<compile_context>
chip_gen: v7x
topology: tpu7x:2x2x1
jax: 0.10.0
libtpu: 0.0.40
codegen_flags: <defaults>
</compile_context>

<pallas_src>
from collections import namedtuple

import jax
import jax.numpy as jnp
from jax.experimental import pallas as pl
from jax.experimental.pallas import tpu as pltpu

Genotype = namedtuple("Genotype", "normal normal_concat reduce reduce_concat")

DARTS_V1 = Genotype(
    normal=[("sep_conv_3x3", 1), ("sep_conv_3x3", 0),
            ("skip_connect", 0), ("sep_conv_3x3", 1),
            ("skip_connect", 0), ("sep_conv_3x3", 1),
            ("sep_conv_3x3", 0), ("skip_connect", 2)],
    normal_concat=[2, 3, 4, 5],
    reduce=[("max_pool_3x3", 0), ("max_pool_3x3", 1),
            ("skip_connect", 2), ("max_pool_3x3", 0),
            ("max_pool_3x3", 0), ("skip_connect", 2),
            ("skip_connect", 2), ("avg_pool_3x3", 0)],
    reduce_concat=[2, 3, 4, 5],
)


# ----------------------------------------------------------------------------
# Fused cell kernel (preprocess -> sep branches -> adds -> concat), genotype
# structure baked in at trace time.
# ----------------------------------------------------------------------------

def _make_cell_kernel(op_names, indices, concat, sep_slot, steps, C):
    def kernel(s0_ref, s1_ref, w0_ref, b0_ref, w1_ref, b1_ref,
               dw1_ref, pw1_ref, sh1_ref, dw2_ref, pw2_ref, sh2_ref,
               o_ref, pad_ref):
        Nb, H, W, _ = o_ref.shape

        # Zero the halo scratch ONCE per grid step; every depthwise call fully
        # overwrites the interior, so the 1-px border stays zero for all of
        # them.  (Per-invocation, so it is safe under megacore grid splitting.)
        pad_ref[...] = jnp.zeros_like(pad_ref)

        def relu_dw3x3(x, dw):
            # ReLU then depthwise 3x3 (stride 1, pad 1); halo built in VMEM
            # scratch.  relu(pad(x)) == pad(relu(x)) since the border is zero.
            # TODO(synk): pltpu.roll-based W shifts + 8-row strip tiling of the
            # accumulator would further cut padded-scratch/VMEM traffic.
            pad_ref[:, 1:H + 1, 1:W + 1, :] = jnp.maximum(x, 0.0)
            acc = jnp.zeros((Nb, H, W, C), jnp.float32)
            for ky in range(3):
                for kx in range(3):
                    acc = acc + pad_ref[:, ky:ky + H, kx:kx + W, :] * dw[ky, kx]
            return acc

        def pw1x1(x, pw, sh):
            # 1x1 conv = channel matmul on the MXU: bf16 operands, f32 acc.
            # BN scale is pre-folded into pw, so the epilogue is just "+shift".
            y = jnp.dot(x.reshape(Nb * H * W, C).astype(jnp.bfloat16), pw,
                        preferred_element_type=jnp.float32)
            return (y + sh).reshape(Nb, H, W, C)

        def preprocess(x_ref, w_ref, sh_ref):
            x = jnp.maximum(x_ref[...], 0.0).astype(jnp.bfloat16)
            cin = x.shape[-1]
            y = jnp.dot(x.reshape(Nb * H * W, cin), w_ref[...],
                        preferred_element_type=jnp.float32)
            return (y + sh_ref[...]).reshape(Nb, H, W, C)

        def sep_conv(x, k):
            h = pw1x1(relu_dw3x3(x, dw1_ref[k]), pw1_ref[k], sh1_ref[k])
            return pw1x1(relu_dw3x3(h, dw2_ref[k]), pw2_ref[k], sh2_ref[k])

        states = [preprocess(s0_ref, w0_ref, b0_ref),
                  preprocess(s1_ref, w1_ref, b1_ref)]
        for i in range(steps):
            hs = []
            for j in (2 * i, 2 * i + 1):
                name, idx = op_names[j], indices[j]
                if name == "sep_conv_3x3":
                    hs.append(sep_conv(states[idx], sep_slot[j]))
                elif name == "skip_connect":
                    hs.append(states[idx])            # Identity (stride 1)
                else:
                    # TODO(synk): pooling / dilated ops of other genotypes.
                    raise NotImplementedError(name)
            # TODO(synk): drop_path is training-only; eval path implemented.
            states.append(hs[0] + hs[1])

        # Lane-dense (len(concat)*C wide) output slab, single store per block.
        o_ref[...] = jnp.concatenate([states[k] for k in concat], axis=-1)

    return kernel


def _pick_batch_block(N, H, W, C, Cin0, Cin1, n_out, budget_bytes=16 << 20):
    """Images per grid step: enough rows (nb*H*W ~ 256) to feed the MXU, but
    bounded by a VMEM budget conservative enough for v7x (64 MiB physical)."""
    per_img = 4 * (2 * H * W * (Cin0 + Cin1 + n_out * C)   # in/out, double-buffered
                   + (H + 2) * (W + 2) * C                 # halo scratch
                   + 8 * H * W * C)                        # live state values
    nb = min(N, max(1, budget_bytes // max(per_img, 1)), max(1, pl.cdiv(256, H * W)))
    nb = int(nb)
    while N % nb:                                          # exact grid, no ragged tail
        nb -= 1
    return nb


def _vmem_limit_bytes(nb, H, W, C, Cin0, Cin1, n_sep, n_out):
    io = 4 * nb * H * W * (Cin0 + Cin1 + n_out * C)
    wts = 2 * C * (Cin0 + Cin1 + 2 * n_sep * C) + 4 * (2 * C + n_sep * 20 * C)
    scratch = 4 * nb * (H + 2) * (W + 2) * C
    live = 4 * nb * H * W * C * 8
    est = 2 * (io + wts) + scratch + live + (4 << 20)
    # Above the 16 MiB v5e default scoped VMEM; under v7x's 64 MiB physical.
    return int(min(48 << 20, max(24 << 20, est)))


def _cell_fused_pallas(s0, s1, p, op_names, indices, concat, sep_slot,
                       steps, C, n_out):
    N, H, W, Cin0 = s0.shape
    Cin1 = s1.shape[-1]
    n_sep = p["dw1"].shape[0]
    nb = _pick_batch_block(N, H, W, C, Cin0, Cin1, n_out)
    kernel = _make_cell_kernel(op_names, indices, concat, sep_slot, steps, C)

    batch_map = lambda n: (n, 0, 0, 0)
    w2 = lambda n: (0, 0)
    w3 = lambda n: (0, 0, 0)
    w4 = lambda n: (0, 0, 0, 0)

    return pl.pallas_call(
        kernel,
        out_shape=jax.ShapeDtypeStruct((N, H, W, n_out * C), jnp.float32),
        grid=(N // nb,),
        in_specs=[
            pl.BlockSpec((nb, H, W, Cin0), batch_map),
            pl.BlockSpec((nb, H, W, Cin1), batch_map),
            pl.BlockSpec((Cin0, C), w2),
            pl.BlockSpec((1, C), w2),
            pl.BlockSpec((Cin1, C), w2),
            pl.BlockSpec((1, C), w2),
            pl.BlockSpec((n_sep, 3, 3, C), w4),
            pl.BlockSpec((n_sep, C, C), w3),
            pl.BlockSpec((n_sep, 1, C), w3),
            pl.BlockSpec((n_sep, 3, 3, C), w4),
            pl.BlockSpec((n_sep, C, C), w3),
            pl.BlockSpec((n_sep, 1, C), w3),
        ],
        out_specs=pl.BlockSpec((nb, H, W, n_out * C), batch_map),
        scratch_shapes=[pltpu.VMEM((nb, H + 2, W + 2, C), jnp.float32)],
        compiler_params=pltpu.CompilerParams(
            dimension_semantics=("parallel",),
            vmem_limit_bytes=_vmem_limit_bytes(nb, H, W, C, Cin0, Cin1,
                                               n_sep, n_out)),
    )(s0, s1, p["pre0_w"], p["pre0_b"], p["pre1_w"], p["pre1_b"],
      p["dw1"], p["pw1"], p["sh1"], p["dw2"], p["pw2"], p["sh2"])


# ----------------------------------------------------------------------------
# Pure-jnp reference (identical folded/stacked params and identical bf16 casts)
# ----------------------------------------------------------------------------

def _cell_ref(s0, s1, p, op_names, indices, concat, sep_slot, steps, C):
    def preprocess(x, w, sh):
        N, H, W_, cin = x.shape
        y = jnp.dot(jnp.maximum(x, 0.0).astype(jnp.bfloat16).reshape(-1, cin),
                    w, preferred_element_type=jnp.float32) + sh
        return y.reshape(N, H, W_, C)

    def relu_dw3x3(x, dw):
        N, H, W_, _ = x.shape
        xp = jnp.pad(jnp.maximum(x, 0.0), ((0, 0), (1, 1), (1, 1), (0, 0)))
        acc = jnp.zeros((N, H, W_, C), jnp.float32)
        for ky in range(3):
            for kx in range(3):
                acc = acc + xp[:, ky:ky + H, kx:kx + W_, :] * dw[ky, kx]
        return acc

    def pw1x1(x, pw, sh):
        N, H, W_, _ = x.shape
        y = jnp.dot(x.astype(jnp.bfloat16).reshape(-1, C), pw,
                    preferred_element_type=jnp.float32) + sh
        return y.reshape(N, H, W_, C)

    def sep_conv(x, k):
        h = pw1x1(relu_dw3x3(x, p["dw1"][k]), p["pw1"][k], p["sh1"][k])
        return pw1x1(relu_dw3x3(h, p["dw2"][k]), p["pw2"][k], p["sh2"][k])

    states = [preprocess(s0, p["pre0_w"], p["pre0_b"]),
              preprocess(s1, p["pre1_w"], p["pre1_b"])]
    for i in range(steps):
        hs = []
        for j in (2 * i, 2 * i + 1):
            name, idx = op_names[j], indices[j]
            if name == "sep_conv_3x3":
                hs.append(sep_conv(states[idx], sep_slot[j]))
            elif name == "skip_connect":
                hs.append(states[idx])
            else:
                raise NotImplementedError(name)
        states.append(hs[0] + hs[1])
    return jnp.concatenate([states[k] for k in concat], axis=-1)


# ----------------------------------------------------------------------------
# Cell forward wrapper (NCHW in/out to match the PyTorch contract)
# ----------------------------------------------------------------------------

def make_cell_forward(genotype, use_pallas=True):
    op_names, indices = zip(*genotype.normal)      # non-reduction cell
    concat = list(genotype.normal_concat)
    steps = len(op_names) // 2
    n_out = len(concat)
    for name in op_names:
        if name not in ("sep_conv_3x3", "skip_connect"):
            # TODO(synk): pooling / dilated-conv ops of other genotypes.
            raise NotImplementedError(name)
    sep_js = [j for j, name in enumerate(op_names) if name == "sep_conv_3x3"]
    sep_slot = {j: r for r, j in enumerate(sep_js)}

    def forward(params, s0_nchw, s1_nchw, drop_prob=0.0):
        del drop_prob  # TODO(synk): drop_path (training-only) not implemented.
        # TODO(synk): NCHW<->NHWC transposes kept only for the PyTorch layout
        # contract; NHWC callers should skip them.
        s0 = jnp.transpose(s0_nchw, (0, 2, 3, 1)).astype(jnp.float32)
        s1 = jnp.transpose(s1_nchw, (0, 2, 3, 1)).astype(jnp.float32)
        C = params["pre0_w"].shape[1]
        if use_pallas:
            out = _cell_fused_pallas(s0, s1, params, op_names, indices, concat,
                                     sep_slot, steps, C, n_out)
        else:
            out = _cell_ref(s0, s1, params, op_names, indices, concat,
                            sep_slot, steps, C)
        return jnp.transpose(out, (0, 3, 1, 2))    # NHWC -> NCHW

    return forward


# ----------------------------------------------------------------------------
# Deterministic parameter init: eval-mode BN folded, scale folded into the
# following 1x1 conv weight (cast to bf16 for the MXU), per-branch weights
# stacked once here (no per-forward stacking).
# ----------------------------------------------------------------------------

def _bn_fold(key, C):
    kg, kb, km, kv = jax.random.split(key, 4)
    gamma = 1.0 + 0.1 * jax.random.normal(kg, (C,), jnp.float32)
    beta = 0.1 * jax.random.normal(kb, (C,), jnp.float32)
    mean = 0.1 * jax.random.normal(km, (C,), jnp.float32)
    var = 0.5 + jnp.abs(jax.random.normal(kv, (C,), jnp.float32))
    scale = gamma / jnp.sqrt(var + 1e-5)
    shift = beta - mean * scale
    return scale.reshape(1, C), shift.reshape(1, C)


def init_cell_params(key, genotype, C_prev_prev, C_prev, C,
                     reduction=False, reduction_prev=False):
    # TODO(synk): FactorizedReduce / stride-2 reduction-cell ops not implemented
    # (this script instantiates the non-reduction DARTS_V1 normal cell).
    assert not reduction and not reduction_prev
    op_names, _ = zip(*genotype.normal)
    sep_js = [j for j, name in enumerate(op_names) if name == "sep_conv_3x3"]
    keys = jax.random.split(key, len(op_names) + 2)

    def relu_conv_bn(k, Cin, Cout):
        kw, kb = jax.random.split(k)
        w = 0.1 * jax.random.normal(kw, (Cin, Cout), jnp.float32)
        scale, shift = _bn_fold(kb, Cout)
        return (w * scale).astype(jnp.bfloat16), shift     # BN scale folded, bf16

    pre0_w, pre0_b = relu_conv_bn(keys[0], C_prev_prev, C)
    pre1_w, pre1_b = relu_conv_bn(keys[1], C_prev, C)

    dw1, pw1, sh1, dw2, pw2, sh2 = [], [], [], [], [], []
    for j in sep_js:
        ks = jax.random.split(keys[2 + j], 6)
        s1_, b1_ = _bn_fold(ks[2], C)
        s2_, b2_ = _bn_fold(ks[5], C)
        dw1.append(0.1 * jax.random.normal(ks[0], (3, 3, C), jnp.float32))
        pw1.append((0.1 * jax.random.normal(ks[1], (C, C), jnp.float32) * s1_)
                   .astype(jnp.bfloat16))
        sh1.append(b1_)
        dw2.append(0.1 * jax.random.normal(ks[3], (3, 3, C), jnp.float32))
        pw2.append((0.1 * jax.random.normal(ks[4], (C, C), jnp.float32) * s2_)
                   .astype(jnp.bfloat16))
        sh2.append(b2_)

    return {
        "pre0_w": pre0_w, "pre0_b": pre0_b,
        "pre1_w": pre1_w, "pre1_b": pre1_b,
        "dw1": jnp.stack(dw1), "pw1": jnp.stack(pw1), "sh1": jnp.stack(sh1),
        "dw2": jnp.stack(dw2), "pw2": jnp.stack(pw2), "sh2": jnp.stack(sh2),
    }


# ----------------------------------------------------------------------------

if __name__ == "__main__":
    N, H, W = 2, 8, 8
    C_prev_prev, C_prev, C = 8, 8, 8

    key = jax.random.PRNGKey(0)
    kp, k0, k1 = jax.random.split(key, 3)
    params = init_cell_params(kp, DARTS_V1, C_prev_prev, C_prev, C)
    s0 = jax.random.normal(k0, (N, C_prev_prev, H, W), jnp.float32)  # NCHW
    s1 = jax.random.normal(k1, (N, C_prev, H, W), jnp.float32)       # NCHW

    cell_fwd = make_cell_forward(DARTS_V1, use_pallas=True)
    cell_ref = make_cell_forward(DARTS_V1, use_pallas=False)

    out = jax.block_until_ready(jax.jit(cell_fwd)(params, s0, s1, 0.0))
    ref = jax.block_until_ready(cell_ref(params, s0, s1, 0.0))

    assert out.shape == (N, len(DARTS_V1.normal_concat) * C, H, W), out.shape
    max_err = float(jnp.max(jnp.abs(out - ref)))
    assert jnp.allclose(out, ref, atol=1e-3, rtol=1e-3), max_err
    print("KERNEL_OK")
</pallas_src>

<mosaic_0001>
module attributes {stable_mosaic.version = 11 : i64} {
  func.func @kernel(%arg0: i32, %arg1: memref<2x8x8x8xf32, #tpu.memory_space<vmem>>, %arg2: memref<2x8x8x8xf32, #tpu.memory_space<vmem>>, %arg3: memref<8x8xbf16, #tpu.memory_space<vmem>>, %arg4: memref<1x8xf32, #tpu.memory_space<vmem>>, %arg5: memref<8x8xbf16, #tpu.memory_space<vmem>>, %arg6: memref<1x8xf32, #tpu.memory_space<vmem>>, %arg7: memref<5x3x3x8xf32, #tpu.memory_space<vmem>>, %arg8: memref<5x8x8xbf16, #tpu.memory_space<vmem>>, %arg9: memref<5x1x8xf32, #tpu.memory_space<vmem>>, %arg10: memref<5x3x3x8xf32, #tpu.memory_space<vmem>>, %arg11: memref<5x8x8xbf16, #tpu.memory_space<vmem>>, %arg12: memref<5x1x8xf32, #tpu.memory_space<vmem>>, %arg13: memref<2x8x8x32xf32, #tpu.memory_space<vmem>>, %arg14: memref<2x10x10x8xf32, #tpu.memory_space<vmem>>) attributes {dimension_semantics = [#tpu.dimension_semantics<parallel>], iteration_bounds = array<i64: 1>, scalar_prefetch = 0 : i64, scratch_operands = 1 : i64, tpu.core_type = #tpu.core_type<tc>, window_params = [{transform_indices = @transform_0, window_bounds = array<i64: 2, 8, 8, 8>}, {transform_indices = @transform_1, window_bounds = array<i64: 2, 8, 8, 8>}, {pipeline_mode = #tpu.pipeline_mode<synchronous>, transform_indices = @transform_2, window_bounds = array<i64: 8, 8>}, {pipeline_mode = #tpu.pipeline_mode<synchronous>, transform_indices = @transform_3, window_bounds = array<i64: 1, 8>}, {pipeline_mode = #tpu.pipeline_mode<synchronous>, transform_indices = @transform_4, window_bounds = array<i64: 8, 8>}, {pipeline_mode = #tpu.pipeline_mode<synchronous>, transform_indices = @transform_5, window_bounds = array<i64: 1, 8>}, {pipeline_mode = #tpu.pipeline_mode<synchronous>, transform_indices = @transform_6, window_bounds = array<i64: 5, 3, 3, 8>}, {pipeline_mode = #tpu.pipeline_mode<synchronous>, transform_indices = @transform_7, window_bounds = array<i64: 5, 8, 8>}, {pipeline_mode = #tpu.pipeline_mode<synchronous>, transform_indices = @transform_8, window_bounds = array<i64: 5, 1, 8>}, {pipeline_mode = #tpu.pipeline_mode<synchronous>, transform_indices = @transform_9, window_bounds = array<i64: 5, 3, 3, 8>}, {pipeline_mode = #tpu.pipeline_mode<synchronous>, transform_indices = @transform_10, window_bounds = array<i64: 5, 8, 8>}, {pipeline_mode = #tpu.pipeline_mode<synchronous>, transform_indices = @transform_11, window_bounds = array<i64: 5, 1, 8>}, {transform_indices = @transform_12, window_bounds = array<i64: 2, 8, 8, 32>}]} {
    %cst = arith.constant 0.000000e+00 : f32
    %0 = vector.broadcast %cst : f32 to vector<2x10x10x8xf32>
    %c0 = arith.constant 0 : index
    %c0_0 = arith.constant 0 : index
    %c0_1 = arith.constant 0 : index
    %c0_2 = arith.constant 0 : index
    %1 = vector.load %arg14[%c0, %c0_0, %c0_1, %c0_2] : memref<2x10x10x8xf32, #tpu.memory_space<vmem>>, vector<2x10x10x8xf32>
    tpu.vector_store %arg14[%c0, %c0_0, %c0_1, %c0_2], %0 {strides = array<i32>} : memref<2x10x10x8xf32, #tpu.memory_space<vmem>>, vector<2x10x10x8xf32>,
    %c0_3 = arith.constant 0 : index
    %c0_4 = arith.constant 0 : index
    %c0_5 = arith.constant 0 : index
    %c0_6 = arith.constant 0 : index
    %2 = vector.load %arg1[%c0_3, %c0_4, %c0_5, %c0_6] : memref<2x8x8x8xf32, #tpu.memory_space<vmem>>, vector<2x8x8x8xf32>
    %cst_7 = arith.constant 0.000000e+00 : f32
    %3 = vector.broadcast %cst_7 : f32 to vector<2x8x8x8xf32>
    %4 = arith.maximumf %2, %3 : vector<2x8x8x8xf32>
    %5 = arith.truncf %4 : vector<2x8x8x8xf32> to vector<2x8x8x8xbf16>
    %6 = vector.shape_cast %5 : vector<2x8x8x8xbf16> to vector<128x8xbf16>
    %c0_8 = arith.constant 0 : index
    %c0_9 = arith.constant 0 : index
    %7 = vector.load %arg3[%c0_8, %c0_9] : memref<8x8xbf16, #tpu.memory_space<vmem>>, vector<8x8xbf16>
    %cst_10 = arith.constant dense<0.000000e+00> : vector<128x8xf32>
    %8 = tpu.matmul %6, %7, %cst_10 {dimension_numbers = #tpu.dot_dimension_numbers<[1], [0], [0], [1], [0, 0, 1, 1], [], []>} : vector<128x8xbf16>, vector<8x8xbf16>, vector<128x8xf32> -> vector<128x8xf32>
    %c0_11 = arith.constant 0 : index
    %c0_12 = arith.constant 0 : index
    %9 = vector.load %arg4[%c0_11, %c0_12] : memref<1x8xf32, #tpu.memory_space<vmem>>, vector<1x8xf32>
    %10 = vector.broadcast %9 : vector<1x8xf32> to vector<128x8xf32>
    %11 = arith.addf %8, %10 : vector<128x8xf32>
    %12 = vector.shape_cast %11 : vector<128x8xf32> to vector<2x8x8x8xf32>
    %c0_13 = arith.constant 0 : index
    %c0_14 = arith.constant 0 : index
    %c0_15 = arith.constant 0 : index
    %c0_16 = arith.constant 0 : index
    %13 = vector.load %arg2[%c0_13, %c0_14, %c0_15, %c0_16] : memref<2x8x8x8xf32, #tpu.memory_space<vmem>>, vector<2x8x8x8xf32>
    %cst_17 = arith.constant 0.000000e+00 : f32
    %14 = vector.broadcast %cst_17 : f32 to vector<2x8x8x8xf32>
    %15 = arith.maximumf %13, %14 : vector<2x8x8x8xf32>
    %16 = arith.truncf %15 : vector<2x8x8x8xf32> to vector<2x8x8x8xbf16>
    %17 = vector.shape_cast %16 : vector<2x8x8x8xbf16> to vector<128x8xbf16>
    %c0_18 = arith.constant 0 : index
    %c0_19 = arith.constant 0 : index
    %18 = vector.load %arg5[%c0_18, %c0_19] : memref<8x8xbf16, #tpu.memory_space<vmem>>, vector<8x8xbf16>
    %cst_20 = arith.constant dense<0.000000e+00> : vector<128x8xf32>
    %19 = tpu.matmul %17, %18, %cst_20 {dimension_numbers = #tpu.dot_dimension_numbers<[1], [0], [0], [1], [0, 0, 1, 1], [], []>} : vector<128x8xbf16>, vector<8x8xbf16>, vector<128x8xf32> -> vector<128x8xf32>
    %c0_21 = arith.constant 0 : index
    %c0_22 = arith.constant 0 : index
    %20 = vector.load %arg6[%c0_21, %c0_22] : memref<1x8xf32, #tpu.memory_space<vmem>>, vector<1x8xf32>
    %21 = vector.broadcast %20 : vector<1x8xf32> to vector<128x8xf32>
    %22 = arith.addf %19, %21 : vector<128x8xf32>
    %23 = vector.shape_cast %22 : vector<128x8xf32> to vector<2x8x8x8xf32>
    %c0_23 = arith.constant 0 : index
    %c0_24 = arith.constant 0 : index
    %c0_25 = arith.constant 0 : index
    %c0_26 = arith.constant 0 : index
    %24 = vector.load %arg7[%c0_23, %c0_24, %c0_25, %c0_26] : memref<5x3x3x8xf32, #tpu.memory_space<vmem>>, vector<1x3x3x8xf32>
    %25 = vector.shape_cast %24 : vector<1x3x3x8xf32> to vector<3x3x8xf32>
    %cst_27 = arith.constant 0.000000e+00 : f32
    %26 = vector.broadcast %cst_27 : f32 to vector<2x8x8x8xf32>
    %27 = arith.maximumf %23, %26 : vector<2x8x8x8xf32>
    %c0_28 = arith.constant 0 : index
    %c1 = arith.constant 1 : index
    %c1_29 = arith.constant 1 : index
    %c0_30 = arith.constant 0 : index
    %28 = vector.load %arg14[%c0_28, %c1, %c1_29, %c0_30] : memref<2x10x10x8xf32, #tpu.memory_space<vmem>>, vector<2x8x8x8xf32>
    tpu.vector_store %arg14[%c0_28, %c1, %c1_29, %c0_30], %27 {strides = array<i32>} : memref<2x10x10x8xf32, #tpu.memory_space<vmem>>, vector<2x8x8x8xf32>,
    %cst_31 = arith.constant 0.000000e+00 : f32
    %29 = vector.broadcast %cst_31 : f32 to vector<2x8x8x8xf32>
    %c0_32 = arith.constant 0 : index
    %c0_33 = arith.constant 0 : index
    %c0_34 = arith.constant 0 : index
    %c0_35 = arith.constant 0 : index
    %30 = vector.load %arg14[%c0_32, %c0_33, %c0_34, %c0_35] : memref<2x10x10x8xf32, #tpu.memory_space<vmem>>, vector<2x8x8x8xf32>
    %31 = vector.extract_strided_slice %25 {offsets = [0, 0, 0], sizes = [1, 1, 8], strides = [1, 1, 1]} : vector<3x3x8xf32> to vector<1x1x8xf32>
    %32 = vector.shape_cast %31 : vector<1x1x8xf32> to vector<8xf32>
    %33 = vector.shape_cast %32 : vector<8xf32> to vector<1x1x1x8xf32>
    %34 = vector.broadcast %33 : vector<1x1x1x8xf32> to vector<2x8x8x8xf32>
    %35 = arith.mulf %30, %34 : vector<2x8x8x8xf32>
    %36 = arith.addf %29, %35 : vector<2x8x8x8xf32>
    %c0_36 = arith.constant 0 : index
    %c0_37 = arith.constant 0 : index
    %c1_38 = arith.constant 1 : index
    %c0_39 = arith.constant 0 : index
    %37 = vector.load %arg14[%c0_36, %c0_37, %c1_38, %c0_39] : memref<2x10x10x8xf32, #tpu.memory_space<vmem>>, vector<2x8x8x8xf32>
    %38 = vector.extract_strided_slice %25 {offsets = [0, 1, 0], sizes = [1, 1, 8], strides = [1, 1, 1]} : vector<3x3x8xf32> to vector<1x1x8xf32>
    %39 = vector.shape_cast %38 : vector<1x1x8xf32> to vector<8xf32>
    %40 = vector.shape_cast %39 : vector<8xf32> to vector<1x1x1x8xf32>
    %41 = vector.broadcast %40 : vector<1x1x1x8xf32> to vector<2x8x8x8xf32>
    %42 = arith.mulf %37, %41 : vector<2x8x8x8xf32>
    %43 = arith.addf %36, %42 : vector<2x8x8x8xf32>
    %c0_40 = arith.constant 0 : index
    %c0_41 = arith.constant 0 : index
    %c2 = arith.constant 2 : index
    %c0_42 = arith.constant 0 : index
    %44 = vector.load %arg14[%c0_40, %c0_41, %c2, %c0_42] : memref<2x10x10x8xf32, #tpu.memory_space<vmem>>, vector<2x8x8x8xf32>
    %45 = vector.extract_strided_slice %25 {offsets = [0, 2, 0], sizes = [1, 1, 8], strides = [1, 1, 1]} : vector<3x3x8xf32> to vector<1x1x8xf32>
    %46 = vector.shape_cast %45 : vector<1x1x8xf32> to vector<8xf32>
    %47 = vector.shape_cast %46 : vector<8xf32> to vector<1x1x1x8xf32>
    %48 = vector.broadcast %47 : vector<1x1x1x8xf32> to vector<2x8x8x8xf32>
    %49 = arith.mulf %44, %48 : vector<2x8x8x8xf32>
    %50 = arith.addf %43, %49 : vector<2x8x8x8xf32>
    %c0_43 = arith.constant 0 : index
    %c1_44 = arith.constant 1 : index
    %c0_45 = arith.constant 0 : index
    %c0_46 = arith.constant 0 : index
    %51 = vector.load %arg14[%c0_43, %c1_44, %c0_45, %c0_46] : memref<2x10x10x8xf32, #tpu.memory_space<vmem>>, vector<2x8x8x8xf32>
    %52 = vector.extract_strided_slice %25 {offsets = [1, 0, 0], sizes = [1, 1, 8], strides = [1, 1, 1]} : vector<3x3x8xf32> to vector<1x1x8xf32>
    %53 = vector.shape_cast %52 : vector<1x1x8xf32> to vector<8xf32>
    %54 = vector.shape_cast %53 : vector<8xf32> to vector<1x1x1x8xf32>
    %55 = vector.broadcast %54 : vector<1x1x1x8xf32> to vector<2x8x8x8xf32>
    %56 = arith.mulf %51, %55 : vector<2x8x8x8xf32>
    %57 = arith.addf %50, %56 : vector<2x8x8x8xf32>
    %c0_47 = arith.constant 0 : index
    %c1_48 = arith.constant 1 : index
    %c1_49 = arith.constant 1 : index
    %c0_50 = arith.constant 0 : index
    %58 = vector.load %arg14[%c0_47, %c1_48, %c1_49, %c0_50] : memref<2x10x10x8xf32, #tpu.memory_space<vmem>>, vector<2x8x8x8xf32>
    %59 = vector.extract_strided_slice %25 {offsets = [1, 1, 0], sizes = [1, 1, 8], strides = [1, 1, 1]} : vector<3x3x8xf32> to vector<1x1x8xf32>
    %60 = vector.shape_cast %59 : vector<1x1x8xf32> to vector<8xf32>
    %61 = vector.shape_cast %60 : vector<8xf32> to vector<1x1x1x8xf32>
    %62 = vector.broadcast %61 : vector<1x1x1x8xf32> to vector<2x8x8x8xf32>
    %63 = arith.mulf %58, %62 : vector<2x8x8x8xf32>
    %64 = arith.addf %57, %63 : vector<2x8x8x8xf32>
    %c0_51 = arith.constant 0 : index
    %c1_52 = arith.constant 1 : index
    %c2_53 = arith.constant 2 : index
    %c0_54 = arith.constant 0 : index
    %65 = vector.load %arg14[%c0_51, %c1_52, %c2_53, %c0_54] : memref<2x10x10x8xf32, #tpu.memory_space<vmem>>, vector<2x8x8x8xf32>
    %66 = vector.extract_strided_slice %25 {offsets = [1, 2, 0], sizes = [1, 1, 8], strides = [1, 1, 1]} : vector<3x3x8xf32> to vector<1x1x8xf32>
    %67 = vector.shape_cast %66 : vector<1x1x8xf32> to vector<8xf32>
    %68 = vector.shape_cast %67 : vector<8xf32> to vector<1x1x1x8xf32>
    %69 = vector.broadcast %68 : vector<1x1x1x8xf32> to vector<2x8x8x8xf32>
    %70 = arith.mulf %65, %69 : vector<2x8x8x8xf32>
    %71 = arith.addf %64, %70 : vector<2x8x8x8xf32>
    %c0_55 = arith.constant 0 : index
    %c2_56 = arith.constant 2 : index
    %c0_57 = arith.constant 0 : index
    %c0_58 = arith.constant 0 : index
    %72 = vector.load %arg14[%c0_55, %c2_56, %c0_57, %c0_58] : memref<2x10x10x8xf32, #tpu.memory_space<vmem>>, vector<2x8x8x8xf32>
    %73 = vector.extract_strided_slice %25 {offsets = [2, 0, 0], sizes = [1, 1, 8], strides = [1, 1, 1]} : vector<3x3x8xf32> to vector<1x1x8xf32>
    %74 = vector.shape_cast %73 : vector<1x1x8xf32> to vector<8xf32>
    %75 = vector.shape_cast %74 : vector<8xf32> to vector<1x1x1x8xf32>
    %76 = vector.broadcast %75 : vector<1x1x1x8xf32> to vector<2x8x8x8xf32>
    %77 = arith.mulf %72, %76 : vector<2x8x8x8xf32>
    %78 = arith.addf %71, %77 : vector<2x8x8x8xf32>
    %c0_59 = arith.constant 0 : index
    %c2_60 = arith.constant 2 : index
    %c1_61 = arith.constant 1 : index
    %c0_62 = arith.constant 0 : index
    %79 = vector.load %arg14[%c0_59, %c2_60, %c1_61, %c0_62] : memref<2x10x10x8xf32, #tpu.memory_space<vmem>>, vector<2x8x8x8xf32>
    %80 = vector.extract_strided_slice %25 {offsets = [2, 1, 0], sizes = [1, 1, 8], strides = [1, 1, 1]} : vector<3x3x8xf32> to vector<1x1x8xf32>
    %81 = vector.shape_cast %80 : vector<1x1x8xf32> to vector<8xf32>
    %82 = vector.shape_cast %81 : vector<8xf32> to vector<1x1x1x8xf32>
    %83 = vector.broadcast %82 : vector<1x1x1x8xf32> to vector<2x8x8x8xf32>
    %84 = arith.mulf %79, %83 : vector<2x8x8x8xf32>
    %85 = arith.addf %78, %84 : vector<2x8x8x8xf32>
    %c0_63 = arith.constant 0 : index
    %c2_64 = arith.constant 2 : index
    %c2_65 = arith.constant 2 : index
    %c0_66 = arith.constant 0 : index
    %86 = vector.load %arg14[%c0_63, %c2_64, %c2_65, %c0_66] : memref<2x10x10x8xf32, #tpu.memory_space<vmem>>, vector<2x8x8x8xf32>
    %87 = vector.extract_strided_slice %25 {offsets = [2, 2, 0], sizes = [1, 1, 8], strides = [1, 1, 1]} : vector<3x3x8xf32> to vector<1x1x8xf32>
    %88 = vector.shape_cast %87 : vector<1x1x8xf32> to vector<8xf32>
    %89 = vector.shape_cast %88 : vector<8xf32> to vector<1x1x1x8xf32>
    %90 = vector.broadcast %89 : vector<1x1x1x8xf32> to vector<2x8x8x8xf32>
    %91 = arith.mulf %86, %90 : vector<2x8x8x8xf32>
    %92 = arith.addf %85, %91 : vector<2x8x8x8xf32>
    %c0_67 = arith.constant 0 : index
    %c0_68 = arith.constant 0 : index
    %c0_69 = arith.constant 0 : index
    %93 = vector.load %arg8[%c0_67, %c0_68, %c0_69] : memref<5x8x8xbf16, #tpu.memory_space<vmem>>, vector<1x8x8xbf16>
    %94 = vector.shape_cast %93 : vector<1x8x8xbf16> to vector<8x8xbf16>
    %c0_70 = arith.constant 0 : index
    %c0_71 = arith.constant 0 : index
    %c0_72 = arith.constant 0 : index
    %95 = vector.load %arg9[%c0_70, %c0_71, %c0_72] : memref<5x1x8xf32, #tpu.memory_space<vmem>>, vector<1x1x8xf32>
    %96 = vector.shape_cast %95 : vector<1x1x8xf32> to vector<1x8xf32>
    %97 = vector.shape_cast %92 : vector<2x8x8x8xf32> to vector<128x8xf32>
    %98 = arith.truncf %97 : vector<128x8xf32> to vector<128x8xbf16>
    %cst_73 = arith.constant dense<0.000000e+00> : vector<128x8xf32>
    %99 = tpu.matmul %98, %94, %cst_73 {dimension_numbers = #tpu.dot_dimension_numbers<[1], [0], [0], [1], [0, 0, 1, 1], [], []>} : vector<128x8xbf16>, vector<8x8xbf16>, vector<128x8xf32> -> vector<128x8xf32>
    %100 = vector.broadcast %96 : vector<1x8xf32> to vector<128x8xf32>
    %101 = arith.addf %99, %100 : vector<128x8xf32>
    %102 = vector.shape_cast %101 : vector<128x8xf32> to vector<2x8x8x8xf32>
    %c0_74 = arith.constant 0 : index
    %c0_75 = arith.constant 0 : index
    %c0_76 = arith.constant 0 : index
    %c0_77 = arith.constant 0 : index
    %103 = vector.load %arg10[%c0_74, %c0_75, %c0_76, %c0_77] : memref<5x3x3x8xf32, #tpu.memory_space<vmem>>, vector<1x3x3x8xf32>
    %104 = vector.shape_cast %103 : vector<1x3x3x8xf32> to vector<3x3x8xf32>
    %cst_78 = arith.constant 0.000000e+00 : f32
    %105 = vector.broadcast %cst_78 : f32 to vector<2x8x8x8xf32>
    %106 = arith.maximumf %102, %105 : vector<2x8x8x8xf32>
    %c0_79 = arith.constant 0 : index
    %c1_80 = arith.constant 1 : index
    %c1_81 = arith.constant 1 : index
    %c0_82 = arith.constant 0 : index
    %107 = vector.load %arg14[%c0_79, %c1_80, %c1_81, %c0_82] : memref<2x10x10x8xf32, #tpu.memory_space<vmem>>, vector<2x8x8x8xf32>
    tpu.vector_store %arg14[%c0_79, %c1_80, %c1_81, %c0_82], %106 {strides = array<i32>} : memref<2x10x10x8xf32, #tpu.memory_space<vmem>>, vector<2x8x8x8xf32>,
    %cst_83 = arith.constant 0.000000e+00 : f32
    %108 = vector.broadcast %cst_83 : f32 to vector<2x8x8x8xf32>
    %c0_84 = arith.constant 0 : index
    %c0_85 = arith.constant 0 : index
    %c0_86 = arith.constant 0 : index
    %c0_87 = arith.constant 0 : index
    %109 = vector.load %arg14[%c0_84, %c0_85, %c0_86, %c0_87] : memref<2x10x10x8xf32, #tpu.memory_space<vmem>>, vector<2x8x8x8xf32>
    %110 = vector.extract_strided_slice %104 {offsets = [0, 0, 0], sizes = [1, 1, 8], strides = [1, 1, 1]} : vector<3x3x8xf32> to vector<1x1x8xf32>
    %111 = vector.shape_cast %110 : vector<1x1x8xf32> to vector<8xf32>
    %112 = vector.shape_cast %111 : vector<8xf32> to vector<1x1x1x8xf32>
    %113 = vector.broadcast %112 : vector<1x1x1x8xf32> to vector<2x8x8x8xf32>
    %114 = arith.mulf %109, %113 : vector<2x8x8x8xf32>
    %115 = arith.addf %108, %114 : vector<2x8x8x8xf32>
    %c0_88 = arith.constant 0 : index
    %c0_89 = arith.constant 0 : index
    %c1_90 = arith.constant 1 : index
    %c0_91 = arith.constant 0 : index
    %116 = vector.load %arg14[%c0_88, %c0_89, %c1_90, %c0_91] : memref<2x10x10x8xf32, #tpu.memory_space<vmem>>, vector<2x8x8x8xf32>
    %117 = vector.extract_strided_slice %104 {offsets = [0, 1, 0], sizes = [1, 1, 8], strides = [1, 1, 1]} : vector<3x3x8xf32> to vector<1x1x8xf32>
    %118 = vector.shape_cast %117 : vector<1x1x8xf32> to vector<8xf32>
    %119 = vector.shape_cast %118 : vector<8xf32> to vector<1x1x1x8xf32>
    %120 = vector.broadcast %119 : vector<1x1x1x8xf32> to vector<2x8x8x8xf32>
    %121 = arith.mulf %116, %120 : vector<2x8x8x8xf32>
    %122 = arith.addf %115, %121 : vector<2x8x8x8xf32>
    %c0_92 = arith.constant 0 : index
    %c0_93 = arith.constant 0 : index
    %c2_94 = arith.constant 2 : index
    %c0_95 = arith.constant 0 : index
    %123 = vector.load %arg14[%c0_92, %c0_93, %c2_94, %c0_95] : memref<2x10x10x8xf32, #tpu.memory_space<vmem>>, vector<2x8x8x8xf32>
    %124 = vector.extract_strided_slice %104 {offsets = [0, 2, 0], sizes = [1, 1, 8], strides = [1, 1, 1]} : vector<3x3x8xf32> to vector<1x1x8xf32>
    %125 = vector.shape_cast %124 : vector<1x1x8xf32> to vector<8xf32>
    %126 = vector.shape_cast %125 : vector<8xf32> to vector<1x1x1x8xf32>
    %127 = vector.broadcast %126 : vector<1x1x1x8xf32> to vector<2x8x8x8xf32>
    %128 = arith.mulf %123, %127 : vector<2x8x8x8xf32>
    %129 = arith.addf %122, %128 : vector<2x8x8x8xf32>
    %c0_96 = arith.constant 0 : index
    %c1_97 = arith.constant 1 : index
    %c0_98 = arith.constant 0 : index
    %c0_99 = arith.constant 0 : index
    %130 = vector.load %arg14[%c0_96, %c1_97, %c0_98, %c0_99] : memref<2x10x10x8xf32, #tpu.memory_space<vmem>>, vector<2x8x8x8xf32>
    %131 = vector.extract_strided_slice %104 {offsets = [1, 0, 0], sizes = [1, 1, 8], strides = [1, 1, 1]} : vector<3x3x8xf32> to vector<1x1x8xf32>
    %132 = vector.shape_cast %131 : vector<1x1x8xf32> to vector<8xf32>
    %133 = vector.shape_cast %132 : vector<8xf32> to vector<1x1x1x8xf32>
    %134 = vector.broadcast %133 : vector<1x1x1x8xf32> to vector<2x8x8x8xf32>
    %135 = arith.mulf %130, %134 : vector<2x8x8x8xf32>
    %136 = arith.addf %129, %135 : vector<2x8x8x8xf32>
    %c0_100 = arith.constant 0 : index
    %c1_101 = arith.constant 1 : index
    %c1_102 = arith.constant 1 : index
    %c0_103 = arith.constant 0 : index
    %137 = vector.load %arg14[%c0_100, %c1_101, %c1_102, %c0_103] : memref<2x10x10x8xf32, #tpu.memory_space<vmem>>, vector<2x8x8x8xf32>
    %138 = vector.extract_strided_slice %104 {offsets = [1, 1, 0], sizes = [1, 1, 8], strides = [1, 1, 1]} : vector<3x3x8xf32> to vector<1x1x8xf32>
    %139 = vector.shape_cast %138 : vector<1x1x8xf32> to vector<8xf32>
    %140 = vector.shape_cast %139 : vector<8xf32> to vector<1x1x1x8xf32>
    %141 = vector.broadcast %140 : vector<1x1x1x8xf32> to vector<2x8x8x8xf32>
    %142 = arith.mulf %137, %141 : vector<2x8x8x8xf32>
    %143 = arith.addf %136, %142 : vector<2x8x8x8xf32>
    %c0_104 = arith.constant 0 : index
    %c1_105 = arith.constant 1 : index
    %c2_106 = arith.constant 2 : index
    %c0_107 = arith.constant 0 : index
    %144 = vector.load %arg14[%c0_104, %c1_105, %c2_106, %c0_107] : memref<2x10x10x8xf32, #tpu.memory_space<vmem>>, vector<2x8x8x8xf32>
    %145 = vector.extract_strided_slice %104 {offsets = [1, 2, 0], sizes = [1, 1, 8], strides = [1, 1, 1]} : vector<3x3x8xf32> to vector<1x1x8xf32>
    %146 = vector.shape_cast %145 : vector<1x1x8xf32> to vector<8xf32>
    %147 = vector.shape_cast %146 : vector<8xf32> to vector<1x1x1x8xf32>
    %148 = vector.broadcast %147 : vector<1x1x1x8xf32> to vector<2x8x8x8xf32>
    %149 = arith.mulf %144, %148 : vector<2x8x8x8xf32>
    %150 = arith.addf %143, %149 : vector<2x8x8x8xf32>
    %c0_108 = arith.constant 0 : index
    %c2_109 = arith.constant 2 : index
    %c0_110 = arith.constant 0 : index
    %c0_111 = arith.constant 0 : index
    %151 = vector.load %arg14[%c0_108, %c2_109, %c0_110, %c0_111] : memref<2x10x10x8xf32, #tpu.memory_space<vmem>>, vector<2x8x8x8xf32>
    %152 = vector.extract_strided_slice %104 {offsets = [2, 0, 0], sizes = [1, 1, 8], strides = [1, 1, 1]} : vector<3x3x8xf32> to vector<1x1x8xf32>
    %153 = vector.shape_cast %152 : vector<1x1x8xf32> to vector<8xf32>
    %154 = vector.shape_cast %153 : vector<8xf32> to vector<1x1x1x8xf32>
    %155 = vector.broadcast %154 : vector<1x1x1x8xf32> to vector<2x8x8x8xf32>
    %156 = arith.mulf %151, %155 : vector<2x8x8x8xf32>
    %157 = arith.addf %150, %156 : vector<2x8x8x8xf32>
    %c0_112 = arith.constant 0 : index
    %c2_113 = arith.constant 2 : index
    %c1_114 = arith.constant 1 : index
    %c0_115 = arith.constant 0 : index
    %158 = vector.load %arg14[%c0_112, %c2_113, %c1_114, %c0_115] : memref<2x10x10x8xf32, #tpu.memory_space<vmem>>, vector<2x8x8x8xf32>
    %159 = vector.extract_strided_slice %104 {offsets = [2, 1, 0], sizes = [1, 1, 8], strides = [1, 1, 1]} : vector<3x3x8xf32> to vector<1x1x8xf32>
    %160 = vector.shape_cast %159 : vector<1x1x8xf32> to vector<8xf32>
    %161 = vector.shape_cast %160 : vector<8xf32> to vector<1x1x1x8xf32>
    %162 = vector.broadcast %161 : vector<1x1x1x8xf32> to vector<2x8x8x8xf32>
    %163 = arith.mulf %158, %162 : vector<2x8x8x8xf32>
    %164 = arith.addf %157, %163 : vector<2x8x8x8xf32>
    %c0_116 = arith.constant 0 : index
    %c2_117 = arith.constant 2 : index
    %c2_118 = arith.constant 2 : index
    %c0_119 = arith.constant 0 : index
    %165 = vector.load %arg14[%c0_116, %c2_117, %c2_118, %c0_119] : memref<2x10x10x8xf32, #tpu.memory_space<vmem>>, vector<2x8x8x8xf32>
    %166 = vector.extract_strided_slice %104 {offsets = [2, 2, 0], sizes = [1, 1, 8], strides = [1, 1, 1]} : vector<3x3x8xf32> to vector<1x1x8xf32>
    %167 = vector.shape_cast %166 : vector<1x1x8xf32> to vector<8xf32>
    %168 = vector.shape_cast %167 : vector<8xf32> to vector<1x1x1x8xf32>
    %169 = vector.broadcast %168 : vector<1x1x1x8xf32> to vector<2x8x8x8xf32>
    %170 = arith.mulf %165, %169 : vector<2x8x8x8xf32>
    %171 = arith.addf %164, %170 : vector<2x8x8x8xf32>
    %c0_120 = arith.constant 0 : index
    %c0_121 = arith.constant 0 : index
    %c0_122 = arith.constant 0 : index
    %172 = vector.load %arg11[%c0_120, %c0_121, %c0_122] : memref<5x8x8xbf16, #tpu.memory_space<vmem>>, vector<1x8x8xbf16>
    %173 = vector.shape_cast %172 : vector<1x8x8xbf16> to vector<8x8xbf16>
    %c0_123 = arith.constant 0 : index
    %c0_124 = arith.constant 0 : index
    %c0_125 = arith.constant 0 : index
    %174 = vector.load %arg12[%c0_123, %c0_124, %c0_125] : memref<5x1x8xf32, #tpu.memory_space<vmem>>, vector<1x1x8xf32>
    %175 = vector.shape_cast %174 : vector<1x1x8xf32> to vector<1x8xf32>
    %176 = vector.shape_cast %171 : vector<2x8x8x8xf32> to vector<128x8xf32>
    %177 = arith.truncf %176 : vector<128x8xf32> to vector<128x8xbf16>
    %cst_126 = arith.constant dense<0.000000e+00> : vector<128x8xf32>
    %178 = tpu.matmul %177, %173, %cst_126 {dimension_numbers = #tpu.dot_dimension_numbers<[1], [0], [0], [1], [0, 0, 1, 1], [], []>} : vector<128x8xbf16>, vector<8x8xbf16>, vector<128x8xf32> -> vector<128x8xf32>
    %179 = vector.broadcast %175 : vector<1x8xf32> to vector<128x8xf32>
    %180 = arith.addf %178, %179 : vector<128x8xf32>
    %181 = vector.shape_cast %180 : vector<128x8xf32> to vector<2x8x8x8xf32>
    %c1_127 = arith.constant 1 : index
    %c0_128 = arith.constant 0 : index
    %c0_129 = arith.constant 0 : index
    %c0_130 = arith.constant 0 : index
    %182 = vector.load %arg7[%c1_127, %c0_128, %c0_129, %c0_130] : memref<5x3x3x8xf32, #tpu.memory_space<vmem>>, vector<1x3x3x8xf32>
    %183 = vector.shape_cast %182 : vector<1x3x3x8xf32> to vector<3x3x8xf32>
    %cst_131 = arith.constant 0.000000e+00 : f32
    %184 = vector.broadcast %cst_131 : f32 to vector<2x8x8x8xf32>
    %185 = arith.maximumf %12, %184 : vector<2x8x8x8xf32>
    %c0_132 = arith.constant 0 : index
    %c1_133 = arith.constant 1 : index
    %c1_134 = arith.constant 1 : index
    %c0_135 = arith.constant 0 : index
    %186 = vector.load %arg14[%c0_132, %c1_133, %c1_134, %c0_135] : memref<2x10x10x8xf32, #tpu.memory_space<vmem>>, vector<2x8x8x8xf32>
    tpu.vector_store %arg14[%c0_132, %c1_133, %c1_134, %c0_135], %185 {strides = array<i32>} : memref<2x10x10x8xf32, #tpu.memory_space<vmem>>, vector<2x8x8x8xf32>,
    %cst_136 = arith.constant 0.000000e+00 : f32
    %187 = vector.broadcast %cst_136 : f32 to vector<2x8x8x8xf32>
    %c0_137 = arith.constant 0 : index
    %c0_138 = arith.constant 0 : index
    %c0_139 = arith.constant 0 : index
    %c0_140 = arith.constant 0 : index
    %188 = vector.load %arg14[%c0_137, %c0_138, %c0_139, %c0_140] : memref<2x10x10x8xf32, #tpu.memory_space<vmem>>, vector<2x8x8x8xf32>
    %189 = vector.extract_strided_slice %183 {offsets = [0, 0, 0], sizes = [1, 1, 8], strides = [1, 1, 1]} : vector<3x3x8xf32> to vector<1x1x8xf32>
    %190 = vector.shape_cast %189 : vector<1x1x8xf32> to vector<8xf32>
    %191 = vector.shape_cast %190 : vector<8xf32> to vector<1x1x1x8xf32>
    %192 = vector.broadcast %191 : vector<1x1x1x8xf32> to vector<2x8x8x8xf32>
    %193 = arith.mulf %188, %192 : vector<2x8x8x8xf32>
    %194 = arith.addf %187, %193 : vector<2x8x8x8xf32>
    %c0_141 = arith.constant 0 : index
    %c0_142 = arith.constant 0 : index
    %c1_143 = arith.constant 1 : index
    %c0_144 = arith.constant 0 : index
    %195 = vector.load %arg14[%c0_141, %c0_142, %c1_143, %c0_144] : memref<2x10x10x8xf32, #tpu.memory_space<vmem>>, vector<2x8x8x8xf32>
    %196 = vector.extract_strided_slice %183 {offsets = [0, 1, 0], sizes = [1, 1, 8], strides = [1, 1, 1]} : vector<3x3x8xf32> to vector<1x1x8xf32>
    %197 = vector.shape_cast %196 : vector<1x1x8xf32> to vector<8xf32>
    %198 = vector.shape_cast %197 : vector<8xf32> to vector<1x1x1x8xf32>
    %199 = vector.broadcast %198 : vector<1x1x1x8xf32> to vector<2x8x8x8xf32>
    %200 = arith.mulf %195, %199 : vector<2x8x8x8xf32>
    %201 = arith.addf %194, %200 : vector<2x8x8x8xf32>
    %c0_145 = arith.constant 0 : index
    %c0_146 = arith.constant 0 : index
    %c2_147 = arith.constant 2 : index
    %c0_148 = arith.constant 0 : index
    %202 = vector.load %arg14[%c0_145, %c0_146, %c2_147, %c0_148] : memref<2x10x10x8xf32, #tpu.memory_space<vmem>>, vector<2x8x8x8xf32>
    %203 = vector.extract_strided_slice %183 {offsets = [0, 2, 0], sizes = [1, 1, 8], strides = [1, 1, 1]} : vector<3x3x8xf32> to vector<1x1x8xf32>
    %204 = vector.shape_cast %203 : vector<1x1x8xf32> to vector<8xf32>
    %205 = vector.shape_cast %204 : vector<8xf32> to vector<1x1x1x8xf32>
    %206 = vector.broadcast %205 : vector<1x1x1x8xf32> to vector<2x8x8x8xf32>
    %207 = arith.mulf %202, %206 : vector<2x8x8x8xf32>
    %208 = arith.addf %201, %207 : vector<2x8x8x8xf32>
    %c0_149 = arith.constant 0 : index
    %c1_150 = arith.constant 1 : index
    %c0_151 = arith.constant 0 : index
    %c0_152 = arith.constant 0 : index
    %209 = vector.load %arg14[%c0_149, %c1_150, %c0_151, %c0_152] : memref<2x10x10x8xf32, #tpu.memory_space<vmem>>, vector<2x8x8x8xf32>
    %210 = vector.extract_strided_slice %183 {offsets = [1, 0, 0], sizes = [1, 1, 8], strides = [1, 1, 1]} : vector<3x3x8xf32> to vector<1x1x8xf32>
    %211 = vector.shape_cast %210 : vector<1x1x8xf32> to vector<8xf32>
    %212 = vector.shape_cast %211 : vector<8xf32> to vector<1x1x1x8xf32>
    %213 = vector.broadcast %212 : vector<1x1x1x8xf32> to vector<2x8x8x8xf32>
    %214 = arith.mulf %209, %213 : vector<2x8x8x8xf32>
    %215 = arith.addf %208, %214 : vector<2x8x8x8xf32>
    %c0_153 = arith.constant 0 : index
    %c1_154 = arith.constant 1 : index
    %c1_155 = arith.constant 1 : index
    %c0_156 = arith.constant 0 : index
    %216 = vector.load %arg14[%c0_153, %c1_154, %c1_155, %c0_156] : memref<2x10x10x8xf32, #tpu.memory_space<vmem>>, vector<2x8x8x8xf32>
    %217 = vector.extract_strided_slice %183 {offsets = [1, 1, 0], sizes = [1, 1, 8], strides = [1, 1, 1]} : vector<3x3x8xf32> to vector<1x1x8xf32>
    %218 = vector.shape_cast %217 : vector<1x1x8xf32> to vector<8xf32>
    %219 = vector.shape_cast %218 : vector<8xf32> to vector<1x1x1x8xf32>
    %220 = vector.broadcast %219 : vector<1x1x1x8xf32> to vector<2x8x8x8xf32>
    %221 = arith.mulf %216, %220 : vector<2x8x8x8xf32>
    %222 = arith.addf %215, %221 : vector<2x8x8x8xf32>
    %c0_157 = arith.constant 0 : index
    %c1_158 = arith.constant 1 : index
    %c2_159 = arith.constant 2 : index
    %c0_160 = arith.constant 0 : index
    %223 = vector.load %arg14[%c0_157, %c1_158, %c2_159, %c0_160] : memref<2x10x10x8xf32, #tpu.memory_space<vmem>>, vector<2x8x8x8xf32>
    %224 = vector.extract_strided_slice %183 {offsets = [1, 2, 0], sizes = [1, 1, 8], strides = [1, 1, 1]} : vector<3x3x8xf32> to vector<1x1x8xf32>
    %225 = vector.shape_cast %224 : vector<1x1x8xf32> to vector<8xf32>
    %226 = vector.shape_cast %225 : vector<8xf32> to vector<1x1x1x8xf32>
    %227 = vector.broadcast %226 : vector<1x1x1x8xf32> to vector<2x8x8x8xf32>
    %228 = arith.mulf %223, %227 : vector<2x8x8x8xf32>
    %229 = arith.addf %222, %228 : vector<2x8x8x8xf32>
    %c0_161 = arith.constant 0 : index
    %c2_162 = arith.constant 2 : index
    %c0_163 = arith.constant 0 : index
    %c0_164 = arith.constant 0 : index
    %230 = vector.load %arg14[%c0_161, %c2_162, %c0_163, %c0_164] : memref<2x10x10x8xf32, #tpu.memory_space<vmem>>, vector<2x8x8x8xf32>
    %231 = vector.extract_strided_slice %183 {offsets = [2, 0, 0], sizes = [1, 1, 8], strides = [1, 1, 1]} : vector<3x3x8xf32> to vector<1x1x8xf32>
    %232 = vector.shape_cast %231 : vector<1x1x8xf32> to vector<8xf32>
    %233 = vector.shape_cast %232 : vector<8xf32> to vector<1x1x1x8xf32>
    %234 = vector.broadcast %233 : vector<1x1x1x8xf32> to vector<2x8x8x8xf32>
    %235 = arith.mulf %230, %234 : vector<2x8x8x8xf32>
    %236 = arith.addf %229, %235 : vector<2x8x8x8xf32>
    %c0_165 = arith.constant 0 : index
    %c2_166 = arith.constant 2 : index
    %c1_167 = arith.constant 1 : index
    %c0_168 = arith.constant 0 : index
    %237 = vector.load %arg14[%c0_165, %c2_166, %c1_167, %c0_168] : memref<2x10x10x8xf32, #tpu.memory_space<vmem>>, vector<2x8x8x8xf32>
    %238 = vector.extract_strided_slice %183 {offsets = [2, 1, 0], sizes = [1, 1, 8], strides = [1, 1, 1]} : vector<3x3x8xf32> to vector<1x1x8xf32>
    %239 = vector.shape_cast %238 : vector<1x1x8xf32> to vector<8xf32>
    %240 = vector.shape_cast %239 : vector<8xf32> to vector<1x1x1x8xf32>
    %241 = vector.broadcast %240 : vector<1x1x1x8xf32> to vector<2x8x8x8xf32>
    %242 = arith.mulf %237, %241 : vector<2x8x8x8xf32>
    %243 = arith.addf %236, %242 : vector<2x8x8x8xf32>
    %c0_169 = arith.constant 0 : index
    %c2_170 = arith.constant 2 : index
    %c2_171 = arith.constant 2 : index
    %c0_172 = arith.constant 0 : index
    %244 = vector.load %arg14[%c0_169, %c2_170, %c2_171, %c0_172] : memref<2x10x10x8xf32, #tpu.memory_space<vmem>>, vector<2x8x8x8xf32>
    %245 = vector.extract_strided_slice %183 {offsets = [2, 2, 0], sizes = [1, 1, 8], strides = [1, 1, 1]} : vector<3x3x8xf32> to vector<1x1x8xf32>
    %246 = vector.shape_cast %245 : vector<1x1x8xf32> to vector<8xf32>
    %247 = vector.shape_cast %246 : vector<8xf32> to vector<1x1x1x8xf32>
    %248 = vector.broadcast %247 : vector<1x1x1x8xf32> to vector<2x8x8x8xf32>
    %249 = arith.mulf %244, %248 : vector<2x8x8x8xf32>
    %250 = arith.addf %243, %249 : vector<2x8x8x8xf32>
    %c1_173 = arith.constant 1 : index
    %c0_174 = arith.constant 0 : index
    %c0_175 = arith.constant 0 : index
    %251 = vector.load %arg8[%c1_173, %c0_174, %c0_175] : memref<5x8x8xbf16, #tpu.memory_space<vmem>>, vector<1x8x8xbf16>
    %252 = vector.shape_cast %251 : vector<1x8x8xbf16> to vector<8x8xbf16>
    %c1_176 = arith.constant 1 : index
    %c0_177 = arith.constant 0 : index
    %c0_178 = arith.constant 0 : index
    %253 = vector.load %arg9[%c1_176, %c0_177, %c0_178] : memref<5x1x8xf32, #tpu.memory_space<vmem>>, vector<1x1x8xf32>
    %254 = vector.shape_cast %253 : vector<1x1x8xf32> to vector<1x8xf32>
    %255 = vector.shape_cast %250 : vector<2x8x8x8xf32> to vector<128x8xf32>
    %256 = arith.truncf %255 : vector<128x8xf32> to vector<128x8xbf16>
    %cst_179 = arith.constant dense<0.000000e+00> : vector<128x8xf32>
    %257 = tpu.matmul %256, %252, %cst_179 {dimension_numbers = #tpu.dot_dimension_numbers<[1], [0], [0], [1], [0, 0, 1, 1], [], []>} : vector<128x8xbf16>, vector<8x8xbf16>, vector<128x8xf32> -> vector<128x8xf32>
    %258 = vector.broadcast %254 : vector<1x8xf32> to vector<128x8xf32>
    %259 = arith.addf %257, %258 : vector<128x8xf32>
    %260 = vector.shape_cast %259 : vector<128x8xf32> to vector<2x8x8x8xf32>
    %c1_180 = arith.constant 1 : index
    %c0_181 = arith.constant 0 : index
    %c0_182 = arith.constant 0 : index
    %c0_183 = arith.constant 0 : index
    %261 = vector.load %arg10[%c1_180, %c0_181, %c0_182, %c0_183] : memref<5x3x3x8xf32, #tpu.memory_space<vmem>>, vector<1x3x3x8xf32>
    %262 = vector.shape_cast %261 : vector<1x3x3x8xf32> to vector<3x3x8xf32>
    %cst_184 = arith.constant 0.000000e+00 : f32
    %263 = vector.broadcast %cst_184 : f32 to vector<2x8x8x8xf32>
    %264 = arith.maximumf %260, %263 : vector<2x8x8x8xf32>
    %c0_185 = arith.constant 0 : index
    %c1_186 = arith.constant 1 : index
    %c1_187 = arith.constant 1 : index
    %c0_188 = arith.constant 0 : index
    %265 = vector.load %arg14[%c0_185, %c1_186, %c1_187, %c0_188] : memref<2x10x10x8xf32, #tpu.memory_space<vmem>>, vector<2x8x8x8xf32>
    tpu.vector_store %arg14[%c0_185, %c1_186, %c1_187, %c0_188], %264 {strides = array<i32>} : memref<2x10x10x8xf32, #tpu.memory_space<vmem>>, vector<2x8x8x8xf32>,
    %cst_189 = arith.constant 0.000000e+00 : f32
    %266 = vector.broadcast %cst_189 : f32 to vector<2x8x8x8xf32>
    %c0_190 = arith.constant 0 : index
    %c0_191 = arith.constant 0 : index
    %c0_192 = arith.constant 0 : index
    %c0_193 = arith.constant 0 : index
    %267 = vector.load %arg14[%c0_190, %c0_191, %c0_192, %c0_193] : memref<2x10x10x8xf32, #tpu.memory_space<vmem>>, vector<2x8x8x8xf32>
    %268 = vector.extract_strided_slice %262 {offsets = [0, 0, 0], sizes = [1, 1, 8], strides = [1, 1, 1]} : vector<3x3x8xf32> to vector<1x1x8xf32>
    %269 = vector.shape_cast %268 : vector<1x1x8xf32> to vector<8xf32>
    %270 = vector.shape_cast %269 : vector<8xf32> to vector<1x1x1x8xf32>
    %271 = vector.broadcast %270 : vector<1x1x1x8xf32> to vector<2x8x8x8xf32>
    %272 = arith.mulf %267, %271 : vector<2x8x8x8xf32>
    %273 = arith.addf %266, %272 : vector<2x8x8x8xf32>
    %c0_194 = arith.constant 0 : index
    %c0_195 = arith.constant 0 : index
    %c1_196 = arith.constant 1 : index
    %c0_197 = arith.constant 0 : index
    %274 = vector.load %arg14[%c0_194, %c0_195, %c1_196, %c0_197] : memref<2x10x10x8xf32, #tpu.memory_space<vmem>>, vector<2x8x8x8xf32>
    %275 = vector.extract_strided_slice %262 {offsets = [0, 1, 0], sizes = [1, 1, 8], strides = [1, 1, 1]} : vector<3x3x8xf32> to vector<1x1x8xf32>
    %276 = vector.shape_cast %275 : vector<1x1x8xf32> to vector<8xf32>
    %277 = vector.shape_cast %276 : vector<8xf32> to vector<1x1x1x8xf32>
    %278 = vector.broadcast %277 : vector<1x1x1x8xf32> to vector<2x8x8x8xf32>
    %279 = arith.mulf %274, %278 : vector<2x8x8x8xf32>
    %280 = arith.addf %273, %279 : vector<2x8x8x8xf32>
    %c0_198 = arith.constant 0 : index
    %c0_199 = arith.constant 0 : index
    %c2_200 = arith.constant 2 : index
    %c0_201 = arith.constant 0 : index
    %281 = vector.load %arg14[%c0_198, %c0_199, %c2_200, %c0_201] : memref<2x10x10x8xf32, #tpu.memory_space<vmem>>, vector<2x8x8x8xf32>
    %282 = vector.extract_strided_slice %262 {offsets = [0, 2, 0], sizes = [1, 1, 8], strides = [1, 1, 1]} : vector<3x3x8xf32> to vector<1x1x8xf32>
    %283 = vector.shape_cast %282 : vector<1x1x8xf32> to vector<8xf32>
    %284 = vector.shape_cast %283 : vector<8xf32> to vector<1x1x1x8xf32>
    %285 = vector.broadcast %284 : vector<1x1x1x8xf32> to vector<2x8x8x8xf32>
    %286 = arith.mulf %281, %285 : vector<2x8x8x8xf32>
    %287 = arith.addf %280, %286 : vector<2x8x8x8xf32>
    %c0_202 = arith.constant 0 : index
    %c1_203 = arith.constant 1 : index
    %c0_204 = arith.constant 0 : index
    %c0_205 = arith.constant 0 : index
    %288 = vector.load %arg14[%c0_202, %c1_203, %c0_204, %c0_205] : memref<2x10x10x8xf32, #tpu.memory_space<vmem>>, vector<2x8x8x8xf32>
    %289 = vector.extract_strided_slice %262 {offsets = [1, 0, 0], sizes = [1, 1, 8], strides = [1, 1, 1]} : vector<3x3x8xf32> to vector<1x1x8xf32>
    %290 = vector.shape_cast %289 : vector<1x1x8xf32> to vector<8xf32>
    %291 = vector.shape_cast %290 : vector<8xf32> to vector<1x1x1x8xf32>
    %292 = vector.broadcast %291 : vector<1x1x1x8xf32> to vector<2x8x8x8xf32>
    %293 = arith.mulf %288, %292 : vector<2x8x8x8xf32>
    %294 = arith.addf %287, %293 : vector<2x8x8x8xf32>
    %c0_206 = arith.constant 0 : index
    %c1_207 = arith.constant 1 : index
    %c1_208 = arith.constant 1 : index
    %c0_209 = arith.constant 0 : index
    %295 = vector.load %arg14[%c0_206, %c1_207, %c1_208, %c0_209] : memref<2x10x10x8xf32, #tpu.memory_space<vmem>>, vector<2x8x8x8xf32>
    %296 = vector.extract_strided_slice %262 {offsets = [1, 1, 0], sizes = [1, 1, 8], strides = [1, 1, 1]} : vector<3x3x8xf32> to vector<1x1x8xf32>
    %297 = vector.shape_cast %296 : vector<1x1x8xf32> to vector<8xf32>
    %298 = vector.shape_cast %297 : vector<8xf32> to vector<1x1x1x8xf32>
    %299 = vector.broadcast %298 : vector<1x1x1x8xf32> to vector<2x8x8x8xf32>
    %300 = arith.mulf %295, %299 : vector<2x8x8x8xf32>
    %301 = arith.addf %294, %300 : vector<2x8x8x8xf32>
    %c0_210 = arith.constant 0 : index
    %c1_211 = arith.constant 1 : index
    %c2_212 = arith.constant 2 : index
    %c0_213 = arith.constant 0 : index
    %302 = vector.load %arg14[%c0_210, %c1_211, %c2_212, %c0_213] : memref<2x10x10x8xf32, #tpu.memory_space<vmem>>, vector<2x8x8x8xf32>
    %303 = vector.extract_strided_slice %262 {offsets = [1, 2, 0], sizes = [1, 1, 8], strides = [1, 1, 1]} : vector<3x3x8xf32> to vector<1x1x8xf32>
    %304 = vector.shape_cast %303 : vector<1x1x8xf32> to vector<8xf32>
    %305 = vector.shape_cast %304 : vector<8xf32> to vector<1x1x1x8xf32>
    %306 = vector.broadcast %305 : vector<1x1x1x8xf32> to vector<2x8x8x8xf32>
    %307 = arith.mulf %302, %306 : vector<2x8x8x8xf32>
    %308 = arith.addf %301, %307 : vector<2x8x8x8xf32>
    %c0_214 = arith.constant 0 : index
    %c2_215 = arith.constant 2 : index
    %c0_216 = arith.constant 0 : index
    %c0_217 = arith.constant 0 : index
    %309 = vector.load %arg14[%c0_214, %c2_215, %c0_216, %c0_217] : memref<2x10x10x8xf32, #tpu.memory_space<vmem>>, vector<2x8x8x8xf32>
    %310 = vector.extract_strided_slice %262 {offsets = [2, 0, 0], sizes = [1, 1, 8], strides = [1, 1, 1]} : vector<3x3x8xf32> to vector<1x1x8xf32>
    %311 = vector.shape_cast %310 : vector<1x1x8xf32> to vector<8xf32>
    %312 = vector.shape_cast %311 : vector<8xf32> to vector<1x1x1x8xf32>
    %313 = vector.broadcast %312 : vector<1x1x1x8xf32> to vector<2x8x8x8xf32>
    %314 = arith.mulf %309, %313 : vector<2x8x8x8xf32>
    %315 = arith.addf %308, %314 : vector<2x8x8x8xf32>
    %c0_218 = arith.constant 0 : index
    %c2_219 = arith.constant 2 : index
    %c1_220 = arith.constant 1 : index
    %c0_221 = arith.constant 0 : index
    %316 = vector.load %arg14[%c0_218, %c2_219, %c1_220, %c0_221] : memref<2x10x10x8xf32, #tpu.memory_space<vmem>>, vector<2x8x8x8xf32>
    %317 = vector.extract_strided_slice %262 {offsets = [2, 1, 0], sizes = [1, 1, 8], strides = [1, 1, 1]} : vector<3x3x8xf32> to vector<1x1x8xf32>
    %318 = vector.shape_cast %317 : vector<1x1x8xf32> to vector<8xf32>
    %319 = vector.shape_cast %318 : vector<8xf32> to vector<1x1x1x8xf32>
    %320 = vector.broadcast %319 : vector<1x1x1x8xf32> to vector<2x8x8x8xf32>
    %321 = arith.mulf %316, %320 : vector<2x8x8x8xf32>
    %322 = arith.addf %315, %321 : vector<2x8x8x8xf32>
    %c0_222 = arith.constant 0 : index
    %c2_223 = arith.constant 2 : index
    %c2_224 = arith.constant 2 : index
    %c0_225 = arith.constant 0 : index
    %323 = vector.load %arg14[%c0_222, %c2_223, %c2_224, %c0_225] : memref<2x10x10x8xf32, #tpu.memory_space<vmem>>, vector<2x8x8x8xf32>
    %324 = vector.extract_strided_slice %262 {offsets = [2, 2, 0], sizes = [1, 1, 8], strides = [1, 1, 1]} : vector<3x3x8xf32> to vector<1x1x8xf32>
    %325 = vector.shape_cast %324 : vector<1x1x8xf32> to vector<8xf32>
    %326 = vector.shape_cast %325 : vector<8xf32> to vector<1x1x1x8xf32>
    %327 = vector.broadcast %326 : vector<1x1x1x8xf32> to vector<2x8x8x8xf32>
    %328 = arith.mulf %323, %327 : vector<2x8x8x8xf32>
    %329 = arith.addf %322, %328 : vector<2x8x8x8xf32>
    %c1_226 = arith.constant 1 : index
    %c0_227 = arith.constant 0 : index
    %c0_228 = arith.constant 0 : index
    %330 = vector.load %arg11[%c1_226, %c0_227, %c0_228] : memref<5x8x8xbf16, #tpu.memory_space<vmem>>, vector<1x8x8xbf16>
    %331 = vector.shape_cast %330 : vector<1x8x8xbf16> to vector<8x8xbf16>
    %c1_229 = arith.constant 1 : index
    %c0_230 = arith.constant 0 : index
    %c0_231 = arith.constant 0 : index
    %332 = vector.load %arg12[%c1_229, %c0_230, %c0_231] : memref<5x1x8xf32, #tpu.memory_space<vmem>>, vector<1x1x8xf32>
    %333 = vector.shape_cast %332 : vector<1x1x8xf32> to vector<1x8xf32>
    %334 = vector.shape_cast %329 : vector<2x8x8x8xf32> to vector<128x8xf32>
    %335 = arith.truncf %334 : vector<128x8xf32> to vector<128x8xbf16>
    %cst_232 = arith.constant dense<0.000000e+00> : vector<128x8xf32>
    %336 = tpu.matmul %335, %331, %cst_232 {dimension_numbers = #tpu.dot_dimension_numbers<[1], [0], [0], [1], [0, 0, 1, 1], [], []>} : vector<128x8xbf16>, vector<8x8xbf16>, vector<128x8xf32> -> vector<128x8xf32>
    %337 = vector.broadcast %333 : vector<1x8xf32> to vector<128x8xf32>
    %338 = arith.addf %336, %337 : vector<128x8xf32>
    %339 = vector.shape_cast %338 : vector<128x8xf32> to vector<2x8x8x8xf32>
    %340 = arith.addf %181, %339 : vector<2x8x8x8xf32>
    %c2_233 = arith.constant 2 : index
    %c0_234 = arith.constant 0 : index
    %c0_235 = arith.constant 0 : index
    %c0_236 = arith.constant 0 : index
    %341 = vector.load %arg7[%c2_233, %c0_234, %c0_235, %c0_236] : memref<5x3x3x8xf32, #tpu.memory_space<vmem>>, vector<1x3x3x8xf32>
    %342 = vector.shape_cast %341 : vector<1x3x3x8xf32> to vector<3x3x8xf32>
    %cst_237 = arith.constant 0.000000e+00 : f32
    %343 = vector.broadcast %cst_237 : f32 to vector<2x8x8x8xf32>
    %344 = arith.maximumf %23, %343 : vector<2x8x8x8xf32>
    %c0_238 = arith.constant 0 : index
    %c1_239 = arith.constant 1 : index
    %c1_240 = arith.constant 1 : index
    %c0_241 = arith.constant 0 : index
    %345 = vector.load %arg14[%c0_238, %c1_239, %c1_240, %c0_241] : memref<2x10x10x8xf32, #tpu.memory_space<vmem>>, vector<2x8x8x8xf32>
    tpu.vector_store %arg14[%c0_238, %c1_239, %c1_240, %c0_241], %344 {strides = array<i32>} : memref<2x10x10x8xf32, #tpu.memory_space<vmem>>, vector<2x8x8x8xf32>,
    %cst_242 = arith.constant 0.000000e+00 : f32
    %346 = vector.broadcast %cst_242 : f32 to vector<2x8x8x8xf32>
    %c0_243 = arith.constant 0 : index
    %c0_244 = arith.constant 0 : index
    %c0_245 = arith.constant 0 : index
    %c0_246 = arith.constant 0 : index
    %347 = vector.load %arg14[%c0_243, %c0_244, %c0_245, %c0_246] : memref<2x10x10x8xf32, #tpu.memory_space<vmem>>, vector<2x8x8x8xf32>
    %348 = vector.extract_strided_slice %342 {offsets = [0, 0, 0], sizes = [1, 1, 8], strides = [1, 1, 1]} : vector<3x3x8xf32> to vector<1x1x8xf32>
    %349 = vector.shape_cast %348 : vector<1x1x8xf32> to vector<8xf32>
    %350 = vector.shape_cast %349 : vector<8xf32> to vector<1x1x1x8xf32>
    %351 = vector.broadcast %350 : vector<1x1x1x8xf32> to vector<2x8x8x8xf32>
    %352 = arith.mulf %347, %351 : vector<2x8x8x8xf32>
    %353 = arith.addf %346, %352 : vector<2x8x8x8xf32>
    %c0_247 = arith.constant 0 : index
    %c0_248 = arith.constant 0 : index
    %c1_249 = arith.constant 1 : index
    %c0_250 = arith.constant 0 : index
    %354 = vector.load %arg14[%c0_247, %c0_248, %c1_249, %c0_250] : memref<2x10x10x8xf32, #tpu.memory_space<vmem>>, vector<2x8x8x8xf32>
    %355 = vector.extract_strided_slice %342 {offsets = [0, 1, 0], sizes = [1, 1, 8], strides = [1, 1, 1]} : vector<3x3x8xf32> to vector<1x1x8xf32>
    %356 = vector.shape_cast %355 : vector<1x1x8xf32> to vector<8xf32>
    %357 = vector.shape_cast %356 : vector<8xf32> to vector<1x1x1x8xf32>
    %358 = vector.broadcast %357 : vector<1x1x1x8xf32> to vector<2x8x8x8xf32>
    %359 = arith.mulf %354, %358 : vector<2x8x8x8xf32>
    %360 = arith.addf %353, %359 : vector<2x8x8x8xf32>
    %c0_251 = arith.constant 0 : index
    %c0_252 = arith.constant 0 : index
    %c2_253 = arith.constant 2 : index
    %c0_254 = arith.constant 0 : index
    %361 = vector.load %arg14[%c0_251, %c0_252, %c2_253, %c0_254] : memref<2x10x10x8xf32, #tpu.memory_space<vmem>>, vector<2x8x8x8xf32>
    %362 = vector.extract_strided_slice %342 {offsets = [0, 2, 0], sizes = [1, 1, 8], strides = [1, 1, 1]} : vector<3x3x8xf32> to vector<1x1x8xf32>
    %363 = vector.shape_cast %362 : vector<1x1x8xf32> to vector<8xf32>
    %364 = vector.shape_cast %363 : vector<8xf32> to vector<1x1x1x8xf32>
    %365 = vector.broadcast %364 : vector<1x1x1x8xf32> to vector<2x8x8x8xf32>
    %366 = arith.mulf %361, %365 : vector<2x8x8x8xf32>
    %367 = arith.addf %360, %366 : vector<2x8x8x8xf32>
    %c0_255 = arith.constant 0 : index
    %c1_256 = arith.constant 1 : index
    %c0_257 = arith.constant 0 : index
    %c0_258 = arith.constant 0 : index
    %368 = vector.load %arg14[%c0_255, %c1_256, %c0_257, %c0_258] : memref<2x10x10x8xf32, #tpu.memory_space<vmem>>, vector<2x8x8x8xf32>
    %369 = vector.extract_strided_slice %342 {offsets = [1, 0, 0], sizes = [1, 1, 8], strides = [1, 1, 1]} : vector<3x3x8xf32> to vector<1x1x8xf32>
    %370 = vector.shape_cast %369 : vector<1x1x8xf32> to vector<8xf32>
    %371 = vector.shape_cast %370 : vector<8xf32> to vector<1x1x1x8xf32>
    %372 = vector.broadcast %371 : vector<1x1x1x8xf32> to vector<2x8x8x8xf32>
    %373 = arith.mulf %368, %372 : vector<2x8x8x8xf32>
    %374 = arith.addf %367, %373 : vector<2x8x8x8xf32>
    %c0_259 = arith.constant 0 : index
    %c1_260 = arith.constant 1 : index
    %c1_261 = arith.constant 1 : index
    %c0_262 = arith.constant 0 : index
    %375 = vector.load %arg14[%c0_259, %c1_260, %c1_261, %c0_262] : memref<2x10x10x8xf32, #tpu.memory_space<vmem>>, vector<2x8x8x8xf32>
    %376 = vector.extract_strided_slice %342 {offsets = [1, 1, 0], sizes = [1, 1, 8], strides = [1, 1, 1]} : vector<3x3x8xf32> to vector<1x1x8xf32>
    %377 = vector.shape_cast %376 : vector<1x1x8xf32> to vector<8xf32>
    %378 = vector.shape_cast %377 : vector<8xf32> to vector<1x1x1x8xf32>
    %379 = vector.broadcast %378 : vector<1x1x1x8xf32> to vector<2x8x8x8xf32>
    %380 = arith.mulf %375, %379 : vector<2x8x8x8xf32>
    %381 = arith.addf %374, %380 : vector<2x8x8x8xf32>
    %c0_263 = arith.constant 0 : index
    %c1_264 = arith.constant 1 : index
    %c2_265 = arith.constant 2 : index
    %c0_266 = arith.constant 0 : index
    %382 = vector.load %arg14[%c0_263, %c1_264, %c2_265, %c0_266] : memref<2x10x10x8xf32, #tpu.memory_space<vmem>>, vector<2x8x8x8xf32>
    %383 = vector.extract_strided_slice %342 {offsets = [1, 2, 0], sizes = [1, 1, 8], strides = [1, 1, 1]} : vector<3x3x8xf32> to vector<1x1x8xf32>
    %384 = vector.shape_cast %383 : vector<1x1x8xf32> to vector<8xf32>
    %385 = vector.shape_cast %384 : vector<8xf32> to vector<1x1x1x8xf32>
    %386 = vector.broadcast %385 : vector<1x1x1x8xf32> to vector<2x8x8x8xf32>
    %387 = arith.mulf %382, %386 : vector<2x8x8x8xf32>
    %388 = arith.addf %381, %387 : vector<2x8x8x8xf32>
    %c0_267 = arith.constant 0 : index
    %c2_268 = arith.constant 2 : index
    %c0_269 = arith.constant 0 : index
    %c0_270 = arith.constant 0 : index
    %389 = vector.load %arg14[%c0_267, %c2_268, %c0_269, %c0_270] : memref<2x10x10x8xf32, #tpu.memory_space<vmem>>, vector<2x8x8x8xf32>
    %390 = vector.extract_strided_slice %342 {offsets = [2, 0, 0], sizes = [1, 1, 8], strides = [1, 1, 1]} : vector<3x3x8xf32> to vector<1x1x8xf32>
    %391 = vector.shape_cast %390 : vector<1x1x8xf32> to vector<8xf32>
    %392 = vector.shape_cast %391 : vector<8xf32> to vector<1x1x1x8xf32>
    %393 = vector.broadcast %392 : vector<1x1x1x8xf32> to vector<2x8x8x8xf32>
    %394 = arith.mulf %389, %393 : vector<2x8x8x8xf32>
    %395 = arith.addf %388, %394 : vector<2x8x8x8xf32>
    %c0_271 = arith.constant 0 : index
    %c2_272 = arith.constant 2 : index
    %c1_273 = arith.constant 1 : index
    %c0_274 = arith.constant 0 : index
    %396 = vector.load %arg14[%c0_271, %c2_272, %c1_273, %c0_274] : memref<2x10x10x8xf32, #tpu.memory_space<vmem>>, vector<2x8x8x8xf32>
    %397 = vector.extract_strided_slice %342 {offsets = [2, 1, 0], sizes = [1, 1, 8], strides = [1, 1, 1]} : vector<3x3x8xf32> to vector<1x1x8xf32>
    %398 = vector.shape_cast %397 : vector<1x1x8xf32> to vector<8xf32>
    %399 = vector.shape_cast %398 : vector<8xf32> to vector<1x1x1x8xf32>
    %400 = vector.broadcast %399 : vector<1x1x1x8xf32> to vector<2x8x8x8xf32>
    %401 = arith.mulf %396, %400 : vector<2x8x8x8xf32>
    %402 = arith.addf %395, %401 : vector<2x8x8x8xf32>
    %c0_275 = arith.constant 0 : index
    %c2_276 = arith.constant 2 : index
    %c2_277 = arith.constant 2 : index
    %c0_278 = arith.constant 0 : index
    %403 = vector.load %arg14[%c0_275, %c2_276, %c2_277, %c0_278] : memref<2x10x10x8xf32, #tpu.memory_space<vmem>>, vector<2x8x8x8xf32>
    %404 = vector.extract_strided_slice %342 {offsets = [2, 2, 0], sizes = [1, 1, 8], strides = [1, 1, 1]} : vector<3x3x8xf32> to vector<1x1x8xf32>
    %405 = vector.shape_cast %404 : vector<1x1x8xf32> to vector<8xf32>
    %406 = vector.shape_cast %405 : vector<8xf32> to vector<1x1x1x8xf32>
    %407 = vector.broadcast %406 : vector<1x1x1x8xf32> to vector<2x8x8x8xf32>
    %408 = arith.mulf %403, %407 : vector<2x8x8x8xf32>
    %409 = arith.addf %402, %408 : vector<2x8x8x8xf32>
    %c2_279 = arith.constant 2 : index
    %c0_280 = arith.constant 0 : index
    %c0_281 = arith.constant 0 : index
    %410 = vector.load %arg8[%c2_279, %c0_280, %c0_281] : memref<5x8x8xbf16, #tpu.memory_space<vmem>>, vector<1x8x8xbf16>
    %411 = vector.shape_cast %410 : vector<1x8x8xbf16> to vector<8x8xbf16>
    %c2_282 = arith.constant 2 : index
    %c0_283 = arith.constant 0 : index
    %c0_284 = arith.constant 0 : index
    %412 = vector.load %arg9[%c2_282, %c0_283, %c0_284] : memref<5x1x8xf32, #tpu.memory_space<vmem>>, vector<1x1x8xf32>
    %413 = vector.shape_cast %412 : vector<1x1x8xf32> to vector<1x8xf32>
    %414 = vector.shape_cast %409 : vector<2x8x8x8xf32> to vector<128x8xf32>
    %415 = arith.truncf %414 : vector<128x8xf32> to vector<128x8xbf16>
    %cst_285 = arith.constant dense<0.000000e+00> : vector<128x8xf32>
    %416 = tpu.matmul %415, %411, %cst_285 {dimension_numbers = #tpu.dot_dimension_numbers<[1], [0], [0], [1], [0, 0, 1, 1], [], []>} : vector<128x8xbf16>, vector<8x8xbf16>, vector<128x8xf32> -> vector<128x8xf32>
    %417 = vector.broadcast %413 : vector<1x8xf32> to vector<128x8xf32>
    %418 = arith.addf %416, %417 : vector<128x8xf32>
    %419 = vector.shape_cast %418 : vector<128x8xf32> to vector<2x8x8x8xf32>
    %c2_286 = arith.constant 2 : index
    %c0_287 = arith.constant 0 : index
    %c0_288 = arith.constant 0 : index
    %c0_289 = arith.constant 0 : index
    %420 = vector.load %arg10[%c2_286, %c0_287, %c0_288, %c0_289] : memref<5x3x3x8xf32, #tpu.memory_space<vmem>>, vector<1x3x3x8xf32>
    %421 = vector.shape_cast %420 : vector<1x3x3x8xf32> to vector<3x3x8xf32>
    %cst_290 = arith.constant 0.000000e+00 : f32
    %422 = vector.broadcast %cst_290 : f32 to vector<2x8x8x8xf32>
    %423 = arith.maximumf %419, %422 : vector<2x8x8x8xf32>
    %c0_291 = arith.constant 0 : index
    %c1_292 = arith.constant 1 : index
    %c1_293 = arith.constant 1 : index
    %c0_294 = arith.constant 0 : index
    %424 = vector.load %arg14[%c0_291, %c1_292, %c1_293, %c0_294] : memref<2x10x10x8xf32, #tpu.memory_space<vmem>>, vector<2x8x8x8xf32>
    tpu.vector_store %arg14[%c0_291, %c1_292, %c1_293, %c0_294], %423 {strides = array<i32>} : memref<2x10x10x8xf32, #tpu.memory_space<vmem>>, vector<2x8x8x8xf32>,
    %cst_295 = arith.constant 0.000000e+00 : f32
    %425 = vector.broadcast %cst_295 : f32 to vector<2x8x8x8xf32>
    %c0_296 = arith.constant 0 : index
    %c0_297 = arith.constant 0 : index
    %c0_298 = arith.constant 0 : index
    %c0_299 = arith.constant 0 : index
    %426 = vector.load %arg14[%c0_296, %c0_297, %c0_298, %c0_299] : memref<2x10x10x8xf32, #tpu.memory_space<vmem>>, vector<2x8x8x8xf32>
    %427 = vector.extract_strided_slice %421 {offsets = [0, 0, 0], sizes = [1, 1, 8], strides = [1, 1, 1]} : vector<3x3x8xf32> to vector<1x1x8xf32>
    %428 = vector.shape_cast %427 : vector<1x1x8xf32> to vector<8xf32>
    %429 = vector.shape_cast %428 : vector<8xf32> to vector<1x1x1x8xf32>
    %430 = vector.broadcast %429 : vector<1x1x1x8xf32> to vector<2x8x8x8xf32>
    %431 = arith.mulf %426, %430 : vector<2x8x8x8xf32>
    %432 = arith.addf %425, %431 : vector<2x8x8x8xf32>
    %c0_300 = arith.constant 0 : index
    %c0_301 = arith.constant 0 : index
    %c1_302 = arith.constant 1 : index
    %c0_303 = arith.constant 0 : index
    %433 = vector.load %arg14[%c0_300, %c0_301, %c1_302, %c0_303] : memref<2x10x10x8xf32, #tpu.memory_space<vmem>>, vector<2x8x8x8xf32>
    %434 = vector.extract_strided_slice %421 {offsets = [0, 1, 0], sizes = [1, 1, 8], strides = [1, 1, 1]} : vector<3x3x8xf32> to vector<1x1x8xf32>
    %435 = vector.shape_cast %434 : vector<1x1x8xf32> to vector<8xf32>
    %436 = vector.shape_cast %435 : vector<8xf32> to vector<1x1x1x8xf32>
    %437 = vector.broadcast %436 : vector<1x1x1x8xf32> to vector<2x8x8x8xf32>
    %438 = arith.mulf %433, %437 : vector<2x8x8x8xf32>
    %439 = arith.addf %432, %438 : vector<2x8x8x8xf32>
    %c0_304 = arith.constant 0 : index
    %c0_305 = arith.constant 0 : index
    %c2_306 = arith.constant 2 : index
    %c0_307 = arith.constant 0 : index
    %440 = vector.load %arg14[%c0_304, %c0_305, %c2_306, %c0_307] : memref<2x10x10x8xf32, #tpu.memory_space<vmem>>, vector<2x8x8x8xf32>
    %441 = vector.extract_strided_slice %421 {offsets = [0, 2, 0], sizes = [1, 1, 8], strides = [1, 1, 1]} : vector<3x3x8xf32> to vector<1x1x8xf32>
    %442 = vector.shape_cast %441 : vector<1x1x8xf32> to vector<8xf32>
    %443 = vector.shape_cast %442 : vector<8xf32> to vector<1x1x1x8xf32>
    %444 = vector.broadcast %443 : vector<1x1x1x8xf32> to vector<2x8x8x8xf32>
    %445 = arith.mulf %440, %444 : vector<2x8x8x8xf32>
    %446 = arith.addf %439, %445 : vector<2x8x8x8xf32>
    %c0_308 = arith.constant 0 : index
    %c1_309 = arith.constant 1 : index
    %c0_310 = arith.constant 0 : index
    %c0_311 = arith.constant 0 : index
    %447 = vector.load %arg14[%c0_308, %c1_309, %c0_310, %c0_311] : memref<2x10x10x8xf32, #tpu.memory_space<vmem>>, vector<2x8x8x8xf32>
    %448 = vector.extract_strided_slice %421 {offsets = [1, 0, 0], sizes = [1, 1, 8], strides = [1, 1, 1]} : vector<3x3x8xf32> to vector<1x1x8xf32>
    %449 = vector.shape_cast %448 : vector<1x1x8xf32> to vector<8xf32>
    %450 = vector.shape_cast %449 : vector<8xf32> to vector<1x1x1x8xf32>
    %451 = vector.broadcast %450 : vector<1x1x1x8xf32> to vector<2x8x8x8xf32>
    %452 = arith.mulf %447, %451 : vector<2x8x8x8xf32>
    %453 = arith.addf %446, %452 : vector<2x8x8x8xf32>
    %c0_312 = arith.constant 0 : index
    %c1_313 = arith.constant 1 : index
    %c1_314 = arith.constant 1 : index
    %c0_315 = arith.constant 0 : index
    %454 = vector.load %arg14[%c0_312, %c1_313, %c1_314, %c0_315] : memref<2x10x10x8xf32, #tpu.memory_space<vmem>>, vector<2x8x8x8xf32>
    %455 = vector.extract_strided_slice %421 {offsets = [1, 1, 0], sizes = [1, 1, 8], strides = [1, 1, 1]} : vector<3x3x8xf32> to vector<1x1x8xf32>
    %456 = vector.shape_cast %455 : vector<1x1x8xf32> to vector<8xf32>
    %457 = vector.shape_cast %456 : vector<8xf32> to vector<1x1x1x8xf32>
    %458 = vector.broadcast %457 : vector<1x1x1x8xf32> to vector<2x8x8x8xf32>
    %459 = arith.mulf %454, %458 : vector<2x8x8x8xf32>
    %460 = arith.addf %453, %459 : vector<2x8x8x8xf32>
    %c0_316 = arith.constant 0 : index
    %c1_317 = arith.constant 1 : index
    %c2_318 = arith.constant 2 : index
    %c0_319 = arith.constant 0 : index
    %461 = vector.load %arg14[%c0_316, %c1_317, %c2_318, %c0_319] : memref<2x10x10x8xf32, #tpu.memory_space<vmem>>, vector<2x8x8x8xf32>
    %462 = vector.extract_strided_slice %421 {offsets = [1, 2, 0], sizes = [1, 1, 8], strides = [1, 1, 1]} : vector<3x3x8xf32> to vector<1x1x8xf32>
    %463 = vector.shape_cast %462 : vector<1x1x8xf32> to vector<8xf32>
    %464 = vector.shape_cast %463 : vector<8xf32> to vector<1x1x1x8xf32>
    %465 = vector.broadcast %464 : vector<1x1x1x8xf32> to vector<2x8x8x8xf32>
    %466 = arith.mulf %461, %465 : vector<2x8x8x8xf32>
    %467 = arith.addf %460, %466 : vector<2x8x8x8xf32>
    %c0_320 = arith.constant 0 : index
    %c2_321 = arith.constant 2 : index
    %c0_322 = arith.constant 0 : index
    %c0_323 = arith.constant 0 : index
    %468 = vector.load %arg14[%c0_320, %c2_321, %c0_322, %c0_323] : memref<2x10x10x8xf32, #tpu.memory_space<vmem>>, vector<2x8x8x8xf32>
    %469 = vector.extract_strided_slice %421 {offsets = [2, 0, 0], sizes = [1, 1, 8], strides = [1, 1, 1]} : vector<3x3x8xf32> to vector<1x1x8xf32>
    %470 = vector.shape_cast %469 : vector<1x1x8xf32> to vector<8xf32>
    %471 = vector.shape_cast %470 : vector<8xf32> to vector<1x1x1x8xf32>
    %472 = vector.broadcast %471 : vector<1x1x1x8xf32> to vector<2x8x8x8xf32>
    %473 = arith.mulf %468, %472 : vector<2x8x8x8xf32>
    %474 = arith.addf %467, %473 : vector<2x8x8x8xf32>
    %c0_324 = arith.constant 0 : index
    %c2_325 = arith.constant 2 : index
    %c1_326 = arith.constant 1 : index
    %c0_327 = arith.constant 0 : index
    %475 = vector.load %arg14[%c0_324, %c2_325, %c1_326, %c0_327] : memref<2x10x10x8xf32, #tpu.memory_space<vmem>>, vector<2x8x8x8xf32>
    %476 = vector.extract_strided_slice %421 {offsets = [2, 1, 0], sizes = [1, 1, 8], strides = [1, 1, 1]} : vector<3x3x8xf32> to vector<1x1x8xf32>
    %477 = vector.shape_cast %476 : vector<1x1x8xf32> to vector<8xf32>
    %478 = vector.shape_cast %477 : vector<8xf32> to vector<1x1x1x8xf32>
    %479 = vector.broadcast %478 : vector<1x1x1x8xf32> to vector<2x8x8x8xf32>
    %480 = arith.mulf %475, %479 : vector<2x8x8x8xf32>
    %481 = arith.addf %474, %480 : vector<2x8x8x8xf32>
    %c0_328 = arith.constant 0 : index
    %c2_329 = arith.constant 2 : index
    %c2_330 = arith.constant 2 : index
    %c0_331 = arith.constant 0 : index
    %482 = vector.load %arg14[%c0_328, %c2_329, %c2_330, %c0_331] : memref<2x10x10x8xf32, #tpu.memory_space<vmem>>, vector<2x8x8x8xf32>
    %483 = vector.extract_strided_slice %421 {offsets = [2, 2, 0], sizes = [1, 1, 8], strides = [1, 1, 1]} : vector<3x3x8xf32> to vector<1x1x8xf32>
    %484 = vector.shape_cast %483 : vector<1x1x8xf32> to vector<8xf32>
    %485 = vector.shape_cast %484 : vector<8xf32> to vector<1x1x1x8xf32>
    %486 = vector.broadcast %485 : vector<1x1x1x8xf32> to vector<2x8x8x8xf32>
    %487 = arith.mulf %482, %486 : vector<2x8x8x8xf32>
    %488 = arith.addf %481, %487 : vector<2x8x8x8xf32>
    %c2_332 = arith.constant 2 : index
    %c0_333 = arith.constant 0 : index
    %c0_334 = arith.constant 0 : index
    %489 = vector.load %arg11[%c2_332, %c0_333, %c0_334] : memref<5x8x8xbf16, #tpu.memory_space<vmem>>, vector<1x8x8xbf16>
    %490 = vector.shape_cast %489 : vector<1x8x8xbf16> to vector<8x8xbf16>
    %c2_335 = arith.constant 2 : index
    %c0_336 = arith.constant 0 : index
    %c0_337 = arith.constant 0 : index
    %491 = vector.load %arg12[%c2_335, %c0_336, %c0_337] : memref<5x1x8xf32, #tpu.memory_space<vmem>>, vector<1x1x8xf32>
    %492 = vector.shape_cast %491 : vector<1x1x8xf32> to vector<1x8xf32>
    %493 = vector.shape_cast %488 : vector<2x8x8x8xf32> to vector<128x8xf32>
    %494 = arith.truncf %493 : vector<128x8xf32> to vector<128x8xbf16>
    %cst_338 = arith.constant dense<0.000000e+00> : vector<128x8xf32>
    %495 = tpu.matmul %494, %490, %cst_338 {dimension_numbers = #tpu.dot_dimension_numbers<[1], [0], [0], [1], [0, 0, 1, 1], [], []>} : vector<128x8xbf16>, vector<8x8xbf16>, vector<128x8xf32> -> vector<128x8xf32>
    %496 = vector.broadcast %492 : vector<1x8xf32> to vector<128x8xf32>
    %497 = arith.addf %495, %496 : vector<128x8xf32>
    %498 = vector.shape_cast %497 : vector<128x8xf32> to vector<2x8x8x8xf32>
    %499 = arith.addf %12, %498 : vector<2x8x8x8xf32>
    %c3 = arith.constant 3 : index
    %c0_339 = arith.constant 0 : index
    %c0_340 = arith.constant 0 : index
    %c0_341 = arith.constant 0 : index
    %500 = vector.load %arg7[%c3, %c0_339, %c0_340, %c0_341] : memref<5x3x3x8xf32, #tpu.memory_space<vmem>>, vector<1x3x3x8xf32>
    %501 = vector.shape_cast %500 : vector<1x3x3x8xf32> to vector<3x3x8xf32>
    %cst_342 = arith.constant 0.000000e+00 : f32
    %502 = vector.broadcast %cst_342 : f32 to vector<2x8x8x8xf32>
    %503 = arith.maximumf %23, %502 : vector<2x8x8x8xf32>
    %c0_343 = arith.constant 0 : index
    %c1_344 = arith.constant 1 : index
    %c1_345 = arith.constant 1 : index
    %c0_346 = arith.constant 0 : index
    %504 = vector.load %arg14[%c0_343, %c1_344, %c1_345, %c0_346] : memref<2x10x10x8xf32, #tpu.memory_space<vmem>>, vector<2x8x8x8xf32>
    tpu.vector_store %arg14[%c0_343, %c1_344, %c1_345, %c0_346], %503 {strides = array<i32>} : memref<2x10x10x8xf32, #tpu.memory_space<vmem>>, vector<2x8x8x8xf32>,
    %cst_347 = arith.constant 0.000000e+00 : f32
    %505 = vector.broadcast %cst_347 : f32 to vector<2x8x8x8xf32>
    %c0_348 = arith.constant 0 : index
    %c0_349 = arith.constant 0 : index
    %c0_350 = arith.constant 0 : index
    %c0_351 = arith.constant 0 : index
    %506 = vector.load %arg14[%c0_348, %c0_349, %c0_350, %c0_351] : memref<2x10x10x8xf32, #tpu.memory_space<vmem>>, vector<2x8x8x8xf32>
    %507 = vector.extract_strided_slice %501 {offsets = [0, 0, 0], sizes = [1, 1, 8], strides = [1, 1, 1]} : vector<3x3x8xf32> to vector<1x1x8xf32>
    %508 = vector.shape_cast %507 : vector<1x1x8xf32> to vector<8xf32>
    %509 = vector.shape_cast %508 : vector<8xf32> to vector<1x1x1x8xf32>
    %510 = vector.broadcast %509 : vector<1x1x1x8xf32> to vector<2x8x8x8xf32>
    %511 = arith.mulf %506, %510 : vector<2x8x8x8xf32>
    %512 = arith.addf %505, %511 : vector<2x8x8x8xf32>
    %c0_352 = arith.constant 0 : index
    %c0_353 = arith.constant 0 : index
    %c1_354 = arith.constant 1 : index
    %c0_355 = arith.constant 0 : index
    %513 = vector.load %arg14[%c0_352, %c0_353, %c1_354, %c0_355] : memref<2x10x10x8xf32, #tpu.memory_space<vmem>>, vector<2x8x8x8xf32>
    %514 = vector.extract_strided_slice %501 {offsets = [0, 1, 0], sizes = [1, 1, 8], strides = [1, 1, 1]} : vector<3x3x8xf32> to vector<1x1x8xf32>
    %515 = vector.shape_cast %514 : vector<1x1x8xf32> to vector<8xf32>
    %516 = vector.shape_cast %515 : vector<8xf32> to vector<1x1x1x8xf32>
    %517 = vector.broadcast %516 : vector<1x1x1x8xf32> to vector<2x8x8x8xf32>
    %518 = arith.mulf %513, %517 : vector<2x8x8x8xf32>
    %519 = arith.addf %512, %518 : vector<2x8x8x8xf32>
    %c0_356 = arith.constant 0 : index
    %c0_357 = arith.constant 0 : index
    %c2_358 = arith.constant 2 : index
    %c0_359 = arith.constant 0 : index
    %520 = vector.load %arg14[%c0_356, %c0_357, %c2_358, %c0_359] : memref<2x10x10x8xf32, #tpu.memory_space<vmem>>, vector<2x8x8x8xf32>
    %521 = vector.extract_strided_slice %501 {offsets = [0, 2, 0], sizes = [1, 1, 8], strides = [1, 1, 1]} : vector<3x3x8xf32> to vector<1x1x8xf32>
    %522 = vector.shape_cast %521 : vector<1x1x8xf32> to vector<8xf32>
    %523 = vector.shape_cast %522 : vector<8xf32> to vector<1x1x1x8xf32>
    %524 = vector.broadcast %523 : vector<1x1x1x8xf32> to vector<2x8x8x8xf32>
    %525 = arith.mulf %520, %524 : vector<2x8x8x8xf32>
    %526 = arith.addf %519, %525 : vector<2x8x8x8xf32>
    %c0_360 = arith.constant 0 : index
    %c1_361 = arith.constant 1 : index
    %c0_362 = arith.constant 0 : index
    %c0_363 = arith.constant 0 : index
    %527 = vector.load %arg14[%c0_360, %c1_361, %c0_362, %c0_363] : memref<2x10x10x8xf32, #tpu.memory_space<vmem>>, vector<2x8x8x8xf32>
    %528 = vector.extract_strided_slice %501 {offsets = [1, 0, 0], sizes = [1, 1, 8], strides = [1, 1, 1]} : vector<3x3x8xf32> to vector<1x1x8xf32>
    %529 = vector.shape_cast %528 : vector<1x1x8xf32> to vector<8xf32>
    %530 = vector.shape_cast %529 : vector<8xf32> to vector<1x1x1x8xf32>
    %531 = vector.broadcast %530 : vector<1x1x1x8xf32> to vector<2x8x8x8xf32>
    %532 = arith.mulf %527, %531 : vector<2x8x8x8xf32>
    %533 = arith.addf %526, %532 : vector<2x8x8x8xf32>
    %c0_364 = arith.constant 0 : index
    %c1_365 = arith.constant 1 : index
    %c1_366 = arith.constant 1 : index
    %c0_367 = arith.constant 0 : index
    %534 = vector.load %arg14[%c0_364, %c1_365, %c1_366, %c0_367] : memref<2x10x10x8xf32, #tpu.memory_space<vmem>>, vector<2x8x8x8xf32>
    %535 = vector.extract_strided_slice %501 {offsets = [1, 1, 0], sizes = [1, 1, 8], strides = [1, 1, 1]} : vector<3x3x8xf32> to vector<1x1x8xf32>
    %536 = vector.shape_cast %535 : vector<1x1x8xf32> to vector<8xf32>
    %537 = vector.shape_cast %536 : vector<8xf32> to vector<1x1x1x8xf32>
    %538 = vector.broadcast %537 : vector<1x1x1x8xf32> to vector<2x8x8x8xf32>
    %539 = arith.mulf %534, %538 : vector<2x8x8x8xf32>
    %540 = arith.addf %533, %539 : vector<2x8x8x8xf32>
    %c0_368 = arith.constant 0 : index
    %c1_369 = arith.constant 1 : index
    %c2_370 = arith.constant 2 : index
    %c0_371 = arith.constant 0 : index
    %541 = vector.load %arg14[%c0_368, %c1_369, %c2_370, %c0_371] : memref<2x10x10x8xf32, #tpu.memory_space<vmem>>, vector<2x8x8x8xf32>
    %542 = vector.extract_strided_slice %501 {offsets = [1, 2, 0], sizes = [1, 1, 8], strides = [1, 1, 1]} : vector<3x3x8xf32> to vector<1x1x8xf32>
    %543 = vector.shape_cast %542 : vector<1x1x8xf32> to vector<8xf32>
    %544 = vector.shape_cast %543 : vector<8xf32> to vector<1x1x1x8xf32>
    %545 = vector.broadcast %544 : vector<1x1x1x8xf32> to vector<2x8x8x8xf32>
    %546 = arith.mulf %541, %545 : vector<2x8x8x8xf32>
    %547 = arith.addf %540, %546 : vector<2x8x8x8xf32>
    %c0_372 = arith.constant 0 : index
    %c2_373 = arith.constant 2 : index
    %c0_374 = arith.constant 0 : index
    %c0_375 = arith.constant 0 : index
    %548 = vector.load %arg14[%c0_372, %c2_373, %c0_374, %c0_375] : memref<2x10x10x8xf32, #tpu.memory_space<vmem>>, vector<2x8x8x8xf32>
    %549 = vector.extract_strided_slice %501 {offsets = [2, 0, 0], sizes = [1, 1, 8], strides = [1, 1, 1]} : vector<3x3x8xf32> to vector<1x1x8xf32>
    %550 = vector.shape_cast %549 : vector<1x1x8xf32> to vector<8xf32>
    %551 = vector.shape_cast %550 : vector<8xf32> to vector<1x1x1x8xf32>
    %552 = vector.broadcast %551 : vector<1x1x1x8xf32> to vector<2x8x8x8xf32>
    %553 = arith.mulf %548, %552 : vector<2x8x8x8xf32>
    %554 = arith.addf %547, %553 : vector<2x8x8x8xf32>
    %c0_376 = arith.constant 0 : index
    %c2_377 = arith.constant 2 : index
    %c1_378 = arith.constant 1 : index
    %c0_379 = arith.constant 0 : index
    %555 = vector.load %arg14[%c0_376, %c2_377, %c1_378, %c0_379] : memref<2x10x10x8xf32, #tpu.memory_space<vmem>>, vector<2x8x8x8xf32>
    %556 = vector.extract_strided_slice %501 {offsets = [2, 1, 0], sizes = [1, 1, 8], strides = [1, 1, 1]} : vector<3x3x8xf32> to vector<1x1x8xf32>
    %557 = vector.shape_cast %556 : vector<1x1x8xf32> to vector<8xf32>
    %558 = vector.shape_cast %557 : vector<8xf32> to vector<1x1x1x8xf32>
    %559 = vector.broadcast %558 : vector<1x1x1x8xf32> to vector<2x8x8x8xf32>
    %560 = arith.mulf %555, %559 : vector<2x8x8x8xf32>
    %561 = arith.addf %554, %560 : vector<2x8x8x8xf32>
    %c0_380 = arith.constant 0 : index
    %c2_381 = arith.constant 2 : index
    %c2_382 = arith.constant 2 : index
    %c0_383 = arith.constant 0 : index
    %562 = vector.load %arg14[%c0_380, %c2_381, %c2_382, %c0_383] : memref<2x10x10x8xf32, #tpu.memory_space<vmem>>, vector<2x8x8x8xf32>
    %563 = vector.extract_strided_slice %501 {offsets = [2, 2, 0], sizes = [1, 1, 8], strides = [1, 1, 1]} : vector<3x3x8xf32> to vector<1x1x8xf32>
    %564 = vector.shape_cast %563 : vector<1x1x8xf32> to vector<8xf32>
    %565 = vector.shape_cast %564 : vector<8xf32> to vector<1x1x1x8xf32>
    %566 = vector.broadcast %565 : vector<1x1x1x8xf32> to vector<2x8x8x8xf32>
    %567 = arith.mulf %562, %566 : vector<2x8x8x8xf32>
    %568 = arith.addf %561, %567 : vector<2x8x8x8xf32>
    %c3_384 = arith.constant 3 : index
    %c0_385 = arith.constant 0 : index
    %c0_386 = arith.constant 0 : index
    %569 = vector.load %arg8[%c3_384, %c0_385, %c0_386] : memref<5x8x8xbf16, #tpu.memory_space<vmem>>, vector<1x8x8xbf16>
    %570 = vector.shape_cast %569 : vector<1x8x8xbf16> to vector<8x8xbf16>
    %c3_387 = arith.constant 3 : index
    %c0_388 = arith.constant 0 : index
    %c0_389 = arith.constant 0 : index
    %571 = vector.load %arg9[%c3_387, %c0_388, %c0_389] : memref<5x1x8xf32, #tpu.memory_space<vmem>>, vector<1x1x8xf32>
    %572 = vector.shape_cast %571 : vector<1x1x8xf32> to vector<1x8xf32>
    %573 = vector.shape_cast %568 : vector<2x8x8x8xf32> to vector<128x8xf32>
    %574 = arith.truncf %573 : vector<128x8xf32> to vector<128x8xbf16>
    %cst_390 = arith.constant dense<0.000000e+00> : vector<128x8xf32>
    %575 = tpu.matmul %574, %570, %cst_390 {dimension_numbers = #tpu.dot_dimension_numbers<[1], [0], [0], [1], [0, 0, 1, 1], [], []>} : vector<128x8xbf16>, vector<8x8xbf16>, vector<128x8xf32> -> vector<128x8xf32>
    %576 = vector.broadcast %572 : vector<1x8xf32> to vector<128x8xf32>
    %577 = arith.addf %575, %576 : vector<128x8xf32>
    %578 = vector.shape_cast %577 : vector<128x8xf32> to vector<2x8x8x8xf32>
    %c3_391 = arith.constant 3 : index
    %c0_392 = arith.constant 0 : index
    %c0_393 = arith.constant 0 : index
    %c0_394 = arith.constant 0 : index
    %579 = vector.load %arg10[%c3_391, %c0_392, %c0_393, %c0_394] : memref<5x3x3x8xf32, #tpu.memory_space<vmem>>, vector<1x3x3x8xf32>
    %580 = vector.shape_cast %579 : vector<1x3x3x8xf32> to vector<3x3x8xf32>
    %cst_395 = arith.constant 0.000000e+00 : f32
    %581 = vector.broadcast %cst_395 : f32 to vector<2x8x8x8xf32>
    %582 = arith.maximumf %578, %581 : vector<2x8x8x8xf32>
    %c0_396 = arith.constant 0 : index
    %c1_397 = arith.constant 1 : index
    %c1_398 = arith.constant 1 : index
    %c0_399 = arith.constant 0 : index
    %583 = vector.load %arg14[%c0_396, %c1_397, %c1_398, %c0_399] : memref<2x10x10x8xf32, #tpu.memory_space<vmem>>, vector<2x8x8x8xf32>
    tpu.vector_store %arg14[%c0_396, %c1_397, %c1_398, %c0_399], %582 {strides = array<i32>} : memref<2x10x10x8xf32, #tpu.memory_space<vmem>>, vector<2x8x8x8xf32>,
    %cst_400 = arith.constant 0.000000e+00 : f32
    %584 = vector.broadcast %cst_400 : f32 to vector<2x8x8x8xf32>
    %c0_401 = arith.constant 0 : index
    %c0_402 = arith.constant 0 : index
    %c0_403 = arith.constant 0 : index
    %c0_404 = arith.constant 0 : index
    %585 = vector.load %arg14[%c0_401, %c0_402, %c0_403, %c0_404] : memref<2x10x10x8xf32, #tpu.memory_space<vmem>>, vector<2x8x8x8xf32>
    %586 = vector.extract_strided_slice %580 {offsets = [0, 0, 0], sizes = [1, 1, 8], strides = [1, 1, 1]} : vector<3x3x8xf32> to vector<1x1x8xf32>
    %587 = vector.shape_cast %586 : vector<1x1x8xf32> to vector<8xf32>
    %588 = vector.shape_cast %587 : vector<8xf32> to vector<1x1x1x8xf32>
    %589 = vector.broadcast %588 : vector<1x1x1x8xf32> to vector<2x8x8x8xf32>
    %590 = arith.mulf %585, %589 : vector<2x8x8x8xf32>
    %591 = arith.addf %584, %590 : vector<2x8x8x8xf32>
    %c0_405 = arith.constant 0 : index
    %c0_406 = arith.constant 0 : index
    %c1_407 = arith.constant 1 : index
    %c0_408 = arith.constant 0 : index
    %592 = vector.load %arg14[%c0_405, %c0_406, %c1_407, %c0_408] : memref<2x10x10x8xf32, #tpu.memory_space<vmem>>, vector<2x8x8x8xf32>
    %593 = vector.extract_strided_slice %580 {offsets = [0, 1, 0], sizes = [1, 1, 8], strides = [1, 1, 1]} : vector<3x3x8xf32> to vector<1x1x8xf32>
    %594 = vector.shape_cast %593 : vector<1x1x8xf32> to vector<8xf32>
    %595 = vector.shape_cast %594 : vector<8xf32> to vector<1x1x1x8xf32>
    %596 = vector.broadcast %595 : vector<1x1x1x8xf32> to vector<2x8x8x8xf32>
    %597 = arith.mulf %592, %596 : vector<2x8x8x8xf32>
    %598 = arith.addf %591, %597 : vector<2x8x8x8xf32>
    %c0_409 = arith.constant 0 : index
    %c0_410 = arith.constant 0 : index
    %c2_411 = arith.constant 2 : index
    %c0_412 = arith.constant 0 : index
    %599 = vector.load %arg14[%c0_409, %c0_410, %c2_411, %c0_412] : memref<2x10x10x8xf32, #tpu.memory_space<vmem>>, vector<2x8x8x8xf32>
    %600 = vector.extract_strided_slice %580 {offsets = [0, 2, 0], sizes = [1, 1, 8], strides = [1, 1, 1]} : vector<3x3x8xf32> to vector<1x1x8xf32>
    %601 = vector.shape_cast %600 : vector<1x1x8xf32> to vector<8xf32>
    %602 = vector.shape_cast %601 : vector<8xf32> to vector<1x1x1x8xf32>
    %603 = vector.broadcast %602 : vector<1x1x1x8xf32> to vector<2x8x8x8xf32>
    %604 = arith.mulf %599, %603 : vector<2x8x8x8xf32>
    %605 = arith.addf %598, %604 : vector<2x8x8x8xf32>
    %c0_413 = arith.constant 0 : index
    %c1_414 = arith.constant 1 : index
    %c0_415 = arith.constant 0 : index
    %c0_416 = arith.constant 0 : index
    %606 = vector.load %arg14[%c0_413, %c1_414, %c0_415, %c0_416] : memref<2x10x10x8xf32, #tpu.memory_space<vmem>>, vector<2x8x8x8xf32>
    %607 = vector.extract_strided_slice %580 {offsets = [1, 0, 0], sizes = [1, 1, 8], strides = [1, 1, 1]} : vector<3x3x8xf32> to vector<1x1x8xf32>
    %608 = vector.shape_cast %607 : vector<1x1x8xf32> to vector<8xf32>
    %609 = vector.shape_cast %608 : vector<8xf32> to vector<1x1x1x8xf32>
    %610 = vector.broadcast %609 : vector<1x1x1x8xf32> to vector<2x8x8x8xf32>
    %611 = arith.mulf %606, %610 : vector<2x8x8x8xf32>
    %612 = arith.addf %605, %611 : vector<2x8x8x8xf32>
    %c0_417 = arith.constant 0 : index
    %c1_418 = arith.constant 1 : index
    %c1_419 = arith.constant 1 : index
    %c0_420 = arith.constant 0 : index
    %613 = vector.load %arg14[%c0_417, %c1_418, %c1_419, %c0_420] : memref<2x10x10x8xf32, #tpu.memory_space<vmem>>, vector<2x8x8x8xf32>
    %614 = vector.extract_strided_slice %580 {offsets = [1, 1, 0], sizes = [1, 1, 8], strides = [1, 1, 1]} : vector<3x3x8xf32> to vector<1x1x8xf32>
    %615 = vector.shape_cast %614 : vector<1x1x8xf32> to vector<8xf32>
    %616 = vector.shape_cast %615 : vector<8xf32> to vector<1x1x1x8xf32>
    %617 = vector.broadcast %616 : vector<1x1x1x8xf32> to vector<2x8x8x8xf32>
    %618 = arith.mulf %613, %617 : vector<2x8x8x8xf32>
    %619 = arith.addf %612, %618 : vector<2x8x8x8xf32>
    %c0_421 = arith.constant 0 : index
    %c1_422 = arith.constant 1 : index
    %c2_423 = arith.constant 2 : index
    %c0_424 = arith.constant 0 : index
    %620 = vector.load %arg14[%c0_421, %c1_422, %c2_423, %c0_424] : memref<2x10x10x8xf32, #tpu.memory_space<vmem>>, vector<2x8x8x8xf32>
    %621 = vector.extract_strided_slice %580 {offsets = [1, 2, 0], sizes = [1, 1, 8], strides = [1, 1, 1]} : vector<3x3x8xf32> to vector<1x1x8xf32>
    %622 = vector.shape_cast %621 : vector<1x1x8xf32> to vector<8xf32>
    %623 = vector.shape_cast %622 : vector<8xf32> to vector<1x1x1x8xf32>
    %624 = vector.broadcast %623 : vector<1x1x1x8xf32> to vector<2x8x8x8xf32>
    %625 = arith.mulf %620, %624 : vector<2x8x8x8xf32>
    %626 = arith.addf %619, %625 : vector<2x8x8x8xf32>
    %c0_425 = arith.constant 0 : index
    %c2_426 = arith.constant 2 : index
    %c0_427 = arith.constant 0 : index
    %c0_428 = arith.constant 0 : index
    %627 = vector.load %arg14[%c0_425, %c2_426, %c0_427, %c0_428] : memref<2x10x10x8xf32, #tpu.memory_space<vmem>>, vector<2x8x8x8xf32>
    %628 = vector.extract_strided_slice %580 {offsets = [2, 0, 0], sizes = [1, 1, 8], strides = [1, 1, 1]} : vector<3x3x8xf32> to vector<1x1x8xf32>
    %629 = vector.shape_cast %628 : vector<1x1x8xf32> to vector<8xf32>
    %630 = vector.shape_cast %629 : vector<8xf32> to vector<1x1x1x8xf32>
    %631 = vector.broadcast %630 : vector<1x1x1x8xf32> to vector<2x8x8x8xf32>
    %632 = arith.mulf %627, %631 : vector<2x8x8x8xf32>
    %633 = arith.addf %626, %632 : vector<2x8x8x8xf32>
    %c0_429 = arith.constant 0 : index
    %c2_430 = arith.constant 2 : index
    %c1_431 = arith.constant 1 : index
    %c0_432 = arith.constant 0 : index
    %634 = vector.load %arg14[%c0_429, %c2_430, %c1_431, %c0_432] : memref<2x10x10x8xf32, #tpu.memory_space<vmem>>, vector<2x8x8x8xf32>
    %635 = vector.extract_strided_slice %580 {offsets = [2, 1, 0], sizes = [1, 1, 8], strides = [1, 1, 1]} : vector<3x3x8xf32> to vector<1x1x8xf32>
    %636 = vector.shape_cast %635 : vector<1x1x8xf32> to vector<8xf32>
    %637 = vector.shape_cast %636 : vector<8xf32> to vector<1x1x1x8xf32>
    %638 = vector.broadcast %637 : vector<1x1x1x8xf32> to vector<2x8x8x8xf32>
    %639 = arith.mulf %634, %638 : vector<2x8x8x8xf32>
    %640 = arith.addf %633, %639 : vector<2x8x8x8xf32>
    %c0_433 = arith.constant 0 : index
    %c2_434 = arith.constant 2 : index
    %c2_435 = arith.constant 2 : index
    %c0_436 = arith.constant 0 : index
    %641 = vector.load %arg14[%c0_433, %c2_434, %c2_435, %c0_436] : memref<2x10x10x8xf32, #tpu.memory_space<vmem>>, vector<2x8x8x8xf32>
    %642 = vector.extract_strided_slice %580 {offsets = [2, 2, 0], sizes = [1, 1, 8], strides = [1, 1, 1]} : vector<3x3x8xf32> to vector<1x1x8xf32>
    %643 = vector.shape_cast %642 : vector<1x1x8xf32> to vector<8xf32>
    %644 = vector.shape_cast %643 : vector<8xf32> to vector<1x1x1x8xf32>
    %645 = vector.broadcast %644 : vector<1x1x1x8xf32> to vector<2x8x8x8xf32>
    %646 = arith.mulf %641, %645 : vector<2x8x8x8xf32>
    %647 = arith.addf %640, %646 : vector<2x8x8x8xf32>
    %c3_437 = arith.constant 3 : index
    %c0_438 = arith.constant 0 : index
    %c0_439 = arith.constant 0 : index
    %648 = vector.load %arg11[%c3_437, %c0_438, %c0_439] : memref<5x8x8xbf16, #tpu.memory_space<vmem>>, vector<1x8x8xbf16>
    %649 = vector.shape_cast %648 : vector<1x8x8xbf16> to vector<8x8xbf16>
    %c3_440 = arith.constant 3 : index
    %c0_441 = arith.constant 0 : index
    %c0_442 = arith.constant 0 : index
    %650 = vector.load %arg12[%c3_440, %c0_441, %c0_442] : memref<5x1x8xf32, #tpu.memory_space<vmem>>, vector<1x1x8xf32>
    %651 = vector.shape_cast %650 : vector<1x1x8xf32> to vector<1x8xf32>
    %652 = vector.shape_cast %647 : vector<2x8x8x8xf32> to vector<128x8xf32>
    %653 = arith.truncf %652 : vector<128x8xf32> to vector<128x8xbf16>
    %cst_443 = arith.constant dense<0.000000e+00> : vector<128x8xf32>
    %654 = tpu.matmul %653, %649, %cst_443 {dimension_numbers = #tpu.dot_dimension_numbers<[1], [0], [0], [1], [0, 0, 1, 1], [], []>} : vector<128x8xbf16>, vector<8x8xbf16>, vector<128x8xf32> -> vector<128x8xf32>
    %655 = vector.broadcast %651 : vector<1x8xf32> to vector<128x8xf32>
    %656 = arith.addf %654, %655 : vector<128x8xf32>
    %657 = vector.shape_cast %656 : vector<128x8xf32> to vector<2x8x8x8xf32>
    %658 = arith.addf %12, %657 : vector<2x8x8x8xf32>
    %c4 = arith.constant 4 : index
    %c0_444 = arith.constant 0 : index
    %c0_445 = arith.constant 0 : index
    %c0_446 = arith.constant 0 : index
    %659 = vector.load %arg7[%c4, %c0_444, %c0_445, %c0_446] : memref<5x3x3x8xf32, #tpu.memory_space<vmem>>, vector<1x3x3x8xf32>
    %660 = vector.shape_cast %659 : vector<1x3x3x8xf32> to vector<3x3x8xf32>
    %cst_447 = arith.constant 0.000000e+00 : f32
    %661 = vector.broadcast %cst_447 : f32 to vector<2x8x8x8xf32>
    %662 = arith.maximumf %12, %661 : vector<2x8x8x8xf32>
    %c0_448 = arith.constant 0 : index
    %c1_449 = arith.constant 1 : index
    %c1_450 = arith.constant 1 : index
    %c0_451 = arith.constant 0 : index
    %663 = vector.load %arg14[%c0_448, %c1_449, %c1_450, %c0_451] : memref<2x10x10x8xf32, #tpu.memory_space<vmem>>, vector<2x8x8x8xf32>
    tpu.vector_store %arg14[%c0_448, %c1_449, %c1_450, %c0_451], %662 {strides = array<i32>} : memref<2x10x10x8xf32, #tpu.memory_space<vmem>>, vector<2x8x8x8xf32>,
    %cst_452 = arith.constant 0.000000e+00 : f32
    %664 = vector.broadcast %cst_452 : f32 to vector<2x8x8x8xf32>
    %c0_453 = arith.constant 0 : index
    %c0_454 = arith.constant 0 : index
    %c0_455 = arith.constant 0 : index
    %c0_456 = arith.constant 0 : index
    %665 = vector.load %arg14[%c0_453, %c0_454, %c0_455, %c0_456] : memref<2x10x10x8xf32, #tpu.memory_space<vmem>>, vector<2x8x8x8xf32>
    %666 = vector.extract_strided_slice %660 {offsets = [0, 0, 0], sizes = [1, 1, 8], strides = [1, 1, 1]} : vector<3x3x8xf32> to vector<1x1x8xf32>
    %667 = vector.shape_cast %666 : vector<1x1x8xf32> to vector<8xf32>
    %668 = vector.shape_cast %667 : vector<8xf32> to vector<1x1x1x8xf32>
    %669 = vector.broadcast %668 : vector<1x1x1x8xf32> to vector<2x8x8x8xf32>
    %670 = arith.mulf %665, %669 : vector<2x8x8x8xf32>
    %671 = arith.addf %664, %670 : vector<2x8x8x8xf32>
    %c0_457 = arith.constant 0 : index
    %c0_458 = arith.constant 0 : index
    %c1_459 = arith.constant 1 : index
    %c0_460 = arith.constant 0 : index
    %672 = vector.load %arg14[%c0_457, %c0_458, %c1_459, %c0_460] : memref<2x10x10x8xf32, #tpu.memory_space<vmem>>, vector<2x8x8x8xf32>
    %673 = vector.extract_strided_slice %660 {offsets = [0, 1, 0], sizes = [1, 1, 8], strides = [1, 1, 1]} : vector<3x3x8xf32> to vector<1x1x8xf32>
    %674 = vector.shape_cast %673 : vector<1x1x8xf32> to vector<8xf32>
    %675 = vector.shape_cast %674 : vector<8xf32> to vector<1x1x1x8xf32>
    %676 = vector.broadcast %675 : vector<1x1x1x8xf32> to vector<2x8x8x8xf32>
    %677 = arith.mulf %672, %676 : vector<2x8x8x8xf32>
    %678 = arith.addf %671, %677 : vector<2x8x8x8xf32>
    %c0_461 = arith.constant 0 : index
    %c0_462 = arith.constant 0 : index
    %c2_463 = arith.constant 2 : index
    %c0_464 = arith.constant 0 : index
    %679 = vector.load %arg14[%c0_461, %c0_462, %c2_463, %c0_464] : memref<2x10x10x8xf32, #tpu.memory_space<vmem>>, vector<2x8x8x8xf32>
    %680 = vector.extract_strided_slice %660 {offsets = [0, 2, 0], sizes = [1, 1, 8], strides = [1, 1, 1]} : vector<3x3x8xf32> to vector<1x1x8xf32>
    %681 = vector.shape_cast %680 : vector<1x1x8xf32> to vector<8xf32>
    %682 = vector.shape_cast %681 : vector<8xf32> to vector<1x1x1x8xf32>
    %683 = vector.broadcast %682 : vector<1x1x1x8xf32> to vector<2x8x8x8xf32>
    %684 = arith.mulf %679, %683 : vector<2x8x8x8xf32>
    %685 = arith.addf %678, %684 : vector<2x8x8x8xf32>
    %c0_465 = arith.constant 0 : index
    %c1_466 = arith.constant 1 : index
    %c0_467 = arith.constant 0 : index
    %c0_468 = arith.constant 0 : index
    %686 = vector.load %arg14[%c0_465, %c1_466, %c0_467, %c0_468] : memref<2x10x10x8xf32, #tpu.memory_space<vmem>>, vector<2x8x8x8xf32>
    %687 = vector.extract_strided_slice %660 {offsets = [1, 0, 0], sizes = [1, 1, 8], strides = [1, 1, 1]} : vector<3x3x8xf32> to vector<1x1x8xf32>
    %688 = vector.shape_cast %687 : vector<1x1x8xf32> to vector<8xf32>
    %689 = vector.shape_cast %688 : vector<8xf32> to vector<1x1x1x8xf32>
    %690 = vector.broadcast %689 : vector<1x1x1x8xf32> to vector<2x8x8x8xf32>
    %691 = arith.mulf %686, %690 : vector<2x8x8x8xf32>
    %692 = arith.addf %685, %691 : vector<2x8x8x8xf32>
    %c0_469 = arith.constant 0 : index
    %c1_470 = arith.constant 1 : index
    %c1_471 = arith.constant 1 : index
    %c0_472 = arith.constant 0 : index
    %693 = vector.load %arg14[%c0_469, %c1_470, %c1_471, %c0_472] : memref<2x10x10x8xf32, #tpu.memory_space<vmem>>, vector<2x8x8x8xf32>
    %694 = vector.extract_strided_slice %660 {offsets = [1, 1, 0], sizes = [1, 1, 8], strides = [1, 1, 1]} : vector<3x3x8xf32> to vector<1x1x8xf32>
    %695 = vector.shape_cast %694 : vector<1x1x8xf32> to vector<8xf32>
    %696 = vector.shape_cast %695 : vector<8xf32> to vector<1x1x1x8xf32>
    %697 = vector.broadcast %696 : vector<1x1x1x8xf32> to vector<2x8x8x8xf32>
    %698 = arith.mulf %693, %697 : vector<2x8x8x8xf32>
    %699 = arith.addf %692, %698 : vector<2x8x8x8xf32>
    %c0_473 = arith.constant 0 : index
    %c1_474 = arith.constant 1 : index
    %c2_475 = arith.constant 2 : index
    %c0_476 = arith.constant 0 : index
    %700 = vector.load %arg14[%c0_473, %c1_474, %c2_475, %c0_476] : memref<2x10x10x8xf32, #tpu.memory_space<vmem>>, vector<2x8x8x8xf32>
    %701 = vector.extract_strided_slice %660 {offsets = [1, 2, 0], sizes = [1, 1, 8], strides = [1, 1, 1]} : vector<3x3x8xf32> to vector<1x1x8xf32>
    %702 = vector.shape_cast %701 : vector<1x1x8xf32> to vector<8xf32>
    %703 = vector.shape_cast %702 : vector<8xf32> to vector<1x1x1x8xf32>
    %704 = vector.broadcast %703 : vector<1x1x1x8xf32> to vector<2x8x8x8xf32>
    %705 = arith.mulf %700, %704 : vector<2x8x8x8xf32>
    %706 = arith.addf %699, %705 : vector<2x8x8x8xf32>
    %c0_477 = arith.constant 0 : index
    %c2_478 = arith.constant 2 : index
    %c0_479 = arith.constant 0 : index
    %c0_480 = arith.constant 0 : index
    %707 = vector.load %arg14[%c0_477, %c2_478, %c0_479, %c0_480] : memref<2x10x10x8xf32, #tpu.memory_space<vmem>>, vector<2x8x8x8xf32>
    %708 = vector.extract_strided_slice %660 {offsets = [2, 0, 0], sizes = [1, 1, 8], strides = [1, 1, 1]} : vector<3x3x8xf32> to vector<1x1x8xf32>
    %709 = vector.shape_cast %708 : vector<1x1x8xf32> to vector<8xf32>
    %710 = vector.shape_cast %709 : vector<8xf32> to vector<1x1x1x8xf32>
    %711 = vector.broadcast %710 : vector<1x1x1x8xf32> to vector<2x8x8x8xf32>
    %712 = arith.mulf %707, %711 : vector<2x8x8x8xf32>
    %713 = arith.addf %706, %712 : vector<2x8x8x8xf32>
    %c0_481 = arith.constant 0 : index
    %c2_482 = arith.constant 2 : index
    %c1_483 = arith.constant 1 : index
    %c0_484 = arith.constant 0 : index
    %714 = vector.load %arg14[%c0_481, %c2_482, %c1_483, %c0_484] : memref<2x10x10x8xf32, #tpu.memory_space<vmem>>, vector<2x8x8x8xf32>
    %715 = vector.extract_strided_slice %660 {offsets = [2, 1, 0], sizes = [1, 1, 8], strides = [1, 1, 1]} : vector<3x3x8xf32> to vector<1x1x8xf32>
    %716 = vector.shape_cast %715 : vector<1x1x8xf32> to vector<8xf32>
    %717 = vector.shape_cast %716 : vector<8xf32> to vector<1x1x1x8xf32>
    %718 = vector.broadcast %717 : vector<1x1x1x8xf32> to vector<2x8x8x8xf32>
    %719 = arith.mulf %714, %718 : vector<2x8x8x8xf32>
    %720 = arith.addf %713, %719 : vector<2x8x8x8xf32>
    %c0_485 = arith.constant 0 : index
    %c2_486 = arith.constant 2 : index
    %c2_487 = arith.constant 2 : index
    %c0_488 = arith.constant 0 : index
    %721 = vector.load %arg14[%c0_485, %c2_486, %c2_487, %c0_488] : memref<2x10x10x8xf32, #tpu.memory_space<vmem>>, vector<2x8x8x8xf32>
    %722 = vector.extract_strided_slice %660 {offsets = [2, 2, 0], sizes = [1, 1, 8], strides = [1, 1, 1]} : vector<3x3x8xf32> to vector<1x1x8xf32>
    %723 = vector.shape_cast %722 : vector<1x1x8xf32> to vector<8xf32>
    %724 = vector.shape_cast %723 : vector<8xf32> to vector<1x1x1x8xf32>
    %725 = vector.broadcast %724 : vector<1x1x1x8xf32> to vector<2x8x8x8xf32>
    %726 = arith.mulf %721, %725 : vector<2x8x8x8xf32>
    %727 = arith.addf %720, %726 : vector<2x8x8x8xf32>
    %c4_489 = arith.constant 4 : index
    %c0_490 = arith.constant 0 : index
    %c0_491 = arith.constant 0 : index
    %728 = vector.load %arg8[%c4_489, %c0_490, %c0_491] : memref<5x8x8xbf16, #tpu.memory_space<vmem>>, vector<1x8x8xbf16>
    %729 = vector.shape_cast %728 : vector<1x8x8xbf16> to vector<8x8xbf16>
    %c4_492 = arith.constant 4 : index
    %c0_493 = arith.constant 0 : index
    %c0_494 = arith.constant 0 : index
    %730 = vector.load %arg9[%c4_492, %c0_493, %c0_494] : memref<5x1x8xf32, #tpu.memory_space<vmem>>, vector<1x1x8xf32>
    %731 = vector.shape_cast %730 : vector<1x1x8xf32> to vector<1x8xf32>
    %732 = vector.shape_cast %727 : vector<2x8x8x8xf32> to vector<128x8xf32>
    %733 = arith.truncf %732 : vector<128x8xf32> to vector<128x8xbf16>
    %cst_495 = arith.constant dense<0.000000e+00> : vector<128x8xf32>
    %734 = tpu.matmul %733, %729, %cst_495 {dimension_numbers = #tpu.dot_dimension_numbers<[1], [0], [0], [1], [0, 0, 1, 1], [], []>} : vector<128x8xbf16>, vector<8x8xbf16>, vector<128x8xf32> -> vector<128x8xf32>
    %735 = vector.broadcast %731 : vector<1x8xf32> to vector<128x8xf32>
    %736 = arith.addf %734, %735 : vector<128x8xf32>
    %737 = vector.shape_cast %736 : vector<128x8xf32> to vector<2x8x8x8xf32>
    %c4_496 = arith.constant 4 : index
    %c0_497 = arith.constant 0 : index
    %c0_498 = arith.constant 0 : index
    %c0_499 = arith.constant 0 : index
    %738 = vector.load %arg10[%c4_496, %c0_497, %c0_498, %c0_499] : memref<5x3x3x8xf32, #tpu.memory_space<vmem>>, vector<1x3x3x8xf32>
    %739 = vector.shape_cast %738 : vector<1x3x3x8xf32> to vector<3x3x8xf32>
    %cst_500 = arith.constant 0.000000e+00 : f32
    %740 = vector.broadcast %cst_500 : f32 to vector<2x8x8x8xf32>
    %741 = arith.maximumf %737, %740 : vector<2x8x8x8xf32>
    %c0_501 = arith.constant 0 : index
    %c1_502 = arith.constant 1 : index
    %c1_503 = arith.constant 1 : index
    %c0_504 = arith.constant 0 : index
    %742 = vector.load %arg14[%c0_501, %c1_502, %c1_503, %c0_504] : memref<2x10x10x8xf32, #tpu.memory_space<vmem>>, vector<2x8x8x8xf32>
    tpu.vector_store %arg14[%c0_501, %c1_502, %c1_503, %c0_504], %741 {strides = array<i32>} : memref<2x10x10x8xf32, #tpu.memory_space<vmem>>, vector<2x8x8x8xf32>,
    %cst_505 = arith.constant 0.000000e+00 : f32
    %743 = vector.broadcast %cst_505 : f32 to vector<2x8x8x8xf32>
    %c0_506 = arith.constant 0 : index
    %c0_507 = arith.constant 0 : index
    %c0_508 = arith.constant 0 : index
    %c0_509 = arith.constant 0 : index
    %744 = vector.load %arg14[%c0_506, %c0_507, %c0_508, %c0_509] : memref<2x10x10x8xf32, #tpu.memory_space<vmem>>, vector<2x8x8x8xf32>
    %745 = vector.extract_strided_slice %739 {offsets = [0, 0, 0], sizes = [1, 1, 8], strides = [1, 1, 1]} : vector<3x3x8xf32> to vector<1x1x8xf32>
    %746 = vector.shape_cast %745 : vector<1x1x8xf32> to vector<8xf32>
    %747 = vector.shape_cast %746 : vector<8xf32> to vector<1x1x1x8xf32>
    %748 = vector.broadcast %747 : vector<1x1x1x8xf32> to vector<2x8x8x8xf32>
    %749 = arith.mulf %744, %748 : vector<2x8x8x8xf32>
    %750 = arith.addf %743, %749 : vector<2x8x8x8xf32>
    %c0_510 = arith.constant 0 : index
    %c0_511 = arith.constant 0 : index
    %c1_512 = arith.constant 1 : index
    %c0_513 = arith.constant 0 : index
    %751 = vector.load %arg14[%c0_510, %c0_511, %c1_512, %c0_513] : memref<2x10x10x8xf32, #tpu.memory_space<vmem>>, vector<2x8x8x8xf32>
    %752 = vector.extract_strided_slice %739 {offsets = [0, 1, 0], sizes = [1, 1, 8], strides = [1, 1, 1]} : vector<3x3x8xf32> to vector<1x1x8xf32>
    %753 = vector.shape_cast %752 : vector<1x1x8xf32> to vector<8xf32>
    %754 = vector.shape_cast %753 : vector<8xf32> to vector<1x1x1x8xf32>
    %755 = vector.broadcast %754 : vector<1x1x1x8xf32> to vector<2x8x8x8xf32>
    %756 = arith.mulf %751, %755 : vector<2x8x8x8xf32>
    %757 = arith.addf %750, %756 : vector<2x8x8x8xf32>
    %c0_514 = arith.constant 0 : index
    %c0_515 = arith.constant 0 : index
    %c2_516 = arith.constant 2 : index
    %c0_517 = arith.constant 0 : index
    %758 = vector.load %arg14[%c0_514, %c0_515, %c2_516, %c0_517] : memref<2x10x10x8xf32, #tpu.memory_space<vmem>>, vector<2x8x8x8xf32>
    %759 = vector.extract_strided_slice %739 {offsets = [0, 2, 0], sizes = [1, 1, 8], strides = [1, 1, 1]} : vector<3x3x8xf32> to vector<1x1x8xf32>
    %760 = vector.shape_cast %759 : vector<1x1x8xf32> to vector<8xf32>
    %761 = vector.shape_cast %760 : vector<8xf32> to vector<1x1x1x8xf32>
    %762 = vector.broadcast %761 : vector<1x1x1x8xf32> to vector<2x8x8x8xf32>
    %763 = arith.mulf %758, %762 : vector<2x8x8x8xf32>
    %764 = arith.addf %757, %763 : vector<2x8x8x8xf32>
    %c0_518 = arith.constant 0 : index
    %c1_519 = arith.constant 1 : index
    %c0_520 = arith.constant 0 : index
    %c0_521 = arith.constant 0 : index
    %765 = vector.load %arg14[%c0_518, %c1_519, %c0_520, %c0_521] : memref<2x10x10x8xf32, #tpu.memory_space<vmem>>, vector<2x8x8x8xf32>
    %766 = vector.extract_strided_slice %739 {offsets = [1, 0, 0], sizes = [1, 1, 8], strides = [1, 1, 1]} : vector<3x3x8xf32> to vector<1x1x8xf32>
    %767 = vector.shape_cast %766 : vector<1x1x8xf32> to vector<8xf32>
    %768 = vector.shape_cast %767 : vector<8xf32> to vector<1x1x1x8xf32>
    %769 = vector.broadcast %768 : vector<1x1x1x8xf32> to vector<2x8x8x8xf32>
    %770 = arith.mulf %765, %769 : vector<2x8x8x8xf32>
    %771 = arith.addf %764, %770 : vector<2x8x8x8xf32>
    %c0_522 = arith.constant 0 : index
    %c1_523 = arith.constant 1 : index
    %c1_524 = arith.constant 1 : index
    %c0_525 = arith.constant 0 : index
    %772 = vector.load %arg14[%c0_522, %c1_523, %c1_524, %c0_525] : memref<2x10x10x8xf32, #tpu.memory_space<vmem>>, vector<2x8x8x8xf32>
    %773 = vector.extract_strided_slice %739 {offsets = [1, 1, 0], sizes = [1, 1, 8], strides = [1, 1, 1]} : vector<3x3x8xf32> to vector<1x1x8xf32>
    %774 = vector.shape_cast %773 : vector<1x1x8xf32> to vector<8xf32>
    %775 = vector.shape_cast %774 : vector<8xf32> to vector<1x1x1x8xf32>
    %776 = vector.broadcast %775 : vector<1x1x1x8xf32> to vector<2x8x8x8xf32>
    %777 = arith.mulf %772, %776 : vector<2x8x8x8xf32>
    %778 = arith.addf %771, %777 : vector<2x8x8x8xf32>
    %c0_526 = arith.constant 0 : index
    %c1_527 = arith.constant 1 : index
    %c2_528 = arith.constant 2 : index
    %c0_529 = arith.constant 0 : index
    %779 = vector.load %arg14[%c0_526, %c1_527, %c2_528, %c0_529] : memref<2x10x10x8xf32, #tpu.memory_space<vmem>>, vector<2x8x8x8xf32>
    %780 = vector.extract_strided_slice %739 {offsets = [1, 2, 0], sizes = [1, 1, 8], strides = [1, 1, 1]} : vector<3x3x8xf32> to vector<1x1x8xf32>
    %781 = vector.shape_cast %780 : vector<1x1x8xf32> to vector<8xf32>
    %782 = vector.shape_cast %781 : vector<8xf32> to vector<1x1x1x8xf32>
    %783 = vector.broadcast %782 : vector<1x1x1x8xf32> to vector<2x8x8x8xf32>
    %784 = arith.mulf %779, %783 : vector<2x8x8x8xf32>
    %785 = arith.addf %778, %784 : vector<2x8x8x8xf32>
    %c0_530 = arith.constant 0 : index
    %c2_531 = arith.constant 2 : index
    %c0_532 = arith.constant 0 : index
    %c0_533 = arith.constant 0 : index
    %786 = vector.load %arg14[%c0_530, %c2_531, %c0_532, %c0_533] : memref<2x10x10x8xf32, #tpu.memory_space<vmem>>, vector<2x8x8x8xf32>
    %787 = vector.extract_strided_slice %739 {offsets = [2, 0, 0], sizes = [1, 1, 8], strides = [1, 1, 1]} : vector<3x3x8xf32> to vector<1x1x8xf32>
    %788 = vector.shape_cast %787 : vector<1x1x8xf32> to vector<8xf32>
    %789 = vector.shape_cast %788 : vector<8xf32> to vector<1x1x1x8xf32>
    %790 = vector.broadcast %789 : vector<1x1x1x8xf32> to vector<2x8x8x8xf32>
    %791 = arith.mulf %786, %790 : vector<2x8x8x8xf32>
    %792 = arith.addf %785, %791 : vector<2x8x8x8xf32>
    %c0_534 = arith.constant 0 : index
    %c2_535 = arith.constant 2 : index
    %c1_536 = arith.constant 1 : index
    %c0_537 = arith.constant 0 : index
    %793 = vector.load %arg14[%c0_534, %c2_535, %c1_536, %c0_537] : memref<2x10x10x8xf32, #tpu.memory_space<vmem>>, vector<2x8x8x8xf32>
    %794 = vector.extract_strided_slice %739 {offsets = [2, 1, 0], sizes = [1, 1, 8], strides = [1, 1, 1]} : vector<3x3x8xf32> to vector<1x1x8xf32>
    %795 = vector.shape_cast %794 : vector<1x1x8xf32> to vector<8xf32>
    %796 = vector.shape_cast %795 : vector<8xf32> to vector<1x1x1x8xf32>
    %797 = vector.broadcast %796 : vector<1x1x1x8xf32> to vector<2x8x8x8xf32>
    %798 = arith.mulf %793, %797 : vector<2x8x8x8xf32>
    %799 = arith.addf %792, %798 : vector<2x8x8x8xf32>
    %c0_538 = arith.constant 0 : index
    %c2_539 = arith.constant 2 : index
    %c2_540 = arith.constant 2 : index
    %c0_541 = arith.constant 0 : index
    %800 = vector.load %arg14[%c0_538, %c2_539, %c2_540, %c0_541] : memref<2x10x10x8xf32, #tpu.memory_space<vmem>>, vector<2x8x8x8xf32>
    %801 = vector.extract_strided_slice %739 {offsets = [2, 2, 0], sizes = [1, 1, 8], strides = [1, 1, 1]} : vector<3x3x8xf32> to vector<1x1x8xf32>
    %802 = vector.shape_cast %801 : vector<1x1x8xf32> to vector<8xf32>
    %803 = vector.shape_cast %802 : vector<8xf32> to vector<1x1x1x8xf32>
    %804 = vector.broadcast %803 : vector<1x1x1x8xf32> to vector<2x8x8x8xf32>
    %805 = arith.mulf %800, %804 : vector<2x8x8x8xf32>
    %806 = arith.addf %799, %805 : vector<2x8x8x8xf32>
    %c4_542 = arith.constant 4 : index
    %c0_543 = arith.constant 0 : index
    %c0_544 = arith.constant 0 : index
    %807 = vector.load %arg11[%c4_542, %c0_543, %c0_544] : memref<5x8x8xbf16, #tpu.memory_space<vmem>>, vector<1x8x8xbf16>
    %808 = vector.shape_cast %807 : vector<1x8x8xbf16> to vector<8x8xbf16>
    %c4_545 = arith.constant 4 : index
    %c0_546 = arith.constant 0 : index
    %c0_547 = arith.constant 0 : index
    %809 = vector.load %arg12[%c4_545, %c0_546, %c0_547] : memref<5x1x8xf32, #tpu.memory_space<vmem>>, vector<1x1x8xf32>
    %810 = vector.shape_cast %809 : vector<1x1x8xf32> to vector<1x8xf32>
    %811 = vector.shape_cast %806 : vector<2x8x8x8xf32> to vector<128x8xf32>
    %812 = arith.truncf %811 : vector<128x8xf32> to vector<128x8xbf16>
    %cst_548 = arith.constant dense<0.000000e+00> : vector<128x8xf32>
    %813 = tpu.matmul %812, %808, %cst_548 {dimension_numbers = #tpu.dot_dimension_numbers<[1], [0], [0], [1], [0, 0, 1, 1], [], []>} : vector<128x8xbf16>, vector<8x8xbf16>, vector<128x8xf32> -> vector<128x8xf32>
    %814 = vector.broadcast %810 : vector<1x8xf32> to vector<128x8xf32>
    %815 = arith.addf %813, %814 : vector<128x8xf32>
    %816 = vector.shape_cast %815 : vector<128x8xf32> to vector<2x8x8x8xf32>
    %817 = arith.addf %816, %340 : vector<2x8x8x8xf32>
    %818 = tpu.concatenate %340, %499, %658, %817 in 3 : vector<2x8x8x8xf32>, vector<2x8x8x8xf32>, vector<2x8x8x8xf32>, vector<2x8x8x8xf32> -> vector<2x8x8x32xf32>
    %c0_549 = arith.constant 0 : index
    %c0_550 = arith.constant 0 : index
    %c0_551 = arith.constant 0 : index
    %c0_552 = arith.constant 0 : index
    %819 = vector.load %arg13[%c0_549, %c0_550, %c0_551, %c0_552] : memref<2x8x8x32xf32, #tpu.memory_space<vmem>>, vector<2x8x8x32xf32>
    tpu.vector_store %arg13[%c0_549, %c0_550, %c0_551, %c0_552], %818 {strides = array<i32>} : memref<2x8x8x32xf32, #tpu.memory_space<vmem>>, vector<2x8x8x32xf32>,
    return
  }
  func.func @transform_0(%arg0: i32) -> (i32, i32, i32, i32) {
    %c0_i32 = arith.constant 0 : i32
    %c0_i32_0 = arith.constant 0 : i32
    %c0_i32_1 = arith.constant 0 : i32
    %c0_i32_2 = arith.constant 0 : i32
    return %arg0, %c0_i32, %c0_i32_0, %c0_i32_1 : i32, i32, i32, i32
  }
  func.func @transform_1(%arg0: i32) -> (i32, i32, i32, i32) {
    %c0_i32 = arith.constant 0 : i32
    %c0_i32_0 = arith.constant 0 : i32
    %c0_i32_1 = arith.constant 0 : i32
    %c0_i32_2 = arith.constant 0 : i32
    return %arg0, %c0_i32, %c0_i32_0, %c0_i32_1 : i32, i32, i32, i32
  }
  func.func @transform_2(%arg0: i32) -> (i32, i32) {
    %c0_i32 = arith.constant 0 : i32
    %c0_i32_0 = arith.constant 0 : i32
    %c0_i32_1 = arith.constant 0 : i32
    return %c0_i32, %c0_i32_0 : i32, i32
  }
  func.func @transform_3(%arg0: i32) -> (i32, i32) {
    %c0_i32 = arith.constant 0 : i32
    %c0_i32_0 = arith.constant 0 : i32
    %c0_i32_1 = arith.constant 0 : i32
    return %c0_i32, %c0_i32_0 : i32, i32
  }
  func.func @transform_4(%arg0: i32) -> (i32, i32) {
    %c0_i32 = arith.constant 0 : i32
    %c0_i32_0 = arith.constant 0 : i32
    %c0_i32_1 = arith.constant 0 : i32
    return %c0_i32, %c0_i32_0 : i32, i32
  }
  func.func @transform_5(%arg0: i32) -> (i32, i32) {
    %c0_i32 = arith.constant 0 : i32
    %c0_i32_0 = arith.constant 0 : i32
    %c0_i32_1 = arith.constant 0 : i32
    return %c0_i32, %c0_i32_0 : i32, i32
  }
  func.func @transform_6(%arg0: i32) -> (i32, i32, i32, i32) {
    %c0_i32 = arith.constant 0 : i32
    %c0_i32_0 = arith.constant 0 : i32
    %c0_i32_1 = arith.constant 0 : i32
    %c0_i32_2 = arith.constant 0 : i32
    %c0_i32_3 = arith.constant 0 : i32
    return %c0_i32, %c0_i32_0, %c0_i32_1, %c0_i32_2 : i32, i32, i32, i32
  }
  func.func @transform_7(%arg0: i32) -> (i32, i32, i32) {
    %c0_i32 = arith.constant 0 : i32
    %c0_i32_0 = arith.constant 0 : i32
    %c0_i32_1 = arith.constant 0 : i32
    %c0_i32_2 = arith.constant 0 : i32
    return %c0_i32, %c0_i32_0, %c0_i32_1 : i32, i32, i32
  }
  func.func @transform_8(%arg0: i32) -> (i32, i32, i32) {
    %c0_i32 = arith.constant 0 : i32
    %c0_i32_0 = arith.constant 0 : i32
    %c0_i32_1 = arith.constant 0 : i32
    %c0_i32_2 = arith.constant 0 : i32
    return %c0_i32, %c0_i32_0, %c0_i32_1 : i32, i32, i32
  }
  func.func @transform_9(%arg0: i32) -> (i32, i32, i32, i32) {
    %c0_i32 = arith.constant 0 : i32
    %c0_i32_0 = arith.constant 0 : i32
    %c0_i32_1 = arith.constant 0 : i32
    %c0_i32_2 = arith.constant 0 : i32
    %c0_i32_3 = arith.constant 0 : i32
    return %c0_i32, %c0_i32_0, %c0_i32_1, %c0_i32_2 : i32, i32, i32, i32
  }
  func.func @transform_10(%arg0: i32) -> (i32, i32, i32) {
    %c0_i32 = arith.constant 0 : i32
    %c0_i32_0 = arith.constant 0 : i32
    %c0_i32_1 = arith.constant 0 : i32
    %c0_i32_2 = arith.constant 0 : i32
    return %c0_i32, %c0_i32_0, %c0_i32_1 : i32, i32, i32
  }
  func.func @transform_11(%arg0: i32) -> (i32, i32, i32) {
    %c0_i32 = arith.constant 0 : i32
    %c0_i32_0 = arith.constant 0 : i32
    %c0_i32_1 = arith.constant 0 : i32
    %c0_i32_2 = arith.constant 0 : i32
    return %c0_i32, %c0_i32_0, %c0_i32_1 : i32, i32, i32
  }
  func.func @transform_12(%arg0: i32) -> (i32, i32, i32, i32) {
    %c0_i32 = arith.constant 0 : i32
    %c0_i32_0 = arith.constant 0 : i32
    %c0_i32_1 = arith.constant 0 : i32
    %c0_i32_2 = arith.constant 0 : i32
    return %arg0, %c0_i32, %c0_i32_0, %c0_i32_1 : i32, i32, i32, i32
  }
}

</mosaic_0001>

<bundles_post_ra>
// kernel: forward.1
= control target key start
LH: loop header
LB: loop body
LE: loop exit
PB: predicated region body
PF: predicated region fallthrough
CT: control target
= control target key end

     0   :  { %vm205_vm0 = vcmask 1043456   ;;  %vm43_vm1 = vcmask 64512   ;;  %s12165_s0 = inlined_call_operand.vmem [shape: f32[2,8,8,8], index: 0, kind: input, shape index: {}]   ;;  %s12166_s1 = inlined_call_operand.vmem [shape: f32[2,8,8,8], index: 1, kind: input, shape index: {}]   ;;  %s12167_s2 = inlined_call_operand.vmem [shape: bf16[8,8], index: 2, kind: input, shape index: {}]   ;;  %s12168_s3 = inlined_call_operand.vmem [shape: f32[1,8], index: 3, kind: input, shape index: {}]   ;;  %s12169_s4 = inlined_call_operand.vmem [shape: bf16[8,8], index: 4, kind: input, shape index: {}]   ;;  %s12170_s5 = inlined_call_operand.vmem [shape: f32[1,8], index: 5, kind: input, shape index: {}]   ;;  %s12171_s6 = inlined_call_operand.vmem [shape: f32[5,3,3,8], index: 6, kind: input, shape index: {}]   ;;  %s12172_s7 = inlined_call_operand.vmem [shape: bf16[5,8,8], index: 7, kind: input, shape index: {}]   ;;  %s12173_s8 = inlined_call_operand.vmem [shape: f32[5,1,8], index: 8, kind: input, shape index: {}]   ;;  %s12174_s9 = inlined_call_operand.vmem [shape: f32[5,3,3,8], index: 9, kind: input, shape index: {}]   ;;  %s12175_s10 = inlined_call_operand.vmem [shape: bf16[5,8,8], index: 10, kind: input, shape index: {}]   ;;  %s12176_s11 = inlined_call_operand.vmem [shape: f32[5,1,8], index: 11, kind: input, shape index: {}]   ;;  %s12177_s12 = inlined_call_operand.hbm [shape: f32[2,8,8,32], index: 12, kind: output, shape index: {}]  }
   0x1   :  { %v354_v0 = vld [vmem:[%s12169_s4] sm:$0xf]  ;;  %v307_v2 = vld [vmem:[%s12166_s1 + $0x8] sm:$0xff]  ;;  %v308_v6 = vld [vmem:[%s12166_s1 + $0x10] sm:$0xff] }
   0x2   :  { %v306_v1 = vld [vmem:[%s12166_s1] sm:$0xff]  ;;  %7826 = vmatprep.subr.msk.bf16.mxu1 %vm205_vm0, %v354_v0  ;;  %v427_v3 = vsel %vm205_vm0, %v354_v0, 0  ;;  %v323_v5 = vmax.f32 %v307_v2, 0.0  ;;  %v309_v7 = vld [vmem:[%s12166_s1 + $0x18] sm:$0xff]  ;;  %v324_v9 = vmax.f32 %v308_v6, 0.0  ;;  %v311_v11 = vld [vmem:[%s12166_s1 + $0x28] sm:$0xff] }
   0x3   :  { %v322_v4 = vmax.f32 %v306_v1, 0.0  ;;  %v310_v8 = vld [vmem:[%s12166_s1 + $0x20] sm:$0xff]  ;;  %7580 = vmatpush3.bf16.msra.mxu1 %v427_v3  ;;  %v325_v10 = vmax.f32 %v309_v7, 0.0  ;;  %v327_v14 = vmax.f32 %v311_v11, 0.0  ;;  %v7967_v15 = vld [vmem:[%s12166_s1 + $0x30] sm:$0xff]  ;;  %v7972_v16 = vld [vmem:[%s12166_s1 + $0x38] sm:$0xff] }
   0x4   :  { %v326_v12 = vmax.f32 %v310_v8, 0.0  ;;  %v7977_v17 = vld [vmem:[%s12166_s1 + $0x40] sm:$0xff]  ;;  %v7982_v19 = vld [vmem:[%s12166_s1 + $0x48] sm:$0xff]  ;;  %v328_v22 = vmax.f32 %v7967_v15, 0.0  ;;  %v329_v23 = vmax.f32 %v7972_v16, 0.0 }
   0x5   :  { %v7445_v13 = vpack.c.bf16 %v323_v5, %v322_v4  ;;  %v7446_v18 = vpack.c.bf16 %v325_v10, %v324_v9  ;;  %v133_v21 = vld [vmem:[%s12167_s2] sm:$0xf]  ;;  %v330_v24 = vmax.f32 %v7977_v17, 0.0  ;;  %v86_v26 = vld [vmem:[%s12165_s0 + $0x8] sm:$0xff]  ;;  %v331_v27 = vmax.f32 %v7982_v19, 0.0 }
   0x6   :  { %v7447_v20 = vpack.c.bf16 %v327_v14, %v326_v12  ;;  %7825 = vmatprep.subr.msk.bf16.mxu0 %vm205_vm0, %v133_v21  ;;  %v85_v25 = vld [vmem:[%s12165_s0] sm:$0xff]  ;;  %v207_v28 = vsel %vm205_vm0, %v133_v21, 0  ;;  %v102_v30 = vmax.f32 %v86_v26, 0.0 }
   0x7   :  { %7581 = vmatprep.mubr.msk.bf16.mxu1 %vm43_vm1, %v7445_v13  ;;  %v101_v29 = vmax.f32 %v85_v25, 0.0 }
   0x8   :  { %7582 = vmatmul.mubr.msk.bf16.vlgmr.msra.gmra.mrb[0].mxu1 %vm43_vm1, %v7446_v18 }
   0x9   :  { %7585 = vmatprep.mubr.msk.bf16.mxu1 %vm43_vm1, %v7447_v20 }
   0xa   :  { %17 = vsyncpa [#allocation4], 0  ;;  %7562 = vmatpush3.bf16.msra.mxu0 %v207_v28  ;;  %vm45_vm2 = vcmask 58368   ;;  %v7437_v31 = vpack.c.bf16 %v102_v30, %v101_v29  ;;  %v7870_v32 = vmov 0.0   ;;  %v7448_v33 = vpack.c.bf16 %v329_v23, %v328_v22  ;;  %v316_v35 = vld [vmem:[%s12166_s1 + $0x50] sm:$0xff]  ;;  %v317_v36 = vld [vmem:[%s12166_s1 + $0x58] sm:$0xff] }
   0xb   :  { %51 = vst.msk [vmem:[#allocation2 + $0x30] sm:$0xff] %vm43_vm1, %v7870_v32  ;;  %44 = vst.msk [vmem:[#allocation2] sm:$0xff] %vm43_vm1, %v7870_v32  ;;  %v7449_v34 = vpack.c.bf16 %v331_v27, %v330_v24  ;;  %v318_v37 = vld [vmem:[%s12166_s1 + $0x60] sm:$0xff]  ;;  %v319_v38 = vld [vmem:[%s12166_s1 + $0x68] sm:$0xff]  ;;  %v332_v39 = vmax.f32 %v316_v35, 0.0  ;;  %v333_v40 = vmax.f32 %v317_v36, 0.0  ;;  %v578_v23 = vlaneseq }
   0xc   :  { %52 = vst.msk [vmem:[#allocation2 + $0x38] sm:$0x3] %vm45_vm2, %v7870_v32  ;;  %46 = vst.msk [vmem:[#allocation2 + $0x8] sm:$0x3] %vm45_vm2, %v7870_v32  ;;  %7563 = vmatprep.mubr.msk.bf16.mxu0 %vm43_vm1, %v7437_v31  ;;  %v334_v41 = vmax.f32 %v318_v37, 0.0  ;;  %v335_v42 = vmax.f32 %v319_v38, 0.0 }
   0xd   :  { %47 = vst.msk [vmem:[#allocation2 + $0x10] sm:$0xff] %vm43_vm1, %v7870_v32  ;;  %49 = vst.msk [vmem:[#allocation2 + $0x20] sm:$0xff] %vm43_vm1, %v7870_v32  ;;  %v7450_v43 = vpack.c.bf16 %v333_v40, %v332_v39  ;;  %v320_v45 = vld [vmem:[%s12166_s1 + $0x70] sm:$0xff]  ;;  %v321_v46 = vld [vmem:[%s12166_s1 + $0x78] sm:$0xff]  ;;  %v579_v24 = vshrl.u32 %v578_v23, 7  ;;  %vm7206_vm3 = vcmask 130048  }
   0xe   :  { %48 = vst.msk [vmem:[#allocation2 + $0x18] sm:$0x3] %vm45_vm2, %v7870_v32  ;;  %50 = vst.msk [vmem:[#allocation2 + $0x28] sm:$0x3] %vm45_vm2, %v7870_v32  ;;  %v7451_v44 = vpack.c.bf16 %v335_v42, %v334_v41  ;;  %v336_v47 = vmax.f32 %v320_v45, 0.0  ;;  %v337_v48 = vmax.f32 %v321_v46, 0.0 }
   0xf   :  { %53 = vst.msk [vmem:[#allocation2 + $0x40] sm:$0xff] %vm43_vm1, %v7870_v32  ;;  %55 = vst.msk [vmem:[#allocation2 + $0x50] sm:$0xff] %vm43_vm1, %v7870_v32  ;;  %v87_v50 = vld [vmem:[%s12165_s0 + $0x10] sm:$0xff]  ;;  %v88_v51 = vld [vmem:[%s12165_s0 + $0x18] sm:$0xff]  ;;  %v8120_v25 = vsub.s32 0, %v579_v24  ;;  %v8125_v27 = vsub.s32 1, %v579_v24 }
  0x10   :  { %54 = vst.msk [vmem:[#allocation2 + $0x48] sm:$0x3] %vm45_vm2, %v7870_v32  ;;  %56 = vst.msk [vmem:[#allocation2 + $0x58] sm:$0x3] %vm45_vm2, %v7870_v32  ;;  %7586 = vmatmul.mubr.msk.bf16.gmra.mrb[4].mxu1 %vm43_vm1, %v7448_v33  ;;  %v7452_v49 = vpack.c.bf16 %v337_v48, %v336_v47  ;;  %v103_v52 = vmax.f32 %v87_v50, 0.0  ;;  %v104_v53 = vmax.f32 %v88_v51, 0.0 }
  0x11   :  { %57 = vst.msk [vmem:[#allocation2 + $0x60] sm:$0xff] %vm43_vm1, %v7870_v32  ;;  %59 = vst.msk [vmem:[#allocation2 + $0x70] sm:$0xff] %vm43_vm1, %v7870_v32  ;;  %7589 = vmatprep.mubr.msk.bf16.mxu1 %vm43_vm1, %v7449_v34  ;;  %v89_v55 = vld [vmem:[%s12165_s0 + $0x20] sm:$0xff]  ;;  %v90_v56 = vld [vmem:[%s12165_s0 + $0x28] sm:$0xff]  ;;  %vm7223_vm4 = vcmask 195584   ;;  %vm7240_vm5 = vcmask 261120  }
  0x12   :  { %58 = vst.msk [vmem:[#allocation2 + $0x68] sm:$0x3] %vm45_vm2, %v7870_v32  ;;  %60 = vst.msk [vmem:[#allocation2 + $0x78] sm:$0x3] %vm45_vm2, %v7870_v32  ;;  %v7438_v54 = vpack.c.bf16 %v104_v53, %v103_v52  ;;  %v105_v57 = vmax.f32 %v89_v55, 0.0  ;;  %v106_v58 = vmax.f32 %v90_v56, 0.0 }
  0x13   :  { %61 = vst.msk [vmem:[#allocation2 + $0x80] sm:$0xff] %vm43_vm1, %v7870_v32  ;;  %63 = vst.msk [vmem:[#allocation2 + $0x90] sm:$0xff] %vm43_vm1, %v7870_v32  ;;  %v91_v59 = vld [vmem:[%s12165_s0 + $0x30] sm:$0xff]  ;;  %v92_v60 = vld [vmem:[%s12165_s0 + $0x38] sm:$0xff]  ;;  %s7874_s13 = smov [#allocation3]  }
  0x14   :  { %62 = vst.msk [vmem:[#allocation2 + $0x88] sm:$0x3] %vm45_vm2, %v7870_v32  ;;  %64 = vst.msk [vmem:[#allocation2 + $0x98] sm:$0x3] %vm45_vm2, %v7870_v32  ;;  %7564 = vmatmul.mubr.msk.bf16.vlgmr.msra.gmra.mrb[0].mxu0 %vm43_vm1, %v7438_v54  ;;  %v107_v61 = vmax.f32 %v91_v59, 0.0  ;;  %v108_v62 = vmax.f32 %v92_v60, 0.0  ;;  %v7439_v63 = vpack.c.bf16 %v106_v58, %v105_v57 }
  0x15   :  { %65 = vst.msk [vmem:[#allocation2 + $0xa0] sm:$0xff] %vm43_vm1, %v7870_v32  ;;  %67 = vst.msk [vmem:[#allocation2 + $0xb0] sm:$0xff] %vm43_vm1, %v7870_v32  ;;  %v93_v1 = vld [vmem:[%s12165_s0 + $0x40] sm:$0xff]  ;;  %v94_v2 = vld [vmem:[%s12165_s0 + $0x48] sm:$0xff]  ;;  %s7262_s14 = sshll.u32 %s7874_s13, 4  ;;  %s7263_s14 = int_to_ptr.vmem [resolvable:$true] %s7262_s14 }
  0x16   :  { %66 = vst.msk [vmem:[#allocation2 + $0xa8] sm:$0x3] %vm45_vm2, %v7870_v32  ;;  %68 = vst.msk [vmem:[#allocation2 + $0xb8] sm:$0x3] %vm45_vm2, %v7870_v32  ;;  %v7440_v0 = vpack.c.bf16 %v108_v62, %v107_v61  ;;  %7567 = vmatprep.mubr.msk.bf16.mxu0 %vm43_vm1, %v7439_v63  ;;  %v109_v3 = vmax.f32 %v93_v1, 0.0  ;;  %v110_v4 = vmax.f32 %v94_v2, 0.0  ;;  %p7851_p1 = scmp.lt.s32.totalorder %s7263_s14, %s7263_s14 }
  0x17   :  { %69 = vst.msk [vmem:[#allocation2 + $0xc0] sm:$0xff] %vm43_vm1, %v7870_v32  ;;  %71 = vst.msk [vmem:[#allocation2 + $0xd0] sm:$0xff] %vm43_vm1, %v7870_v32  ;;  %v95_v5 = vld [vmem:[%s12165_s0 + $0x50] sm:$0xff]  ;;  %v96_v6 = vld [vmem:[%s12165_s0 + $0x58] sm:$0xff]  ;;  %s7846_s15 = scalar_lea.vmem %s7263_s14, 2048 }
  0x18   :  { %70 = vst.msk [vmem:[#allocation2 + $0xc8] sm:$0x3] %vm45_vm2, %v7870_v32  ;;  %72 = vst.msk [vmem:[#allocation2 + $0xd8] sm:$0x3] %vm45_vm2, %v7870_v32  ;;  %7590 = vmatmul.mubr.msk.bf16.gmra.mrb[8].mxu1 %vm43_vm1, %v7450_v43  ;;  %v111_v7 = vmax.f32 %v95_v5, 0.0  ;;  %v112_v8 = vmax.f32 %v96_v6, 0.0  ;;  %v7441_v9 = vpack.c.bf16 %v110_v4, %v109_v3  ;;  %p7847_p0 = scmp.ne.s32.totalorder %s7263_s14, %s7846_s15  ;;  %p7852_p2 = scmp.lt.s32.totalorder %s7846_s15, %s7846_s15 }
  0x19   :  { %73 = vst.msk [vmem:[#allocation2 + $0xe0] sm:$0xff] %vm43_vm1, %v7870_v32  ;;  %75 = vst.msk [vmem:[#allocation2 + $0xf0] sm:$0xff] %vm43_vm1, %v7870_v32  ;;  %7593 = vmatprep.mubr.msk.bf16.mxu1 %vm43_vm1, %v7451_v44  ;;  %v1031_v10 = vld [vmem:[%s12172_s7] sm:$0xf]  ;;  %v98_v14 = vld [vmem:[%s12165_s0 + $0x68] sm:$0xff] }
  0x1a   :  { %74 = vst.msk [vmem:[#allocation2 + $0xe8] sm:$0x3] %vm45_vm2, %v7870_v32  ;;  %76 = vst.msk [vmem:[#allocation2 + $0xf8] sm:$0x3] %vm45_vm2, %v7870_v32  ;;  %v7442_v11 = vpack.c.bf16 %v112_v8, %v111_v7  ;;  %7827 = vmatprep.subr.msk.bf16.mxu0 %vm205_vm0, %v1031_v10  ;;  %v1072_v12 = vsel %vm205_vm0, %v1031_v10, 0  ;;  %v97_v13 = vld [vmem:[%s12165_s0 + $0x60] sm:$0xff]  ;;  %p7853_p3 = por %p7852_p2, %p7851_p1 }
  0x1b   :  { %77 = vst.msk [vmem:[#allocation2 + $0x100] sm:$0xff] %vm43_vm1, %v7870_v32  ;;  %79 = vst.msk [vmem:[#allocation2 + $0x110] sm:$0xff] %vm43_vm1, %v7870_v32  ;;  %7598 = vmatpush3.bf16.msra.mxu0 %v1072_v12  ;;  %v113_v15 = vmax.f32 %v97_v13, 0.0  ;;  %v114_v16 = vmax.f32 %v98_v14, 0.0  ;;  %v99_v17 = vld [vmem:[%s12165_s0 + $0x70] sm:$0xff]  ;;  %v100_v18 = vld [vmem:[%s12165_s0 + $0x78] sm:$0xff] }
  0x1c   :  { %78 = vst.msk [vmem:[#allocation2 + $0x108] sm:$0x3] %vm45_vm2, %v7870_v32  ;;  %80 = vst.msk [vmem:[#allocation2 + $0x118] sm:$0x3] %vm45_vm2, %v7870_v32  ;;  %7568 = vmatmul.mubr.msk.bf16.gmra.mrb[4].mxu0 %vm43_vm1, %v7440_v0  ;;  %v115_v19 = vmax.f32 %v99_v17, 0.0  ;;  %v116_v20 = vmax.f32 %v100_v18, 0.0  ;;  %p7854_p4 = pnand %p7853_p3, %p7847_p0 }
  0x1d   :  { %81 = vst.msk [vmem:[#allocation2 + $0x120] sm:$0xff] %vm43_vm1, %v7870_v32  ;;  %83 = vst.msk [vmem:[#allocation2 + $0x130] sm:$0xff] %vm43_vm1, %v7870_v32  ;;  %7571 = vmatprep.mubr.msk.bf16.mxu0 %vm43_vm1, %v7441_v9  ;;  %v7443_v21 = vpack.c.bf16 %v114_v16, %v113_v15  ;;  %v526_v26 = vld [vmem:[%s12171_s6] sm:$0x7]  ;;  %v528_v55 = vld [vmem:[%s12171_s6 + $0x8] sm:$0x7] }
  0x1e   :  { %82 = vst.msk [vmem:[#allocation2 + $0x128] sm:$0x3] %vm45_vm2, %v7870_v32  ;;  %84 = vst.msk [vmem:[#allocation2 + $0x138] sm:$0x3] %vm45_vm2, %v7870_v32  ;;  %v7444_v22 = vpack.c.bf16 %v116_v20, %v115_v19  ;;  %v8130_v28 = vld [vmem:[%s12170_s5] ss:$0 sm:$0xff]  ;;  %v8133_v29 = vrot.slane %v526_v26, %v8120_v25  ;;  %v8138_v31 = vrot.slane %v526_v26, %v8125_v27 }
  0x1f   :  { %12335 = vst [vmem:[#allocation6_spill] sm:$0xff] %v8120_v25  ;;  %12336 = vst [vmem:[#allocation7_spill] sm:$0xff] %v8125_v27  ;;  %v8135_v30 = vld [vmem:[#allocation2] sm:$0xff]  ;;  %v8140_v32 = vsub.s32 2, %v579_v24  ;;  %v8186_v0 = vrot.slane %v528_v55, %v8120_v25  ;;  %v8189_v1 = vrot.slane %v528_v55, %v8125_v27  ;;  %v882_v6 = vld [vmem:[#allocation2 + $0x90] sm:$0xff] }
  0x20   :  { %7594 = vmatmul.mubr.msk.bf16.gmra.mrb[12].mxu1 %vm43_vm1, %v7452_v49  ;;  %v8142_v34 = vld [vmem:[#allocation2 + $0x1] sm:$0xff]  ;;  %v582_v41 = vmul.f32 %v8133_v29, %v8135_v30 }
  0x21   :  { %12337 = vst [vmem:[#allocation8_spill] sm:$0xff] %v8140_v32  ;;  %v570_v37 = vld [vmem:[#allocation2 + $0xa0] sm:$0xff]  ;;  %v634_v45 = vmul.f32 %v8138_v31, %v8142_v34  ;;  %v8154_v46 = vrot.slane %v526_v26, %v8140_v32  ;;  %v8196_v5 = vrot.slane %v528_v55, %v8140_v32  ;;  %v8231_v26 = vmul.f32 %v8186_v0, %v882_v6 }
  0x22   :  { %v622_v38 = vld [vmem:[#allocation2 + $0xa1] sm:$0xff]  ;;  %v590_v49 = vmul.f32 %v8133_v29, %v570_v37 }
  0x23   :  { %v642_v50 = vmul.f32 %v8138_v31, %v622_v38  ;;  %v8165_v52 = vld [vmem:[#allocation2 + $0x2] sm:$0xff]  ;;  %v650_v58 = vadd.f32 %v634_v45, %v582_v41 }
  0x24   :  { %7572 = vmatmul.mubr.msk.bf16.gmra.mrb[8].mxu0 %vm43_vm1, %v7442_v11  ;;  %v674_v53 = vld [vmem:[#allocation2 + $0xa2] sm:$0xff]  ;;  %v686_v59 = vmul.f32 %v8154_v46, %v8165_v52 }
  0x25   :  { %7575 = vmatprep.mubr.msk.bf16.mxu0 %vm43_vm1, %v7443_v21  ;;  %v527_v56 = vld [vmem:[%s12171_s6 + $0x4] sm:$0x7]  ;;  %v658_v60 = vadd.f32 %v642_v50, %v590_v49  ;;  %v694_v61 = vmul.f32 %v8154_v46, %v674_v53 }
  0x26   :  { %v8193_v4 = vrot.slane %v527_v56, %v8120_v25  ;;  %v8202_v10 = vrot.slane %v527_v56, %v8125_v27  ;;  %v8205_v11 = vrot.slane %v527_v56, %v8140_v32  ;;  %v702_v16 = vadd.f32 %v686_v59, %v650_v58 }
  0x27   :  { %v8216_v18 = vadd.f32 %v694_v61, %v658_v60 }
  0x2c   :  { %7576 = vmatmul.mubr.msk.bf16.gmra.mrb[12].mxu0 %vm43_vm1, %v7444_v22 }
  0xdb   :  { %v7583_v33 = vpop.f32.mrb[0].mxu1 }
  0xdc   :  { %v472_v35 = vadd.f32 %v7583_v33, %v8130_v28  ;;  %v463_v36 = vpop.f32.mrb[1].mxu1 }
  0xdd   :  { %v464_v39 = vadd.f32 %v8130_v28, %v463_v36  ;;  %v7584_v40 = vpop.f32.mrb[2].mxu1 }
  0xde   :  { %v8148_v42 = vmax.f32 %v472_v35, 0.0  ;;  %v475_v43 = vadd.f32 %v7584_v40, %v8130_v28  ;;  %v466_v44 = vpop.f32.mrb[3].mxu1 }
  0xdf   :  { %v8156_v47 = vmax.f32 %v464_v39, 0.0  ;;  %v467_v48 = vadd.f32 %v8130_v28, %v466_v44 }
  0xe0   :  { %12338 = vst [vmem:[#allocation9_spill] sm:$0xff] %v8148_v42  ;;  %548 = vst.msk [vmem:[#allocation2 + $0x31] sm:$0xff] %vm43_vm1, %v8148_v42  ;;  %v8163_v51 = vmax.f32 %v475_v43, 0.0 }
  0xe1   :  { %12339 = vst [vmem:[#allocation10_spill] sm:$0xff] %v8156_v47  ;;  %546 = vst.msk [vmem:[#allocation2 + $0x11] sm:$0xff] %vm43_vm1, %v8156_v47  ;;  %v8169_v54 = vmax.f32 %v467_v48, 0.0 }
  0xe2   :  { %12340 = vst [vmem:[#allocation11_spill] sm:$0xff] %v8163_v51  ;;  %549 = vst.msk [vmem:[#allocation2 + $0x41] sm:$0xff] %vm43_vm1, %v8163_v51 }
  0xe3   :  { %12341 = vst [vmem:[#allocation12_spill] sm:$0xff] %v8169_v54  ;;  %547 = vst.msk [vmem:[#allocation2 + $0x21] sm:$0xff] %vm43_vm1, %v8169_v54  ;;  %v7587_v57 = vpop.f32.mrb[4].mxu1 }
  0xe4   :  { %v488_v62 = vadd.f32 %v7587_v57, %v8130_v28  ;;  %v479_v63 = vpop.f32.mrb[5].mxu1 }
  0xe5   :  { %v480_v2 = vadd.f32 %v8130_v28, %v479_v63  ;;  %v7588_v3 = vpop.f32.mrb[6].mxu1 }
  0xe6   :  { %v8198_v7 = vmax.f32 %v488_v62, 0.0  ;;  %v491_v8 = vadd.f32 %v7588_v3, %v8130_v28  ;;  %v482_v9 = vpop.f32.mrb[7].mxu1 }
  0xe7   :  { %v8207_v12 = vld [vmem:[#allocation2 + $0x30] sm:$0xff]  ;;  %v8211_v14 = vmax.f32 %v480_v2, 0.0  ;;  %v483_v15 = vadd.f32 %v8130_v28, %v482_v9 }
  0xe8   :  { %12342 = vst [vmem:[#allocation13_spill] sm:$0xff] %v8198_v7  ;;  %v8209_v13 = vld [vmem:[#allocation2 + $0x32] sm:$0xff]  ;;  %552 = vst.msk [vmem:[#allocation2 + $0x71] sm:$0xff] %vm43_vm1, %v8198_v7  ;;  %v8220_v21 = vmax.f32 %v491_v8, 0.0  ;;  %v8224_v23 = vmul.f32 %v8186_v0, %v8207_v12  ;;  %v585_v55 = vmul.f32 %v8133_v29, %v8207_v12 }
  0xe9   :  { %12343 = vst [vmem:[#allocation14_spill] sm:$0xff] %v8211_v14  ;;  %v8214_v17 = vld [vmem:[#allocation2 + $0x31] sm:$0xff]  ;;  %550 = vst.msk [vmem:[#allocation2 + $0x51] sm:$0xff] %vm43_vm1, %v8211_v14  ;;  %v8235_v33 = vmax.f32 %v483_v15, 0.0  ;;  %v8241_v37 = vmul.f32 %v8196_v5, %v8209_v13 }
  0xea   :  { %v563_v19 = vld [vmem:[#allocation2 + $0x10] sm:$0xff]  ;;  %12344 = vst [vmem:[#allocation15_spill] sm:$0xff] %v8220_v21  ;;  %v8228_v24 = vmul.f32 %v8189_v1, %v8214_v17  ;;  %v564_v38 = vld [vmem:[#allocation2 + $0x20] sm:$0xff]  ;;  %553 = vst.msk [vmem:[#allocation2 + $0x81] sm:$0xff] %vm43_vm1, %v8220_v21 }
  0xeb   :  { %v667_v20 = vld [vmem:[#allocation2 + $0x12] sm:$0xff]  ;;  %12345 = vst [vmem:[#allocation16_spill] sm:$0xff] %v8235_v33  ;;  %v583_v35 = vmul.f32 %v8133_v29, %v563_v19  ;;  %v668_v39 = vld [vmem:[#allocation2 + $0x22] sm:$0xff]  ;;  %v738_v41 = vmul.f32 %v8193_v4, %v563_v19  ;;  %551 = vst.msk [vmem:[#allocation2 + $0x61] sm:$0xff] %vm43_vm1, %v8235_v33  ;;  %v7591_v48 = vpop.f32.mrb[8].mxu1  ;;  %v739_v50 = vmul.f32 %v8193_v4, %v564_v38 }
  0xec   :  { %v615_v22 = vld [vmem:[#allocation2 + $0x11] sm:$0xff]  ;;  %v687_v40 = vmul.f32 %v8154_v46, %v667_v20  ;;  %v771_v43 = vld [vmem:[#allocation2 + $0x21] sm:$0xff]  ;;  %v842_v45 = vmul.f32 %v8205_v11, %v667_v20  ;;  %v504_v56 = vadd.f32 %v7591_v48, %v8130_v28  ;;  %v495_v57 = vpop.f32.mrb[9].mxu1  ;;  %v843_v59 = vmul.f32 %v8205_v11, %v668_v39 }
  0xed   :  { %v635_v36 = vmul.f32 %v8138_v31, %v615_v22  ;;  %v790_v44 = vmul.f32 %v8202_v10, %v615_v22  ;;  %v791_v53 = vmul.f32 %v8202_v10, %v771_v43  ;;  %v754_v58 = vadd.f32 %v738_v41, %v702_v16  ;;  %v7592_v62 = vpop.f32.mrb[10].mxu1 }
  0xee   :  { %v895_v60 = vmul.f32 %v8186_v0, %v564_v38  ;;  %v496_v61 = vadd.f32 %v8130_v28, %v495_v57  ;;  %v947_v2 = vmul.f32 %v8189_v1, %v771_v43  ;;  %v584_v3 = vmul.f32 %v8133_v29, %v564_v38  ;;  %v498_v9 = vpop.f32.mrb[11].mxu1 }
  0xef   :  { %v651_v49 = vadd.f32 %v635_v36, %v583_v35  ;;  %v8261_v6 = vmax.f32 %v504_v56, 0.0  ;;  %v507_v8 = vadd.f32 %v7592_v62, %v8130_v28  ;;  %v806_v15 = vadd.f32 %v790_v44, %v754_v58  ;;  %v8270_v36 = vld [vmem:[#allocation2 + $0x40] sm:$0xff] }
  0xf0   :  { %v636_v16 = vmul.f32 %v771_v43, %v8138_v31  ;;  %v8265_v19 = vmax.f32 %v496_v61, 0.0  ;;  %v499_v20 = vadd.f32 %v8130_v28, %v498_v9  ;;  %v637_v35 = vmul.f32 %v8214_v17, %v8138_v31  ;;  %v773_v56 = vld [vmem:[#allocation2 + $0x41] sm:$0xff] }
  0xf1   :  { %v703_v63 = vadd.f32 %v687_v40, %v651_v49  ;;  %12346 = vst [vmem:[#allocation17_spill] sm:$0xff] %v8261_v6  ;;  %556 = vst.msk [vmem:[#allocation2 + $0xd1] sm:$0xff] %vm43_vm1, %v8261_v6  ;;  %v8274_v38 = vmax.f32 %v507_v8, 0.0  ;;  %v858_v40 = vadd.f32 %v842_v45, %v806_v15  ;;  %v688_v44 = vmul.f32 %v8154_v46, %v668_v39  ;;  %v670_v62 = vld [vmem:[#allocation2 + $0x42] sm:$0xff] }
  0xf2   :  { %12347 = vst [vmem:[#allocation18_spill] sm:$0xff] %v8265_v19  ;;  %v652_v41 = vadd.f32 %v636_v16, %v584_v3  ;;  %554 = vst.msk [vmem:[#allocation2 + $0xb1] sm:$0xff] %vm43_vm1, %v8265_v19  ;;  %v8279_v43 = vmax.f32 %v499_v20, 0.0  ;;  %v653_v49 = vadd.f32 %v637_v35, %v585_v55  ;;  %v999_v45 = vmul.f32 %v8196_v5, %v668_v39  ;;  %v567_v16 = vld [vmem:[#allocation2 + $0x50] sm:$0xff] }
  0xf3   :  { %v755_v22 = vadd.f32 %v739_v50, %v703_v63  ;;  %12348 = vst [vmem:[#allocation19_spill] sm:$0xff] %v8274_v38  ;;  %v689_v50 = vmul.f32 %v8154_v46, %v8209_v13  ;;  %557 = vst.msk [vmem:[#allocation2 + $0xe1] sm:$0xff] %vm43_vm1, %v8274_v38  ;;  %v911_v57 = vadd.f32 %v895_v60, %v858_v40 }
  0xf4   :  { %12349 = vst [vmem:[#allocation20_spill] sm:$0xff] %v8279_v43  ;;  %v704_v58 = vadd.f32 %v688_v44, %v652_v41  ;;  %v740_v61 = vmul.f32 %v8193_v4, %v8207_v12  ;;  %555 = vst.msk [vmem:[#allocation2 + $0xc1] sm:$0xff] %vm43_vm1, %v8279_v43  ;;  %v741_v3 = vmul.f32 %v8193_v4, %v8270_v36 }
  0xf5   :  { %v807_v48 = vadd.f32 %v791_v53, %v755_v22  ;;  %v7595_v53 = vpop.f32.mrb[12].mxu1  ;;  %v705_v63 = vadd.f32 %v689_v50, %v653_v49  ;;  %v792_v8 = vmul.f32 %v8214_v17, %v8202_v10  ;;  %v963_v9 = vadd.f32 %v947_v2, %v911_v57 }
  0xf6   :  { %v520_v60 = vadd.f32 %v7595_v53, %v8130_v28  ;;  %v511_v39 = vpop.f32.mrb[13].mxu1  ;;  %v756_v15 = vadd.f32 %v740_v61, %v704_v58  ;;  %v793_v12 = vmul.f32 %v8202_v10, %v773_v56  ;;  %v844_v40 = vmul.f32 %v8205_v11, %v8209_v13  ;;  %v934_v61 = vld [vmem:[#allocation2 + $0x91] sm:$0xff] }
  0xf7   :  { %v859_v55 = vadd.f32 %v843_v59, %v807_v48  ;;  %v512_v20 = vadd.f32 %v8130_v28, %v511_v39  ;;  %v7596_v22 = vpop.f32.mrb[14].mxu1  ;;  %v757_v35 = vadd.f32 %v741_v3, %v705_v63  ;;  %v845_v2 = vmul.f32 %v8205_v11, %v670_v62 }
  0xf8   :  { %v8300_v41 = vmax.f32 %v520_v60, 0.0  ;;  %v523_v17 = vadd.f32 %v7596_v22, %v8130_v28  ;;  %v514_v44 = vpop.f32.mrb[15].mxu1  ;;  %v808_v48 = vadd.f32 %v792_v8, %v756_v15  ;;  %v898_v63 = vmul.f32 %v8186_v0, %v567_v16  ;;  %v671_v60 = vld [vmem:[#allocation2 + $0x52] sm:$0xff] }
  0xf9   :  { %v912_v59 = vadd.f32 %v8224_v23, %v859_v55  ;;  %v8304_v49 = vmax.f32 %v512_v20, 0.0  ;;  %v515_v50 = vadd.f32 %v8130_v28, %v514_v44  ;;  %v809_v58 = vadd.f32 %v793_v12, %v757_v35  ;;  %v930_v23 = vld [vmem:[#allocation2 + $0x51] sm:$0xff] }
  0xfa   :  { %12350 = vst [vmem:[#allocation21_spill] sm:$0xff] %v8300_v41  ;;  %560 = vst.msk [vmem:[#allocation2 + $0x111] sm:$0xff] %vm43_vm1, %v8300_v41  ;;  %v8310_v13 = vmax.f32 %v523_v17, 0.0  ;;  %v860_v53 = vadd.f32 %v844_v40, %v808_v48  ;;  %v897_v55 = vmul.f32 %v8186_v0, %v8270_v36  ;;  %v949_v15 = vmul.f32 %v8189_v1, %v773_v56  ;;  %v986_v48 = vld [vmem:[#allocation2 + $0x92] sm:$0xff] }
  0xfb   :  { %12351 = vst [vmem:[#allocation22_spill] sm:$0xff] %v8304_v49  ;;  %v964_v57 = vadd.f32 %v8228_v24, %v912_v59  ;;  %558 = vst.msk [vmem:[#allocation2 + $0xf1] sm:$0xff] %vm43_vm1, %v8304_v49  ;;  %v8317_v28 = vmax.f32 %v515_v50, 0.0  ;;  %v1015_v24 = vadd.f32 %v999_v45, %v963_v9  ;;  %v861_v8 = vadd.f32 %v845_v2, %v809_v58  ;;  %v568_v59 = vld [vmem:[#allocation2 + $0x60] sm:$0xff] }
  0xfc   :  { %12352 = vst [vmem:[#allocation23_spill] sm:$0xff] %v8310_v13  ;;  %561 = vst.msk [vmem:[#allocation2 + $0x121] sm:$0xff] %vm43_vm1, %v8310_v13  ;;  %v913_v39 = vadd.f32 %v897_v55, %v860_v53  ;;  %v950_v12 = vmul.f32 %v8189_v1, %v930_v23  ;;  %v8325_v20 = vmul.f32 %v8189_v1, %v934_v61  ;;  %v775_v58 = vld [vmem:[#allocation2 + $0x61] sm:$0xff]  ;;  %v569_v61 = vld [vmem:[#allocation2 + $0x70] sm:$0xff] }
  0xfd   :  { %12353 = vst [vmem:[#allocation24_spill] sm:$0xff] %v8317_v28  ;;  %v1016_v3 = vadd.f32 %v8241_v37, %v964_v57  ;;  %559 = vst.msk [vmem:[#allocation2 + $0x101] sm:$0xff] %vm43_vm1, %v8317_v28  ;;  %v914_v45 = vadd.f32 %v898_v63, %v861_v8  ;;  %v586_v37 = vmul.f32 %v8133_v29, %v8270_v36  ;;  %v672_v53 = vld [vmem:[#allocation2 + $0x62] sm:$0xff]  ;;  %v932_v28 = vld [vmem:[#allocation2 + $0x71] sm:$0xff] }
  0xfe   :  { %v587_v9 = vmul.f32 %v8133_v29, %v567_v16  ;;  %v965_v35 = vadd.f32 %v949_v15, %v913_v39  ;;  %v1001_v40 = vmul.f32 %v8196_v5, %v670_v62  ;;  %v638_v17 = vmul.f32 %v773_v56, %v8138_v31  ;;  %v571_v13 = vld [vmem:[#allocation2 + $0xb0] sm:$0xff] }
  0xff   :  { %v1033_v22 = vpack.c.bf16 %v1016_v3, %v1015_v24  ;;  %v639_v44 = vmul.f32 %v930_v23, %v8138_v31  ;;  %v966_v2 = vadd.f32 %v950_v12, %v914_v45  ;;  %v1002_v50 = vmul.f32 %v8196_v5, %v671_v60 }
 0x100   :  { %v690_v57 = vmul.f32 %v8154_v46, %v670_v62  ;;  %v691_v36 = vmul.f32 %v8154_v46, %v671_v60  ;;  %v1017_v55 = vadd.f32 %v1001_v40, %v965_v35  ;;  %v654_v63 = vadd.f32 %v638_v17, %v586_v37  ;;  %v673_v35 = vld [vmem:[#allocation2 + $0x72] sm:$0xff] }
 0x101   :  { %7599 = vmatprep.mubr.msk.bf16.mxu0 %vm43_vm1, %v1033_v22  ;;  %v655_v24 = vadd.f32 %v639_v44, %v587_v9  ;;  %v742_v56 = vmul.f32 %v8193_v4, %v567_v16  ;;  %v1018_v3 = vadd.f32 %v1002_v50, %v966_v2  ;;  %v743_v8 = vmul.f32 %v8193_v4, %v568_v59  ;;  %v725_v2 = vld [vmem:[#allocation2 + $0x80] sm:$0xff] }
 0x102   :  { %v794_v39 = vmul.f32 %v930_v23, %v8202_v10  ;;  %v8343_v15 = vmul.f32 %v8196_v5, %v986_v48  ;;  %v706_v12 = vadd.f32 %v690_v57, %v654_v63  ;;  %v795_v22 = vmul.f32 %v8202_v10, %v775_v58 }
 0x103   :  { %v707_v62 = vadd.f32 %v691_v36, %v655_v24  ;;  %v846_v45 = vmul.f32 %v8205_v11, %v671_v60  ;;  %v1034_v37 = vpack.c.bf16 %v1018_v3, %v1017_v55  ;;  %v847_v9 = vmul.f32 %v8205_v11, %v672_v53  ;;  %v777_v3 = vld [vmem:[#allocation2 + $0x81] sm:$0xff] }
 0x104   :  { %v899_v16 = vmul.f32 %v8186_v0, %v568_v59  ;;  %v900_v40 = vmul.f32 %v8186_v0, %v569_v61  ;;  %v758_v17 = vadd.f32 %v742_v56, %v706_v12  ;;  %v951_v44 = vmul.f32 %v8189_v1, %v775_v58 }
 0x105   :  { %v759_v23 = vadd.f32 %v743_v8, %v707_v62  ;;  %v588_v48 = vmul.f32 %v8133_v29, %v568_v59  ;;  %7600 = vmatmul.mubr.msk.bf16.vlgmr.msra.gmra.mrb[16].mxu0 %vm43_vm1, %v1034_v37  ;;  %v952_v60 = vmul.f32 %v8189_v1, %v932_v28  ;;  %v589_v50 = vmul.f32 %v8133_v29, %v569_v61  ;;  %v829_v8 = vld [vmem:[#allocation2 + $0x82] sm:$0xff] }
 0x106   :  { %v640_v57 = vmul.f32 %v775_v58, %v8138_v31  ;;  %v641_v36 = vmul.f32 %v932_v28, %v8138_v31  ;;  %v810_v55 = vadd.f32 %v794_v39, %v758_v17  ;;  %v1003_v24 = vmul.f32 %v8196_v5, %v672_v53 }
 0x107   :  { %v811_v63 = vadd.f32 %v795_v22, %v759_v23  ;;  %v1004_v56 = vmul.f32 %v8196_v5, %v673_v35  ;;  %v692_v62 = vmul.f32 %v8154_v46, %v672_v53  ;;  %v693_v37 = vmul.f32 %v8154_v46, %v673_v35  ;;  %v623_v22 = vld [vmem:[#allocation2 + $0xb1] sm:$0xff] }
 0x108   :  { %v656_v59 = vadd.f32 %v640_v57, %v588_v48  ;;  %v657_v12 = vadd.f32 %v641_v36, %v589_v50  ;;  %v862_v49 = vadd.f32 %v846_v45, %v810_v55  ;;  %v744_v58 = vmul.f32 %v8193_v4, %v569_v61  ;;  %v675_v48 = vld [vmem:[#allocation2 + $0xb2] sm:$0xff] }
 0x109   :  { %v863_v41 = vadd.f32 %v847_v9, %v811_v63  ;;  %v745_v39 = vmul.f32 %v8193_v4, %v725_v2  ;;  %v796_v43 = vmul.f32 %v932_v28, %v8202_v10  ;;  %v797_v38 = vmul.f32 %v8202_v10, %v777_v3  ;;  %v572_v63 = vld [vmem:[#allocation2 + $0xc0] sm:$0xff] }
 0x10a   :  { %v708_v17 = vadd.f32 %v692_v62, %v656_v59  ;;  %v709_v23 = vadd.f32 %v693_v37, %v657_v12  ;;  %v915_v50 = vadd.f32 %v899_v16, %v862_v49  ;;  %v848_v53 = vmul.f32 %v8205_v11, %v673_v35 }
 0x10b   :  { %v916_v57 = vadd.f32 %v900_v40, %v863_v41  ;;  %v849_v36 = vmul.f32 %v8205_v11, %v829_v8  ;;  %v591_v61 = vmul.f32 %v8133_v29, %v571_v13  ;;  %v643_v55 = vmul.f32 %v8138_v31, %v623_v22 }
 0x10c   :  { %v760_v45 = vadd.f32 %v744_v58, %v708_v17  ;;  %v761_v9 = vadd.f32 %v745_v39, %v709_v23  ;;  %v967_v59 = vadd.f32 %v951_v44, %v915_v50  ;;  %v901_v28 = vmul.f32 %v8186_v0, %v725_v2  ;;  %v779_v39 = vld [vmem:[#allocation2 + $0xc1] sm:$0xff]  ;;  %v573_v50 = vld [vmem:[#allocation2 + $0xd0] sm:$0xff] }
 0x10d   :  { %v968_v12 = vadd.f32 %v952_v60, %v916_v57  ;;  %v746_v62 = vmul.f32 %v8193_v4, %v571_v13  ;;  %v659_v41 = vadd.f32 %v643_v55, %v591_v61  ;;  %v695_v35 = vmul.f32 %v8154_v46, %v675_v48  ;;  %v676_v23 = vld [vmem:[#allocation2 + $0xc2] sm:$0xff] }
 0x10e   :  { %v812_v37 = vadd.f32 %v796_v43, %v760_v45  ;;  %v813_v49 = vadd.f32 %v797_v38, %v761_v9  ;;  %v1019_v16 = vadd.f32 %v1003_v24, %v967_v59  ;;  %v798_v17 = vmul.f32 %v8202_v10, %v623_v22 }
 0x10f   :  { %v1020_v40 = vadd.f32 %v1004_v56, %v968_v12  ;;  %v762_v58 = vadd.f32 %v746_v62, %v8216_v18  ;;  %v711_v60 = vadd.f32 %v695_v35, %v659_v41  ;;  %v747_v2 = vmul.f32 %v8193_v4, %v572_v63 }
 0x110   :  { %v864_v19 = vadd.f32 %v848_v53, %v812_v37  ;;  %v865_v44 = vadd.f32 %v849_v36, %v813_v49  ;;  %v953_v38 = vmul.f32 %v8189_v1, %v777_v3  ;;  %v850_v57 = vmul.f32 %v8205_v11, %v675_v48  ;;  %v936_v48 = vld [vmem:[#allocation2 + $0xd1] sm:$0xff] }
 0x111   :  { %v1035_v13 = vpack.c.bf16 %v1020_v40, %v1019_v16  ;;  %v814_v43 = vadd.f32 %v798_v17, %v762_v58  ;;  %v763_v18 = vadd.f32 %v747_v2, %v711_v60  ;;  %v799_v45 = vmul.f32 %v8202_v10, %v779_v39  ;;  %v574_v40 = vld [vmem:[#allocation2 + $0xe0] sm:$0xff] }
 0x112   :  { %v917_v24 = vadd.f32 %v901_v28, %v864_v19  ;;  %v918_v56 = vadd.f32 %v8231_v26, %v865_v44  ;;  %v1005_v22 = vmul.f32 %v8196_v5, %v829_v8  ;;  %v851_v53 = vmul.f32 %v8205_v11, %v676_v23  ;;  %v677_v8 = vld [vmem:[#allocation2 + $0xd2] sm:$0xff] }
 0x113   :  { %7603 = vmatprep.mubr.msk.bf16.mxu0 %vm43_vm1, %v1035_v13  ;;  %v866_v36 = vadd.f32 %v850_v57, %v814_v43  ;;  %v903_v9 = vmul.f32 %v8186_v0, %v572_v63  ;;  %v815_v55 = vadd.f32 %v799_v45, %v763_v18  ;;  %v904_v19 = vmul.f32 %v8186_v0, %v573_v50 }
 0x114   :  { %v969_v61 = vadd.f32 %v953_v38, %v917_v24  ;;  %v970_v3 = vadd.f32 %v8325_v20, %v918_v56  ;;  %v955_v59 = vmul.f32 %v8189_v1, %v779_v39  ;;  %v592_v12 = vmul.f32 %v8133_v29, %v572_v63  ;;  %v678_v38 = vld [vmem:[#allocation2 + $0xe2] sm:$0xff]  ;;  %v575_v56 = vld [vmem:[#allocation2 + $0xf0] sm:$0xff] }
 0x115   :  { %v919_v26 = vadd.f32 %v903_v9, %v866_v36  ;;  %v593_v28 = vmul.f32 %v8133_v29, %v573_v50  ;;  %v867_v49 = vadd.f32 %v851_v53, %v815_v55  ;;  %v644_v41 = vmul.f32 %v779_v39, %v8138_v31 }
 0x116   :  { %v1021_v62 = vadd.f32 %v1005_v22, %v969_v61  ;;  %v1022_v37 = vadd.f32 %v8343_v15, %v970_v3  ;;  %v956_v20 = vmul.f32 %v8189_v1, %v936_v48  ;;  %v645_v16 = vmul.f32 %v936_v48, %v8138_v31  ;;  %v781_v15 = vld [vmem:[#allocation2 + $0xe1] sm:$0xff]  ;;  %v938_v3 = vld [vmem:[#allocation2 + $0xf1] sm:$0xff] }
 0x117   :  { %v971_v35 = vadd.f32 %v955_v59, %v919_v26  ;;  %v920_v17 = vadd.f32 %v904_v19, %v867_v49  ;;  %v660_v44 = vadd.f32 %v644_v41, %v592_v12  ;;  %v696_v63 = vmul.f32 %v8154_v46, %v676_v23  ;;  %v679_v59 = vld [vmem:[#allocation2 + $0xf2] sm:$0xff] }
 0x118   :  { %v1036_v58 = vpack.c.bf16 %v1022_v37, %v1021_v62  ;;  %v1007_v60 = vmul.f32 %v8196_v5, %v676_v23  ;;  %v661_v2 = vadd.f32 %v645_v16, %v593_v28  ;;  %v697_v13 = vmul.f32 %v8154_v46, %v677_v8 }
 0x119   :  { %v972_v39 = vadd.f32 %v956_v20, %v920_v17  ;;  %v1008_v43 = vmul.f32 %v8196_v5, %v677_v8  ;;  %v712_v57 = vadd.f32 %v696_v63, %v660_v44  ;;  %v748_v24 = vmul.f32 %v8193_v4, %v573_v50  ;;  %v576_v20 = vld [vmem:[#allocation2 + $0x100] sm:$0xff] }
 0x11a   :  { %7604 = vmatmul.mubr.msk.bf16.gmra.mrb[20].mxu0 %vm43_vm1, %v1036_v58  ;;  %v1023_v18 = vadd.f32 %v1007_v60, %v971_v35  ;;  %v713_v45 = vadd.f32 %v697_v13, %v661_v2  ;;  %v749_v22 = vmul.f32 %v8193_v4, %v574_v40  ;;  %v800_v23 = vmul.f32 %v936_v48, %v8202_v10  ;;  %v783_v2 = vld [vmem:[#allocation2 + $0x101] sm:$0xff] }
 0x11b   :  { %v1024_v53 = vadd.f32 %v1008_v43, %v972_v39  ;;  %v764_v36 = vadd.f32 %v748_v24, %v712_v57  ;;  %v801_v9 = vmul.f32 %v8202_v10, %v781_v15  ;;  %v852_v61 = vmul.f32 %v8205_v11, %v677_v8  ;;  %v680_v13 = vld [vmem:[#allocation2 + $0x102] sm:$0xff]  ;;  %v577_v24 = vld [vmem:[#allocation2 + $0x110] sm:$0xff] }
 0x11c   :  { %v765_v55 = vadd.f32 %v749_v22, %v713_v45  ;;  %v853_v19 = vmul.f32 %v8205_v11, %v678_v38  ;;  %v905_v26 = vmul.f32 %v8186_v0, %v574_v40  ;;  %v594_v50 = vmul.f32 %v8133_v29, %v574_v40 }
 0x11d   :  { %v1037_v12 = vpack.c.bf16 %v1024_v53, %v1023_v18  ;;  %v816_v28 = vadd.f32 %v800_v23, %v764_v36  ;;  %v595_v62 = vmul.f32 %v8133_v29, %v575_v56  ;;  %v646_v48 = vmul.f32 %v781_v15, %v8138_v31 }
 0x11e   :  { %v817_v37 = vadd.f32 %v801_v9, %v765_v55  ;;  %v906_v49 = vmul.f32 %v8186_v0, %v575_v56  ;;  %v957_v8 = vmul.f32 %v8189_v1, %v781_v15  ;;  %v647_v41 = vmul.f32 %v938_v3, %v8138_v31  ;;  %v681_v55 = vld [vmem:[#allocation2 + $0x112] sm:$0xff] }
 0x11f   :  { %7607 = vmatprep.mubr.msk.bf16.mxu0 %vm43_vm1, %v1037_v12  ;;  %v868_v35 = vadd.f32 %v852_v61, %v816_v28  ;;  %v662_v16 = vadd.f32 %v646_v48, %v594_v50  ;;  %v698_v40 = vmul.f32 %v8154_v46, %v678_v38  ;;  %v750_v58 = vmul.f32 %v8193_v4, %v575_v56  ;;  %v940_v61 = vld [vmem:[#allocation2 + $0x111] sm:$0xff] }
 0x120   :  { %v869_v17 = vadd.f32 %v853_v19, %v817_v37  ;;  %v958_v44 = vmul.f32 %v8189_v1, %v938_v3  ;;  %v663_v63 = vadd.f32 %v647_v41, %v595_v62  ;;  %v699_v60 = vmul.f32 %v8154_v46, %v679_v59 }
 0x121   :  { %v921_v15 = vadd.f32 %v905_v26, %v868_v35  ;;  %v1009_v39 = vmul.f32 %v8196_v5, %v678_v38  ;;  %v1010_v43 = vmul.f32 %v8196_v5, %v679_v59  ;;  %v714_v57 = vadd.f32 %v698_v40, %v662_v16 }
 0x122   :  { %v922_v18 = vadd.f32 %v906_v49, %v869_v17  ;;  %v715_v45 = vadd.f32 %v699_v60, %v663_v63  ;;  %v751_v22 = vmul.f32 %v8193_v4, %v576_v20  ;;  %v802_v56 = vmul.f32 %v938_v3, %v8202_v10 }
 0x123   :  { %v973_v23 = vadd.f32 %v957_v8, %v921_v15  ;;  %v766_v53 = vadd.f32 %v750_v58, %v714_v57  ;;  %v803_v36 = vmul.f32 %v8202_v10, %v783_v2  ;;  %v854_v9 = vmul.f32 %v8205_v11, %v679_v59  ;;  %v733_v8 = vld [vmem:[#allocation2 + $0x120] sm:$0xff] }
 0x124   :  { %v974_v19 = vadd.f32 %v958_v44, %v922_v18  ;;  %v767_v38 = vadd.f32 %v751_v22, %v715_v45  ;;  %v855_v26 = vmul.f32 %v8205_v11, %v680_v13  ;;  %v907_v50 = vmul.f32 %v8186_v0, %v576_v20  ;;  %v890_v45 = vld [vmem:[#allocation2 + $0x130] sm:$0xff] }
 0x125   :  { %v1025_v12 = vadd.f32 %v1009_v39, %v973_v23  ;;  %v818_v28 = vadd.f32 %v802_v56, %v766_v53  ;;  %v596_v62 = vmul.f32 %v8133_v29, %v576_v20  ;;  %v597_v3 = vmul.f32 %v8133_v29, %v577_v24  ;;  %v837_v39 = vld [vmem:[#allocation2 + $0x122] sm:$0xff] }
 0x126   :  { %v1026_v48 = vadd.f32 %v1010_v43, %v974_v19  ;;  %v819_v37 = vadd.f32 %v803_v36, %v767_v38  ;;  %v648_v49 = vmul.f32 %v783_v2, %v8138_v31  ;;  %v649_v59 = vmul.f32 %v940_v61, %v8138_v31  ;;  %v785_v31 = vld [vmem:[#allocation2 + $0x121] sm:$0xff]  ;;  %v942_v19 = vld [vmem:[#allocation2 + $0x131] sm:$0xff] }
 0x127   :  { %v870_v41 = vadd.f32 %v854_v9, %v818_v28  ;;  %v908_v35 = vmul.f32 %v8186_v0, %v577_v24  ;;  %v700_v16 = vmul.f32 %v8154_v46, %v680_v13  ;;  %v701_v40 = vmul.f32 %v8154_v46, %v681_v55 }
 0x128   :  { %v1038_v58 = vpack.c.bf16 %v1026_v48, %v1025_v12  ;;  %v871_v17 = vadd.f32 %v855_v26, %v819_v37  ;;  %v664_v44 = vadd.f32 %v648_v49, %v596_v62  ;;  %v665_v20 = vadd.f32 %v649_v59, %v597_v3  ;;  %v994_v3 = vld [vmem:[#allocation2 + $0x132] sm:$0xff] }
 0x129   :  { %v923_v63 = vadd.f32 %v907_v50, %v870_v41  ;;  %v959_v29 = vmul.f32 %v8189_v1, %v783_v2  ;;  %v960_v60 = vmul.f32 %v8189_v1, %v940_v61  ;;  %v752_v15 = vmul.f32 %v8193_v4, %v577_v24 }
 0x12a   :  { %7608 = vmatmul.mubr.msk.bf16.gmra.mrb[24].mxu0 %vm43_vm1, %v1038_v58  ;;  %v924_v43 = vadd.f32 %v908_v35, %v871_v17  ;;  %v716_v57 = vadd.f32 %v700_v16, %v664_v44  ;;  %v717_v18 = vadd.f32 %v701_v40, %v665_v20  ;;  %v753_v46 = vmul.f32 %v8193_v4, %v733_v8 }
 0x12b   :  { %v975_v22 = vadd.f32 %v959_v29, %v923_v63  ;;  %v1011_v56 = vmul.f32 %v8196_v5, %v680_v13  ;;  %v1012_v23 = vmul.f32 %v8196_v5, %v681_v55  ;;  %v804_v2 = vmul.f32 %v940_v61, %v8202_v10 }
 0x12c   :  { %v976_v53 = vadd.f32 %v960_v60, %v924_v43  ;;  %v768_v36 = vadd.f32 %v752_v15, %v716_v57  ;;  %v769_v24 = vadd.f32 %v753_v46, %v717_v18  ;;  %v805_v9 = vmul.f32 %v8202_v10, %v785_v31  ;;  %v7565_v10 = vpop.f32.mrb[0].mxu0 }
 0x12d   :  { %v856_v38 = vmul.f32 %v8205_v11, %v681_v55  ;;  %v857_v26 = vmul.f32 %v8205_v11, %v837_v39  ;;  %v910_v4 = vmul.f32 %v8186_v0, %v890_v45  ;;  %v1027_v50 = vadd.f32 %v1011_v56, %v975_v22  ;;  %v243_v35 = vpop.f32.mrb[1].mxu0  ;;  %v1674_v56 = vld [vmem:[%s12175_s10] sm:$0xf] }
 0x12e   :  { %v1028_v12 = vadd.f32 %v1012_v23, %v976_v53  ;;  %v820_v28 = vadd.f32 %v804_v2, %v768_v36  ;;  %v821_v13 = vadd.f32 %v805_v9, %v769_v24  ;;  %v962_v62 = vmul.f32 %v8189_v1, %v942_v19  ;;  %v7566_v16 = vpop.f32.mrb[2].mxu0  ;;  %7828 = vmatprep.subr.msk.bf16.mxu1 %vm205_vm0, %v1674_v56  ;;  %v7273_v2 = vld [vmem:[%s12168_s3] ss:$0 sm:$0xff] }
 0x12f   :  { %v909_v49 = vmul.f32 %v8186_v0, %v733_v8  ;;  %v961_v11 = vmul.f32 %v8189_v1, %v785_v31  ;;  %v1014_v41 = vmul.f32 %v8196_v5, %v994_v3  ;;  %v1013_v17 = vmul.f32 %v8196_v5, %v837_v39  ;;  %v246_v44 = vpop.f32.mrb[3].mxu0  ;;  %v7328_v5 = vld [vmem:[%s12172_s7 + $0x4] sm:$0xf]  ;;  %v1171_v3 = vld [vmem:[%s12174_s9] sm:$0x7] }
 0x130   :  { %v1039_v61 = vpack.c.bf16 %v1028_v12, %v1027_v50  ;;  %v872_v48 = vadd.f32 %v856_v38, %v820_v28  ;;  %v873_v37 = vadd.f32 %v857_v26, %v821_v13  ;;  %v7569_v0 = vpop.f32.mrb[4].mxu0  ;;  %7829 = vmatprep.subr.msk.bf16.mxu0 %vm205_vm0, %v7328_v5  ;;  %v2361_v39 = vsel %vm205_vm0, %v7328_v5, 0 }
 0x131   :  { %v259_v8 = vpop.f32.mrb[5].mxu0  ;;  %7634 = vmatpush3.bf16.msra.mxu0 %v2361_v39  ;;  %v1715_v23 = vsel %vm205_vm0, %v1674_v56, 0  ;;  %v8462_v53 = vadd.f32 %v7565_v10, %v7273_v2  ;;  %v8464_v36 = vadd.f32 %v7273_v2, %v243_v35  ;;  %v8466_v24 = vadd.f32 %v7566_v16, %v7273_v2  ;;  %v7325_v10 = vld [vmem:[%s12171_s6 + $0xc] sm:$0x7] }
 0x132   :  { %7611 = vmatprep.mubr.msk.bf16.mxu0 %vm43_vm1, %v1039_v61  ;;  %v925_v55 = vadd.f32 %v909_v49, %v872_v48  ;;  %v926_v59 = vadd.f32 %v910_v4, %v873_v37  ;;  %v7570_v60 = vpop.f32.mrb[6].mxu0  ;;  %7616 = vmatpush3.bf16.msra.mxu1 %v1715_v23  ;;  %v8468_v9 = vadd.f32 %v7273_v2, %v246_v44 }
 0x133   :  { %v262_v15 = vpop.f32.mrb[7].mxu0  ;;  %12354 = vst [vmem:[#allocation25_spill] sm:$0xff] %v8462_v53  ;;  %12355 = vst [vmem:[#allocation26_spill] sm:$0xff] %v8464_v36  ;;  %v8470_v19 = vadd.f32 %v7569_v0, %v7273_v2  ;;  %v8474_v4 = vadd.f32 %v7273_v2, %v259_v8  ;;  %v8476_v50 = vadd.f32 %v7570_v60, %v7273_v2  ;;  %v12388_v42 = vmax.f32 %v8464_v36, 0.0 }
 0x134   :  { %v977_v40 = vadd.f32 %v961_v11, %v925_v55  ;;  %v978_v58 = vadd.f32 %v962_v62, %v926_v59  ;;  %v7573_v43 = vpop.f32.mrb[8].mxu0  ;;  %12356 = vst [vmem:[#allocation27_spill] sm:$0xff] %v8466_v24  ;;  %12357 = vst [vmem:[#allocation28_spill] sm:$0xff] %v8468_v9  ;;  %v8480_v13 = vadd.f32 %v7273_v2, %v262_v15 }
 0x135   :  { %v275_v1 = vpop.f32.mrb[9].mxu0  ;;  %12358 = vst [vmem:[#allocation29_spill] sm:$0xff] %v8470_v19  ;;  %12359 = vst [vmem:[#allocation30_spill] sm:$0xff] %v8474_v4  ;;  %v8482_v62 = vadd.f32 %v7573_v43, %v7273_v2  ;;  %v1850_v43 = vld [vmem:[#allocation2] sm:$0xff]  ;;  %v8548_v60 = vrot.slane %v7325_v10, %v8140_v32 }
 0x136   :  { %v1029_v20 = vadd.f32 %v1013_v17, %v977_v40  ;;  %v1030_v63 = vadd.f32 %v1014_v41, %v978_v58  ;;  %v7574_v31 = vpop.f32.mrb[10].mxu0  ;;  %12360 = vst [vmem:[#allocation31_spill] sm:$0xff] %v8476_v50  ;;  %12361 = vst [vmem:[#allocation32_spill] sm:$0xff] %v8480_v13  ;;  %v8487_v61 = vadd.f32 %v7273_v2, %v275_v1  ;;  %v1902_v1 = vld [vmem:[#allocation2 + $0x1] sm:$0xff] }
 0x137   :  { %v278_v57 = vpop.f32.mrb[11].mxu0  ;;  %12362 = vst [vmem:[#allocation33_spill] sm:$0xff] %v8482_v62  ;;  %v8489_v48 = vadd.f32 %v7574_v31, %v7273_v2  ;;  %v8508_v40 = vrot.slane %v1171_v3, %v8120_v25  ;;  %v8511_v58 = vrot.slane %v1171_v3, %v8125_v27  ;;  %12372 = vst [vmem:[#allocation43_spill] sm:$0xff] %v8548_v60 }
 0x138   :  { %v1040_v29 = vpack.c.bf16 %v1030_v63, %v1029_v20  ;;  %v7577_v18 = vpop.f32.mrb[12].mxu0  ;;  %12363 = vst [vmem:[#allocation34_spill] sm:$0xff] %v8487_v61  ;;  %v8491_v37 = vadd.f32 %v7273_v2, %v278_v57  ;;  %v8518_v20 = vld [vmem:[%s12173_s8] ss:$0 sm:$0xff]  ;;  %v8521_v63 = vrot.slane %v7325_v10, %v8120_v25 }
 0x139   :  { %v291_v46 = vpop.f32.mrb[13].mxu0  ;;  %12364 = vst [vmem:[#allocation35_spill] sm:$0xff] %v8489_v48  ;;  %v8493_v49 = vadd.f32 %v7577_v18, %v7273_v2  ;;  %v1226_v56 = vmul.f32 %v8508_v40, %v8135_v30  ;;  %v1278_v23 = vmul.f32 %v8511_v58, %v8142_v34  ;;  %v1172_v18 = vld [vmem:[%s12174_s9 + $0x4] sm:$0x7] }
 0x13a   :  { %7612 = vmatmul.mubr.msk.bf16.gmra.mrb[28].mxu0 %vm43_vm1, %v1040_v29  ;;  %v7578_v45 = vpop.f32.mrb[14].mxu0  ;;  %12365 = vst [vmem:[#allocation36_spill] sm:$0xff] %v8491_v37  ;;  %v8499_v59 = vadd.f32 %v7273_v2, %v291_v46  ;;  %12370 = vst [vmem:[#allocation41_spill] sm:$0xff] %v8521_v63  ;;  %v8524_v29 = vrot.slane %v7325_v10, %v8125_v27  ;;  %v1870_v15 = vmul.f32 %v8521_v63, %v1850_v43  ;;  %v1173_v43 = vld [vmem:[%s12174_s9 + $0x8] sm:$0x7] }
 0x13b   :  { %v294_v22 = vpop.f32.mrb[15].mxu0  ;;  %12366 = vst [vmem:[#allocation37_spill] sm:$0xff] %v8493_v49  ;;  %v8501_v11 = vadd.f32 %v7578_v45, %v7273_v2  ;;  %v1214_v45 = vld [vmem:[#allocation2 + $0xa0] sm:$0xff]  ;;  %v1294_v16 = vadd.f32 %v1278_v23, %v1226_v56  ;;  %v8567_v55 = vrot.slane %v1172_v18, %v8125_v27  ;;  %v8578_v56 = vrot.slane %v1173_v43, %v8120_v25 }
 0x13c   :  { %12367 = vst [vmem:[#allocation38_spill] sm:$0xff] %v8499_v59  ;;  %v8503_v41 = vadd.f32 %v7273_v2, %v294_v22  ;;  %12371 = vst [vmem:[#allocation42_spill] sm:$0xff] %v8524_v29  ;;  %v1266_v22 = vld [vmem:[#allocation2 + $0xa1] sm:$0xff]  ;;  %v8539_v2 = vrot.slane %v1171_v3, %v8140_v32  ;;  %v1234_v0 = vmul.f32 %v8508_v40, %v1214_v45 }
 0x13d   :  { %12368 = vst [vmem:[#allocation39_spill] sm:$0xff] %v8501_v11  ;;  %v1954_v3 = vld [vmem:[#allocation2 + $0x2] sm:$0xff]  ;;  %v1878_v10 = vmul.f32 %v8521_v63, %v1214_v45  ;;  %v7326_v45 = vld [vmem:[%s12171_s6 + $0x10] sm:$0x7]  ;;  %12374 = vst [vmem:[#allocation45_spill] sm:$0xff] %v8578_v56  ;;  %v12390_v11 = vmax.f32 %v8468_v9, 0.0 }
 0x13e   :  { %12369 = vst [vmem:[#allocation40_spill] sm:$0xff] %v8503_v41  ;;  %v1330_v35 = vmul.f32 %v8539_v2, %v8165_v52  ;;  %v8575_v52 = vrot.slane %v1172_v18, %v8140_v32  ;;  %v8593_v26 = vrot.slane %v7326_v45, %v8120_v25 }
 0x140   :  { %12373 = vst [vmem:[#allocation44_spill] sm:$0xff] %v8575_v52  ;;  %v1346_v12 = vadd.f32 %v1330_v35, %v1294_v16  ;;  %12375 = vst [vmem:[#allocation46_spill] sm:$0xff] %v8593_v26  ;;  %v1533_v35 = vld [vmem:[#allocation2 + $0x130] sm:$0xff] }
 0x1d8   :  { %v7601_v46 = vpop.f32.mrb[16].mxu0 }
 0x1d9   :  { %v1117_v5 = vadd.f32 %v7601_v46, %v8518_v20  ;;  %v1108_v39 = vpop.f32.mrb[17].mxu0  ;;  %v1922_v46 = vmul.f32 %v8524_v29, %v1902_v1  ;;  %v1318_v1 = vld [vmem:[#allocation2 + $0xa2] sm:$0xff] }
 0x1da   :  { %v1109_v31 = vadd.f32 %v8518_v20, %v1108_v39  ;;  %v7602_v57 = vpop.f32.mrb[18].mxu0  ;;  %v1286_v39 = vmul.f32 %v8511_v58, %v1266_v22  ;;  %v1338_v23 = vmul.f32 %v8539_v2, %v1318_v1  ;;  %v1982_v28 = vmul.f32 %v8548_v60, %v1318_v1 }
 0x1db   :  { %v1176_v30 = vmax.f32 %v1117_v5, 0.0  ;;  %v1120_v34 = vadd.f32 %v7602_v57, %v8518_v20  ;;  %v1111_v8 = vpop.f32.mrb[19].mxu0  ;;  %v1930_v5 = vmul.f32 %v8524_v29, %v1266_v22  ;;  %v1938_v22 = vadd.f32 %v1922_v46, %v1870_v15 }
 0x1dc   :  { %v1174_v44 = vmax.f32 %v1109_v31, 0.0  ;;  %v1112_v17 = vadd.f32 %v8518_v20, %v1111_v8  ;;  %v8563_v31 = vrot.slane %v1172_v18, %v8120_v25  ;;  %v8586_v15 = vrot.slane %v1173_v43, %v8125_v27  ;;  %v1525_v18 = vld [vmem:[#allocation2 + $0x90] sm:$0xff] }
 0x1dd   :  { %1192 = vst.msk [vmem:[#allocation2 + $0x31] sm:$0xff] %vm43_vm1, %v1176_v30  ;;  %v1177_v57 = vmax.f32 %v1120_v34, 0.0  ;;  %v1974_v30 = vmul.f32 %v8548_v60, %v1954_v3  ;;  %v8589_v46 = vrot.slane %v1173_v43, %v8140_v32  ;;  %v1577_v34 = vld [vmem:[#allocation2 + $0x91] sm:$0xff]  ;;  %v8613_v16 = vmul.f32 %v8578_v56, %v1525_v18 }
 0x1de   :  { %1190 = vst.msk [vmem:[#allocation2 + $0x11] sm:$0xff] %vm43_vm1, %v1174_v44  ;;  %v1175_v8 = vmax.f32 %v1112_v17, 0.0  ;;  %v7327_v17 = vld [vmem:[%s12171_s6 + $0x14] sm:$0x7]  ;;  %v1302_v44 = vadd.f32 %v1286_v39, %v1234_v0  ;;  %v8596_v0 = vrot.slane %v7326_v45, %v8125_v27  ;;  %v8599_v39 = vrot.slane %v7326_v45, %v8140_v32 }
 0x1df   :  { %1193 = vst.msk [vmem:[#allocation2 + $0x41] sm:$0xff] %vm43_vm1, %v1177_v57  ;;  %v1629_v3 = vld [vmem:[#allocation2 + $0x92] sm:$0xff]  ;;  %v1946_v57 = vadd.f32 %v1930_v5, %v1878_v10  ;;  %v8604_v43 = vrot.slane %v7327_v17, %v8120_v25  ;;  %v8607_v38 = vrot.slane %v7327_v17, %v8125_v27  ;;  %v8610_v1 = vrot.slane %v7327_v17, %v8140_v32 }
 0x1e0   :  { %1191 = vst.msk [vmem:[#allocation2 + $0x21] sm:$0xff] %vm43_vm1, %v1175_v8  ;;  %12376 = vst [vmem:[#allocation47_spill] sm:$0xff] %v8596_v0  ;;  %v8601_v8 = vadd.f32 %v1974_v30, %v1938_v22  ;;  %v8616_v10 = vmul.f32 %v8586_v15, %v1577_v34  ;;  %v8619_v5 = vmul.f32 %v8589_v46, %v1629_v3 }
 0x1e1   :  { %12377 = vst [vmem:[#allocation48_spill] sm:$0xff] %v8599_v39  ;;  %12378 = vst [vmem:[#allocation49_spill] sm:$0xff] %v8613_v16  ;;  %v8621_v45 = vadd.f32 %v1338_v23, %v1302_v44  ;;  %v8626_v33 = vmul.f32 %v8604_v43, %v1525_v18  ;;  %v8629_v17 = vmul.f32 %v8607_v38, %v1577_v34  ;;  %v12386_v34 = vmax.f32 %v8462_v53, 0.0 }
 0x1e2   :  { %12379 = vst [vmem:[#allocation50_spill] sm:$0xff] %v8616_v10  ;;  %12380 = vst [vmem:[#allocation51_spill] sm:$0xff] %v8619_v5  ;;  %v8632_v21 = vmul.f32 %v8610_v1, %v1629_v3  ;;  %v8634_v14 = vadd.f32 %v1982_v28, %v1946_v57  ;;  %v8650_v28 = vmul.f32 %v8578_v56, %v1533_v35 }
 0x1e3   :  { %12381 = vst [vmem:[#allocation52_spill] sm:$0xff] %v8621_v45  ;;  %12382 = vst [vmem:[#allocation53_spill] sm:$0xff] %v8626_v33 }
 0x1e4   :  { %v1519_v22 = vld [vmem:[#allocation2 + $0x30] sm:$0xff]  ;;  %12383 = vst [vmem:[#allocation54_spill] sm:$0xff] %v8629_v17  ;;  %12384 = vst [vmem:[#allocation55_spill] sm:$0xff] %v8632_v21 }
 0x1e5   :  { %v1571_v30 = vld [vmem:[#allocation2 + $0x31] sm:$0xff]  ;;  %12385 = vst [vmem:[#allocation56_spill] sm:$0xff] %v8634_v14  ;;  %v8637_v44 = vmul.f32 %v8578_v56, %v1519_v22  ;;  %12387 = vst [vmem:[#allocation57_spill] sm:$0xff] %v8650_v28  ;;  %v1229_v32 = vmul.f32 %v1519_v22, %v8508_v40 }
 0x1e6   :  { %v8623_v6 = vld [vmem:[#allocation2 + $0x32] sm:$0xff]  ;;  %v8640_v23 = vmul.f32 %v8586_v15, %v1571_v30  ;;  %v8659_v27 = vld [vmem:[#allocation2 + $0x40] sm:$0xff]  ;;  %v1281_v36 = vmul.f32 %v1571_v30, %v8511_v58 }
 0x1e7   :  { %v1207_v7 = vld [vmem:[#allocation2 + $0x10] sm:$0xff]  ;;  %v8644_v18 = vmul.f32 %v8589_v46, %v8623_v6  ;;  %1836 = vst.msk [vmem:[#allocation2 + $0x31] sm:$0xff] %vm43_vm1, %v12386_v34  ;;  %v8661_v53 = vld [vmem:[#allocation2 + $0x41] sm:$0xff]  ;;  %v1333_v45 = vmul.f32 %v8623_v6, %v8539_v2  ;;  %v1385_v48 = vmul.f32 %v8563_v31, %v8659_v27 }
 0x1e8   :  { %v1259_v54 = vld [vmem:[#allocation2 + $0x11] sm:$0xff]  ;;  %v1227_v3 = vmul.f32 %v8508_v40, %v1207_v7  ;;  %v1382_v47 = vmul.f32 %v8563_v31, %v1207_v7  ;;  %v8663_v34 = vld [vmem:[#allocation2 + $0x42] sm:$0xff]  ;;  %v1297_v49 = vadd.f32 %v1281_v36, %v1229_v32  ;;  %v1437_v32 = vmul.f32 %v8567_v55, %v8661_v53 }
 0x1e9   :  { %v1311_v51 = vld [vmem:[#allocation2 + $0x12] sm:$0xff]  ;;  %v1279_v57 = vmul.f32 %v8511_v58, %v1259_v54  ;;  %v1363_v25 = vld [vmem:[#allocation2 + $0x20] sm:$0xff]  ;;  %v1434_v14 = vmul.f32 %v8567_v55, %v1259_v54 }
 0x1ea   :  { %1834 = vst.msk [vmem:[#allocation2 + $0x11] sm:$0xff] %vm43_vm1, %v12388_v42  ;;  %v1331_v35 = vmul.f32 %v8539_v2, %v1311_v51  ;;  %v1415_v28 = vld [vmem:[#allocation2 + $0x21] sm:$0xff]  ;;  %v1486_v7 = vmul.f32 %v8575_v52, %v1311_v51  ;;  %v12389_v42 = vmax.f32 %v8466_v24, 0.0  ;;  %v1383_v33 = vmul.f32 %v8563_v31, %v1363_v25 }
 0x1eb   :  { %v1467_v21 = vld [vmem:[#allocation2 + $0x22] sm:$0xff]  ;;  %v1295_v17 = vadd.f32 %v1279_v57, %v1227_v3  ;;  %v1398_v41 = vadd.f32 %v1382_v47, %v1346_v12  ;;  %v1435_v54 = vmul.f32 %v8567_v55, %v1415_v28  ;;  %v1538_v59 = vmul.f32 %v8578_v56, %v1363_v25 }
 0x1ec   :  { %1837 = vst.msk [vmem:[#allocation2 + $0x41] sm:$0xff] %vm43_vm1, %v12389_v42  ;;  %1835 = vst.msk [vmem:[#allocation2 + $0x21] sm:$0xff] %vm43_vm1, %v12390_v11  ;;  %v1487_v51 = vmul.f32 %v8575_v52, %v1467_v21  ;;  %v1590_v24 = vmul.f32 %v8586_v15, %v1415_v28  ;;  %v1228_v57 = vmul.f32 %v1363_v25, %v8508_v40 }
 0x1ed   :  { %v1347_v42 = vadd.f32 %v1331_v35, %v1295_v17  ;;  %v1450_v3 = vadd.f32 %v1434_v14, %v1398_v41  ;;  %v1280_v47 = vmul.f32 %v1415_v28, %v8511_v58  ;;  %v1642_v12 = vmul.f32 %v8589_v46, %v1467_v21  ;;  %v7605_v5 = vpop.f32.mrb[20].mxu0 }
 0x1ee   :  { %v1332_v9 = vmul.f32 %v1467_v21, %v8539_v2  ;;  %v1384_v11 = vmul.f32 %v1519_v22, %v8563_v31  ;;  %v1133_v14 = vadd.f32 %v7605_v5, %v8518_v20  ;;  %v1124_v41 = vpop.f32.mrb[21].mxu0  ;;  %v1349_v25 = vadd.f32 %v1333_v45, %v1297_v49 }
 0x1ef   :  { %v1399_v10 = vadd.f32 %v1383_v33, %v1347_v42  ;;  %v1502_v16 = vadd.f32 %v1486_v7, %v1450_v3  ;;  %v1296_v37 = vadd.f32 %v1280_v47, %v1228_v57  ;;  %v1436_v17 = vmul.f32 %v1571_v30, %v8567_v55  ;;  %v7606_v36 = vpop.f32.mrb[22].mxu0 }
 0x1f0   :  { %v1125_v21 = vadd.f32 %v8518_v20, %v1124_v41  ;;  %v1180_v35 = vmax.f32 %v1133_v14, 0.0  ;;  %v1136_v7 = vadd.f32 %v7606_v36, %v8518_v20  ;;  %v1127_v42 = vpop.f32.mrb[23].mxu0  ;;  %v1401_v3 = vadd.f32 %v1385_v48, %v1349_v25 }
 0x1f1   :  { %v1451_v22 = vadd.f32 %v1435_v54, %v1399_v10  ;;  %v1554_v28 = vadd.f32 %v1538_v59, %v1502_v16  ;;  %v1348_v33 = vadd.f32 %v1332_v9, %v1296_v37  ;;  %v1488_v5 = vmul.f32 %v8623_v6, %v8575_v52  ;;  %v1851_v37 = vld [vmem:[#allocation2 + $0x10] sm:$0xff] }
 0x1f2   :  { %v1178_v49 = vmax.f32 %v1125_v21, 0.0  ;;  %v1128_v45 = vadd.f32 %v8518_v20, %v1127_v42  ;;  %1196 = vst.msk [vmem:[#allocation2 + $0x71] sm:$0xff] %vm43_vm1, %v1180_v35  ;;  %v1181_v47 = vmax.f32 %v1136_v7, 0.0  ;;  %v1453_v10 = vadd.f32 %v1437_v32, %v1401_v3  ;;  %v1903_v54 = vld [vmem:[#allocation2 + $0x11] sm:$0xff] }
 0x1f3   :  { %v1503_v30 = vadd.f32 %v1487_v51, %v1451_v22  ;;  %v1606_v57 = vadd.f32 %v1590_v24, %v1554_v28  ;;  %v1400_v41 = vadd.f32 %v1384_v11, %v1348_v33  ;;  %v1489_v9 = vmul.f32 %v8575_v52, %v8663_v34  ;;  %v1955_v25 = vld [vmem:[#allocation2 + $0x12] sm:$0xff]  ;;  %v8710_v32 = vld [vmem:[#allocation2 + $0x20] sm:$0xff] }
 0x1f4   :  { %1194 = vst.msk [vmem:[#allocation2 + $0x51] sm:$0xff] %vm43_vm1, %v1178_v49  ;;  %v1179_v48 = vmax.f32 %v1128_v45, 0.0  ;;  %v1540_v16 = vmul.f32 %v8578_v56, %v8659_v27  ;;  %1197 = vst.msk [vmem:[#allocation2 + $0x81] sm:$0xff] %vm43_vm1, %v1181_v47  ;;  %v1592_v11 = vmul.f32 %v8586_v15, %v8661_v53  ;;  %v1230_v14 = vmul.f32 %v8659_v27, %v8508_v40  ;;  %v8723_v33 = vld [vmem:[#allocation2 + $0x21] sm:$0xff] }
 0x1f5   :  { %v1555_v59 = vadd.f32 %v8637_v44, %v1503_v30  ;;  %v1658_v6 = vadd.f32 %v1642_v12, %v1606_v57  ;;  %v1452_v24 = vadd.f32 %v1436_v17, %v1400_v41  ;;  %v1505_v51 = vadd.f32 %v1489_v9, %v1453_v10  ;;  %v8733_v42 = vld [vmem:[#allocation2 + $0x22] sm:$0xff] }
 0x1f6   :  { %1195 = vst.msk [vmem:[#allocation2 + $0x61] sm:$0xff] %vm43_vm1, %v1179_v48  ;;  %v1644_v12 = vmul.f32 %v8589_v46, %v8663_v34  ;;  %v1282_v17 = vmul.f32 %v8661_v53, %v8511_v58  ;;  %v1871_v21 = vmul.f32 %v8521_v63, %v1851_v37  ;;  %v1334_v22 = vmul.f32 %v8663_v34, %v8539_v2 }
 0x1f7   :  { %v1607_v44 = vadd.f32 %v8640_v23, %v1555_v59  ;;  %v1504_v36 = vadd.f32 %v1488_v5, %v1452_v24  ;;  %v1923_v27 = vmul.f32 %v8524_v29, %v1903_v54  ;;  %v2026_v28 = vmul.f32 %v8593_v26, %v1851_v37 }
 0x1f8   :  { %v1298_v35 = vadd.f32 %v1282_v17, %v1230_v14  ;;  %v8727_v7 = vmul.f32 %v8548_v60, %v1955_v25  ;;  %v8731_v53 = vmul.f32 %v8593_v26, %v8710_v32  ;;  %v8739_v49 = vmul.f32 %v8596_v0, %v1903_v54 }
 0x1f9   :  { %v1659_v23 = vadd.f32 %v8644_v18, %v1607_v44  ;;  %v1556_v3 = vadd.f32 %v1540_v16, %v1504_v36  ;;  %v1939_v34 = vadd.f32 %v1923_v27, %v1871_v21  ;;  %v8736_v5 = vadd.f32 %v2026_v28, %v8601_v8  ;;  %v8741_v30 = vld [vmem:[#allocation2 + $0x70] sm:$0xff] }
 0x1fa   :  { %v1350_v18 = vadd.f32 %v1334_v22, %v1298_v35  ;;  %v8743_v57 = vld [vmem:[#allocation2 + $0x71] sm:$0xff]  ;;  %v8749_v41 = vmul.f32 %v8596_v0, %v8723_v33  ;;  %v8752_v10 = vmul.f32 %v8599_v39, %v1955_v25  ;;  %v8756_v59 = vmul.f32 %v8578_v56, %v8741_v30 }
 0x1fb   :  { %v1676_v45 = vpack.c.bf16 %v1659_v23, %v1658_v6  ;;  %v8745_v47 = vld [vmem:[#allocation2 + $0x72] sm:$0xff]  ;;  %v1608_v37 = vadd.f32 %v1592_v11, %v1556_v3  ;;  %v8760_v6 = vmul.f32 %v8586_v15, %v8743_v57  ;;  %v8764_v16 = vmul.f32 %v8599_v39, %v8733_v42  ;;  %v8780_v17 = vld [vmem:[#allocation2 + $0x80] sm:$0xff] }
 0x1fc   :  { %v1521_v8 = vld [vmem:[#allocation2 + $0x50] sm:$0xff]  ;;  %v12391_v54 = vmax.f32 %v8470_v19, 0.0  ;;  %v8775_v25 = vmul.f32 %v8589_v46, %v8745_v47  ;;  %v12392_v44 = vmax.f32 %v8474_v4, 0.0  ;;  %v8782_v21 = vld [vmem:[#allocation2 + $0x81] sm:$0xff] }
 0x1fd   :  { %v1573_v9 = vld [vmem:[#allocation2 + $0x51] sm:$0xff]  ;;  %7617 = vmatprep.mubr.msk.bf16.mxu1 %vm43_vm1, %v1676_v45  ;;  %v1541_v24 = vmul.f32 %v8578_v56, %v1521_v8  ;;  %v1231_v14 = vmul.f32 %v1521_v8, %v8508_v40  ;;  %v8784_v36 = vld [vmem:[#allocation2 + $0x82] sm:$0xff]  ;;  %v1660_v27 = vadd.f32 %v1644_v12, %v1608_v37  ;;  %v1386_v35 = vmul.f32 %v1521_v8, %v8563_v31  ;;  %v7609_v8 = vpop.f32.mrb[24].mxu0 }
 0x1fe   :  { %v1625_v48 = vld [vmem:[#allocation2 + $0x52] sm:$0xff]  ;;  %1840 = vst.msk [vmem:[#allocation2 + $0x71] sm:$0xff] %vm43_vm1, %v12391_v54  ;;  %v1593_v11 = vmul.f32 %v8586_v15, %v1573_v9  ;;  %12393 = vst [vmem:[#allocation58_spill] sm:$0xff] %v8784_v36  ;;  %v1283_v28 = vmul.f32 %v1573_v9, %v8511_v58  ;;  %v1367_v23 = vld [vmem:[#allocation2 + $0x60] sm:$0xff]  ;;  %v12394_v54 = vmax.f32 %v8476_v50, 0.0  ;;  %v1438_v12 = vmul.f32 %v1573_v9, %v8567_v55 }
 0x1ff   :  { %1838 = vst.msk [vmem:[#allocation2 + $0x51] sm:$0xff] %vm43_vm1, %v12392_v44  ;;  %v1645_v22 = vmul.f32 %v8589_v46, %v1625_v48  ;;  %v8789_v3 = vld [vmem:[#allocation2 + $0x61] sm:$0xff]  ;;  %v1557_v44 = vadd.f32 %v1541_v24, %v1505_v51  ;;  %v1335_v4 = vmul.f32 %v1625_v48, %v8539_v2  ;;  %v1387_v19 = vmul.f32 %v8563_v31, %v1367_v23  ;;  %v1140_v24 = vpop.f32.mrb[25].mxu0 }
 0x200   :  { %v8791_v45 = vld [vmem:[#allocation2 + $0x62] sm:$0xff]  ;;  %1841 = vst.msk [vmem:[#allocation2 + $0x81] sm:$0xff] %vm43_vm1, %v12394_v54  ;;  %v12395_v37 = vmax.f32 %v8480_v13, 0.0  ;;  %v1299_v39 = vadd.f32 %v1283_v28, %v1231_v14  ;;  %v1402_v0 = vadd.f32 %v1386_v35, %v1350_v18  ;;  %v1439_v26 = vmul.f32 %v8567_v55, %v8789_v3 }
 0x201   :  { %v1490_v50 = vmul.f32 %v1625_v48, %v8575_v52  ;;  %v1149_v51 = vadd.f32 %v7609_v8, %v8518_v20  ;;  %v1609_v54 = vadd.f32 %v1593_v11, %v1557_v44  ;;  %v1491_v60 = vmul.f32 %v8575_v52, %v8791_v45  ;;  %v8815_v52 = vld [vmem:[#allocation2 + $0x30] sm:$0xff] }
 0x202   :  { %1839 = vst.msk [vmem:[#allocation2 + $0x61] sm:$0xff] %vm43_vm1, %v12395_v37  ;;  %v1542_v9 = vmul.f32 %v8578_v56, %v1367_v23  ;;  %v1141_v13 = vadd.f32 %v8518_v20, %v1140_v24  ;;  %v7610_v37 = vpop.f32.mrb[26].mxu0  ;;  %v1351_v29 = vadd.f32 %v1335_v4, %v1299_v39  ;;  %v1454_v14 = vadd.f32 %v1438_v12, %v1402_v0 }
 0x203   :  { %v1594_v18 = vmul.f32 %v8586_v15, %v8789_v3  ;;  %v1184_v28 = vmax.f32 %v1149_v51, 0.0  ;;  %v1152_v48 = vadd.f32 %v7610_v37, %v8518_v20  ;;  %v1143_v35 = vpop.f32.mrb[27].mxu0  ;;  %v1661_v8 = vadd.f32 %v1645_v22, %v1609_v54  ;;  %v8821_v51 = vld [vmem:[#allocation2 + $0x31] sm:$0xff] }
 0x204   :  { %v1991_v11 = vadd.f32 %v8727_v7, %v1939_v34  ;;  %v1182_v44 = vmax.f32 %v1141_v13, 0.0  ;;  %v1144_v63 = vadd.f32 %v8518_v20, %v1143_v35  ;;  %v1403_v36 = vadd.f32 %v1387_v19, %v1351_v29 }
 0x205   :  { %v1506_v56 = vadd.f32 %v1490_v50, %v1454_v14  ;;  %1200 = vst.msk [vmem:[#allocation2 + $0xd1] sm:$0xff] %vm43_vm1, %v1184_v28  ;;  %v1185_v4 = vmax.f32 %v1152_v48, 0.0  ;;  %v1677_v0 = vpack.c.bf16 %v1661_v8, %v1660_v27  ;;  %v2094_v12 = vadd.f32 %v8739_v49, %v8736_v5 }
 0x206   :  { %v2043_v39 = vadd.f32 %v8731_v53, %v1991_v11  ;;  %1198 = vst.msk [vmem:[#allocation2 + $0xb1] sm:$0xff] %vm43_vm1, %v1182_v44  ;;  %v1183_v13 = vmax.f32 %v1144_v63, 0.0  ;;  %v1455_v7 = vadd.f32 %v1439_v26, %v1403_v36  ;;  %v1646_v19 = vmul.f32 %v8589_v46, %v8791_v45  ;;  %v8834_v63 = vld [vmem:[#allocation2 + $0x32] sm:$0xff] }
 0x207   :  { %v1558_v34 = vadd.f32 %v1542_v9, %v1506_v56  ;;  %1201 = vst.msk [vmem:[#allocation2 + $0xe1] sm:$0xff] %vm43_vm1, %v1185_v4  ;;  %7618 = vmatmul.mubr.msk.bf16.vlgmr.msra.gmra.mrb[16].mxu1 %vm43_vm1, %v1677_v0  ;;  %v2146_v29 = vadd.f32 %v8752_v10, %v2094_v12  ;;  %v2182_v53 = vmul.f32 %v8604_v43, %v8710_v32  ;;  %v12396_v12 = vmax.f32 %v8482_v62, 0.0 }
 0x208   :  { %v2095_v50 = vadd.f32 %v8749_v41, %v2043_v39  ;;  %v2183_v5 = vmul.f32 %v8604_v43, %v8815_v52  ;;  %1199 = vst.msk [vmem:[#allocation2 + $0xc1] sm:$0xff] %vm43_vm1, %v1183_v13  ;;  %v1507_v26 = vadd.f32 %v1491_v60, %v1455_v7  ;;  %v2234_v49 = vmul.f32 %v8607_v38, %v8723_v33 }
 0x209   :  { %v1610_v56 = vadd.f32 %v1594_v18, %v1558_v34  ;;  %v2235_v41 = vmul.f32 %v8607_v38, %v8821_v51  ;;  %v2198_v36 = vadd.f32 %v2182_v53, %v2146_v29  ;;  %v2286_v22 = vmul.f32 %v8610_v1, %v8733_v42 }
 0x20a   :  { %v2147_v10 = vadd.f32 %v8764_v16, %v2095_v50  ;;  %v1232_v27 = vmul.f32 %v1367_v23, %v8508_v40  ;;  %v1559_v24 = vadd.f32 %v8756_v59, %v1507_v26  ;;  %v2287_v60 = vmul.f32 %v8610_v1, %v8834_v63 }
 0x20b   :  { %v1233_v54 = vmul.f32 %v8741_v30, %v8508_v40  ;;  %v1284_v9 = vmul.f32 %v8789_v3, %v8511_v58  ;;  %v1662_v37 = vadd.f32 %v1646_v19, %v1610_v56  ;;  %v2250_v16 = vadd.f32 %v2234_v49, %v2198_v36  ;;  %v12398_v56 = vld [vmem:[#allocation44_spill] sm:$0xff]  ;;  %v12399_v36 = vld [vmem:[#allocation35_spill] sm:$0xff] }
 0x20c   :  { %v2199_v14 = vadd.f32 %v2183_v5, %v2147_v10  ;;  %v1285_v18 = vmul.f32 %v8743_v57, %v8511_v58  ;;  %v1611_v28 = vadd.f32 %v8760_v6, %v1559_v24  ;;  %v1336_v59 = vmul.f32 %v8791_v45, %v8539_v2  ;;  %v8859_v35 = vld [vmem:[#allocation2 + $0xd0] sm:$0xff] }
 0x20d   :  { %v1300_v23 = vadd.f32 %v1284_v9, %v1232_v27  ;;  %v1337_v48 = vmul.f32 %v8745_v47, %v8539_v2  ;;  %v8861_v8 = vld [vmem:[#allocation2 + $0xd1] sm:$0xff]  ;;  %v2302_v44 = vadd.f32 %v2286_v22, %v2250_v16  ;;  %v1388_v0 = vmul.f32 %v8741_v30, %v8563_v31  ;;  %v7613_v27 = vpop.f32.mrb[28].mxu0 }
 0x20e   :  { %v8863_v3 = vld [vmem:[#allocation2 + $0xd2] sm:$0xff]  ;;  %v2251_v11 = vadd.f32 %v2235_v41, %v2199_v14  ;;  %v1301_v4 = vadd.f32 %v1285_v18, %v1233_v54  ;;  %v1663_v13 = vadd.f32 %v8775_v25, %v1611_v28  ;;  %v1389_v34 = vmul.f32 %v8563_v31, %v8780_v17  ;;  %v8884_v50 = vld [vmem:[#allocation2 + $0xe0] sm:$0xff] }
 0x20f   :  { %v8867_v6 = vld [vmem:[#allocation2 + $0xb0] sm:$0xff]  ;;  %1844 = vst.msk [vmem:[#allocation2 + $0xd1] sm:$0xff] %vm43_vm1, %v12396_v12  ;;  %v1352_v7 = vadd.f32 %v1336_v59, %v1300_v23  ;;  %v1440_v19 = vmul.f32 %v8743_v57, %v8567_v55  ;;  %v12397_v30 = vmax.f32 %v8487_v61, 0.0  ;;  %v8886_v29 = vld [vmem:[#allocation2 + $0xe1] sm:$0xff]  ;;  %v1441_v25 = vmul.f32 %v8567_v55, %v8782_v21  ;;  %v12402_v14 = vld [vmem:[#allocation45_spill] sm:$0xff]  ;;  %v1156_v23 = vpop.f32.mrb[29].mxu0 }
 0x210   :  { %v8869_v39 = vld [vmem:[#allocation2 + $0xb1] sm:$0xff]  ;;  %v8888_v53 = vld [vmem:[#allocation2 + $0xe2] sm:$0xff]  ;;  %v2303_v5 = vadd.f32 %v2287_v60, %v2251_v11  ;;  %v1353_v26 = vadd.f32 %v1337_v48, %v1301_v4  ;;  %v1492_v49 = vmul.f32 %v8745_v47, %v12398_v56  ;;  %v12400_v22 = vmax.f32 %v12399_v36, 0.0  ;;  %v7614_v4 = vpop.f32.mrb[30].mxu0 }
 0x211   :  { %v8871_v45 = vld [vmem:[#allocation2 + $0xb2] sm:$0xff]  ;;  %v8894_v41 = vld [vmem:[#allocation2 + $0xc0] sm:$0xff]  ;;  %v1678_v24 = vpack.c.bf16 %v1663_v13, %v1662_v37  ;;  %v1404_v60 = vadd.f32 %v1388_v0, %v1352_v7  ;;  %v1544_v16 = vmul.f32 %v12402_v14, %v8780_v17  ;;  %v1165_v28 = vadd.f32 %v7613_v27, %v8518_v20 }
 0x212   :  { %1842 = vst.msk [vmem:[#allocation2 + $0xb1] sm:$0xff] %vm43_vm1, %v12397_v30  ;;  %v8896_v57 = vld [vmem:[#allocation2 + $0xc1] sm:$0xff]  ;;  %1845 = vst.msk [vmem:[#allocation2 + $0xe1] sm:$0xff] %vm43_vm1, %v12400_v22  ;;  %v12403_v47 = vld [vmem:[#allocation36_spill] sm:$0xff]  ;;  %v2322_v59 = vpack.c.bf16 %v2303_v5, %v2302_v44  ;;  %v1405_v48 = vadd.f32 %v1389_v34, %v1353_v26  ;;  %v1596_v11 = vmul.f32 %v8586_v15, %v8782_v21  ;;  %v1159_v44 = vpop.f32.mrb[31].mxu0 }
 0x213   :  { %v8898_v10 = vld [vmem:[#allocation2 + $0xc2] sm:$0xff]  ;;  %v12404_v18 = vmax.f32 %v12403_v47, 0.0  ;;  %v1157_v37 = vadd.f32 %v8518_v20, %v1156_v23  ;;  %7621 = vmatprep.mubr.msk.bf16.mxu1 %vm43_vm1, %v1678_v24  ;;  %v1456_v0 = vadd.f32 %v1440_v19, %v1404_v60  ;;  %v12405_v12 = vld [vmem:[#allocation41_spill] sm:$0xff]  ;;  %v1188_v7 = vmax.f32 %v1165_v28, 0.0 }
 0x214   :  { %v12401_v54 = vld [vmem:[#allocation58_spill] sm:$0xff]  ;;  %v1872_v17 = vmul.f32 %v8710_v32, %v12405_v12  ;;  %v1873_v13 = vmul.f32 %v8815_v52, %v12405_v12  ;;  %v1168_v30 = vadd.f32 %v7614_v4, %v8518_v20  ;;  %7635 = vmatprep.mubr.msk.bf16.mxu0 %vm43_vm1, %v2322_v59  ;;  %v1457_v34 = vadd.f32 %v1441_v25, %v1405_v48  ;;  %v8926_v27 = vld [vmem:[#allocation2 + $0x131] sm:$0xff]  ;;  %v12408_v28 = vld [vmem:[#allocation43_spill] sm:$0xff] }
 0x215   :  { %v1493_v9 = vmul.f32 %v12398_v56, %v12401_v54  ;;  %1843 = vst.msk [vmem:[#allocation2 + $0xc1] sm:$0xff] %vm43_vm1, %v12404_v18  ;;  %v12406_v21 = vld [vmem:[#allocation42_spill] sm:$0xff]  ;;  %v1186_v26 = vmax.f32 %v1157_v37, 0.0  ;;  %v1160_v22 = vadd.f32 %v8518_v20, %v1159_v44  ;;  %v1508_v19 = vadd.f32 %v1492_v49, %v1456_v0  ;;  %12407 = vst [vmem:[#allocation44_spill] sm:$0xff] %v8926_v27  ;;  %v8936_v48 = vld [vmem:[#allocation2 + $0x132] sm:$0xff] }
 0x216   :  { %v1924_v5 = vmul.f32 %v8723_v33, %v12406_v21  ;;  %v1925_v32 = vmul.f32 %v8821_v51, %v12406_v21  ;;  %1204 = vst.msk [vmem:[#allocation2 + $0x111] sm:$0xff] %vm43_vm1, %v1188_v7  ;;  %v1189_v24 = vmax.f32 %v1168_v30, 0.0  ;;  %v1976_v25 = vmul.f32 %v8733_v42, %v12408_v28  ;;  %v8931_v23 = vld [vmem:[#allocation2 + $0x40] sm:$0xff]  ;;  %12409 = vst [vmem:[#allocation58_spill] sm:$0xff] %v8936_v48  ;;  %v12410_v37 = vld [vmem:[#allocation49_spill] sm:$0xff] }
 0x217   :  { %v1509_v60 = vadd.f32 %v1493_v9, %v1457_v34  ;;  %1202 = vst.msk [vmem:[#allocation2 + $0xf1] sm:$0xff] %vm43_vm1, %v1186_v26  ;;  %v1187_v33 = vmax.f32 %v1160_v22, 0.0  ;;  %v1560_v20 = vadd.f32 %v1544_v16, %v1508_v19  ;;  %v1977_v59 = vmul.f32 %v8834_v63, %v12408_v28  ;;  %v12411_v0 = vld [vmem:[#allocation46_spill] sm:$0xff]  ;;  %v12414_v22 = vld [vmem:[#allocation47_spill] sm:$0xff]  ;;  %v12420_v47 = vld [vmem:[#allocation37_spill] sm:$0xff] }
 0x218   :  { %v1940_v18 = vadd.f32 %v1924_v5, %v1872_v17  ;;  %v1941_v49 = vadd.f32 %v1925_v32, %v1873_v13  ;;  %1205 = vst.msk [vmem:[#allocation2 + $0x121] sm:$0xff] %vm43_vm1, %v1189_v24  ;;  %v2028_v42 = vmul.f32 %v8815_v52, %v12411_v0  ;;  %v8942_v17 = vld [vmem:[#allocation2 + $0x41] sm:$0xff]  ;;  %v8946_v7 = vmul.f32 %v8586_v15, %v8926_v27  ;;  %v8958_v32 = vld [vmem:[#allocation2 + $0x50] sm:$0xff] }
 0x219   :  { %v1561_v9 = vadd.f32 %v12410_v37, %v1509_v60  ;;  %1203 = vst.msk [vmem:[#allocation2 + $0x101] sm:$0xff] %vm43_vm1, %v1187_v33  ;;  %v1612_v16 = vadd.f32 %v1596_v11, %v1560_v20  ;;  %v1648_v13 = vmul.f32 %v8589_v46, %v12401_v54  ;;  %v2029_v44 = vmul.f32 %v12411_v0, %v8931_v23  ;;  %v8953_v34 = vld [vmem:[#allocation2 + $0x42] sm:$0xff]  ;;  %v8968_v33 = vld [vmem:[#allocation2 + $0x51] sm:$0xff] }
 0x21a   :  { %v1992_v4 = vadd.f32 %v1976_v25, %v1940_v18  ;;  %12412 = vst [vmem:[#allocation45_spill] sm:$0xff] %v8946_v7  ;;  %v1993_v30 = vadd.f32 %v1977_v59, %v1941_v49  ;;  %v12413_v5 = vld [vmem:[#allocation50_spill] sm:$0xff]  ;;  %v2080_v19 = vmul.f32 %v8821_v51, %v12414_v22  ;;  %v8962_v11 = vmul.f32 %v8589_v46, %v8936_v48  ;;  %v12416_v18 = vld [vmem:[#allocation48_spill] sm:$0xff]  ;;  %v12417_v20 = vld [vmem:[#allocation51_spill] sm:$0xff] }
 0x21b   :  { %v1613_v52 = vadd.f32 %v12413_v5, %v1561_v9  ;;  %v1664_v24 = vadd.f32 %v1648_v13, %v1612_v16  ;;  %v2081_v60 = vmul.f32 %v12414_v22, %v8942_v17  ;;  %v2132_v25 = vmul.f32 %v8834_v63, %v12416_v18  ;;  %v8975_v9 = vld [vmem:[#allocation2 + $0x52] sm:$0xff]  ;;  %v12427_v7 = vld [vmem:[#allocation39_spill] sm:$0xff] }
 0x21c   :  { %v2044_v26 = vadd.f32 %v2028_v42, %v1992_v4  ;;  %12415 = vst [vmem:[#allocation41_spill] sm:$0xff] %v8962_v11  ;;  %v2045_v54 = vadd.f32 %v2029_v44, %v1993_v30  ;;  %v2133_v51 = vmul.f32 %v12416_v18, %v8953_v34  ;;  %v2184_v37 = vmul.f32 %v8604_v43, %v8931_v23 }
 0x21d   :  { %v1665_v49 = vadd.f32 %v12417_v20, %v1613_v52  ;;  %v2185_v42 = vmul.f32 %v8604_v43, %v8958_v32  ;;  %v2236_v63 = vmul.f32 %v8607_v38, %v8942_v17  ;;  %v1235_v16 = vmul.f32 %v8508_v40, %v8867_v6  ;;  %v8983_v13 = vld [vmem:[#allocation2 + $0x110] sm:$0xff] }
 0x21e   :  { %v2096_v59 = vadd.f32 %v2080_v19, %v2044_v26  ;;  %v2097_v4 = vadd.f32 %v2081_v60, %v2045_v54  ;;  %v8985_v30 = vld [vmem:[#allocation2 + $0x111] sm:$0xff]  ;;  %v2237_v26 = vmul.f32 %v8607_v38, %v8968_v33  ;;  %v1287_v19 = vmul.f32 %v8511_v58, %v8869_v39 }
 0x21f   :  { %12418 = vst [vmem:[#allocation42_spill] sm:$0xff] %v8985_v30  ;;  %v8987_v44 = vld [vmem:[#allocation2 + $0x112] sm:$0xff]  ;;  %v1679_v5 = vpack.c.bf16 %v1665_v49, %v1664_v24  ;;  %v12421_v61 = vmax.f32 %v12420_v47, 0.0  ;;  %v2288_v24 = vmul.f32 %v8610_v1, %v8953_v34  ;;  %v1390_v49 = vmul.f32 %v8563_v31, %v8867_v6  ;;  %v9011_v48 = vld [vmem:[#allocation2 + $0x120] sm:$0xff] }
 0x220   :  { %12419 = vst [vmem:[#allocation43_spill] sm:$0xff] %v8987_v44  ;;  %v2148_v52 = vadd.f32 %v2132_v25, %v2096_v59  ;;  %v8993_v54 = vld [vmem:[#allocation2 + $0xf0] sm:$0xff]  ;;  %v2149_v36 = vadd.f32 %v2133_v51, %v2097_v4  ;;  %v2289_v25 = vmul.f32 %v8610_v1, %v8975_v9  ;;  %v12422_v59 = vld [vmem:[#allocation38_spill] sm:$0xff]  ;;  %12424 = vst [vmem:[#allocation49_spill] sm:$0xff] %v9011_v48 }
 0x221   :  { %v8995_v60 = vld [vmem:[#allocation2 + $0xf1] sm:$0xff]  ;;  %1848 = vst.msk [vmem:[#allocation2 + $0x111] sm:$0xff] %vm43_vm1, %v12421_v61  ;;  %v12423_v62 = vmax.f32 %v12422_v59, 0.0  ;;  %v9013_v27 = vld [vmem:[#allocation2 + $0x121] sm:$0xff]  ;;  %7622 = vmatmul.mubr.msk.bf16.gmra.mrb[20].mxu1 %vm43_vm1, %v1679_v5  ;;  %v1303_v51 = vadd.f32 %v1287_v19, %v1235_v16  ;;  %v1339_v4 = vmul.f32 %v8539_v2, %v8871_v45  ;;  %v1391_v6 = vmul.f32 %v8563_v31, %v8894_v41 }
 0x222   :  { %v8997_v20 = vld [vmem:[#allocation2 + $0xf2] sm:$0xff]  ;;  %12425 = vst [vmem:[#allocation46_spill] sm:$0xff] %v9013_v27  ;;  %v9015_v47 = vld [vmem:[#allocation2 + $0x122] sm:$0xff]  ;;  %v2200_v61 = vadd.f32 %v2184_v37, %v2148_v52  ;;  %v12428_v27 = vmax.f32 %v12427_v7, 0.0  ;;  %v1442_v16 = vmul.f32 %v8567_v55, %v8869_v39  ;;  %v1443_v52 = vmul.f32 %v8567_v55, %v8896_v57 }
 0x223   :  { %1846 = vst.msk [vmem:[#allocation2 + $0xf1] sm:$0xff] %vm43_vm1, %v12423_v62  ;;  %12426 = vst [vmem:[#allocation50_spill] sm:$0xff] %v9015_v47  ;;  %v9022_v11 = vld [vmem:[#allocation2 + $0x100] sm:$0xff]  ;;  %v2201_v47 = vadd.f32 %v2185_v42, %v2149_v36  ;;  %v12429_v5 = vld [vmem:[#allocation52_spill] sm:$0xff]  ;;  %v1355_v30 = vadd.f32 %v1339_v4, %v1303_v51  ;;  %v1494_v7 = vmul.f32 %v12398_v56, %v8871_v45 }
 0x224   :  { %v9024_v59 = vld [vmem:[#allocation2 + $0x101] sm:$0xff]  ;;  %1849 = vst.msk [vmem:[#allocation2 + $0x121] sm:$0xff] %vm43_vm1, %v12428_v27  ;;  %v1406_v37 = vadd.f32 %v1390_v49, %v12429_v5  ;;  %v12430_v19 = vld [vmem:[#allocation40_spill] sm:$0xff]  ;;  %v2252_v44 = vadd.f32 %v2236_v63, %v2200_v61  ;;  %v1495_v36 = vmul.f32 %v12398_v56, %v8898_v10  ;;  %v1546_v39 = vmul.f32 %v12402_v14, %v8894_v41 }
 0x225   :  { %v9026_v62 = vld [vmem:[#allocation2 + $0x102] sm:$0xff]  ;;  %v12431_v48 = vmax.f32 %v12430_v19, 0.0  ;;  %v2253_v27 = vadd.f32 %v2237_v26, %v2201_v47  ;;  %v1547_v49 = vmul.f32 %v12402_v14, %v8859_v35  ;;  %v1407_v19 = vadd.f32 %v1391_v6, %v1355_v30 }
 0x226   :  { %v1458_v42 = vadd.f32 %v1442_v16, %v1406_v37  ;;  %v2304_v5 = vadd.f32 %v2288_v24, %v2252_v44  ;;  %v1874_v63 = vmul.f32 %v8931_v23, %v12405_v12  ;;  %v1875_v47 = vmul.f32 %v8958_v32, %v12405_v12  ;;  %v9061_v24 = vld [vmem:[#allocation2 + $0x60] sm:$0xff] }
 0x227   :  { %1847 = vst.msk [vmem:[#allocation2 + $0x101] sm:$0xff] %vm43_vm1, %v12431_v48  ;;  %v1598_v48 = vmul.f32 %v8586_v15, %v8896_v57  ;;  %v2305_v45 = vadd.f32 %v2289_v25, %v2253_v27  ;;  %v1926_v26 = vmul.f32 %v8942_v17, %v12406_v21  ;;  %v1459_v51 = vadd.f32 %v1443_v52, %v1407_v19  ;;  %v9065_v37 = vld [vmem:[#allocation2 + $0x61] sm:$0xff] }
 0x228   :  { %v1510_v61 = vadd.f32 %v1494_v7, %v1458_v42  ;;  %v1599_v4 = vmul.f32 %v8586_v15, %v8861_v8  ;;  %v1927_v30 = vmul.f32 %v8968_v33, %v12406_v21  ;;  %v1978_v44 = vmul.f32 %v8953_v34, %v12408_v28  ;;  %v9071_v27 = vld [vmem:[#allocation2 + $0x62] sm:$0xff] }
 0x229   :  { %v2323_v23 = vpack.c.bf16 %v2305_v45, %v2304_v5  ;;  %v1942_v25 = vadd.f32 %v1926_v26, %v1874_v63  ;;  %v2030_v6 = vmul.f32 %v8958_v32, %v12411_v0  ;;  %v1511_v17 = vadd.f32 %v1495_v36, %v1459_v51  ;;  %v9078_v36 = vld [vmem:[#allocation2 + $0x70] sm:$0xff] }
 0x22a   :  { %v1562_v7 = vadd.f32 %v1546_v39, %v1510_v61  ;;  %v1650_v16 = vmul.f32 %v8589_v46, %v8898_v10  ;;  %v1943_v52 = vadd.f32 %v1927_v30, %v1875_v47  ;;  %v1979_v19 = vmul.f32 %v8975_v9, %v12408_v28 }
 0x22b   :  { %7636 = vmatmul.mubr.msk.bf16.vlgmr.msra.gmra.mrb[32].mxu0 %vm43_vm1, %v2323_v23  ;;  %v1651_v42 = vmul.f32 %v8589_v46, %v8863_v3  ;;  %v1994_v39 = vadd.f32 %v1978_v44, %v1942_v25  ;;  %v2031_v32 = vmul.f32 %v12411_v0, %v9061_v24  ;;  %v1563_v5 = vadd.f32 %v1547_v49, %v1511_v17 }
 0x22c   :  { %v1614_v34 = vadd.f32 %v1598_v48, %v1562_v7  ;;  %v1995_v63 = vadd.f32 %v1979_v19, %v1943_v52  ;;  %v2082_v45 = vmul.f32 %v8968_v33, %v12414_v22  ;;  %v2083_v61 = vmul.f32 %v12414_v22, %v9065_v37  ;;  %v9092_v33 = vld [vmem:[#allocation2 + $0x71] sm:$0xff] }
 0x22d   :  { %v2046_v47 = vadd.f32 %v2030_v6, %v1994_v39  ;;  %v2134_v48 = vmul.f32 %v8975_v9, %v12416_v18  ;;  %v2135_v26 = vmul.f32 %v12416_v18, %v9071_v27  ;;  %v2186_v51 = vmul.f32 %v8604_v43, %v9061_v24 }
 0x22e   :  { %v1615_v30 = vadd.f32 %v1599_v4, %v1563_v5  ;;  %v1666_v44 = vadd.f32 %v1650_v16, %v1614_v34  ;;  %v2047_v49 = vadd.f32 %v2031_v32, %v1995_v63  ;;  %v2187_v23 = vmul.f32 %v8604_v43, %v9078_v36  ;;  %v9100_v4 = vld [vmem:[#allocation2 + $0x72] sm:$0xff] }
 0x22f   :  { %v2098_v7 = vadd.f32 %v2082_v45, %v2046_v47  ;;  %v2238_v25 = vmul.f32 %v8607_v38, %v9065_v37  ;;  %v1236_v9 = vmul.f32 %v8894_v41, %v8508_v40  ;;  %v1237_v6 = vmul.f32 %v8859_v35, %v8508_v40 }
 0x230   :  { %v1667_v17 = vadd.f32 %v1651_v42, %v1615_v30  ;;  %v2099_v52 = vadd.f32 %v2083_v61, %v2047_v49  ;;  %v1288_v16 = vmul.f32 %v8896_v57, %v8511_v58  ;;  %v1289_v19 = vmul.f32 %v8861_v8, %v8511_v58 }
 0x231   :  { %v2150_v34 = vadd.f32 %v2134_v48, %v2098_v7  ;;  %v2239_v39 = vmul.f32 %v8607_v38, %v9092_v33  ;;  %v1340_v41 = vmul.f32 %v8898_v10, %v8539_v2  ;;  %v1341_v32 = vmul.f32 %v8863_v3, %v8539_v2 }
 0x232   :  { %v1680_v42 = vpack.c.bf16 %v1667_v17, %v1666_v44  ;;  %v2151_v5 = vadd.f32 %v2135_v26, %v2099_v52  ;;  %v1304_v63 = vadd.f32 %v1288_v16, %v1236_v9  ;;  %v1305_v45 = vadd.f32 %v1289_v19, %v1237_v6 }
 0x233   :  { %v2202_v61 = vadd.f32 %v2186_v51, %v2150_v34  ;;  %v2290_v57 = vmul.f32 %v8610_v1, %v9071_v27  ;;  %v2291_v47 = vmul.f32 %v8610_v1, %v9100_v4  ;;  %v1392_v48 = vmul.f32 %v8859_v35, %v8563_v31 }
 0x234   :  { %7625 = vmatprep.mubr.msk.bf16.mxu1 %vm43_vm1, %v1680_v42  ;;  %v2203_v10 = vadd.f32 %v2187_v23, %v2151_v5  ;;  %v1356_v30 = vadd.f32 %v1340_v41, %v1304_v63  ;;  %v1357_v49 = vadd.f32 %v1341_v32, %v1305_v45  ;;  %v1393_v26 = vmul.f32 %v8563_v31, %v8884_v50 }
 0x235   :  { %v2254_v44 = vadd.f32 %v2238_v25, %v2202_v61  ;;  %v1444_v51 = vmul.f32 %v8861_v8, %v8567_v55  ;;  %v1445_v7 = vmul.f32 %v8567_v55, %v8886_v29  ;;  %v1496_v9 = vmul.f32 %v8863_v3, %v12398_v56 }
 0x236   :  { %v2255_v6 = vadd.f32 %v2239_v39, %v2203_v10  ;;  %v1408_v35 = vadd.f32 %v1392_v48, %v1356_v30  ;;  %v1409_v17 = vadd.f32 %v1393_v26, %v1357_v49  ;;  %v1497_v23 = vmul.f32 %v12398_v56, %v8888_v53  ;;  %v2065_v49 = vld [vmem:[#allocation2 + $0x81] sm:$0xff] }
 0x237   :  { %v2306_v52 = vadd.f32 %v2290_v57, %v2254_v44  ;;  %v1548_v16 = vmul.f32 %v12402_v14, %v8884_v50  ;;  %v1549_v25 = vmul.f32 %v12402_v14, %v8993_v54  ;;  %v1600_v8 = vmul.f32 %v8586_v15, %v8886_v29 }
 0x238   :  { %v2307_v19 = vadd.f32 %v2291_v47, %v2255_v6  ;;  %v1460_v34 = vadd.f32 %v1444_v51, %v1408_v35  ;;  %v1461_v41 = vadd.f32 %v1445_v7, %v1409_v17  ;;  %v1876_v3 = vmul.f32 %v9061_v24, %v12405_v12  ;;  %v2013_v47 = vld [vmem:[#allocation2 + $0x80] sm:$0xff] }
 0x239   :  { %v1601_v39 = vmul.f32 %v8586_v15, %v8995_v60  ;;  %v1877_v32 = vmul.f32 %v9078_v36, %v12405_v12  ;;  %v1928_v42 = vmul.f32 %v9065_v37, %v12406_v21  ;;  %v1929_v5 = vmul.f32 %v9092_v33, %v12406_v21  ;;  %v2117_v7 = vld [vmem:[#allocation2 + $0x82] sm:$0xff] }
 0x23a   :  { %v2324_v63 = vpack.c.bf16 %v2307_v19, %v2306_v52  ;;  %v1512_v45 = vadd.f32 %v1496_v9, %v1460_v34  ;;  %v1513_v61 = vadd.f32 %v1497_v23, %v1461_v41  ;;  %v1652_v57 = vmul.f32 %v8589_v46, %v8888_v53 }
 0x23b   :  { %v1944_v24 = vadd.f32 %v1928_v42, %v1876_v3  ;;  %v1945_v48 = vadd.f32 %v1929_v5, %v1877_v32  ;;  %v1980_v10 = vmul.f32 %v9071_v27, %v12408_v28  ;;  %v1981_v30 = vmul.f32 %v9100_v4, %v12408_v28 }
 0x23c   :  { %7639 = vmatprep.mubr.msk.bf16.mxu0 %vm43_vm1, %v2324_v63  ;;  %v1564_v37 = vadd.f32 %v1548_v16, %v1512_v45  ;;  %v1565_v26 = vadd.f32 %v1549_v25, %v1513_v61  ;;  %v1653_v44 = vmul.f32 %v8589_v46, %v8997_v20  ;;  %v2032_v51 = vmul.f32 %v9078_v36, %v12411_v0 }
 0x23d   :  { %v1996_v9 = vadd.f32 %v1980_v10, %v1944_v24  ;;  %v1997_v6 = vadd.f32 %v1981_v30, %v1945_v48  ;;  %v2033_v35 = vmul.f32 %v12411_v0, %v2013_v47  ;;  %v2084_v27 = vmul.f32 %v9092_v33, %v12414_v22 }
 0x23e   :  { %v1616_v17 = vadd.f32 %v1600_v8, %v1564_v37  ;;  %v1617_v23 = vadd.f32 %v1601_v39, %v1565_v26  ;;  %v2085_v52 = vmul.f32 %v12414_v22, %v2065_v49  ;;  %v2136_v16 = vmul.f32 %v9100_v4, %v12416_v18  ;;  %v12432_v37 = vld [vmem:[#allocation53_spill] sm:$0xff] }
 0x23f   :  { %v2048_v25 = vadd.f32 %v2032_v51, %v1996_v9  ;;  %v2049_v19 = vadd.f32 %v2033_v35, %v1997_v6  ;;  %v2137_v34 = vmul.f32 %v12416_v18, %v2117_v7  ;;  %v1238_v36 = vmul.f32 %v8884_v50, %v8508_v40  ;;  %v1859_v51 = vld [vmem:[#allocation2 + $0xb0] sm:$0xff] }
 0x240   :  { %v1668_v41 = vadd.f32 %v1652_v57, %v1616_v17  ;;  %v1669_v3 = vadd.f32 %v1653_v44, %v1617_v23  ;;  %v1239_v32 = vmul.f32 %v8993_v54, %v8508_v40  ;;  %v1290_v33 = vmul.f32 %v8886_v29, %v8511_v58  ;;  %v1911_v35 = vld [vmem:[#allocation2 + $0xb1] sm:$0xff]  ;;  %v12433_v17 = vld [vmem:[#allocation54_spill] sm:$0xff] }
 0x241   :  { %v2100_v8 = vadd.f32 %v2084_v27, %v2048_v25  ;;  %v2101_v39 = vadd.f32 %v2085_v52, %v2049_v19  ;;  %v2188_v42 = vmul.f32 %v8604_v43, %v2013_v47  ;;  %v1291_v4 = vmul.f32 %v8995_v60, %v8511_v58 }
 0x242   :  { %v1681_v5 = vpack.c.bf16 %v1669_v3, %v1668_v41  ;;  %v1306_v63 = vadd.f32 %v1290_v33, %v1238_v36  ;;  %v1342_v50 = vmul.f32 %v8888_v53, %v8539_v2  ;;  %v1394_v45 = vmul.f32 %v8993_v54, %v8563_v31  ;;  %v12434_v41 = vld [vmem:[#allocation55_spill] sm:$0xff] }
 0x243   :  { %v2152_v61 = vadd.f32 %v2136_v16, %v2100_v8  ;;  %v2153_v57 = vadd.f32 %v2137_v34, %v2101_v39  ;;  %v1307_v24 = vadd.f32 %v1291_v4, %v1239_v32  ;;  %v1343_v29 = vmul.f32 %v8997_v20, %v8539_v2  ;;  %v1963_v34 = vld [vmem:[#allocation2 + $0xb2] sm:$0xff]  ;;  %v12435_v39 = vld [vmem:[#allocation42_spill] sm:$0xff] }
 0x244   :  { %7626 = vmatmul.mubr.msk.bf16.gmra.mrb[24].mxu1 %vm43_vm1, %v1681_v5  ;;  %v2240_v47 = vmul.f32 %v8607_v38, %v2065_v49  ;;  %v2292_v48 = vmul.f32 %v8610_v1, %v2117_v7  ;;  %v1358_v10 = vadd.f32 %v1342_v50, %v1306_v63  ;;  %v1395_v30 = vmul.f32 %v8563_v31, %v9022_v11  ;;  %v2015_v5 = vld [vmem:[#allocation2 + $0xc0] sm:$0xff] }
 0x245   :  { %v2204_v53 = vadd.f32 %v2188_v42, %v2152_v61  ;;  %v2205_v26 = vadd.f32 %v12432_v37, %v2153_v57  ;;  %v1359_v54 = vadd.f32 %v1343_v29, %v1307_v24  ;;  %v1446_v44 = vmul.f32 %v8995_v60, %v8567_v55  ;;  %v2067_v50 = vld [vmem:[#allocation2 + $0xc1] sm:$0xff] }
 0x246   :  { %v1410_v9 = vadd.f32 %v1394_v45, %v1358_v10  ;;  %v1447_v6 = vmul.f32 %v8567_v55, %v9024_v59  ;;  %v1498_v49 = vmul.f32 %v8997_v20, %v12398_v56  ;;  %v1499_v7 = vmul.f32 %v12398_v56, %v9026_v62  ;;  %v9208_v29 = vld [vmem:[#allocation2 + $0xc2] sm:$0xff] }
 0x247   :  { %v2256_v27 = vadd.f32 %v2240_v47, %v2204_v53  ;;  %v2257_v23 = vadd.f32 %v12433_v17, %v2205_v26  ;;  %v1411_v52 = vadd.f32 %v1395_v30, %v1359_v54  ;;  %v1550_v16 = vmul.f32 %v12402_v14, %v9022_v11  ;;  %v12437_v30 = vld [vmem:[#allocation56_spill] sm:$0xff] }
 0x248   :  { %v1462_v60 = vadd.f32 %v1446_v44, %v1410_v9  ;;  %v1551_v25 = vmul.f32 %v12402_v14, %v8983_v13  ;;  %v1602_v19 = vmul.f32 %v8586_v15, %v9024_v59  ;;  %v1879_v20 = vmul.f32 %v12405_v12, %v1859_v51  ;;  %v9214_v26 = vld [vmem:[#allocation2 + $0xd0] sm:$0xff] }
 0x249   :  { %v2308_v36 = vadd.f32 %v2292_v48, %v2256_v27  ;;  %v2309_v3 = vadd.f32 %v12434_v41, %v2257_v23  ;;  %v1463_v32 = vadd.f32 %v1447_v6, %v1411_v52  ;;  %v1931_v33 = vmul.f32 %v12406_v21, %v1911_v35  ;;  %v12436_v48 = vld [vmem:[#allocation43_spill] sm:$0xff]  ;;  %v2275_v41 = vld [vmem:[#allocation2 + $0xd2] sm:$0xff] }
 0x24a   :  { %v1514_v8 = vadd.f32 %v1498_v49, %v1462_v60  ;;  %v1603_v42 = vmul.f32 %v8586_v15, %v12435_v39  ;;  %v1654_v4 = vmul.f32 %v8589_v46, %v9026_v62  ;;  %v2034_v63 = vmul.f32 %v12411_v0, %v1859_v51 }
 0x24b   :  { %v2325_v45 = vpack.c.bf16 %v2309_v3, %v2308_v36  ;;  %v1515_v61 = vadd.f32 %v1499_v7, %v1463_v32  ;;  %v1947_v57 = vadd.f32 %v1931_v33, %v1879_v20  ;;  %v1983_v24 = vmul.f32 %v12408_v28, %v1963_v34 }
 0x24c   :  { %v1566_v47 = vadd.f32 %v1550_v16, %v1514_v8  ;;  %v1655_v10 = vmul.f32 %v8589_v46, %v12436_v48  ;;  %v2050_v53 = vadd.f32 %v2034_v63, %v12437_v30  ;;  %v2086_v37 = vmul.f32 %v12414_v22, %v1911_v35  ;;  %v2223_v16 = vld [vmem:[#allocation2 + $0xd1] sm:$0xff] }
 0x24d   :  { %7640 = vmatmul.mubr.msk.bf16.gmra.mrb[36].mxu0 %vm43_vm1, %v2325_v45  ;;  %v1567_v54 = vadd.f32 %v1551_v25, %v1515_v61  ;;  %v1999_v44 = vadd.f32 %v1983_v24, %v1947_v57  ;;  %v2035_v51 = vmul.f32 %v12411_v0, %v2015_v5  ;;  %v2087_v9 = vmul.f32 %v12414_v22, %v2067_v50  ;;  %v12438_v30 = vld [vmem:[#allocation49_spill] sm:$0xff] }
 0x24e   :  { %v1618_v6 = vadd.f32 %v1602_v19, %v1566_v47  ;;  %v2102_v49 = vadd.f32 %v2086_v37, %v2050_v53  ;;  %v2138_v7 = vmul.f32 %v12416_v18, %v1963_v34  ;;  %v2139_v27 = vmul.f32 %v12416_v18, %v9208_v29 }
 0x24f   :  { %v1619_v17 = vadd.f32 %v1603_v42, %v1567_v54  ;;  %v2051_v23 = vadd.f32 %v2035_v51, %v1999_v44  ;;  %v2190_v35 = vmul.f32 %v8604_v43, %v2015_v5  ;;  %v2191_v52 = vmul.f32 %v8604_v43, %v9214_v26  ;;  %v12439_v54 = vld [vmem:[#allocation46_spill] sm:$0xff] }
 0x250   :  { %v1670_v60 = vadd.f32 %v1654_v4, %v1618_v6  ;;  %v2154_v25 = vadd.f32 %v2138_v7, %v2102_v49  ;;  %v2242_v20 = vmul.f32 %v8607_v38, %v2067_v50  ;;  %v1240_v19 = vmul.f32 %v9022_v11, %v8508_v40  ;;  %v12440_v49 = vld [vmem:[#allocation50_spill] sm:$0xff] }
 0x251   :  { %v1671_v36 = vadd.f32 %v1655_v10, %v1619_v17  ;;  %v2103_v34 = vadd.f32 %v2087_v9, %v2051_v23  ;;  %v1241_v3 = vmul.f32 %v8983_v13, %v8508_v40  ;;  %v1292_v32 = vmul.f32 %v9024_v59, %v8511_v58 }
 0x252   :  { %v2206_v33 = vadd.f32 %v2190_v35, %v2154_v25  ;;  %v2243_v8 = vmul.f32 %v8607_v38, %v2223_v16  ;;  %v2294_v42 = vmul.f32 %v8610_v1, %v9208_v29  ;;  %v1293_v4 = vmul.f32 %v12435_v39, %v8511_v58 }
 0x253   :  { %v1682_v63 = vpack.c.bf16 %v1671_v36, %v1670_v60  ;;  %v2155_v11 = vadd.f32 %v2139_v27, %v2103_v34  ;;  %v1308_v45 = vadd.f32 %v1292_v32, %v1240_v19  ;;  %v1344_v61 = vmul.f32 %v9026_v62, %v8539_v2  ;;  %v2017_v60 = vld [vmem:[#allocation2 + $0xe0] sm:$0xff] }
 0x254   :  { %v2258_v57 = vadd.f32 %v2242_v20, %v2206_v33  ;;  %v2295_v40 = vmul.f32 %v8610_v1, %v2275_v41  ;;  %v1309_v24 = vadd.f32 %v1293_v4, %v1241_v3  ;;  %v1345_v59 = vmul.f32 %v12436_v48, %v8539_v2  ;;  %v2069_v36 = vld [vmem:[#allocation2 + $0xe1] sm:$0xff]  ;;  %v2173_v4 = vld [vmem:[#allocation2 + $0xf0] sm:$0xff] }
 0x255   :  { %7629 = vmatprep.mubr.msk.bf16.mxu1 %vm43_vm1, %v1682_v63  ;;  %v2207_v47 = vadd.f32 %v2191_v52, %v2155_v11  ;;  %v1360_v10 = vadd.f32 %v1344_v61, %v1308_v45  ;;  %v1396_v58 = vmul.f32 %v8983_v13, %v8563_v31  ;;  %v1397_v53 = vmul.f32 %v8563_v31, %v12438_v30  ;;  %v12441_v63 = vld [vmem:[#allocation57_spill] sm:$0xff] }
 0x256   :  { %v1361_v37 = vadd.f32 %v1345_v59, %v1309_v24  ;;  %v1448_v62 = vmul.f32 %v12435_v39, %v8567_v55  ;;  %v1449_v44 = vmul.f32 %v8567_v55, %v12439_v54  ;;  %v1500_v2 = vmul.f32 %v12436_v48, %v12398_v56  ;;  %v2225_v59 = vld [vmem:[#allocation2 + $0xf1] sm:$0xff] }
 0x257   :  { %v2259_v51 = vadd.f32 %v2243_v8, %v2207_v47  ;;  %v2310_v9 = vadd.f32 %v2294_v42, %v2258_v57  ;;  %v1412_v6 = vadd.f32 %v1396_v58, %v1360_v10  ;;  %v1501_v7 = vmul.f32 %v12398_v56, %v12440_v49  ;;  %v12442_v47 = vld [vmem:[#allocation45_spill] sm:$0xff] }
 0x258   :  { %v1413_v13 = vadd.f32 %v1397_v53, %v1361_v37  ;;  %v1880_v27 = vmul.f32 %v2015_v5, %v12405_v12  ;;  %v1881_v31 = vmul.f32 %v9214_v26, %v12405_v12  ;;  %v1932_v39 = vmul.f32 %v2067_v50, %v12406_v21  ;;  %v2277_v53 = vld [vmem:[#allocation2 + $0xf2] sm:$0xff] }
 0x259   :  { %v2311_v17 = vadd.f32 %v2295_v40, %v2259_v51  ;;  %v1464_v23 = vadd.f32 %v1448_v62, %v1412_v6  ;;  %v1552_v55 = vmul.f32 %v12402_v14, %v12438_v30  ;;  %v1933_v48 = vmul.f32 %v2223_v16, %v12406_v21 }
 0x25a   :  { %v1465_v35 = vadd.f32 %v1449_v44, %v1413_v13  ;;  %v1604_v52 = vmul.f32 %v8586_v15, %v12439_v54  ;;  %v1948_v56 = vadd.f32 %v1932_v39, %v1880_v27  ;;  %v1984_v5 = vmul.f32 %v9208_v29, %v12408_v28  ;;  %v2121_v15 = vld [vmem:[#allocation2 + $0xe2] sm:$0xff]  ;;  %v12443_v44 = vld [vmem:[#allocation41_spill] sm:$0xff] }
 0x25b   :  { %v2326_v25 = vpack.c.bf16 %v2311_v17, %v2310_v9  ;;  %v1516_v20 = vadd.f32 %v1500_v2, %v1464_v23  ;;  %v1949_v19 = vadd.f32 %v1933_v48, %v1881_v31  ;;  %v1985_v50 = vmul.f32 %v2275_v41, %v12408_v28  ;;  %v2019_v27 = vld [vmem:[#allocation2 + $0x100] sm:$0xff] }
 0x25c   :  { %v1517_v34 = vadd.f32 %v1501_v7, %v1465_v35  ;;  %v1656_v14 = vmul.f32 %v8589_v46, %v12440_v49  ;;  %v2000_v3 = vadd.f32 %v1984_v5, %v1948_v56  ;;  %v2036_v32 = vmul.f32 %v9214_v26, %v12411_v0  ;;  %v2071_v56 = vld [vmem:[#allocation2 + $0x101] sm:$0xff] }
 0x25d   :  { %7643 = vmatprep.mubr.msk.bf16.mxu0 %vm43_vm1, %v2326_v25  ;;  %v1568_v33 = vadd.f32 %v1552_v55, %v1516_v20  ;;  %v2001_v29 = vadd.f32 %v1985_v50, %v1949_v19  ;;  %v2037_v8 = vmul.f32 %v12411_v0, %v2017_v60  ;;  %v2088_v42 = vmul.f32 %v2223_v16, %v12414_v22  ;;  %v2123_v19 = vld [vmem:[#allocation2 + $0x102] sm:$0xff] }
 0x25e   :  { %v1569_v11 = vadd.f32 %v12441_v63, %v1517_v34  ;;  %v2052_v45 = vadd.f32 %v2036_v32, %v2000_v3  ;;  %v2089_v61 = vmul.f32 %v12414_v22, %v2069_v36  ;;  %v2140_v46 = vmul.f32 %v2275_v41, %v12416_v18 }
 0x25f   :  { %v1620_v57 = vadd.f32 %v1604_v52, %v1568_v33  ;;  %v2053_v40 = vadd.f32 %v2037_v8, %v2001_v29  ;;  %v2141_v26 = vmul.f32 %v12416_v18, %v2121_v15  ;;  %v2192_v24 = vmul.f32 %v8604_v43, %v2017_v60  ;;  %v2227_v29 = vld [vmem:[#allocation2 + $0x111] sm:$0xff] }
 0x260   :  { %v1621_v10 = vadd.f32 %v12442_v47, %v1569_v11  ;;  %v2104_v58 = vadd.f32 %v2088_v42, %v2052_v45  ;;  %v2193_v16 = vmul.f32 %v8604_v43, %v2173_v4  ;;  %v2244_v30 = vmul.f32 %v8607_v38, %v2069_v36  ;;  %v2279_v45 = vld [vmem:[#allocation2 + $0x112] sm:$0xff] }
 0x261   :  { %v1672_v37 = vadd.f32 %v1656_v14, %v1620_v57  ;;  %v2105_v62 = vadd.f32 %v2089_v61, %v2053_v40  ;;  %v1882_v54 = vmul.f32 %v2017_v60, %v12405_v12  ;;  %v1883_v41 = vmul.f32 %v2173_v4, %v12405_v12  ;;  %v2175_v14 = vld [vmem:[#allocation2 + $0x110] sm:$0xff] }
 0x262   :  { %v1673_v2 = vadd.f32 %v12443_v44, %v1621_v10  ;;  %v2156_v51 = vadd.f32 %v2140_v46, %v2104_v58  ;;  %v1934_v9 = vmul.f32 %v2069_v36, %v12406_v21  ;;  %v1935_v6 = vmul.f32 %v2225_v59, %v12406_v21  ;;  %v2021_v58 = vld [vmem:[#allocation2 + $0x120] sm:$0xff] }
 0x263   :  { %v2157_v49 = vadd.f32 %v2141_v26, %v2105_v62  ;;  %v1986_v7 = vmul.f32 %v2121_v15, %v12408_v28  ;;  %v1987_v13 = vmul.f32 %v2277_v53, %v12408_v28  ;;  %v2038_v31 = vmul.f32 %v2173_v4, %v12411_v0 }
 0x264   :  { %v1683_v39 = vpack.c.bf16 %v1673_v2, %v1672_v37  ;;  %v2208_v17 = vadd.f32 %v2192_v24, %v2156_v51  ;;  %v1950_v23 = vadd.f32 %v1934_v9, %v1882_v54  ;;  %v1951_v55 = vadd.f32 %v1935_v6, %v1883_v41  ;;  %v2073_v41 = vld [vmem:[#allocation2 + $0x121] sm:$0xff] }
 0x265   :  { %v2209_v48 = vadd.f32 %v2193_v16, %v2157_v49  ;;  %v2245_v35 = vmul.f32 %v8607_v38, %v2225_v59  ;;  %v2296_v52 = vmul.f32 %v8610_v1, %v2121_v15  ;;  %v2039_v20 = vmul.f32 %v12411_v0, %v2019_v27 }
 0x266   :  { %7630 = vmatmul.mubr.msk.bf16.gmra.mrb[28].mxu1 %vm43_vm1, %v1683_v39  ;;  %v2260_v5 = vadd.f32 %v2244_v30, %v2208_v17  ;;  %v2002_v60 = vadd.f32 %v1986_v7, %v1950_v23  ;;  %v2003_v25 = vadd.f32 %v1987_v13, %v1951_v55  ;;  %v2297_v36 = vmul.f32 %v8610_v1, %v2277_v53 }
 0x267   :  { %v2261_v50 = vadd.f32 %v2245_v35, %v2209_v48  ;;  %v2090_v34 = vmul.f32 %v2225_v59, %v12414_v22  ;;  %v2091_v15 = vmul.f32 %v12414_v22, %v2071_v56  ;;  %v2142_v42 = vmul.f32 %v2277_v53, %v12416_v18 }
 0x268   :  { %v2312_v3 = vadd.f32 %v2296_v52, %v2260_v5  ;;  %v2054_v32 = vadd.f32 %v2038_v31, %v2002_v60  ;;  %v2055_v33 = vadd.f32 %v2039_v20, %v2003_v25  ;;  %v2143_v4 = vmul.f32 %v12416_v18, %v2123_v19 }
 0x269   :  { %v2313_v8 = vadd.f32 %v2297_v36, %v2261_v50  ;;  %v1884_v61 = vmul.f32 %v2019_v27, %v12405_v12  ;;  %v1885_v46 = vmul.f32 %v2175_v14, %v12405_v12  ;;  %v1936_v40 = vmul.f32 %v2071_v56, %v12406_v21  ;;  %v12444_v50 = vld [vmem:[#allocation44_spill] sm:$0xff] }
 0x26a   :  { %v2106_v63 = vadd.f32 %v2090_v34, %v2054_v32  ;;  %v2107_v11 = vadd.f32 %v2091_v15, %v2055_v33  ;;  %v1937_v26 = vmul.f32 %v2227_v29, %v12406_v21  ;;  %v2194_v47 = vmul.f32 %v8604_v43, %v2019_v27 }
 0x26b   :  { %v2327_v57 = vpack.c.bf16 %v2313_v8, %v2312_v3  ;;  %v2195_v10 = vmul.f32 %v8604_v43, %v2175_v14  ;;  %v1952_v16 = vadd.f32 %v1936_v40, %v1884_v61  ;;  %v1988_v53 = vmul.f32 %v2123_v19, %v12408_v28  ;;  %v12445_v3 = vld [vmem:[#allocation58_spill] sm:$0xff] }
 0x26c   :  { %v2158_v24 = vadd.f32 %v2142_v42, %v2106_v63  ;;  %v2159_v59 = vadd.f32 %v2143_v4, %v2107_v11  ;;  %v1953_v30 = vadd.f32 %v1937_v26, %v1885_v46  ;;  %v1989_v12 = vmul.f32 %v2279_v45, %v12408_v28  ;;  %v2125_v28 = vld [vmem:[#allocation2 + $0x122] sm:$0xff]  ;;  %v7339_v63 = vld [vmem:[%s12174_s9 + $0xc] sm:$0x7]  ;;  %v7353_v11 = vld [vmem:[%s12171_s6 + $0x18] sm:$0x7] }
 0x26d   :  { %7644 = vmatmul.mubr.msk.bf16.gmra.mrb[40].mxu0 %vm43_vm1, %v2327_v57  ;;  %v2246_v54 = vmul.f32 %v8607_v38, %v2071_v56  ;;  %v2247_v21 = vmul.f32 %v8607_v38, %v2227_v29  ;;  %v2004_v44 = vadd.f32 %v1988_v53, %v1952_v16  ;;  %v2040_v51 = vmul.f32 %v2175_v14, %v12411_v0  ;;  %v7843_v56 = vld [vmem:[#allocation2 + $0x130] sm:$0xff]  ;;  %v7342_v4 = vld [vmem:[%s12175_s10 + $0x4] sm:$0xf]  ;;  %v12448_v57 = vld [vmem:[#allocation7_spill] sm:$0xff] }
 0x26e   :  { %v2210_v37 = vadd.f32 %v2194_v47, %v2158_v24  ;;  %v2211_v62 = vadd.f32 %v2195_v10, %v2159_v59  ;;  %v2005_v2 = vadd.f32 %v1989_v12, %v1953_v30  ;;  %v2041_v9 = vmul.f32 %v12411_v0, %v2021_v58  ;;  %7830 = vmatprep.subr.msk.bf16.mxu1 %vm205_vm0, %v7342_v4  ;;  %v12447_v61 = vld [vmem:[#allocation6_spill] sm:$0xff] }
 0x26f   :  { %v2298_v7 = vmul.f32 %v8610_v1, %v2123_v19  ;;  %v2299_v13 = vmul.f32 %v8610_v1, %v2279_v45  ;;  %v2056_v27 = vadd.f32 %v2040_v51, %v2004_v44  ;;  %v2092_v39 = vmul.f32 %v2227_v29, %v12414_v22  ;;  %v2496_v26 = vld [vmem:[#allocation2] sm:$0xff] }
 0x270   :  { %v2262_v6 = vadd.f32 %v2246_v54, %v2210_v37  ;;  %v2263_v49 = vadd.f32 %v2247_v21, %v2211_v62  ;;  %v2057_v31 = vadd.f32 %v2041_v9, %v2005_v2  ;;  %v2093_v17 = vmul.f32 %v12414_v22, %v2073_v41  ;;  %v2548_v24 = vld [vmem:[#allocation2 + $0x1] sm:$0xff]  ;;  %v12451_v62 = vld [vmem:[#allocation8_spill] sm:$0xff] }
 0x271   :  { %v2144_v48 = vmul.f32 %v2279_v45, %v12416_v18  ;;  %v2108_v35 = vadd.f32 %v2092_v39, %v2056_v27  ;;  %v2145_v0 = vmul.f32 %v12416_v18, %v2125_v28  ;;  %v2197_v5 = vmul.f32 %v7843_v56, %v8604_v43  ;;  %v9347_v45 = vld [vmem:[%s12173_s8 + $0x1] ss:$0 sm:$0xff]  ;;  %v2600_v9 = vld [vmem:[#allocation2 + $0x2] sm:$0xff]  ;;  %v7341_v39 = vld [vmem:[%s12174_s9 + $0x14] sm:$0x7] }
 0x272   :  { %v2314_v23 = vadd.f32 %v2298_v7, %v2262_v6  ;;  %v2315_v55 = vadd.f32 %v2299_v13, %v2263_v49  ;;  %v2109_v52 = vadd.f32 %v2093_v17, %v2057_v31  ;;  %v2196_v19 = vmul.f32 %v8604_v43, %v2021_v58  ;;  %v7356_v43 = vld [vmem:[%s12172_s7 + $0x8] sm:$0xf]  ;;  %12446 = vst [vmem:[#allocation47_spill] sm:$0xff] %v9347_v45  ;;  %v2504_v21 = vld [vmem:[#allocation2 + $0xa0] sm:$0xff]  ;;  %v7340_v13 = vld [vmem:[%s12174_s9 + $0x10] sm:$0x7] }
 0x273   :  { %v2160_v25 = vadd.f32 %v2144_v48, %v2108_v35  ;;  %v2249_v36 = vmul.f32 %v8607_v38, %v12444_v50  ;;  %v2248_v14 = vmul.f32 %v8607_v38, %v2073_v41  ;;  %v2301_v18 = vmul.f32 %v8610_v1, %v12445_v3  ;;  %7831 = vmatprep.subr.msk.bf16.mxu0 %vm205_vm0, %v7356_v43  ;;  %v2556_v41 = vld [vmem:[#allocation2 + $0xa1] sm:$0xff]  ;;  %v2815_v3 = vld [vmem:[#allocation2 + $0x90] sm:$0xff] }
 0x274   :  { %v2328_v60 = vpack.c.bf16 %v2315_v55, %v2314_v23  ;;  %v2161_v20 = vadd.f32 %v2145_v0, %v2109_v52  ;;  %v2300_v15 = vmul.f32 %v8610_v1, %v2125_v28  ;;  %v3653_v38 = vsel %vm205_vm0, %v7356_v43, 0  ;;  %v2608_v52 = vld [vmem:[#allocation2 + $0xa2] sm:$0xff]  ;;  %v2919_v43 = vld [vmem:[#allocation2 + $0x92] sm:$0xff] }
 0x275   :  { %v2212_v22 = vadd.f32 %v2196_v19, %v2160_v25  ;;  %7670 = vmatpush3.bf16.msra.mxu0 %v3653_v38  ;;  %v3007_v1 = vsel %vm205_vm0, %v7342_v4, 0  ;;  %v9350_v46 = vrot.slane %v7339_v63, %v12447_v61  ;;  %v9353_v40 = vrot.slane %v7339_v63, %v12448_v57  ;;  %v7355_v50 = vld [vmem:[%s12171_s6 + $0x20] sm:$0x7] }
 0x276   :  { %7647 = vmatprep.mubr.msk.bf16.mxu0 %vm43_vm1, %v2328_v60  ;;  %v2213_v34 = vadd.f32 %v2197_v5, %v2161_v20  ;;  %7652 = vmatpush3.bf16.msra.mxu1 %v3007_v1  ;;  %v9356_v59 = vrot.slane %v7353_v11, %v12447_v61  ;;  %v9359_v10 = vrot.slane %v7353_v11, %v12448_v57  ;;  %v7354_v5 = vld [vmem:[%s12171_s6 + $0x1c] sm:$0x7] }
 0x277   :  { %v2264_v32 = vadd.f32 %v2248_v14, %v2212_v22  ;;  %v2516_v12 = vmul.f32 %v9350_v46, %v2496_v26  ;;  %v2568_v37 = vmul.f32 %v9353_v40, %v2548_v24  ;;  %v9366_v54 = vrot.slane %v7339_v63, %v12451_v62 }
 0x278   :  { %v2265_v33 = vadd.f32 %v2249_v36, %v2213_v34  ;;  %12449 = vst [vmem:[#allocation48_spill] sm:$0xff] %v9356_v59  ;;  %12450 = vst [vmem:[#allocation51_spill] sm:$0xff] %v9359_v10  ;;  %v3162_v6 = vmul.f32 %v9356_v59, %v2496_v26  ;;  %v3214_v28 = vmul.f32 %v9359_v10, %v2548_v24 }
 0x279   :  { %v2316_v29 = vadd.f32 %v2300_v15, %v2264_v32  ;;  %12452 = vst [vmem:[#allocation52_spill] sm:$0xff] %v9366_v54  ;;  %v9376_v27 = vrot.slane %v7353_v11, %v12451_v62  ;;  %v2524_v17 = vmul.f32 %v9350_v46, %v2504_v21  ;;  %v2576_v23 = vmul.f32 %v9353_v40, %v2556_v41 }
 0x27a   :  { %v2317_v8 = vadd.f32 %v2301_v18, %v2265_v33  ;;  %v2584_v48 = vadd.f32 %v2568_v37, %v2516_v12  ;;  %v2620_v35 = vmul.f32 %v9366_v54, %v2600_v9  ;;  %v9388_v0 = vrot.slane %v7340_v13, %v12447_v61  ;;  %v2867_v18 = vld [vmem:[#allocation2 + $0x91] sm:$0xff] }
 0x27b   :  { %12453 = vst [vmem:[#allocation53_spill] sm:$0xff] %v9376_v27  ;;  %v9391_v56 = vrot.slane %v7340_v13, %v12448_v57  ;;  %v3170_v60 = vmul.f32 %v9356_v59, %v2504_v21  ;;  %v3222_v25 = vmul.f32 %v9359_v10, %v2556_v41  ;;  %v9400_v20 = vrot.slane %v7340_v13, %v12451_v62  ;;  %v12458_v21 = vld [vmem:[#allocation9_spill] sm:$0xff] }
 0x27c   :  { %v2329_v42 = vpack.c.bf16 %v2317_v8, %v2316_v29  ;;  %v9403_v19 = vrot.slane %v7341_v39, %v12447_v61  ;;  %v3230_v36 = vadd.f32 %v3214_v28, %v3162_v6  ;;  %v3266_v22 = vmul.f32 %v9376_v27, %v2600_v9 }
 0x27d   :  { %v9410_v34 = vrot.slane %v7341_v39, %v12448_v57  ;;  %v9413_v14 = vrot.slane %v7341_v39, %v12451_v62  ;;  %v2592_v32 = vadd.f32 %v2576_v23, %v2524_v17  ;;  %v2628_v33 = vmul.f32 %v9366_v54, %v2608_v52 }
 0x27e   :  { %7648 = vmatmul.mubr.msk.bf16.gmra.mrb[44].mxu0 %vm43_vm1, %v2329_v42  ;;  %v2636_v15 = vadd.f32 %v2620_v35, %v2584_v48  ;;  %v9417_v29 = vrot.slane %v7354_v5, %v12447_v61  ;;  %v9420_v8 = vrot.slane %v7354_v5, %v12448_v57  ;;  %v9423_v42 = vrot.slane %v7354_v5, %v12451_v62  ;;  %v12465_v5 = vld [vmem:[#allocation11_spill] sm:$0xff] }
 0x27f   :  { %v9426_v38 = vrot.slane %v7355_v50, %v12447_v61  ;;  %v9429_v4 = vrot.slane %v7355_v50, %v12448_v57  ;;  %v3238_v1 = vadd.f32 %v3222_v25, %v3170_v60  ;;  %v3274_v63 = vmul.f32 %v9376_v27, %v2608_v52 }
 0x280   :  { %12454 = vst [vmem:[#allocation54_spill] sm:$0xff] %v9417_v29  ;;  %12455 = vst [vmem:[#allocation55_spill] sm:$0xff] %v9420_v8  ;;  %v9448_v41 = vmul.f32 %v9413_v14, %v2919_v43 }
 0x281   :  { %12456 = vst [vmem:[#allocation42_spill] sm:$0xff] %v9423_v42  ;;  %v9473_v60 = vadd.f32 %v3274_v63, %v3238_v1 }
 0x282   :  { %12459 = vst [vmem:[#allocation56_spill] sm:$0xff] %v9448_v41 }
 0x283   :  { %12466 = vst [vmem:[#allocation45_spill] sm:$0xff] %v9473_v60 }
 0x2fe   :  { %v7637_v47 = vpop.f32.mrb[32].mxu0 }
 0x2ff   :  { %v2406_v58 = vadd.f32 %v7637_v47, %v9347_v45  ;;  %v2397_v16 = vpop.f32.mrb[33].mxu0  ;;  %v9434_v47 = vadd.f32 %v3266_v22, %v3230_v36 }
 0x300   :  { %v2398_v30 = vadd.f32 %v9347_v45, %v2397_v16  ;;  %v7638_v53 = vpop.f32.mrb[34].mxu0  ;;  %v9440_v16 = vmul.f32 %v9403_v19, %v2815_v3 }
 0x301   :  { %v2466_v44 = vmax.f32 %v2406_v58, 0.0  ;;  %v2409_v2 = vadd.f32 %v7638_v53, %v9347_v45  ;;  %v2400_v51 = vpop.f32.mrb[35].mxu0  ;;  %v9437_v58 = vrot.slane %v7355_v50, %v12451_v62 }
 0x302   :  { %v2464_v49 = vmax.f32 %v2398_v30, 0.0  ;;  %v2401_v7 = vadd.f32 %v9347_v45, %v2400_v51  ;;  %v9443_v30 = vmul.f32 %v9410_v34, %v2867_v18  ;;  %v9456_v51 = vmul.f32 %v9429_v4, %v2867_v18 }
 0x303   :  { %2482 = vst.msk [vmem:[#allocation2 + $0x31] sm:$0xff] %vm43_vm1, %v2466_v44  ;;  %v2467_v31 = vmax.f32 %v2409_v2, 0.0  ;;  %v9450_v44 = vadd.f32 %v2628_v33, %v2592_v32  ;;  %v9453_v2 = vmul.f32 %v9426_v38, %v2815_v3  ;;  %v9466_v39 = vmul.f32 %v9437_v58, %v2919_v43  ;;  %v12467_v3 = vld [vmem:[#allocation12_spill] sm:$0xff] }
 0x304   :  { %2480 = vst.msk [vmem:[#allocation2 + $0x11] sm:$0xff] %vm43_vm1, %v2464_v49  ;;  %v2465_v55 = vmax.f32 %v2401_v7, 0.0  ;;  %12457 = vst [vmem:[#allocation43_spill] sm:$0xff] %v9443_v30  ;;  %v12463_v7 = vld [vmem:[#allocation10_spill] sm:$0xff] }
 0x305   :  { %2483 = vst.msk [vmem:[#allocation2 + $0x41] sm:$0xff] %vm43_vm1, %v2467_v31  ;;  %12460 = vst [vmem:[#allocation49_spill] sm:$0xff] %v9450_v44 }
 0x306   :  { %2481 = vst.msk [vmem:[#allocation2 + $0x21] sm:$0xff] %vm43_vm1, %v2465_v55  ;;  %12461 = vst [vmem:[#allocation46_spill] sm:$0xff] %v9453_v2 }
 0x307   :  { %12462 = vst [vmem:[#allocation50_spill] sm:$0xff] %v9456_v51  ;;  %12464 = vst [vmem:[#allocation57_spill] sm:$0xff] %v9466_v39  ;;  %v12471_v51 = vld [vmem:[#allocation16_spill] sm:$0xff] }
 0x30a   :  { %v2809_v11 = vld [vmem:[#allocation2 + $0x30] sm:$0xff] }
 0x30b   :  { %v2861_v26 = vld [vmem:[#allocation2 + $0x31] sm:$0xff]  ;;  %v2829_v48 = vmul.f32 %v9403_v19, %v2809_v11  ;;  %v2519_v35 = vmul.f32 %v2809_v11, %v9350_v46 }
 0x30c   :  { %v9432_v24 = vld [vmem:[#allocation2 + $0x32] sm:$0xff]  ;;  %v2655_v13 = vld [vmem:[#allocation2 + $0x40] sm:$0xff]  ;;  %v2571_v52 = vmul.f32 %v2861_v26, %v9353_v40  ;;  %v2881_v33 = vmul.f32 %v9410_v34, %v2861_v26 }
 0x30d   :  { %v2497_v53 = vld [vmem:[#allocation2 + $0x10] sm:$0xff]  ;;  %3128 = vst.msk [vmem:[#allocation2 + $0x31] sm:$0xff] %vm43_vm1, %v12458_v21  ;;  %v2707_v28 = vld [vmem:[#allocation2 + $0x41] sm:$0xff]  ;;  %v2933_v43 = vmul.f32 %v9413_v14, %v9432_v24 }
 0x30e   :  { %v2549_v12 = vld [vmem:[#allocation2 + $0x11] sm:$0xff]  ;;  %v2517_v9 = vmul.f32 %v9350_v46, %v2497_v53  ;;  %v2672_v49 = vmul.f32 %v9388_v0, %v2497_v53  ;;  %v9463_v31 = vld [vmem:[#allocation2 + $0x42] sm:$0xff] }
 0x30f   :  { %v2601_v37 = vld [vmem:[#allocation2 + $0x12] sm:$0xff]  ;;  %v2569_v6 = vmul.f32 %v9353_v40, %v2549_v12  ;;  %v2653_v17 = vld [vmem:[#allocation2 + $0x20] sm:$0xff]  ;;  %3129 = vst.msk [vmem:[#allocation2 + $0x41] sm:$0xff] %vm43_vm1, %v12465_v5  ;;  %v2724_v22 = vmul.f32 %v9391_v56, %v2549_v12 }
 0x310   :  { %3126 = vst.msk [vmem:[#allocation2 + $0x11] sm:$0xff] %vm43_vm1, %v12463_v7  ;;  %v2705_v23 = vld [vmem:[#allocation2 + $0x21] sm:$0xff]  ;;  %v2621_v50 = vmul.f32 %v9366_v54, %v2601_v37  ;;  %v2688_v36 = vadd.f32 %v2672_v49, %v2636_v15  ;;  %v2673_v18 = vmul.f32 %v9388_v0, %v2653_v17  ;;  %v2776_v32 = vmul.f32 %v9400_v20, %v2601_v37 }
 0x311   :  { %v2757_v55 = vld [vmem:[#allocation2 + $0x22] sm:$0xff]  ;;  %v2585_v25 = vadd.f32 %v2569_v6, %v2517_v9  ;;  %v2518_v53 = vmul.f32 %v2653_v17, %v9350_v46  ;;  %v2570_v15 = vmul.f32 %v2705_v23, %v9353_v40  ;;  %v2725_v12 = vmul.f32 %v9391_v56, %v2705_v23 }
 0x312   :  { %3127 = vst.msk [vmem:[#allocation2 + $0x21] sm:$0xff] %vm43_vm1, %v12467_v3  ;;  %v2740_v63 = vadd.f32 %v2724_v22, %v2688_v36  ;;  %v2828_v9 = vmul.f32 %v9403_v19, %v2653_v17  ;;  %v2587_v6 = vadd.f32 %v2571_v52, %v2519_v35  ;;  %v2623_v49 = vmul.f32 %v9432_v24, %v9366_v54 }
 0x313   :  { %v2637_v1 = vadd.f32 %v2621_v50, %v2585_v25  ;;  %v2586_v5 = vadd.f32 %v2570_v15, %v2518_v53  ;;  %v2622_v7 = vmul.f32 %v2757_v55, %v9366_v54  ;;  %v2777_v25 = vmul.f32 %v9400_v20, %v2757_v55 }
 0x314   :  { %v2792_v3 = vadd.f32 %v2776_v32, %v2740_v63  ;;  %v2880_v50 = vmul.f32 %v9410_v34, %v2705_v23  ;;  %v2639_v36 = vadd.f32 %v2623_v49, %v2587_v6  ;;  %v2674_v22 = vmul.f32 %v2809_v11, %v9388_v0 }
 0x315   :  { %v2689_v37 = vadd.f32 %v2673_v18, %v2637_v1  ;;  %v2638_v57 = vadd.f32 %v2622_v7, %v2586_v5  ;;  %v2675_v17 = vmul.f32 %v9388_v0, %v2655_v13  ;;  %v2932_v18 = vmul.f32 %v9413_v14, %v2757_v55 }
 0x316   :  { %v2844_v62 = vadd.f32 %v2828_v9, %v2792_v3  ;;  %v2726_v32 = vmul.f32 %v2861_v26, %v9391_v56  ;;  %v2727_v1 = vmul.f32 %v9391_v56, %v2707_v28  ;;  %v2778_v63 = vmul.f32 %v9432_v24, %v9400_v20 }
 0x317   :  { %v2741_v21 = vadd.f32 %v2725_v12, %v2689_v37  ;;  %v3143_v35 = vld [vmem:[#allocation2 + $0x10] sm:$0xff]  ;;  %v2690_v53 = vadd.f32 %v2674_v22, %v2638_v57  ;;  %v2691_v15 = vadd.f32 %v2675_v17, %v2639_v36  ;;  %v9502_v11 = vmul.f32 %v9400_v20, %v9463_v31 }
 0x318   :  { %v3195_v52 = vld [vmem:[#allocation2 + $0x11] sm:$0xff]  ;;  %v2830_v5 = vmul.f32 %v9403_v19, %v2655_v13  ;;  %v2520_v3 = vmul.f32 %v2655_v13, %v9350_v46  ;;  %v3163_v55 = vmul.f32 %v9356_v59, %v3143_v35  ;;  %v2896_v9 = vadd.f32 %v2880_v50, %v2844_v62 }
 0x319   :  { %v2793_v23 = vadd.f32 %v2777_v25, %v2741_v21  ;;  %v3247_v7 = vld [vmem:[#allocation2 + $0x12] sm:$0xff]  ;;  %v3215_v26 = vmul.f32 %v9359_v10, %v3195_v52  ;;  %v2742_v6 = vadd.f32 %v2726_v32, %v2690_v53  ;;  %v2572_v24 = vmul.f32 %v2707_v28, %v9353_v40  ;;  %v3299_v57 = vld [vmem:[#allocation2 + $0x20] sm:$0xff] }
 0x31a   :  { %v9510_v21 = vmul.f32 %v9410_v34, %v2707_v28  ;;  %v3267_v37 = vmul.f32 %v9376_v27, %v3247_v7  ;;  %v3318_v25 = vmul.f32 %v9417_v29, %v3143_v35  ;;  %v3351_v36 = vld [vmem:[#allocation2 + $0x21] sm:$0xff]  ;;  %v9514_v22 = vadd.f32 %v2727_v1, %v2691_v15  ;;  %v3455_v53 = vld [vmem:[#allocation2 + $0x30] sm:$0xff] }
 0x31b   :  { %v2845_v12 = vadd.f32 %v2829_v48, %v2793_v23  ;;  %v3231_v49 = vadd.f32 %v3215_v26, %v3163_v55  ;;  %v2794_v17 = vadd.f32 %v2778_v63, %v2742_v6  ;;  %v9518_v62 = vmul.f32 %v9463_v31, %v9366_v54  ;;  %v3403_v23 = vld [vmem:[#allocation2 + $0x22] sm:$0xff]  ;;  %v3507_v1 = vld [vmem:[#allocation2 + $0x31] sm:$0xff] }
 0x31c   :  { %v3319_v50 = vmul.f32 %v9417_v29, %v3299_v57  ;;  %v3334_v28 = vadd.f32 %v3318_v25, %v9434_v47  ;;  %v3370_v32 = vmul.f32 %v9420_v8, %v3195_v52  ;;  %v2948_v55 = vadd.f32 %v2932_v18, %v2896_v9  ;;  %v3559_v9 = vld [vmem:[#allocation2 + $0x32] sm:$0xff] }
 0x31d   :  { %v2897_v13 = vadd.f32 %v2881_v33, %v2845_v12  ;;  %v3283_v48 = vadd.f32 %v3267_v37, %v3231_v49  ;;  %v9523_v26 = vadd.f32 %v2572_v24, %v2520_v3  ;;  %v3371_v33 = vmul.f32 %v9420_v8, %v3351_v36 }
 0x31e   :  { %v2846_v63 = vadd.f32 %v2830_v5, %v2794_v17  ;;  %v3386_v12 = vadd.f32 %v3370_v32, %v3334_v28  ;;  %v3422_v6 = vmul.f32 %v9423_v42, %v3247_v7  ;;  %v3423_v37 = vmul.f32 %v9423_v42, %v3403_v23 }
 0x31f   :  { %v2949_v35 = vadd.f32 %v2933_v43, %v2897_v13  ;;  %v3335_v15 = vadd.f32 %v3319_v50, %v3283_v48  ;;  %v3474_v47 = vmul.f32 %v9426_v38, %v3299_v57  ;;  %v3475_v52 = vmul.f32 %v9426_v38, %v3455_v53 }
 0x320   :  { %v3438_v18 = vadd.f32 %v3422_v6, %v3386_v12  ;;  %v3526_v43 = vmul.f32 %v9429_v4, %v3351_v36  ;;  %v3527_v3 = vmul.f32 %v9429_v4, %v3507_v1  ;;  %v7641_v24 = vpop.f32.mrb[36].mxu0  ;;  %v3578_v5 = vmul.f32 %v9437_v58, %v3403_v23 }
 0x321   :  { %v2968_v49 = vpack.c.bf16 %v2949_v35, %v2948_v55  ;;  %v3387_v25 = vadd.f32 %v3371_v33, %v3335_v15  ;;  %v3164_v7 = vmul.f32 %v3299_v57, %v9356_v59  ;;  %v3165_v13 = vmul.f32 %v3455_v53, %v9356_v59  ;;  %v2413_v50 = vpop.f32.mrb[37].mxu0 }
 0x322   :  { %v3216_v17 = vmul.f32 %v3351_v36, %v9359_v10  ;;  %v2422_v48 = vadd.f32 %v7641_v24, %v9347_v45  ;;  %v3490_v32 = vadd.f32 %v3474_v47, %v3438_v18  ;;  %v3217_v55 = vmul.f32 %v3507_v1, %v9359_v10  ;;  %v7642_v33 = vpop.f32.mrb[38].mxu0  ;;  %v3301_v24 = vld [vmem:[#allocation2 + $0x40] sm:$0xff] }
 0x323   :  { %7653 = vmatprep.mubr.msk.bf16.mxu1 %vm43_vm1, %v2968_v49  ;;  %v3439_v28 = vadd.f32 %v3423_v37, %v3387_v25  ;;  %v2414_v35 = vadd.f32 %v9347_v45, %v2413_v50  ;;  %v3268_v12 = vmul.f32 %v3403_v23, %v9376_v27  ;;  %v3269_v6 = vmul.f32 %v3559_v9, %v9376_v27  ;;  %v2416_v61 = vpop.f32.mrb[39].mxu0 }
 0x324   :  { %v3232_v15 = vadd.f32 %v3216_v17, %v3164_v7  ;;  %v2470_v57 = vmax.f32 %v2422_v48, 0.0  ;;  %v2425_v49 = vadd.f32 %v7642_v33, %v9347_v45  ;;  %v3542_v60 = vadd.f32 %v3526_v43, %v3490_v32  ;;  %v3353_v48 = vld [vmem:[#allocation2 + $0x41] sm:$0xff] }
 0x325   :  { %v3491_v36 = vadd.f32 %v3475_v52, %v3439_v28  ;;  %v2468_v39 = vmax.f32 %v2414_v35, 0.0  ;;  %v2417_v37 = vadd.f32 %v9347_v45, %v2416_v61  ;;  %v3233_v47 = vadd.f32 %v3217_v55, %v3165_v13  ;;  %v3405_v55 = vld [vmem:[#allocation2 + $0x42] sm:$0xff] }
 0x326   :  { %v3284_v25 = vadd.f32 %v3268_v12, %v3232_v15  ;;  %2486 = vst.msk [vmem:[#allocation2 + $0x71] sm:$0xff] %vm43_vm1, %v2470_v57  ;;  %v2471_v18 = vmax.f32 %v2425_v49, 0.0  ;;  %v3579_v23 = vmul.f32 %v9437_v58, %v3559_v9  ;;  %v3320_v17 = vmul.f32 %v3455_v53, %v9417_v29 }
 0x327   :  { %v3543_v7 = vadd.f32 %v3527_v3, %v3491_v36  ;;  %2484 = vst.msk [vmem:[#allocation2 + $0x51] sm:$0xff] %vm43_vm1, %v2468_v39  ;;  %v2469_v50 = vmax.f32 %v2417_v37, 0.0  ;;  %v2898_v52 = vadd.f32 %v9510_v21, %v2846_v63  ;;  %v3285_v43 = vadd.f32 %v3269_v6, %v3233_v47 }
 0x328   :  { %v3321_v28 = vmul.f32 %v9417_v29, %v3301_v24  ;;  %2487 = vst.msk [vmem:[#allocation2 + $0x81] sm:$0xff] %vm43_vm1, %v2471_v18  ;;  %v3594_v61 = vadd.f32 %v3578_v5, %v3542_v60  ;;  %v3336_v32 = vadd.f32 %v3320_v17, %v3284_v25  ;;  %v3372_v3 = vmul.f32 %v3507_v1, %v9420_v8 }
 0x329   :  { %v3595_v13 = vadd.f32 %v3579_v23, %v3543_v7  ;;  %2485 = vst.msk [vmem:[#allocation2 + $0x61] sm:$0xff] %vm43_vm1, %v2469_v50  ;;  %v2795_v53 = vadd.f32 %v9502_v11, %v9514_v22  ;;  %v2934_v39 = vmul.f32 %v9413_v14, %v9463_v31  ;;  %v3373_v63 = vmul.f32 %v9420_v8, %v3353_v48  ;;  %v12468_v50 = vld [vmem:[#allocation13_spill] sm:$0xff] }
 0x32a   :  { %v3337_v21 = vadd.f32 %v3321_v28, %v3285_v43  ;;  %v2640_v35 = vadd.f32 %v9518_v62, %v9523_v26  ;;  %v3388_v5 = vadd.f32 %v3372_v3, %v3336_v32  ;;  %v3166_v33 = vmul.f32 %v3301_v24, %v9356_v59 }
 0x32b   :  { %v3614_v60 = vpack.c.bf16 %v3595_v13, %v3594_v61  ;;  %v3424_v15 = vmul.f32 %v3559_v9, %v9423_v42  ;;  %v3425_v12 = vmul.f32 %v9423_v42, %v3405_v55  ;;  %v3218_v11 = vmul.f32 %v3353_v48, %v9359_v10  ;;  %v12469_v13 = vld [vmem:[#allocation14_spill] sm:$0xff] }
 0x32c   :  { %v3389_v1 = vadd.f32 %v3373_v63, %v3337_v21  ;;  %v9564_v22 = vadd.f32 %v2934_v39, %v2898_v52  ;;  %v9568_v31 = vmul.f32 %v9426_v38, %v3301_v24  ;;  %v9571_v62 = vmul.f32 %v9429_v4, %v3353_v48 }
 0x32d   :  { %7671 = vmatprep.mubr.msk.bf16.mxu0 %vm43_vm1, %v3614_v60  ;;  %v9574_v26 = vmul.f32 %v9437_v58, %v3405_v55  ;;  %v2813_v6 = vld [vmem:[#allocation2 + $0x70] sm:$0xff]  ;;  %v9578_v49 = vadd.f32 %v3424_v15, %v3388_v5  ;;  %v9582_v37 = vadd.f32 %v3218_v11, %v3166_v33  ;;  %v9585_v47 = vmul.f32 %v3405_v55, %v9376_v27  ;;  %v12470_v15 = vld [vmem:[#allocation15_spill] sm:$0xff] }
 0x32e   :  { %v2865_v57 = vld [vmem:[#allocation2 + $0x71] sm:$0xff]  ;;  %v9580_v36 = vadd.f32 %v3425_v12, %v3389_v1  ;;  %v9588_v7 = vmul.f32 %v9403_v19, %v2813_v6  ;;  %v2523_v48 = vmul.f32 %v2813_v6, %v9350_v46 }
 0x32f   :  { %v9576_v9 = vld [vmem:[#allocation2 + $0x72] sm:$0xff]  ;;  %v9591_v23 = vmul.f32 %v9410_v34, %v2865_v57  ;;  %v2659_v32 = vld [vmem:[#allocation2 + $0x80] sm:$0xff]  ;;  %v2575_v45 = vmul.f32 %v2865_v57, %v9353_v40 }
 0x330   :  { %v2811_v24 = vld [vmem:[#allocation2 + $0x50] sm:$0xff]  ;;  %v9595_v17 = vmul.f32 %v9413_v14, %v9576_v9  ;;  %3132 = vst.msk [vmem:[#allocation2 + $0x71] sm:$0xff] %vm43_vm1, %v12468_v50  ;;  %v2711_v3 = vld [vmem:[#allocation2 + $0x81] sm:$0xff] }
 0x331   :  { %v2863_v25 = vld [vmem:[#allocation2 + $0x51] sm:$0xff]  ;;  %v2831_v52 = vmul.f32 %v9403_v19, %v2811_v24  ;;  %v2521_v61 = vmul.f32 %v2811_v24, %v9350_v46  ;;  %v2763_v55 = vld [vmem:[#allocation2 + $0x82] sm:$0xff]  ;;  %v2676_v60 = vmul.f32 %v2811_v24, %v9388_v0  ;;  %v2591_v8 = vadd.f32 %v2575_v45, %v2523_v48 }
 0x332   :  { %v2915_v18 = vld [vmem:[#allocation2 + $0x52] sm:$0xff]  ;;  %v2883_v43 = vmul.f32 %v9410_v34, %v2863_v25  ;;  %v2573_v39 = vmul.f32 %v2863_v25, %v9353_v40  ;;  %v2657_v63 = vld [vmem:[#allocation2 + $0x60] sm:$0xff]  ;;  %v2728_v33 = vmul.f32 %v2863_v25, %v9391_v56  ;;  %3133 = vst.msk [vmem:[#allocation2 + $0x81] sm:$0xff] %vm43_vm1, %v12470_v15  ;;  %v2783_v45 = vmul.f32 %v9400_v20, %v2763_v55 }
 0x333   :  { %v2935_v28 = vmul.f32 %v9413_v14, %v2915_v18  ;;  %3130 = vst.msk [vmem:[#allocation2 + $0x51] sm:$0xff] %vm43_vm1, %v12469_v13  ;;  %v2625_v21 = vmul.f32 %v2915_v18, %v9366_v54  ;;  %v2709_v5 = vld [vmem:[#allocation2 + $0x61] sm:$0xff]  ;;  %v2847_v12 = vadd.f32 %v2831_v52, %v2795_v53  ;;  %v2677_v11 = vmul.f32 %v9388_v0, %v2657_v63 }
 0x334   :  { %v2761_v1 = vld [vmem:[#allocation2 + $0x62] sm:$0xff]  ;;  %v2729_v13 = vmul.f32 %v9391_v56, %v2709_v5  ;;  %v2780_v50 = vmul.f32 %v2915_v18, %v9400_v20  ;;  %v2589_v2 = vadd.f32 %v2573_v39, %v2521_v61  ;;  %v2692_v44 = vadd.f32 %v2676_v60, %v2640_v35 }
 0x335   :  { %3131 = vst.msk [vmem:[#allocation2 + $0x61] sm:$0xff] %vm43_vm1, %v12471_v51  ;;  %v2781_v24 = vmul.f32 %v9400_v20, %v2761_v1  ;;  %v2832_v25 = vmul.f32 %v9403_v19, %v2657_v63  ;;  %v2899_v42 = vadd.f32 %v2883_v43, %v2847_v12  ;;  %v2884_v41 = vmul.f32 %v9410_v34, %v2709_v5 }
 0x336   :  { %v2936_v53 = vmul.f32 %v9413_v14, %v2761_v1  ;;  %v2522_v52 = vmul.f32 %v2657_v63, %v9350_v46  ;;  %v2641_v15 = vadd.f32 %v2625_v21, %v2589_v2  ;;  %v2744_v30 = vadd.f32 %v2728_v33, %v2692_v44 }
 0x337   :  { %v2574_v18 = vmul.f32 %v2709_v5, %v9353_v40  ;;  %v2951_v51 = vadd.f32 %v2935_v28, %v2899_v42  ;;  %v2626_v35 = vmul.f32 %v2761_v1, %v9366_v54  ;;  %v2627_v61 = vmul.f32 %v9576_v9, %v9366_v54 }
 0x338   :  { %v2678_v43 = vmul.f32 %v2813_v6, %v9388_v0  ;;  %v2693_v39 = vadd.f32 %v2677_v11, %v2641_v15  ;;  %v2796_v60 = vadd.f32 %v2780_v50, %v2744_v30  ;;  %v2679_v44 = vmul.f32 %v9388_v0, %v2659_v32 }
 0x339   :  { %v2590_v12 = vadd.f32 %v2574_v18, %v2522_v52  ;;  %v2969_v63 = vpack.c.bf16 %v2951_v51, %v9564_v22  ;;  %v2730_v2 = vmul.f32 %v2865_v57, %v9391_v56  ;;  %v2731_v21 = vmul.f32 %v9391_v56, %v2711_v3 }
 0x33a   :  { %v2745_v42 = vadd.f32 %v2729_v13, %v2693_v39  ;;  %v2848_v28 = vadd.f32 %v2832_v25, %v2796_v60  ;;  %v2643_v33 = vadd.f32 %v2627_v61, %v2591_v8  ;;  %v3457_v1 = vld [vmem:[#allocation2 + $0x50] sm:$0xff]  ;;  %v2782_v30 = vmul.f32 %v9576_v9, %v9400_v20 }
 0x33b   :  { %v2642_v5 = vadd.f32 %v2626_v35, %v2590_v12  ;;  %v3509_v54 = vld [vmem:[#allocation2 + $0x51] sm:$0xff]  ;;  %7654 = vmatmul.mubr.msk.bf16.vlgmr.msra.gmra.mrb[16].mxu1 %vm43_vm1, %v2969_v63  ;;  %v2834_v51 = vmul.f32 %v9403_v19, %v2659_v32  ;;  %v2886_v22 = vmul.f32 %v9410_v34, %v2711_v3  ;;  %v2938_v8 = vmul.f32 %v9413_v14, %v2763_v55 }
 0x33c   :  { %v2797_v6 = vadd.f32 %v2781_v24, %v2745_v42  ;;  %v2900_v57 = vadd.f32 %v2884_v41, %v2848_v28  ;;  %v2695_v50 = vadd.f32 %v2679_v44, %v2643_v33  ;;  %v3561_v13 = vld [vmem:[#allocation2 + $0x52] sm:$0xff]  ;;  %v3477_v15 = vmul.f32 %v9426_v38, %v3457_v1  ;;  %v12472_v42 = vld [vmem:[#allocation55_spill] sm:$0xff] }
 0x33d   :  { %v2694_v48 = vadd.f32 %v2678_v43, %v2642_v5  ;;  %v3492_v11 = vadd.f32 %v9568_v31, %v9578_v49  ;;  %v3529_v9 = vmul.f32 %v9429_v4, %v3509_v54  ;;  %v3581_v24 = vmul.f32 %v9437_v58, %v3561_v13  ;;  %v3303_v49 = vld [vmem:[#allocation2 + $0x60] sm:$0xff] }
 0x33e   :  { %v2849_v25 = vadd.f32 %v9588_v7, %v2797_v6  ;;  %v2952_v52 = vadd.f32 %v2936_v53, %v2900_v57  ;;  %v2747_v18 = vadd.f32 %v2731_v21, %v2695_v50  ;;  %v3493_v3 = vadd.f32 %v3477_v15, %v9580_v36 }
 0x33f   :  { %v2746_v32 = vadd.f32 %v2730_v2, %v2694_v48  ;;  %v3544_v41 = vadd.f32 %v9571_v62, %v3492_v11  ;;  %v3167_v55 = vmul.f32 %v3457_v1, %v9356_v59  ;;  %v3219_v31 = vmul.f32 %v3509_v54, %v9359_v10  ;;  %v12475_v11 = vld [vmem:[#allocation56_spill] sm:$0xff] }
 0x340   :  { %v2901_v35 = vadd.f32 %v9591_v23, %v2849_v25  ;;  %v2799_v43 = vadd.f32 %v2783_v45, %v2747_v18  ;;  %v3545_v39 = vadd.f32 %v3529_v9, %v3493_v3  ;;  %v3271_v53 = vmul.f32 %v3561_v13, %v9376_v27  ;;  %v7645_v23 = vpop.f32.mrb[40].mxu0  ;;  %v3407_v25 = vld [vmem:[#allocation2 + $0x62] sm:$0xff] }
 0x341   :  { %v2798_v61 = vadd.f32 %v2782_v30, %v2746_v32  ;;  %v3596_v7 = vadd.f32 %v9574_v26, %v3544_v41  ;;  %v3286_v36 = vadd.f32 %v9585_v47, %v9582_v37  ;;  %v3235_v63 = vadd.f32 %v3219_v31, %v3167_v55  ;;  %v12473_v26 = vld [vmem:[#allocation47_spill] sm:$0xff]  ;;  %v2429_v33 = vpop.f32.mrb[41].mxu0  ;;  %v3459_v41 = vld [vmem:[#allocation2 + $0x70] sm:$0xff] }
 0x342   :  { %v2953_v62 = vadd.f32 %v9595_v17, %v2901_v35  ;;  %v2851_v12 = vadd.f32 %v9440_v16, %v2799_v43  ;;  %v3597_v44 = vadd.f32 %v3581_v24, %v3545_v39  ;;  %v3322_v2 = vmul.f32 %v3457_v1, %v9417_v29  ;;  %v12474_v37 = vld [vmem:[#allocation43_spill] sm:$0xff]  ;;  %v7646_v16 = vpop.f32.mrb[42].mxu0  ;;  %v9670_v24 = vld [vmem:[#allocation2 + $0x131] sm:$0xff] }
 0x343   :  { %v2850_v60 = vadd.f32 %v2834_v51, %v2798_v61  ;;  %v3323_v21 = vmul.f32 %v9417_v29, %v3303_v49  ;;  %v3374_v28 = vmul.f32 %v3509_v54, %v12472_v42  ;;  %v2438_v5 = vadd.f32 %v7645_v23, %v12473_v26  ;;  %v3355_v17 = vld [vmem:[#allocation2 + $0x61] sm:$0xff]  ;;  %v2432_v15 = vpop.f32.mrb[43].mxu0  ;;  %12477 = vst [vmem:[#allocation44_spill] sm:$0xff] %v9670_v24  ;;  %v3511_v31 = vld [vmem:[#allocation2 + $0x71] sm:$0xff] }
 0x344   :  { %v2970_v30 = vpack.c.bf16 %v2953_v62, %v2952_v52  ;;  %v2903_v47 = vadd.f32 %v12474_v37, %v2851_v12  ;;  %v2430_v51 = vadd.f32 %v12473_v26, %v2429_v33  ;;  %v3615_v6 = vpack.c.bf16 %v3597_v44, %v3596_v7  ;;  %v12478_v61 = vld [vmem:[#allocation42_spill] sm:$0xff]  ;;  %v3563_v12 = vld [vmem:[#allocation2 + $0x72] sm:$0xff] }
 0x345   :  { %v2902_v45 = vadd.f32 %v2886_v22, %v2850_v60  ;;  %v3287_v57 = vadd.f32 %v3271_v53, %v3235_v63  ;;  %v3338_v48 = vadd.f32 %v3322_v2, %v3286_v36  ;;  %v2474_v50 = vmax.f32 %v2438_v5, 0.0  ;;  %v9665_v22 = vld [vmem:[#allocation2 + $0x130] sm:$0xff] }
 0x346   :  { %v2441_v1 = vadd.f32 %v7646_v16, %v12473_v26  ;;  %7657 = vmatprep.mubr.msk.bf16.mxu1 %vm43_vm1, %v2970_v30  ;;  %v2955_v9 = vadd.f32 %v12475_v11, %v2903_v47  ;;  %12476 = vst [vmem:[#allocation41_spill] sm:$0xff] %v9665_v22  ;;  %v2472_v52 = vmax.f32 %v2430_v51, 0.0  ;;  %v2433_v32 = vadd.f32 %v12473_v26, %v2432_v15 }
 0x347   :  { %v2954_v54 = vadd.f32 %v2938_v8, %v2902_v45  ;;  %7672 = vmatmul.mubr.msk.bf16.vlgmr.msra.gmra.mrb[48].mxu0 %vm43_vm1, %v3615_v6  ;;  %v3339_v18 = vadd.f32 %v3323_v21, %v3287_v57  ;;  %v3375_v3 = vmul.f32 %v12472_v42, %v3355_v17  ;;  %2490 = vst.msk [vmem:[#allocation2 + $0xd1] sm:$0xff] %vm43_vm1, %v2474_v50  ;;  %v9695_v45 = vld [vmem:[#allocation2 + $0x80] sm:$0xff] }
 0x348   :  { %v2475_v55 = vmax.f32 %v2441_v1, 0.0  ;;  %v3390_v35 = vadd.f32 %v3374_v28, %v3338_v48  ;;  %v3426_v43 = vmul.f32 %v3561_v13, %v12478_v61  ;;  %2488 = vst.msk [vmem:[#allocation2 + $0xb1] sm:$0xff] %vm43_vm1, %v2472_v52  ;;  %v2473_v39 = vmax.f32 %v2433_v32, 0.0  ;;  %v9702_v6 = vld [vmem:[#allocation2 + $0x81] sm:$0xff] }
 0x349   :  { %v2971_v8 = vpack.c.bf16 %v2955_v9, %v2954_v54  ;;  %v3391_v7 = vadd.f32 %v3375_v3, %v3339_v18  ;;  %v3427_v53 = vmul.f32 %v12478_v61, %v3407_v25  ;;  %v9678_v36 = vmul.f32 %v9403_v19, %v9665_v22 }
 0x34a   :  { %2491 = vst.msk [vmem:[#allocation2 + $0xe1] sm:$0xff] %vm43_vm1, %v2475_v55  ;;  %v3442_v62 = vadd.f32 %v3426_v43, %v3390_v35  ;;  %v3478_v60 = vmul.f32 %v9426_v38, %v3303_v49  ;;  %v3479_v13 = vmul.f32 %v9426_v38, %v3459_v41  ;;  %v9686_v63 = vmul.f32 %v9410_v34, %v9670_v24  ;;  %v12481_v55 = vld [vmem:[#allocation17_spill] sm:$0xff] }
 0x34b   :  { %12479 = vst [vmem:[#allocation58_spill] sm:$0xff] %v9678_v36  ;;  %7658 = vmatmul.mubr.msk.bf16.gmra.mrb[20].mxu1 %vm43_vm1, %v2971_v8  ;;  %2489 = vst.msk [vmem:[#allocation2 + $0xc1] sm:$0xff] %vm43_vm1, %v2473_v39  ;;  %v3443_v23 = vadd.f32 %v3427_v53, %v3391_v7  ;;  %v3530_v44 = vmul.f32 %v9429_v4, %v3355_v17  ;;  %v3531_v2 = vmul.f32 %v9429_v4, %v3511_v31  ;;  %v12482_v7 = vld [vmem:[#allocation18_spill] sm:$0xff] }
 0x34c   :  { %12480 = vst [vmem:[#allocation47_spill] sm:$0xff] %v9686_v63  ;;  %v3168_v21 = vmul.f32 %v3303_v49, %v9356_v59  ;;  %v3494_v28 = vadd.f32 %v3478_v60, %v3442_v62  ;;  %v3169_v5 = vmul.f32 %v3459_v41, %v9356_v59  ;;  %v3220_v33 = vmul.f32 %v3355_v17, %v9359_v10 }
 0x34d   :  { %v3221_v30 = vmul.f32 %v3511_v31, %v9359_v10  ;;  %v3495_v37 = vadd.f32 %v3479_v13, %v3443_v23  ;;  %v3582_v47 = vmul.f32 %v9437_v58, %v3407_v25  ;;  %v3583_v51 = vmul.f32 %v9437_v58, %v3563_v12  ;;  %v12483_v23 = vld [vmem:[#allocation52_spill] sm:$0xff] }
 0x34e   :  { %v9700_v16 = vmul.f32 %v3407_v25, %v9376_v27  ;;  %v3546_v49 = vadd.f32 %v3530_v44, %v3494_v28  ;;  %v9704_v57 = vadd.f32 %v3220_v33, %v3168_v21  ;;  %v9707_v48 = vmul.f32 %v3563_v12, %v9376_v27  ;;  %v9712_v50 = vld [vmem:[#allocation2 + $0xd0] sm:$0xff] }
 0x34f   :  { %v9710_v17 = vmul.f32 %v3459_v41, %v9417_v29  ;;  %v9714_v1 = vld [vmem:[#allocation2 + $0xd1] sm:$0xff]  ;;  %v3547_v54 = vadd.f32 %v3531_v2, %v3495_v37  ;;  %v9718_v11 = vadd.f32 %v3221_v30, %v3169_v5  ;;  %v9722_v9 = vmul.f32 %v9417_v29, %v9695_v45  ;;  %v12484_v30 = vld [vmem:[#allocation19_spill] sm:$0xff] }
 0x350   :  { %v9716_v15 = vld [vmem:[#allocation2 + $0xd2] sm:$0xff]  ;;  %v9725_v25 = vmul.f32 %v3511_v31, %v12472_v42  ;;  %v9729_v3 = vmul.f32 %v9403_v19, %v9712_v50  ;;  %v9733_v41 = vmul.f32 %v9410_v34, %v9714_v1  ;;  %v9739_v8 = vmul.f32 %v12472_v42, %v9702_v6 }
 0x351   :  { %v2505_v52 = vld [vmem:[#allocation2 + $0xb0] sm:$0xff]  ;;  %3136 = vst.msk [vmem:[#allocation2 + $0xd1] sm:$0xff] %vm43_vm1, %v12481_v55  ;;  %v9742_v35 = vmul.f32 %v3563_v12, %v12478_v61  ;;  %v3598_v53 = vadd.f32 %v3582_v47, %v3546_v49  ;;  %v9749_v62 = vld [vmem:[#allocation2 + $0xe0] sm:$0xff]  ;;  %v3599_v33 = vadd.f32 %v3583_v51, %v3547_v54  ;;  %v12485_v49 = vld [vmem:[#allocation49_spill] sm:$0xff] }
 0x352   :  { %v2557_v32 = vld [vmem:[#allocation2 + $0xb1] sm:$0xff]  ;;  %v2525_v43 = vmul.f32 %v9350_v46, %v2505_v52  ;;  %v2680_v39 = vmul.f32 %v9388_v0, %v2505_v52  ;;  %v9751_v60 = vld [vmem:[#allocation2 + $0xe1] sm:$0xff] }
 0x353   :  { %v2609_v18 = vld [vmem:[#allocation2 + $0xb2] sm:$0xff]  ;;  %v2577_v31 = vmul.f32 %v9353_v40, %v2557_v32  ;;  %v9753_v13 = vld [vmem:[#allocation2 + $0xe2] sm:$0xff]  ;;  %v2732_v21 = vmul.f32 %v9391_v56, %v2557_v32 }
 0x354   :  { %3134 = vst.msk [vmem:[#allocation2 + $0xb1] sm:$0xff] %vm43_vm1, %v12482_v7  ;;  %v2629_v44 = vmul.f32 %v12483_v23, %v2609_v18  ;;  %v2661_v12 = vld [vmem:[#allocation2 + $0xc0] sm:$0xff]  ;;  %v2784_v5 = vmul.f32 %v9400_v20, %v2609_v18  ;;  %3137 = vst.msk [vmem:[#allocation2 + $0xe1] sm:$0xff] %vm43_vm1, %v12484_v30  ;;  %v2696_v52 = vadd.f32 %v2680_v39, %v12485_v49  ;;  %v12486_v55 = vld [vmem:[#allocation20_spill] sm:$0xff]  ;;  %v7649_v18 = vpop.f32.mrb[44].mxu0 }
 0x355   :  { %v2713_v2 = vld [vmem:[#allocation2 + $0xc1] sm:$0xff]  ;;  %v2593_v37 = vadd.f32 %v2577_v31, %v2525_v43  ;;  %v2681_v47 = vmul.f32 %v9388_v0, %v2661_v12  ;;  %v2527_v7 = vmul.f32 %v9712_v50, %v9350_v46  ;;  %v2836_v51 = vmul.f32 %v9403_v19, %v2661_v12  ;;  %v2445_v22 = vpop.f32.mrb[45].mxu0 }
 0x356   :  { %v2765_v28 = vld [vmem:[#allocation2 + $0xc2] sm:$0xff]  ;;  %v2733_v32 = vmul.f32 %v9391_v56, %v2713_v2  ;;  %v2888_v54 = vmul.f32 %v9410_v34, %v2713_v2  ;;  %v2748_v31 = vadd.f32 %v2732_v21, %v2696_v52  ;;  %v3616_v30 = vpack.c.bf16 %v3599_v33, %v3598_v53  ;;  %v7650_v27 = vpop.f32.mrb[46].mxu0 }
 0x357   :  { %3135 = vst.msk [vmem:[#allocation2 + $0xc1] sm:$0xff] %vm43_vm1, %v12486_v55  ;;  %v2785_v24 = vmul.f32 %v9400_v20, %v2765_v28  ;;  %v2645_v43 = vadd.f32 %v2629_v44, %v2593_v37  ;;  %v2526_v39 = vmul.f32 %v2661_v12, %v9350_v46  ;;  %v2454_v49 = vadd.f32 %v7649_v18, %v12473_v26  ;;  %v2448_v21 = vpop.f32.mrb[47].mxu0 }
 0x358   :  { %v2578_v63 = vmul.f32 %v2713_v2, %v9353_v40  ;;  %v2579_v55 = vmul.f32 %v9714_v1, %v9353_v40  ;;  %v2630_v36 = vmul.f32 %v2765_v28, %v12483_v23  ;;  %v2446_v42 = vadd.f32 %v12473_v26, %v2445_v22  ;;  %7675 = vmatprep.mubr.msk.bf16.mxu0 %vm43_vm1, %v3616_v30 }
 0x359   :  { %v2697_v29 = vadd.f32 %v2681_v47, %v2645_v43  ;;  %v2800_v10 = vadd.f32 %v2784_v5, %v2748_v31  ;;  %v2631_v53 = vmul.f32 %v9716_v15, %v12483_v23  ;;  %v2478_v44 = vmax.f32 %v2454_v49, 0.0 }
 0x35a   :  { %v2457_v12 = vadd.f32 %v7650_v27, %v12473_v26  ;;  %v2594_v2 = vadd.f32 %v2578_v63, %v2526_v39  ;;  %v2595_v33 = vadd.f32 %v2579_v55, %v2527_v7  ;;  %v2476_v37 = vmax.f32 %v2446_v42, 0.0  ;;  %v9800_v55 = vld [vmem:[#allocation2 + $0x82] sm:$0xff] }
 0x35b   :  { %v2449_v52 = vadd.f32 %v12473_v26, %v2448_v21  ;;  %v2749_v18 = vadd.f32 %v2733_v32, %v2697_v29  ;;  %v2852_v59 = vadd.f32 %v2836_v51, %v2800_v10  ;;  %2494 = vst.msk [vmem:[#allocation2 + $0x111] sm:$0xff] %vm43_vm1, %v2478_v44  ;;  %v2682_v30 = vmul.f32 %v9712_v50, %v9388_v0 }
 0x35c   :  { %v2479_v22 = vmax.f32 %v2457_v12, 0.0  ;;  %v2646_v5 = vadd.f32 %v2630_v36, %v2594_v2  ;;  %v2647_v47 = vadd.f32 %v2631_v53, %v2595_v33  ;;  %2492 = vst.msk [vmem:[#allocation2 + $0xf1] sm:$0xff] %vm43_vm1, %v2476_v37  ;;  %v2683_v42 = vmul.f32 %v9388_v0, %v9749_v62 }
 0x35d   :  { %v2477_v43 = vmax.f32 %v2449_v52, 0.0  ;;  %v2801_v27 = vadd.f32 %v2785_v24, %v2749_v18  ;;  %v2904_v31 = vadd.f32 %v2888_v54, %v2852_v59  ;;  %v2940_v10 = vmul.f32 %v9413_v14, %v2765_v28 }
 0x35e   :  { %2495 = vst.msk [vmem:[#allocation2 + $0x121] sm:$0xff] %vm43_vm1, %v2479_v22  ;;  %v2941_v29 = vmul.f32 %v9413_v14, %v9716_v15  ;;  %v2698_v26 = vadd.f32 %v2682_v30, %v2646_v5  ;;  %v2734_v36 = vmul.f32 %v9714_v1, %v9391_v56  ;;  %v2699_v24 = vadd.f32 %v2683_v42, %v2647_v47 }
 0x35f   :  { %2493 = vst.msk [vmem:[#allocation2 + $0x101] sm:$0xff] %vm43_vm1, %v2477_v43  ;;  %v2853_v63 = vadd.f32 %v9729_v3, %v2801_v27  ;;  %v2735_v59 = vmul.f32 %v9391_v56, %v9751_v60  ;;  %v2786_v50 = vmul.f32 %v9716_v15, %v9400_v20  ;;  %v2956_v7 = vadd.f32 %v2940_v10, %v2904_v31  ;;  %v12488_v27 = vld [vmem:[#allocation22_spill] sm:$0xff] }
 0x360   :  { %v2750_v28 = vadd.f32 %v2734_v36, %v2698_v26  ;;  %v2787_v32 = vmul.f32 %v9400_v20, %v9753_v13  ;;  %v2838_v1 = vmul.f32 %v9403_v19, %v9749_v62  ;;  %v3288_v54 = vadd.f32 %v9700_v16, %v9704_v57 }
 0x361   :  { %v2905_v51 = vadd.f32 %v9733_v41, %v2853_v63  ;;  %v2751_v3 = vadd.f32 %v2735_v59, %v2699_v24  ;;  %v3289_v39 = vadd.f32 %v9707_v48, %v9718_v11  ;;  %v2890_v49 = vmul.f32 %v9410_v34, %v9751_v60  ;;  %v12489_v24 = vld [vmem:[#allocation23_spill] sm:$0xff] }
 0x362   :  { %v2802_v15 = vadd.f32 %v2786_v50, %v2750_v28  ;;  %v2942_v53 = vmul.f32 %v9413_v14, %v9753_v13  ;;  %v3429_v44 = vmul.f32 %v12478_v61, %v9800_v55  ;;  %v3340_v41 = vadd.f32 %v9710_v17, %v3288_v54  ;;  %v9819_v16 = vld [vmem:[#allocation2 + $0x110] sm:$0xff] }
 0x363   :  { %v2957_v12 = vadd.f32 %v2941_v29, %v2905_v51  ;;  %v2803_v21 = vadd.f32 %v2787_v32, %v2751_v3  ;;  %v3341_v2 = vadd.f32 %v9722_v9, %v3289_v39  ;;  %v9821_v57 = vld [vmem:[#allocation2 + $0x111] sm:$0xff]  ;;  %v3480_v18 = vmul.f32 %v9426_v38, %v9695_v45 }
 0x364   :  { %v9823_v48 = vld [vmem:[#allocation2 + $0x112] sm:$0xff]  ;;  %v2854_v33 = vadd.f32 %v2838_v1, %v2802_v15  ;;  %v2528_v22 = vmul.f32 %v9749_v62, %v9350_v46  ;;  %v2580_v17 = vmul.f32 %v9751_v60, %v9353_v40  ;;  %v3392_v42 = vadd.f32 %v9725_v25, %v3340_v41 }
 0x365   :  { %v2819_v11 = vld [vmem:[#allocation2 + $0xf0] sm:$0xff]  ;;  %v12487_v9 = vld [vmem:[#allocation21_spill] sm:$0xff]  ;;  %v2972_v5 = vpack.c.bf16 %v2957_v12, %v2956_v7  ;;  %v9838_v45 = vld [vmem:[#allocation2 + $0x120] sm:$0xff]  ;;  %v3393_v10 = vadd.f32 %v9739_v8, %v3341_v2  ;;  %v2632_v25 = vmul.f32 %v9753_v13, %v12483_v23  ;;  %v3532_v13 = vmul.f32 %v9429_v4, %v9702_v6 }
 0x366   :  { %v2871_v37 = vld [vmem:[#allocation2 + $0xf1] sm:$0xff]  ;;  %3140 = vst.msk [vmem:[#allocation2 + $0x111] sm:$0xff] %vm43_vm1, %v12487_v9  ;;  %v2839_v47 = vmul.f32 %v9403_v19, %v2819_v11  ;;  %v9840_v31 = vld [vmem:[#allocation2 + $0x121] sm:$0xff]  ;;  %v2906_v60 = vadd.f32 %v2890_v49, %v2854_v33  ;;  %v2529_v29 = vmul.f32 %v2819_v11, %v9350_v46  ;;  %v2596_v7 = vadd.f32 %v2580_v17, %v2528_v22 }
 0x367   :  { %v2923_v52 = vld [vmem:[#allocation2 + $0xf2] sm:$0xff]  ;;  %v2891_v30 = vmul.f32 %v9410_v34, %v2871_v37  ;;  %v9842_v62 = vld [vmem:[#allocation2 + $0x122] sm:$0xff]  ;;  %7661 = vmatprep.mubr.msk.bf16.mxu1 %vm43_vm1, %v2972_v5  ;;  %v2581_v50 = vmul.f32 %v2871_v37, %v9353_v40  ;;  %v3444_v32 = vadd.f32 %v9742_v35, %v3392_v42  ;;  %v3445_v1 = vadd.f32 %v3429_v44, %v3393_v10 }
 0x368   :  { %v2943_v43 = vmul.f32 %v9413_v14, %v2923_v52  ;;  %3138 = vst.msk [vmem:[#allocation2 + $0xf1] sm:$0xff] %vm43_vm1, %v12488_v27  ;;  %v9847_v26 = vld [vmem:[#allocation2 + $0x100] sm:$0xff]  ;;  %3141 = vst.msk [vmem:[#allocation2 + $0x121] sm:$0xff] %vm43_vm1, %v12489_v24  ;;  %v2855_v59 = vadd.f32 %v2839_v47, %v2803_v21  ;;  %v12490_v8 = vld [vmem:[#allocation24_spill] sm:$0xff]  ;;  %v2958_v28 = vadd.f32 %v2942_v53, %v2906_v60 }
 0x369   :  { %v9849_v36 = vld [vmem:[#allocation2 + $0x101] sm:$0xff]  ;;  %v2633_v51 = vmul.f32 %v2923_v52, %v12483_v23  ;;  %v2597_v54 = vadd.f32 %v2581_v50, %v2529_v29  ;;  %v2648_v39 = vadd.f32 %v2632_v25, %v2596_v7  ;;  %v2684_v15 = vmul.f32 %v2819_v11, %v9388_v0  ;;  %v9870_v33 = vld [vmem:[#allocation2 + $0x132] sm:$0xff] }
 0x36a   :  { %v9851_v63 = vld [vmem:[#allocation2 + $0x102] sm:$0xff]  ;;  %v2907_v3 = vadd.f32 %v2891_v30, %v2855_v59  ;;  %v3496_v49 = vadd.f32 %v3480_v18, %v3444_v32  ;;  %v2685_v41 = vmul.f32 %v9388_v0, %v9847_v26  ;;  %v2736_v44 = vmul.f32 %v2871_v37, %v9391_v56  ;;  %v3151_v60 = vld [vmem:[#allocation2 + $0xb0] sm:$0xff]  ;;  %v12493_v37 = vld [vmem:[#allocation57_spill] sm:$0xff] }
 0x36b   :  { %3139 = vst.msk [vmem:[#allocation2 + $0x101] sm:$0xff] %vm43_vm1, %v12490_v8  ;;  %v12491_v12 = vld [vmem:[#allocation46_spill] sm:$0xff]  ;;  %v2649_v2 = vadd.f32 %v2633_v51, %v2597_v54  ;;  %v2700_v35 = vadd.f32 %v2684_v15, %v2648_v39  ;;  %v3584_v11 = vmul.f32 %v9437_v58, %v9800_v55  ;;  %v2737_v18 = vmul.f32 %v9391_v56, %v9849_v36  ;;  %v3203_v42 = vld [vmem:[#allocation2 + $0xb1] sm:$0xff]  ;;  %v12495_v54 = vld [vmem:[#allocation51_spill] sm:$0xff] }
 0x36c   :  { %v3497_v21 = vadd.f32 %v12491_v12, %v3445_v1  ;;  %v2959_v53 = vadd.f32 %v2943_v43, %v2907_v3  ;;  %v3548_v22 = vadd.f32 %v3532_v13, %v3496_v49  ;;  %v12492_v17 = vld [vmem:[#allocation50_spill] sm:$0xff]  ;;  %v2788_v43 = vmul.f32 %v2923_v52, %v9400_v20  ;;  %v12494_v51 = vld [vmem:[#allocation48_spill] sm:$0xff] }
 0x36d   :  { %v2701_v47 = vadd.f32 %v2685_v41, %v2649_v2  ;;  %v2752_v30 = vadd.f32 %v2736_v44, %v2700_v35  ;;  %v2789_v59 = vmul.f32 %v9400_v20, %v9851_v63  ;;  %v9883_v50 = vmul.f32 %v9413_v14, %v9870_v33  ;;  %v12496_v13 = vld [vmem:[#allocation54_spill] sm:$0xff] }
 0x36e   :  { %v3549_v5 = vadd.f32 %v12492_v17, %v3497_v21  ;;  %v2973_v6 = vpack.c.bf16 %v2959_v53, %v2958_v28  ;;  %v3600_v10 = vadd.f32 %v3584_v11, %v3548_v22  ;;  %v2840_v25 = vmul.f32 %v9403_v19, %v9847_v26  ;;  %v3255_v28 = vld [vmem:[#allocation2 + $0xb2] sm:$0xff]  ;;  %v3307_v21 = vld [vmem:[#allocation2 + $0xc0] sm:$0xff] }
 0x36f   :  { %v2753_v55 = vadd.f32 %v2737_v18, %v2701_v47  ;;  %v2804_v7 = vadd.f32 %v2788_v43, %v2752_v30  ;;  %v2841_v52 = vmul.f32 %v9403_v19, %v9819_v16  ;;  %v2892_v1 = vmul.f32 %v9410_v34, %v9849_v36  ;;  %v3359_v53 = vld [vmem:[#allocation2 + $0xc1] sm:$0xff]  ;;  %v12497_v22 = vld [vmem:[#allocation53_spill] sm:$0xff] }
 0x370   :  { %v3601_v29 = vadd.f32 %v12493_v37, %v3549_v5  ;;  %7662 = vmatmul.mubr.msk.bf16.gmra.mrb[24].mxu1 %vm43_vm1, %v2973_v6  ;;  %v3171_v3 = vmul.f32 %v12494_v51, %v3151_v60  ;;  %v3223_v39 = vmul.f32 %v12495_v54, %v3203_v42  ;;  %v2893_v12 = vmul.f32 %v9410_v34, %v9821_v57  ;;  %v9903_v5 = vld [vmem:[#allocation2 + $0xc2] sm:$0xff]  ;;  %v12498_v6 = vld [vmem:[#allocation45_spill] sm:$0xff] }
 0x371   :  { %v2805_v15 = vadd.f32 %v2789_v59, %v2753_v55  ;;  %v2856_v49 = vadd.f32 %v2840_v25, %v2804_v7  ;;  %v3326_v41 = vmul.f32 %v12496_v13, %v3151_v60  ;;  %v2944_v2 = vmul.f32 %v9413_v14, %v9851_v63  ;;  %v12499_v30 = vld [vmem:[#allocation55_spill] sm:$0xff]  ;;  %v9907_v60 = vld [vmem:[#allocation2 + $0xd0] sm:$0xff] }
 0x372   :  { %v3617_v32 = vpack.c.bf16 %v3601_v29, %v3600_v10  ;;  %v2945_v35 = vmul.f32 %v9413_v14, %v9823_v48  ;;  %v3239_v44 = vadd.f32 %v3223_v39, %v3171_v3  ;;  %v3275_v17 = vmul.f32 %v12497_v22, %v3255_v28 }
 0x373   :  { %v2857_v11 = vadd.f32 %v2841_v52, %v2805_v15  ;;  %v2908_v18 = vadd.f32 %v2892_v1, %v2856_v49  ;;  %v3342_v47 = vadd.f32 %v3326_v41, %v12498_v6  ;;  %v3378_v43 = vmul.f32 %v12499_v30, %v3203_v42 }
 0x374   :  { %7676 = vmatmul.mubr.msk.bf16.gmra.mrb[52].mxu0 %vm43_vm1, %v3617_v32  ;;  %v3291_v10 = vadd.f32 %v3275_v17, %v3239_v44  ;;  %v3327_v37 = vmul.f32 %v12496_v13, %v3307_v21  ;;  %v3379_v29 = vmul.f32 %v12499_v30, %v3359_v53  ;;  %v3430_v59 = vmul.f32 %v12478_v61, %v3255_v28  ;;  %v9915_v32 = vld [vmem:[#allocation2 + $0xd1] sm:$0xff] }
 0x375   :  { %v2909_v55 = vadd.f32 %v2893_v12, %v2857_v11  ;;  %v3394_v7 = vadd.f32 %v3378_v43, %v3342_v47  ;;  %v3431_v25 = vmul.f32 %v12478_v61, %v9903_v5  ;;  %v3482_v52 = vmul.f32 %v9426_v38, %v3307_v21  ;;  %v3567_v17 = vld [vmem:[#allocation2 + $0xd2] sm:$0xff] }
 0x376   :  { %v2960_v1 = vadd.f32 %v2944_v2, %v2908_v18  ;;  %v3343_v42 = vadd.f32 %v3327_v37, %v3291_v10  ;;  %v3483_v3 = vmul.f32 %v9426_v38, %v9907_v60  ;;  %v3534_v39 = vmul.f32 %v9429_v4, %v3359_v53 }
 0x377   :  { %v2961_v15 = vadd.f32 %v2945_v35, %v2909_v55  ;;  %v3446_v49 = vadd.f32 %v3430_v59, %v3394_v7  ;;  %v2530_v28 = vmul.f32 %v9847_v26, %v9350_v46  ;;  %v2531_v12 = vmul.f32 %v9819_v16, %v9350_v46 }
 0x378   :  { %v3395_v41 = vadd.f32 %v3379_v29, %v3343_v42  ;;  %v3535_v44 = vmul.f32 %v9429_v4, %v9915_v32  ;;  %v2582_v2 = vmul.f32 %v9849_v36, %v9353_v40  ;;  %v2583_v11 = vmul.f32 %v9821_v57, %v9353_v40 }
 0x379   :  { %v2974_v18 = vpack.c.bf16 %v2961_v15, %v2960_v1  ;;  %v3498_v35 = vadd.f32 %v3482_v52, %v3446_v49  ;;  %v3586_v6 = vmul.f32 %v9437_v58, %v9903_v5  ;;  %v2634_v26 = vmul.f32 %v9851_v63, %v12483_v23 }
 0x37a   :  { %v3447_v46 = vadd.f32 %v3431_v25, %v3395_v41  ;;  %v2598_v47 = vadd.f32 %v2582_v2, %v2530_v28  ;;  %v2599_v43 = vadd.f32 %v2583_v11, %v2531_v12  ;;  %v2635_v10 = vmul.f32 %v9823_v48, %v12483_v23  ;;  %v3309_v12 = vld [vmem:[#allocation2 + $0xe0] sm:$0xff] }
 0x37b   :  { %7665 = vmatprep.mubr.msk.bf16.mxu1 %vm43_vm1, %v2974_v18  ;;  %v3550_v36 = vadd.f32 %v3534_v39, %v3498_v35  ;;  %v3587_v37 = vmul.f32 %v9437_v58, %v3567_v17  ;;  %v2686_v40 = vmul.f32 %v9819_v16, %v9388_v0  ;;  %v2687_v29 = vmul.f32 %v9388_v0, %v9838_v45  ;;  %v3413_v35 = vld [vmem:[#allocation2 + $0xe2] sm:$0xff] }
 0x37c   :  { %v3499_v59 = vadd.f32 %v3483_v3, %v3447_v46  ;;  %v2650_v55 = vadd.f32 %v2634_v26, %v2598_v47  ;;  %v2651_v63 = vadd.f32 %v2635_v10, %v2599_v43  ;;  %v2738_v7 = vmul.f32 %v9821_v57, %v9391_v56  ;;  %v3465_v46 = vld [vmem:[#allocation2 + $0xf0] sm:$0xff]  ;;  %v12500_v47 = vld [vmem:[#allocation58_spill] sm:$0xff] }
 0x37d   :  { %v3602_v25 = vadd.f32 %v3586_v6, %v3550_v36  ;;  %v2739_v23 = vmul.f32 %v9391_v56, %v9840_v31  ;;  %v2790_v52 = vmul.f32 %v9823_v48, %v9400_v20  ;;  %v2791_v1 = vmul.f32 %v9400_v20, %v9842_v62 }
 0x37e   :  { %v3551_v16 = vadd.f32 %v3535_v44, %v3499_v59  ;;  %v2702_v42 = vadd.f32 %v2686_v40, %v2650_v55  ;;  %v2703_v39 = vadd.f32 %v2687_v29, %v2651_v63  ;;  %v3172_v0 = vmul.f32 %v3307_v21, %v12494_v51  ;;  %v3361_v44 = vld [vmem:[#allocation2 + $0xe1] sm:$0xff] }
 0x37f   :  { %v2842_v3 = vmul.f32 %v9403_v19, %v9838_v45  ;;  %v3173_v57 = vmul.f32 %v9907_v60, %v12494_v51  ;;  %v3224_v15 = vmul.f32 %v3359_v53, %v12495_v54  ;;  %v3225_v56 = vmul.f32 %v9915_v32, %v12495_v54  ;;  %v12501_v29 = vld [vmem:[#allocation47_spill] sm:$0xff] }
 0x380   :  { %v3603_v48 = vadd.f32 %v3587_v37, %v3551_v16  ;;  %v2754_v49 = vadd.f32 %v2738_v7, %v2702_v42  ;;  %v2755_v28 = vadd.f32 %v2739_v23, %v2703_v39  ;;  %v2894_v20 = vmul.f32 %v9410_v34, %v9840_v31  ;;  %v3517_v7 = vld [vmem:[#allocation2 + $0xf1] sm:$0xff] }
 0x381   :  { %v3240_v41 = vadd.f32 %v3224_v15, %v3172_v0  ;;  %v3241_v21 = vadd.f32 %v3225_v56, %v3173_v57  ;;  %v3276_v19 = vmul.f32 %v9903_v5, %v12497_v22  ;;  %v3277_v45 = vmul.f32 %v3567_v17, %v12497_v22 }
 0x382   :  { %v3618_v2 = vpack.c.bf16 %v3603_v48, %v3602_v25  ;;  %v2806_v53 = vadd.f32 %v2790_v52, %v2754_v49  ;;  %v2807_v11 = vadd.f32 %v2791_v1, %v2755_v28  ;;  %v2946_v18 = vmul.f32 %v9413_v14, %v9842_v62  ;;  %v3311_v28 = vld [vmem:[#allocation2 + $0x100] sm:$0xff] }
 0x383   :  { %v3292_v6 = vadd.f32 %v3276_v19, %v3240_v41  ;;  %v3293_v26 = vadd.f32 %v3277_v45, %v3241_v21  ;;  %v3328_v34 = vmul.f32 %v9907_v60, %v12496_v13  ;;  %v3329_v31 = vmul.f32 %v12496_v13, %v3309_v12 }
 0x384   :  { %7679 = vmatprep.mubr.msk.bf16.mxu0 %vm43_vm1, %v3618_v2  ;;  %v2858_v5 = vadd.f32 %v2842_v3, %v2806_v53  ;;  %v2859_v43 = vadd.f32 %v12500_v47, %v2807_v11  ;;  %v3380_v10 = vmul.f32 %v9915_v32, %v12499_v30  ;;  %v3381_v36 = vmul.f32 %v12499_v30, %v3361_v44  ;;  %v3363_v2 = vld [vmem:[#allocation2 + $0x101] sm:$0xff] }
 0x385   :  { %v3344_v14 = vadd.f32 %v3328_v34, %v3292_v6  ;;  %v3345_v62 = vadd.f32 %v3329_v31, %v3293_v26  ;;  %v3432_v37 = vmul.f32 %v3567_v17, %v12478_v61  ;;  %v3433_v40 = vmul.f32 %v12478_v61, %v3413_v35  ;;  %v3569_v17 = vld [vmem:[#allocation2 + $0xf2] sm:$0xff]  ;;  %v3415_v26 = vld [vmem:[#allocation2 + $0x102] sm:$0xff] }
 0x386   :  { %v2910_v60 = vadd.f32 %v2894_v20, %v2858_v5  ;;  %v2911_v59 = vadd.f32 %v12501_v29, %v2859_v43  ;;  %v3484_v55 = vmul.f32 %v9426_v38, %v3309_v12  ;;  %v3485_v63 = vmul.f32 %v9426_v38, %v3465_v46  ;;  %v3571_v29 = vld [vmem:[#allocation2 + $0x112] sm:$0xff] }
 0x387   :  { %v3396_v25 = vadd.f32 %v3380_v10, %v3344_v14  ;;  %v3397_v23 = vadd.f32 %v3381_v36, %v3345_v62  ;;  %v3536_v32 = vmul.f32 %v9429_v4, %v3361_v44  ;;  %v3174_v52 = vmul.f32 %v3309_v12, %v12494_v51 }
 0x388   :  { %v2962_v1 = vadd.f32 %v2946_v18, %v2910_v60  ;;  %v2963_v16 = vadd.f32 %v9883_v50, %v2911_v59  ;;  %v3175_v42 = vmul.f32 %v3465_v46, %v12494_v51  ;;  %v3226_v39 = vmul.f32 %v3361_v44, %v12495_v54 }
 0x389   :  { %v3448_v0 = vadd.f32 %v3432_v37, %v3396_v25  ;;  %v3449_v3 = vadd.f32 %v3433_v40, %v3397_v23  ;;  %v3537_v57 = vmul.f32 %v9429_v4, %v3517_v7  ;;  %v3227_v15 = vmul.f32 %v3517_v7, %v12495_v54 }
 0x38a   :  { %v2975_v56 = vpack.c.bf16 %v2963_v16, %v2962_v1  ;;  %v3242_v48 = vadd.f32 %v3226_v39, %v3174_v52  ;;  %v3278_v49 = vmul.f32 %v3413_v35, %v12497_v22  ;;  %v3330_v20 = vmul.f32 %v3465_v46, %v12496_v13  ;;  %v3467_v46 = vld [vmem:[#allocation2 + $0x110] sm:$0xff]  ;;  %v3313_v16 = vld [vmem:[#allocation2 + $0x120] sm:$0xff] }
 0x38b   :  { %v3500_v12 = vadd.f32 %v3484_v55, %v3448_v0  ;;  %v3501_v50 = vadd.f32 %v3485_v63, %v3449_v3  ;;  %v3243_v41 = vadd.f32 %v3227_v15, %v3175_v42  ;;  %v3279_v21 = vmul.f32 %v3569_v17, %v12497_v22  ;;  %v3365_v15 = vld [vmem:[#allocation2 + $0x121] sm:$0xff] }
 0x38c   :  { %7666 = vmatmul.mubr.msk.bf16.gmra.mrb[28].mxu1 %vm43_vm1, %v2975_v56  ;;  %v3588_v19 = vmul.f32 %v9437_v58, %v3413_v35  ;;  %v3589_v45 = vmul.f32 %v9437_v58, %v3569_v17  ;;  %v3294_v44 = vadd.f32 %v3278_v49, %v3242_v48  ;;  %v3331_v6 = vmul.f32 %v12496_v13, %v3311_v28  ;;  %v3519_v35 = vld [vmem:[#allocation2 + $0x111] sm:$0xff] }
 0x38d   :  { %v3552_v53 = vadd.f32 %v3536_v32, %v3500_v12  ;;  %v3553_v11 = vadd.f32 %v3537_v57, %v3501_v50  ;;  %v3295_v18 = vadd.f32 %v3279_v21, %v3243_v41  ;;  %v3382_v31 = vmul.f32 %v3517_v7, %v12499_v30 }
 0x38e   :  { %v3346_v34 = vadd.f32 %v3330_v20, %v3294_v44  ;;  %v3383_v10 = vmul.f32 %v12499_v30, %v3363_v2  ;;  %v3434_v14 = vmul.f32 %v3569_v17, %v12478_v61  ;;  %v3435_v62 = vmul.f32 %v12478_v61, %v3415_v26 }
 0x38f   :  { %v3604_v5 = vadd.f32 %v3588_v19, %v3552_v53  ;;  %v3605_v47 = vadd.f32 %v3589_v45, %v3553_v11  ;;  %v3347_v43 = vadd.f32 %v3331_v6, %v3295_v18  ;;  %v3176_v37 = vmul.f32 %v3311_v28, %v12494_v51  ;;  %v12502_v6 = vld [vmem:[#allocation41_spill] sm:$0xff] }
 0x390   :  { %v3398_v36 = vadd.f32 %v3382_v31, %v3346_v34  ;;  %v3177_v59 = vmul.f32 %v3467_v46, %v12494_v51  ;;  %v3228_v55 = vmul.f32 %v3363_v2, %v12495_v54  ;;  %v3486_v7 = vmul.f32 %v9426_v38, %v3311_v28 }
 0x391   :  { %v3619_v40 = vpack.c.bf16 %v3605_v47, %v3604_v5  ;;  %v3399_v60 = vadd.f32 %v3383_v10, %v3347_v43  ;;  %v3229_v25 = vmul.f32 %v3519_v35, %v12495_v54  ;;  %v3487_v32 = vmul.f32 %v9426_v38, %v3467_v46  ;;  %v12503_v5 = vld [vmem:[#allocation44_spill] sm:$0xff] }
 0x392   :  { %v3450_v63 = vadd.f32 %v3434_v14, %v3398_v36  ;;  %v3244_v52 = vadd.f32 %v3228_v55, %v3176_v37  ;;  %v3280_v1 = vmul.f32 %v3415_v26, %v12497_v22  ;;  %v3538_v42 = vmul.f32 %v9429_v4, %v3363_v2 }
 0x393   :  { %7680 = vmatmul.mubr.msk.bf16.gmra.mrb[56].mxu0 %vm43_vm1, %v3619_v40  ;;  %v3451_v23 = vadd.f32 %v3435_v62, %v3399_v60  ;;  %v3245_v51 = vadd.f32 %v3229_v25, %v3177_v59  ;;  %v3281_v39 = vmul.f32 %v3571_v29, %v12497_v22  ;;  %v3539_v3 = vmul.f32 %v9429_v4, %v3519_v35  ;;  %v3417_v22 = vld [vmem:[#allocation2 + $0x122] sm:$0xff]  ;;  %v7384_v40 = vld [vmem:[%s12172_s7 + $0xc] sm:$0xf] }
 0x394   :  { %v3502_v17 = vadd.f32 %v3486_v7, %v3450_v63  ;;  %v3296_v57 = vadd.f32 %v3280_v1, %v3244_v52  ;;  %v3332_v54 = vmul.f32 %v3467_v46, %v12496_v13  ;;  %v3590_v48 = vmul.f32 %v9437_v58, %v3415_v26  ;;  %7833 = vmatprep.subr.msk.bf16.mxu0 %vm205_vm0, %v7384_v40  ;;  %v7367_v63 = vld [vmem:[%s12174_s9 + $0x18] sm:$0x7]  ;;  %v10050_v7 = vld [vmem:[%s12173_s8 + $0x2] ss:$0 sm:$0xff]  ;;  %v12509_v1 = vld [vmem:[#allocation7_spill] sm:$0xff] }
 0x395   :  { %v3503_v0 = vadd.f32 %v3487_v32, %v3451_v23  ;;  %v3297_v49 = vadd.f32 %v3281_v39, %v3245_v51  ;;  %v3333_v28 = vmul.f32 %v12496_v13, %v3313_v16  ;;  %v3591_v12 = vmul.f32 %v9437_v58, %v3571_v29  ;;  %v12508_v25 = vld [vmem:[#allocation6_spill] sm:$0xff] }
 0x396   :  { %v3554_v56 = vadd.f32 %v3538_v42, %v3502_v17  ;;  %v3348_v50 = vadd.f32 %v3332_v54, %v3296_v57  ;;  %v3384_v41 = vmul.f32 %v3519_v35, %v12499_v30  ;;  %v3385_v19 = vmul.f32 %v12499_v30, %v3365_v15  ;;  %v3788_v52 = vld [vmem:[#allocation2] sm:$0xff] }
 0x397   :  { %v3555_v20 = vadd.f32 %v3539_v3, %v3503_v0  ;;  %v3349_v21 = vadd.f32 %v3333_v28, %v3297_v49  ;;  %v3436_v53 = vmul.f32 %v3571_v29, %v12478_v61  ;;  %v3437_v18 = vmul.f32 %v12478_v61, %v3417_v22  ;;  %v3840_v51 = vld [vmem:[#allocation2 + $0x1] sm:$0xff] }
 0x398   :  { %v3606_v45 = vadd.f32 %v3590_v48, %v3554_v56  ;;  %v3400_v2 = vadd.f32 %v3384_v41, %v3348_v50  ;;  %v3489_v13 = vmul.f32 %v9426_v38, %v12502_v6  ;;  %v3488_v31 = vmul.f32 %v9426_v38, %v3313_v16 }
 0x399   :  { %v3607_v44 = vadd.f32 %v3591_v12, %v3555_v20  ;;  %v3401_v11 = vadd.f32 %v3385_v19, %v3349_v21  ;;  %v3541_v47 = vmul.f32 %v9429_v4, %v12503_v5  ;;  %v3540_v43 = vmul.f32 %v9429_v4, %v3365_v15  ;;  %v12512_v12 = vld [vmem:[#allocation8_spill] sm:$0xff]  ;;  %v3892_v21 = vld [vmem:[#allocation2 + $0x2] sm:$0xff] }
 0x39a   :  { %v3452_v34 = vadd.f32 %v3436_v53, %v3400_v2  ;;  %v3593_v61 = vmul.f32 %v9437_v58, %v9870_v33  ;;  %v3592_v36 = vmul.f32 %v9437_v58, %v3417_v22  ;;  %v4945_v4 = vsel %vm205_vm0, %v7384_v40, 0  ;;  %v7370_v33 = vld [vmem:[%s12175_s10 + $0x8] sm:$0xf]  ;;  %v7368_v2 = vld [vmem:[%s12174_s9 + $0x1c] sm:$0x7] }
 0x39b   :  { %v3620_v26 = vpack.c.bf16 %v3607_v44, %v3606_v45  ;;  %v3453_v46 = vadd.f32 %v3437_v18, %v3401_v11  ;;  %7706 = vmatpush3.bf16.msra.mxu0 %v4945_v4  ;;  %7832 = vmatprep.subr.msk.bf16.mxu1 %vm205_vm0, %v7370_v33  ;;  %v4299_v58 = vsel %vm205_vm0, %v7370_v33, 0  ;;  %v10053_v23 = vrot.slane %v7367_v63, %v12508_v25  ;;  %v7381_v44 = vld [vmem:[%s12171_s6 + $0x24] sm:$0x7] }
 0x39c   :  { %v3504_v30 = vadd.f32 %v3488_v31, %v3452_v34  ;;  %7688 = vmatpush3.bf16.msra.mxu1 %v4299_v58  ;;  %v10056_v16 = vrot.slane %v7367_v63, %v12509_v1  ;;  %v10069_v50 = vrot.slane %v7367_v63, %v12512_v12  ;;  %v10087_v18 = vrot.slane %v7381_v44, %v12508_v25  ;;  %v12518_v33 = vld [vmem:[#allocation10_spill] sm:$0xff] }
 0x39d   :  { %7683 = vmatprep.mubr.msk.bf16.mxu0 %vm43_vm1, %v3620_v26  ;;  %v3505_v10 = vadd.f32 %v3489_v13, %v3453_v46  ;;  %v3808_v56 = vmul.f32 %v10053_v23, %v3788_v52  ;;  %v10090_v6 = vrot.slane %v7381_v44, %v12509_v1  ;;  %v10093_v13 = vrot.slane %v7368_v2, %v12508_v25  ;;  %v7369_v26 = vld [vmem:[%s12174_s9 + $0x20] sm:$0x7] }
 0x39e   :  { %v3556_v35 = vadd.f32 %v3540_v43, %v3504_v30  ;;  %v3860_v20 = vmul.f32 %v10056_v16, %v3840_v51  ;;  %v3912_v11 = vmul.f32 %v10069_v50, %v3892_v21  ;;  %v10099_v31 = vrot.slane %v7368_v2, %v12509_v1  ;;  %v7382_v30 = vld [vmem:[%s12171_s6 + $0x28] sm:$0x7] }
 0x39f   :  { %v3557_v14 = vadd.f32 %v3541_v47, %v3505_v10  ;;  %12515 = vst [vmem:[#allocation48_spill] sm:$0xff] %v10090_v6  ;;  %v10121_v4 = vrot.slane %v7368_v2, %v12512_v12  ;;  %v10150_v2 = vrot.slane %v7382_v30, %v12508_v25 }
 0x3a0   :  { %v3608_v62 = vadd.f32 %v3592_v36, %v3556_v35  ;;  %v3876_v53 = vadd.f32 %v3860_v20, %v3808_v56  ;;  %v12516_v35 = vld [vmem:[#allocation9_spill] sm:$0xff]  ;;  %v4454_v36 = vmul.f32 %v10087_v18, %v3788_v52  ;;  %v3796_v20 = vld [vmem:[#allocation2 + $0xa0] sm:$0xff] }
 0x3a1   :  { %v3609_v37 = vadd.f32 %v3593_v61, %v3557_v14  ;;  %v4506_v14 = vmul.f32 %v10090_v6, %v3840_v51  ;;  %v10134_v51 = vrot.slane %v7369_v26, %v12508_v25  ;;  %12521 = vst [vmem:[#allocation54_spill] sm:$0xff] %v10150_v2 }
 0x3a2   :  { %v3928_v34 = vadd.f32 %v3912_v11, %v3876_v53  ;;  %v10153_v53 = vrot.slane %v7382_v30, %v12509_v1 }
 0x3a3   :  { %v3621_v38 = vpack.c.bf16 %v3609_v37, %v3608_v62  ;;  %v10115_v62 = vrot.slane %v7381_v44, %v12512_v12 }
 0x3a4   :  { %12522 = vst [vmem:[#allocation53_spill] sm:$0xff] %v10153_v53 }
 0x3a5   :  { %7684 = vmatmul.mubr.msk.bf16.gmra.mrb[60].mxu0 %vm43_vm1, %v3621_v38  ;;  %12517 = vst [vmem:[#allocation51_spill] sm:$0xff] %v10115_v62  ;;  %v4558_v44 = vmul.f32 %v10115_v62, %v3892_v21 }
 0x40e   :  { %v10036_v60 = vpop.f32.mrb[16].mxu1 }
 0x40f   :  { %12504 = vst [vmem:[#allocation43_spill] sm:$0xff] %v10036_v60  ;;  %v10038_v29 = vpop.f32.mrb[17].mxu1 }
 0x410   :  { %12505 = vst [vmem:[#allocation56_spill] sm:$0xff] %v10038_v29  ;;  %v10040_v59 = vpop.f32.mrb[18].mxu1 }
 0x411   :  { %12506 = vst [vmem:[#allocation42_spill] sm:$0xff] %v10040_v59  ;;  %v10042_v55 = vpop.f32.mrb[19].mxu1 }
 0x412   :  { %12507 = vst [vmem:[#allocation52_spill] sm:$0xff] %v10042_v55 }
 0x41a   :  { %v7673_v32 = vpop.f32.mrb[48].mxu0 }
 0x41b   :  { %v3698_v17 = vadd.f32 %v7673_v32, %v10050_v7  ;;  %v3689_v42 = vpop.f32.mrb[49].mxu0 }
 0x41c   :  { %v3690_v39 = vadd.f32 %v10050_v7, %v3689_v42  ;;  %v7674_v0 = vpop.f32.mrb[50].mxu0 }
 0x41d   :  { %v3758_v57 = vmax.f32 %v3698_v17, 0.0  ;;  %v3701_v54 = vadd.f32 %v7674_v0, %v10050_v7  ;;  %v3692_v15 = vpop.f32.mrb[51].mxu0  ;;  %v10140_v0 = vrot.slane %v7369_v26, %v12512_v12 }
 0x41e   :  { %v10060_v3 = vpop.f32.mrb[20].mxu1  ;;  %v3756_v49 = vmax.f32 %v3690_v39, 0.0  ;;  %v3693_v28 = vadd.f32 %v10050_v7, %v3692_v15  ;;  %v10137_v39 = vrot.slane %v7369_v26, %v12509_v1 }
 0x41f   :  { %12510 = vst [vmem:[#allocation49_spill] sm:$0xff] %v10060_v3  ;;  %v10064_v48 = vpop.f32.mrb[21].mxu1  ;;  %3774 = vst.msk [vmem:[#allocation2 + $0x31] sm:$0xff] %vm43_vm1, %v3758_v57  ;;  %v3759_v22 = vmax.f32 %v3701_v54, 0.0  ;;  %v12519_v57 = vld [vmem:[#allocation11_spill] sm:$0xff] }
 0x420   :  { %12511 = vst [vmem:[#allocation46_spill] sm:$0xff] %v10064_v48  ;;  %v10072_v41 = vpop.f32.mrb[22].mxu1  ;;  %3772 = vst.msk [vmem:[#allocation2 + $0x11] sm:$0xff] %vm43_vm1, %v3756_v49  ;;  %v3757_v45 = vmax.f32 %v3693_v28, 0.0  ;;  %v12520_v28 = vld [vmem:[#allocation12_spill] sm:$0xff] }
 0x421   :  { %12513 = vst [vmem:[#allocation50_spill] sm:$0xff] %v10072_v41  ;;  %v10075_v19 = vpop.f32.mrb[23].mxu1  ;;  %3775 = vst.msk [vmem:[#allocation2 + $0x41] sm:$0xff] %vm43_vm1, %v3759_v22  ;;  %v3848_v22 = vld [vmem:[#allocation2 + $0xa1] sm:$0xff] }
 0x422   :  { %12514 = vst [vmem:[#allocation57_spill] sm:$0xff] %v10075_v19  ;;  %3773 = vst.msk [vmem:[#allocation2 + $0x21] sm:$0xff] %vm43_vm1, %v3757_v45  ;;  %v4522_v45 = vadd.f32 %v4506_v14, %v4454_v36  ;;  %v3816_v36 = vmul.f32 %v10053_v23, %v3796_v20  ;;  %v3868_v14 = vmul.f32 %v10056_v16, %v3848_v22 }
 0x423   :  { %v10205_v41 = vmul.f32 %v10090_v6, %v3848_v22 }
 0x424   :  { %v10188_v19 = vadd.f32 %v3868_v14, %v3816_v36 }
 0x426   :  { %v10101_v46 = vld [vmem:[#allocation2 + $0x30] sm:$0xff] }
 0x427   :  { %v10103_v5 = vld [vmem:[#allocation2 + $0x31] sm:$0xff] }
 0x428   :  { %v10105_v47 = vld [vmem:[#allocation2 + $0x32] sm:$0xff]  ;;  %v10125_v58 = vld [vmem:[#allocation2 + $0x40] sm:$0xff] }
 0x429   :  { %v3789_v43 = vld [vmem:[#allocation2 + $0x10] sm:$0xff]  ;;  %4420 = vst.msk [vmem:[#allocation2 + $0x31] sm:$0xff] %vm43_vm1, %v12516_v35  ;;  %v10127_v63 = vld [vmem:[#allocation2 + $0x41] sm:$0xff] }
 0x42a   :  { %v3841_v10 = vld [vmem:[#allocation2 + $0x11] sm:$0xff]  ;;  %v3809_v37 = vmul.f32 %v10053_v23, %v3789_v43  ;;  %v3964_v40 = vmul.f32 %v10093_v13, %v3789_v43  ;;  %v10129_v32 = vld [vmem:[#allocation2 + $0x42] sm:$0xff] }
 0x42b   :  { %v3893_v61 = vld [vmem:[#allocation2 + $0x12] sm:$0xff]  ;;  %v3861_v38 = vmul.f32 %v10056_v16, %v3841_v10  ;;  %v3945_v52 = vld [vmem:[#allocation2 + $0x20] sm:$0xff]  ;;  %4421 = vst.msk [vmem:[#allocation2 + $0x41] sm:$0xff] %vm43_vm1, %v12519_v57  ;;  %v4016_v49 = vmul.f32 %v10099_v31, %v3841_v10  ;;  %v7383_v10 = vld [vmem:[%s12171_s6 + $0x2c] sm:$0x7] }
 0x42c   :  { %4418 = vst.msk [vmem:[#allocation2 + $0x11] sm:$0xff] %vm43_vm1, %v12518_v33  ;;  %v3997_v17 = vld [vmem:[#allocation2 + $0x21] sm:$0xff]  ;;  %v3913_v15 = vmul.f32 %v10069_v50, %v3893_v61  ;;  %v3980_v56 = vadd.f32 %v3964_v40, %v3928_v34  ;;  %v3965_v26 = vmul.f32 %v10093_v13, %v3945_v52  ;;  %v4068_v43 = vmul.f32 %v10121_v4, %v3893_v61  ;;  %v10166_v57 = vld [vmem:[#allocation2 + $0x90] sm:$0xff] }
 0x42d   :  { %v10131_v42 = vld [vmem:[#allocation2 + $0x22] sm:$0xff]  ;;  %v3877_v54 = vadd.f32 %v3861_v38, %v3809_v37  ;;  %v4017_v35 = vmul.f32 %v10099_v31, %v3997_v17  ;;  %v4120_v21 = vmul.f32 %v10134_v51, %v3945_v52  ;;  %v3810_v40 = vmul.f32 %v3945_v52, %v10053_v23 }
 0x42e   :  { %4419 = vst.msk [vmem:[#allocation2 + $0x21] sm:$0xff] %vm43_vm1, %v12520_v28  ;;  %v4032_v34 = vadd.f32 %v4016_v49, %v3980_v56  ;;  %v3862_v33 = vmul.f32 %v3997_v17, %v10056_v16  ;;  %v10168_v61 = vld [vmem:[#allocation2 + $0xa2] sm:$0xff]  ;;  %v10177_v56 = vrot.slane %v7383_v10, %v12509_v1  ;;  %v10180_v49 = vrot.slane %v7383_v10, %v12512_v12 }
 0x42f   :  { %v3929_v11 = vadd.f32 %v3913_v15, %v3877_v54  ;;  %v10171_v54 = vrot.slane %v7382_v30, %v12512_v12  ;;  %v10174_v15 = vrot.slane %v7383_v10, %v12508_v25  ;;  %v4069_v52 = vmul.f32 %v10121_v4, %v10131_v42 }
 0x430   :  { %v4084_v38 = vadd.f32 %v4068_v43, %v4032_v34  ;;  %v4574_v43 = vadd.f32 %v4558_v44, %v4522_v45  ;;  %v10186_v30 = vmul.f32 %v10134_v51, %v10166_v57  ;;  %v10192_v48 = vmul.f32 %v10069_v50, %v10168_v61 }
 0x431   :  { %v3981_v37 = vadd.f32 %v3965_v26, %v3929_v11  ;;  %12523 = vst [vmem:[#allocation45_spill] sm:$0xff] %v10171_v54  ;;  %v10195_v10 = vmul.f32 %v10087_v18, %v3796_v20  ;;  %v3878_v45 = vadd.f32 %v3862_v33, %v3810_v40  ;;  %v3811_v33 = vmul.f32 %v10101_v46, %v10053_v23 }
 0x432   :  { %v4136_v11 = vadd.f32 %v4120_v21, %v4084_v38  ;;  %v4121_v21 = vmul.f32 %v10134_v51, %v10101_v46  ;;  %v4173_v38 = vmul.f32 %v10137_v39, %v10103_v5  ;;  %v4224_v22 = vmul.f32 %v10140_v0, %v10131_v42 }
 0x433   :  { %v4033_v28 = vadd.f32 %v4017_v35, %v3981_v37  ;;  %v4435_v26 = vld [vmem:[#allocation2 + $0x10] sm:$0xff]  ;;  %v4172_v37 = vmul.f32 %v10137_v39, %v3997_v17  ;;  %v3914_v17 = vmul.f32 %v10131_v42, %v10069_v50 }
 0x434   :  { %v4487_v34 = vld [vmem:[#allocation2 + $0x11] sm:$0xff]  ;;  %v4455_v36 = vmul.f32 %v10087_v18, %v4435_v26  ;;  %v4610_v59 = vmul.f32 %v10150_v2, %v4435_v26  ;;  %v3915_v26 = vmul.f32 %v10105_v47, %v10069_v50 }
 0x435   :  { %v4085_v35 = vadd.f32 %v4069_v52, %v4033_v28  ;;  %v4539_v44 = vld [vmem:[#allocation2 + $0x12] sm:$0xff]  ;;  %v4507_v14 = vmul.f32 %v10090_v6, %v4487_v34  ;;  %v4188_v3 = vadd.f32 %v4172_v37, %v4136_v11  ;;  %v4225_v28 = vmul.f32 %v10140_v0, %v10105_v47  ;;  %v4591_v40 = vld [vmem:[#allocation2 + $0x20] sm:$0xff] }
 0x436   :  { %v4559_v55 = vmul.f32 %v10115_v62, %v4539_v44  ;;  %v3863_v11 = vmul.f32 %v10103_v5, %v10056_v16  ;;  %v4611_v60 = vmul.f32 %v10150_v2, %v4591_v40  ;;  %v4626_v12 = vadd.f32 %v4610_v59, %v4574_v43  ;;  %v4695_v42 = vld [vmem:[#allocation2 + $0x22] sm:$0xff] }
 0x437   :  { %v4137_v20 = vadd.f32 %v4121_v21, %v4085_v35  ;;  %v4523_v52 = vadd.f32 %v4507_v14, %v4455_v36  ;;  %v3930_v35 = vadd.f32 %v3914_v17, %v3878_v45  ;;  %v4643_v21 = vld [vmem:[#allocation2 + $0x21] sm:$0xff]  ;;  %v4662_v1 = vmul.f32 %v10153_v53, %v4487_v34  ;;  %v4747_v17 = vld [vmem:[#allocation2 + $0x30] sm:$0xff] }
 0x438   :  { %v4240_v36 = vadd.f32 %v4224_v22, %v4188_v3  ;;  %v4663_v25 = vmul.f32 %v10153_v53, %v4643_v21  ;;  %v3879_v59 = vadd.f32 %v3863_v11, %v3811_v33  ;;  %v4799_v3 = vld [vmem:[#allocation2 + $0x31] sm:$0xff] }
 0x439   :  { %v4189_v29 = vadd.f32 %v4173_v38, %v4137_v20  ;;  %v4575_v37 = vadd.f32 %v4559_v55, %v4523_v52  ;;  %v3966_v38 = vmul.f32 %v10101_v46, %v10093_v13  ;;  %v4678_v45 = vadd.f32 %v4662_v1, %v4626_v12 }
 0x43a   :  { %v4714_v55 = vmul.f32 %v10171_v54, %v4539_v44  ;;  %v4766_v46 = vmul.f32 %v10174_v15, %v4591_v40  ;;  %v4456_v1 = vmul.f32 %v4591_v40, %v10087_v18  ;;  %v4457_v12 = vmul.f32 %v4747_v17, %v10087_v18 }
 0x43b   :  { %v4241_v14 = vadd.f32 %v4225_v28, %v4189_v29  ;;  %v4627_v20 = vadd.f32 %v4611_v60, %v4575_v37  ;;  %v3982_v43 = vadd.f32 %v3966_v38, %v3930_v35  ;;  %v4018_v29 = vmul.f32 %v10103_v5, %v10099_v31 }
 0x43c   :  { %v4715_v28 = vmul.f32 %v10171_v54, %v4695_v42  ;;  %v4730_v22 = vadd.f32 %v4714_v55, %v4678_v45  ;;  %v4767_v60 = vmul.f32 %v10174_v15, %v4747_v17  ;;  %v4508_v44 = vmul.f32 %v4643_v21, %v10090_v6 }
 0x43d   :  { %v4260_v52 = vpack.c.bf16 %v4241_v14, %v4240_v36  ;;  %v4679_v34 = vadd.f32 %v4663_v25, %v4627_v20  ;;  %v4818_v5 = vmul.f32 %v10177_v56, %v4643_v21  ;;  %v4509_v25 = vmul.f32 %v4799_v3, %v10090_v6  ;;  %v4851_v36 = vld [vmem:[#allocation2 + $0x32] sm:$0xff] }
 0x43e   :  { %v4782_v11 = vadd.f32 %v4766_v46, %v4730_v22  ;;  %v3931_v35 = vadd.f32 %v3915_v26, %v3879_v59  ;;  %v4034_v37 = vadd.f32 %v4018_v29, %v3982_v43  ;;  %v4524_v14 = vadd.f32 %v4508_v44, %v4456_v1  ;;  %v4593_v44 = vld [vmem:[#allocation2 + $0x40] sm:$0xff] }
 0x43f   :  { %7689 = vmatprep.mubr.msk.bf16.mxu1 %vm43_vm1, %v4260_v52  ;;  %v4731_v33 = vadd.f32 %v4715_v28, %v4679_v34  ;;  %v4560_v38 = vmul.f32 %v4695_v42, %v10115_v62  ;;  %v4819_v45 = vmul.f32 %v10177_v56, %v4799_v3  ;;  %v4525_v55 = vadd.f32 %v4509_v25, %v4457_v12 }
 0x440   :  { %v4834_v40 = vadd.f32 %v4818_v5, %v4782_v11  ;;  %v3967_v34 = vmul.f32 %v10093_v13, %v10125_v58  ;;  %v4070_v21 = vmul.f32 %v10105_v47, %v10121_v4  ;;  %v4612_v26 = vmul.f32 %v4747_v17, %v10150_v2 }
 0x441   :  { %v4783_v20 = vadd.f32 %v4767_v60, %v4731_v33  ;;  %v4576_v28 = vadd.f32 %v4560_v38, %v4524_v14  ;;  %v4870_v29 = vmul.f32 %v10180_v49, %v4695_v42  ;;  %v4871_v22 = vmul.f32 %v10180_v49, %v4851_v36 }
 0x442   :  { %v4561_v46 = vmul.f32 %v4851_v36, %v10115_v62  ;;  %v3983_v1 = vadd.f32 %v3967_v34, %v3931_v35  ;;  %v4122_v12 = vmul.f32 %v10134_v51, %v10125_v58  ;;  %v4664_v33 = vmul.f32 %v4799_v3, %v10153_v53 }
 0x443   :  { %v10240_v52 = vpop.f32.mrb[24].mxu1  ;;  %v4835_v43 = vadd.f32 %v4819_v45, %v4783_v20  ;;  %v4628_v47 = vadd.f32 %v4612_v26, %v4576_v28  ;;  %v4086_v5 = vadd.f32 %v4070_v21, %v4034_v37  ;;  %v4886_v25 = vadd.f32 %v4870_v29, %v4834_v40  ;;  %v4645_v40 = vld [vmem:[#allocation2 + $0x41] sm:$0xff]  ;;  %v4159_v29 = vld [vmem:[#allocation2 + $0x91] sm:$0xff] }
 0x444   :  { %12524 = vst [vmem:[#allocation55_spill] sm:$0xff] %v10240_v52  ;;  %v10247_v59 = vpop.f32.mrb[25].mxu1  ;;  %v4577_v14 = vadd.f32 %v4561_v46, %v4525_v55  ;;  %v3812_v35 = vmul.f32 %v10125_v58, %v10053_v23  ;;  %v4716_v34 = vmul.f32 %v4851_v36, %v10171_v54  ;;  %v3864_v3 = vmul.f32 %v10127_v63, %v10056_v16 }
 0x445   :  { %12525 = vst [vmem:[#allocation58_spill] sm:$0xff] %v10247_v59  ;;  %v10252_v60 = vpop.f32.mrb[26].mxu1  ;;  %v4887_v42 = vadd.f32 %v4871_v22, %v4835_v43  ;;  %v4680_v45 = vadd.f32 %v4664_v33, %v4628_v47  ;;  %v4613_v37 = vmul.f32 %v10150_v2, %v4593_v44  ;;  %v4211_v22 = vld [vmem:[#allocation2 + $0x92] sm:$0xff]  ;;  %v4768_v46 = vmul.f32 %v10174_v15, %v4593_v44 }
 0x446   :  { %12526 = vst [vmem:[#allocation47_spill] sm:$0xff] %v10252_v60  ;;  %v10257_v11 = vpop.f32.mrb[27].mxu1  ;;  %v4138_v33 = vadd.f32 %v4122_v12, %v4086_v5  ;;  %v10281_v12 = vmul.f32 %v10140_v0, %v4211_v22  ;;  %v4820_v5 = vmul.f32 %v10177_v56, %v4645_v40  ;;  %v12536_v60 = vld [vmem:[#allocation16_spill] sm:$0xff] }
 0x447   :  { %v7677_v17 = vpop.f32.mrb[52].mxu0  ;;  %12527 = vst [vmem:[#allocation41_spill] sm:$0xff] %v10257_v11  ;;  %v4906_v11 = vpack.c.bf16 %v4887_v42, %v4886_v25  ;;  %v4732_v58 = vadd.f32 %v4716_v34, %v4680_v45  ;;  %v4019_v34 = vmul.f32 %v10099_v31, %v10127_v63 }
 0x448   :  { %v3714_v38 = vadd.f32 %v7677_v17, %v10050_v7  ;;  %v3705_v20 = vpop.f32.mrb[53].mxu0  ;;  %v4629_v17 = vadd.f32 %v4613_v37, %v4577_v14  ;;  %v10290_v14 = vadd.f32 %v10192_v48, %v10188_v19  ;;  %v3880_v37 = vadd.f32 %v3864_v3, %v3812_v35 }
 0x449   :  { %v3706_v28 = vadd.f32 %v10050_v7, %v3705_v20  ;;  %v7678_v26 = vpop.f32.mrb[54].mxu0  ;;  %7707 = vmatprep.mubr.msk.bf16.mxu0 %vm43_vm1, %v4906_v11  ;;  %v4784_v42 = vadd.f32 %v4768_v46, %v4732_v58  ;;  %v4510_v20 = vmul.f32 %v4645_v40, %v10090_v6  ;;  %v4174_v11 = vmul.f32 %v10137_v39, %v10127_v63 }
 0x44a   :  { %v3762_v55 = vmax.f32 %v3714_v38, 0.0  ;;  %v3717_v21 = vadd.f32 %v7678_v26, %v10050_v7  ;;  %v3708_v43 = vpop.f32.mrb[55].mxu0  ;;  %v4458_v38 = vmul.f32 %v4593_v44, %v10087_v18  ;;  %v4665_v44 = vmul.f32 %v10153_v53, %v4645_v40  ;;  %12528 = vst [vmem:[#allocation44_spill] sm:$0xff] %v10290_v14 }
 0x44b   :  { %v3760_v36 = vmax.f32 %v3706_v28, 0.0  ;;  %v3709_v47 = vadd.f32 %v10050_v7, %v3708_v43  ;;  %v10278_v28 = vmul.f32 %v10137_v39, %v4159_v29  ;;  %v4035_v26 = vadd.f32 %v4019_v34, %v3983_v1 }
 0x44c   :  { %3778 = vst.msk [vmem:[#allocation2 + $0x71] sm:$0xff] %vm43_vm1, %v3762_v55  ;;  %v3763_v25 = vmax.f32 %v3717_v21, 0.0  ;;  %v4697_v55 = vld [vmem:[#allocation2 + $0x42] sm:$0xff]  ;;  %v4530_v21 = vadd.f32 %v10205_v41, %v10195_v10  ;;  %v4566_v43 = vmul.f32 %v10115_v62, %v10168_v61  ;;  %v4190_v63 = vadd.f32 %v4174_v11, %v4138_v33 }
 0x44d   :  { %3776 = vst.msk [vmem:[#allocation2 + $0x51] sm:$0xff] %vm43_vm1, %v3760_v36  ;;  %v3761_v45 = vmax.f32 %v3709_v47, 0.0  ;;  %v4681_v58 = vadd.f32 %v4665_v44, %v4629_v17  ;;  %v4836_v46 = vadd.f32 %v4820_v5, %v4784_v42  ;;  %v4526_v36 = vadd.f32 %v4510_v20, %v4458_v38 }
 0x44e   :  { %3779 = vst.msk [vmem:[#allocation2 + $0x81] sm:$0xff] %vm43_vm1, %v3763_v25  ;;  %v4071_v40 = vmul.f32 %v10121_v4, %v10129_v32  ;;  %v3916_v48 = vmul.f32 %v10129_v32, %v10069_v50  ;;  %v10303_v19 = vmul.f32 %v10174_v15, %v10166_v57  ;;  %v10306_v1 = vmul.f32 %v10177_v56, %v4159_v29 }
 0x44f   :  { %3777 = vst.msk [vmem:[#allocation2 + $0x61] sm:$0xff] %vm43_vm1, %v3761_v45  ;;  %v4226_v41 = vmul.f32 %v10140_v0, %v10129_v32  ;;  %v4717_v61 = vmul.f32 %v10171_v54, %v4697_v55  ;;  %v4872_v10 = vmul.f32 %v10180_v49, %v4697_v55  ;;  %v4562_v35 = vmul.f32 %v4697_v55, %v10115_v62  ;;  %v12533_v45 = vld [vmem:[#allocation13_spill] sm:$0xff]  ;;  %v12534_v55 = vld [vmem:[#allocation14_spill] sm:$0xff] }
 0x450   :  { %12529 = vst [vmem:[#allocation9_spill] sm:$0xff] %v10303_v19  ;;  %12530 = vst [vmem:[#allocation10_spill] sm:$0xff] %v10306_v1  ;;  %v4087_v3 = vadd.f32 %v4071_v40, %v4035_v26  ;;  %v3932_v47 = vadd.f32 %v3916_v48, %v3880_v37  ;;  %v10318_v57 = vmul.f32 %v10180_v49, %v4211_v22 }
 0x451   :  { %v10320_v29 = vadd.f32 %v4566_v43, %v4530_v21  ;;  %v4242_v20 = vadd.f32 %v4226_v41, %v4190_v63  ;;  %v10324_v34 = vadd.f32 %v4717_v61, %v4681_v58  ;;  %v10326_v11 = vadd.f32 %v4872_v10, %v4836_v46  ;;  %v12535_v10 = vld [vmem:[#allocation15_spill] sm:$0xff] }
 0x452   :  { %12531 = vst [vmem:[#allocation11_spill] sm:$0xff] %v10318_v57  ;;  %v10328_v44 = vadd.f32 %v4562_v35, %v4526_v36 }
 0x453   :  { %v4105_v33 = vld [vmem:[#allocation2 + $0x70] sm:$0xff]  ;;  %12532 = vst [vmem:[#allocation12_spill] sm:$0xff] %v10320_v29 }
 0x454   :  { %v10313_v17 = vld [vmem:[#allocation2 + $0x71] sm:$0xff]  ;;  %v10333_v26 = vmul.f32 %v10134_v51, %v4105_v33  ;;  %v3815_v61 = vmul.f32 %v4105_v33, %v10053_v23 }
 0x455   :  { %v10315_v25 = vld [vmem:[#allocation2 + $0x72] sm:$0xff]  ;;  %v10337_v37 = vmul.f32 %v10137_v39, %v10313_v17  ;;  %v3951_v21 = vld [vmem:[#allocation2 + $0x80] sm:$0xff] }
 0x456   :  { %v4103_v42 = vld [vmem:[#allocation2 + $0x50] sm:$0xff]  ;;  %4424 = vst.msk [vmem:[#allocation2 + $0x71] sm:$0xff] %vm43_vm1, %v12533_v45  ;;  %v10341_v43 = vld [vmem:[#allocation2 + $0x81] sm:$0xff]  ;;  %v10349_v41 = vmul.f32 %v10140_v0, %v10315_v25 }
 0x457   :  { %v4155_v32 = vld [vmem:[#allocation2 + $0x51] sm:$0xff]  ;;  %v4123_v5 = vmul.f32 %v10134_v51, %v4103_v42  ;;  %v3813_v22 = vmul.f32 %v4103_v42, %v10053_v23  ;;  %v10343_v63 = vld [vmem:[#allocation2 + $0x82] sm:$0xff]  ;;  %v3968_v36 = vmul.f32 %v4103_v42, %v10093_v13 }
 0x458   :  { %v4207_v38 = vld [vmem:[#allocation2 + $0x52] sm:$0xff]  ;;  %v3865_v58 = vmul.f32 %v4155_v32, %v10056_v16  ;;  %v3949_v46 = vld [vmem:[#allocation2 + $0x60] sm:$0xff]  ;;  %4425 = vst.msk [vmem:[#allocation2 + $0x81] sm:$0xff] %vm43_vm1, %v12535_v10  ;;  %v4175_v45 = vmul.f32 %v10137_v39, %v4155_v32  ;;  %v4020_v57 = vmul.f32 %v4155_v32, %v10099_v31  ;;  %v3919_v32 = vmul.f32 %v10315_v25, %v10069_v50 }
 0x459   :  { %4422 = vst.msk [vmem:[#allocation2 + $0x51] sm:$0xff] %vm43_vm1, %v12534_v55  ;;  %v4001_v40 = vld [vmem:[#allocation2 + $0x61] sm:$0xff]  ;;  %v4139_v35 = vadd.f32 %v4123_v5, %v4087_v3  ;;  %v4227_v55 = vmul.f32 %v10140_v0, %v4207_v38  ;;  %v3917_v59 = vmul.f32 %v4207_v38, %v10069_v50  ;;  %v3969_v52 = vmul.f32 %v10093_v13, %v3949_v46 }
 0x45a   :  { %v4053_v48 = vld [vmem:[#allocation2 + $0x62] sm:$0xff]  ;;  %v3881_v42 = vadd.f32 %v3865_v58, %v3813_v22  ;;  %v3984_v29 = vadd.f32 %v3968_v36, %v3932_v47  ;;  %v4021_v19 = vmul.f32 %v10099_v31, %v4001_v40  ;;  %v4072_v3 = vmul.f32 %v4207_v38, %v10121_v4 }
 0x45b   :  { %4423 = vst.msk [vmem:[#allocation2 + $0x61] sm:$0xff] %vm43_vm1, %v12536_v60  ;;  %v4191_v1 = vadd.f32 %v4175_v45, %v4139_v35  ;;  %v3814_v5 = vmul.f32 %v3949_v46, %v10053_v23  ;;  %v3866_v24 = vmul.f32 %v4001_v40, %v10056_v16  ;;  %v3867_v60 = vmul.f32 %v10313_v17, %v10056_v16 }
 0x45c   :  { %v3933_v10 = vadd.f32 %v3917_v59, %v3881_v42  ;;  %v4036_v8 = vadd.f32 %v4020_v57, %v3984_v29  ;;  %v4124_v58 = vmul.f32 %v10134_v51, %v3949_v46  ;;  %v3918_v47 = vmul.f32 %v4053_v48, %v10069_v50 }
 0x45d   :  { %v4243_v22 = vadd.f32 %v4227_v55, %v4191_v1  ;;  %v3882_v38 = vadd.f32 %v3866_v24, %v3814_v5  ;;  %v3883_v45 = vadd.f32 %v3867_v60, %v3815_v61  ;;  %v4073_v59 = vmul.f32 %v10121_v4, %v4053_v48 }
 0x45e   :  { %v3985_v36 = vadd.f32 %v3969_v52, %v3933_v10  ;;  %v4088_v35 = vadd.f32 %v4072_v3, %v4036_v8  ;;  %v3970_v57 = vmul.f32 %v4105_v33, %v10093_v13  ;;  %v3971_v29 = vmul.f32 %v10093_v13, %v3951_v21 }
 0x45f   :  { %v4261_v27 = vpack.c.bf16 %v4243_v22, %v4242_v20  ;;  %v3934_v55 = vadd.f32 %v3918_v47, %v3882_v38  ;;  %v3935_v46 = vadd.f32 %v3919_v32, %v3883_v45  ;;  %v4176_v14 = vmul.f32 %v10137_v39, %v4001_v40  ;;  %v10383_v5 = vpop.f32.mrb[28].mxu1 }
 0x460   :  { %v4037_v42 = vadd.f32 %v4021_v19, %v3985_v36  ;;  %v4140_v1 = vadd.f32 %v4124_v58, %v4088_v35  ;;  %v4749_v9 = vld [vmem:[#allocation2 + $0x50] sm:$0xff]  ;;  %v4228_v8 = vmul.f32 %v10140_v0, %v4053_v48  ;;  %v4022_v24 = vmul.f32 %v10313_v17, %v10099_v31  ;;  %12537 = vst [vmem:[#allocation13_spill] sm:$0xff] %v10383_v5  ;;  %v10389_v60 = vpop.f32.mrb[29].mxu1 }
 0x461   :  { %7690 = vmatmul.mubr.msk.bf16.vlgmr.msra.gmra.mrb[32].mxu1 %vm43_vm1, %v4261_v27  ;;  %v4023_v52 = vmul.f32 %v10099_v31, %v10341_v43  ;;  %v3986_v20 = vadd.f32 %v3970_v57, %v3934_v55  ;;  %v3987_v61 = vadd.f32 %v3971_v29, %v3935_v46  ;;  %v4074_v19 = vmul.f32 %v10315_v25, %v10121_v4  ;;  %v4801_v3 = vld [vmem:[#allocation2 + $0x51] sm:$0xff] }
 0x462   :  { %v4089_v33 = vadd.f32 %v4073_v59, %v4037_v42  ;;  %v4192_v27 = vadd.f32 %v4176_v14, %v4140_v1  ;;  %v4075_v40 = vmul.f32 %v10121_v4, %v10343_v63  ;;  %v4126_v48 = vmul.f32 %v10134_v51, %v3951_v21  ;;  %v4853_v10 = vld [vmem:[#allocation2 + $0x52] sm:$0xff]  ;;  %12538 = vst [vmem:[#allocation14_spill] sm:$0xff] %v10389_v60  ;;  %v10396_v14 = vpop.f32.mrb[30].mxu1  ;;  %v10406_v57 = vld [vmem:[#allocation2 + $0x60] sm:$0xff] }
 0x463   :  { %v4769_v17 = vmul.f32 %v10174_v15, %v4749_v9  ;;  %v4038_v58 = vadd.f32 %v4022_v24, %v3986_v20  ;;  %v4178_v25 = vmul.f32 %v10137_v39, %v10341_v43  ;;  %v4230_v47 = vmul.f32 %v10140_v0, %v10343_v63  ;;  %12539 = vst [vmem:[#allocation15_spill] sm:$0xff] %v10396_v14  ;;  %v10401_v38 = vpop.f32.mrb[31].mxu1  ;;  %v12550_v60 = vld [vmem:[#allocation44_spill] sm:$0xff] }
 0x464   :  { %v4141_v22 = vadd.f32 %v10333_v26, %v4089_v33  ;;  %v4039_v32 = vadd.f32 %v4023_v52, %v3987_v61  ;;  %v4821_v21 = vmul.f32 %v10177_v56, %v4801_v3  ;;  %v4459_v35 = vmul.f32 %v4749_v9, %v10087_v18  ;;  %12540 = vst [vmem:[#allocation16_spill] sm:$0xff] %v10401_v38  ;;  %v4647_v52 = vld [vmem:[#allocation2 + $0x61] sm:$0xff] }
 0x465   :  { %v4785_v36 = vadd.f32 %v4769_v17, %v10324_v34  ;;  %v4090_v45 = vadd.f32 %v4074_v19, %v4038_v58  ;;  %v4873_v59 = vmul.f32 %v10180_v49, %v4853_v10  ;;  %v4511_v43 = vmul.f32 %v4801_v3, %v10090_v6  ;;  %v4699_v58 = vld [vmem:[#allocation2 + $0x62] sm:$0xff] }
 0x466   :  { %v4193_v26 = vadd.f32 %v10337_v37, %v4141_v22  ;;  %v4244_v63 = vadd.f32 %v4228_v8, %v4192_v27  ;;  %v4091_v29 = vadd.f32 %v4075_v40, %v4039_v32  ;;  %v4563_v34 = vmul.f32 %v4853_v10, %v10115_v62  ;;  %v7681_v8 = vpop.f32.mrb[56].mxu0  ;;  %v12549_v38 = vld [vmem:[#allocation19_spill] sm:$0xff] }
 0x467   :  { %v4837_v42 = vadd.f32 %v4821_v21, %v4785_v36  ;;  %v4142_v55 = vadd.f32 %v4126_v48, %v4090_v45  ;;  %v4527_v46 = vadd.f32 %v4511_v43, %v4459_v35  ;;  %v4614_v24 = vmul.f32 %v4749_v9, %v10150_v2  ;;  %v3721_v48 = vpop.f32.mrb[57].mxu0 }
 0x468   :  { %v4245_v1 = vadd.f32 %v10349_v41, %v4193_v26  ;;  %v4143_v37 = vadd.f32 %v10186_v30, %v4091_v29  ;;  %v4615_v20 = vmul.f32 %v10150_v2, %v10406_v57  ;;  %v4666_v61 = vmul.f32 %v4801_v3, %v10153_v53  ;;  %v7682_v36 = vpop.f32.mrb[58].mxu0 }
 0x469   :  { %v4889_v33 = vadd.f32 %v4873_v59, %v4837_v42  ;;  %v4194_v27 = vadd.f32 %v4178_v25, %v4142_v55  ;;  %v4579_v40 = vadd.f32 %v4563_v34, %v4527_v46  ;;  %v4630_v17 = vadd.f32 %v4614_v24, %v10328_v44  ;;  %v3724_v26 = vpop.f32.mrb[59].mxu0  ;;  %v10426_v59 = vld [vmem:[#allocation2 + $0x130] sm:$0xff] }
 0x46a   :  { %v4262_v19 = vpack.c.bf16 %v4245_v1, %v4244_v63  ;;  %v3730_v41 = vadd.f32 %v7681_v8, %v10050_v7  ;;  %v4195_v9 = vadd.f32 %v10278_v28, %v4143_v37  ;;  %v4667_v30 = vmul.f32 %v10153_v53, %v4647_v52  ;;  %12541 = vst [vmem:[#allocation59_spill] sm:$0xff] %v10426_v59  ;;  %v4803_v42 = vld [vmem:[#allocation2 + $0x71] sm:$0xff] }
 0x46b   :  { %v4907_v22 = vpack.c.bf16 %v4889_v33, %v10326_v11  ;;  %v3722_v32 = vadd.f32 %v10050_v7, %v3721_v48  ;;  %v4246_v3 = vadd.f32 %v4230_v47, %v4194_v27  ;;  %v4631_v25 = vadd.f32 %v4615_v20, %v4579_v40  ;;  %v4751_v11 = vld [vmem:[#allocation2 + $0x70] sm:$0xff] }
 0x46c   :  { %7693 = vmatprep.mubr.msk.bf16.mxu1 %vm43_vm1, %v4262_v19  ;;  %v4682_v21 = vadd.f32 %v4666_v61, %v4630_v17  ;;  %v3766_v35 = vmax.f32 %v3730_v41, 0.0  ;;  %v3733_v44 = vadd.f32 %v7682_v36, %v10050_v7  ;;  %v4247_v45 = vadd.f32 %v10281_v12, %v4195_v9  ;;  %v10430_v34 = vld [vmem:[#allocation2 + $0x131] sm:$0xff] }
 0x46d   :  { %7708 = vmatmul.mubr.msk.bf16.vlgmr.msra.gmra.mrb[64].mxu0 %vm43_vm1, %v4907_v22  ;;  %v4718_v28 = vmul.f32 %v4853_v10, %v10171_v54  ;;  %v3764_v43 = vmax.f32 %v3722_v32, 0.0  ;;  %v3725_v63 = vadd.f32 %v10050_v7, %v3724_v26  ;;  %v4683_v29 = vadd.f32 %v4667_v30, %v4631_v25  ;;  %12542 = vst [vmem:[#allocation60_spill] sm:$0xff] %v10430_v34  ;;  %v10441_v20 = vld [vmem:[#allocation2 + $0x132] sm:$0xff]  ;;  %v10456_v22 = vld [vmem:[#allocation2 + $0x80] sm:$0xff] }
 0x46e   :  { %v4719_v47 = vmul.f32 %v10171_v54, %v4699_v58  ;;  %3782 = vst.msk [vmem:[#allocation2 + $0xd1] sm:$0xff] %vm43_vm1, %v3766_v35  ;;  %v3767_v1 = vmax.f32 %v3733_v44, 0.0  ;;  %v4263_v12 = vpack.c.bf16 %v4247_v45, %v4246_v3  ;;  %v4770_v10 = vmul.f32 %v10174_v15, %v10406_v57  ;;  %12544 = vst [vmem:[#allocation62_spill] sm:$0xff] %v10441_v20  ;;  %v4855_v27 = vld [vmem:[#allocation2 + $0x72] sm:$0xff]  ;;  %v10460_v3 = vld [vmem:[#allocation2 + $0x81] sm:$0xff] }
 0x46f   :  { %v4734_v55 = vadd.f32 %v4718_v28, %v4682_v21  ;;  %3780 = vst.msk [vmem:[#allocation2 + $0xb1] sm:$0xff] %vm43_vm1, %v3764_v43  ;;  %v3765_v46 = vmax.f32 %v3725_v63, 0.0  ;;  %v4771_v37 = vmul.f32 %v10174_v15, %v4751_v11  ;;  %v10439_v33 = vmul.f32 %v10134_v51, %v10426_v59 }
 0x470   :  { %v4735_v24 = vadd.f32 %v4719_v47, %v4683_v29  ;;  %3783 = vst.msk [vmem:[#allocation2 + $0xe1] sm:$0xff] %vm43_vm1, %v3767_v1  ;;  %7694 = vmatmul.mubr.msk.bf16.gmra.mrb[36].mxu1 %vm43_vm1, %v4263_v12  ;;  %v4822_v8 = vmul.f32 %v10177_v56, %v4647_v52  ;;  %v4823_v19 = vmul.f32 %v10177_v56, %v4803_v42 }
 0x471   :  { %12543 = vst [vmem:[#allocation61_spill] sm:$0xff] %v10439_v33  ;;  %v4786_v61 = vadd.f32 %v4770_v10, %v4734_v55  ;;  %v10449_v40 = vmul.f32 %v10137_v39, %v10430_v34  ;;  %3781 = vst.msk [vmem:[#allocation2 + $0xc1] sm:$0xff] %vm43_vm1, %v3765_v46  ;;  %v4460_v41 = vmul.f32 %v10406_v57, %v10087_v18  ;;  %v12551_v34 = vld [vmem:[#allocation20_spill] sm:$0xff] }
 0x472   :  { %v4787_v17 = vadd.f32 %v4771_v37, %v4735_v24  ;;  %v4461_v48 = vmul.f32 %v4751_v11, %v10087_v18  ;;  %v4512_v9 = vmul.f32 %v4647_v52, %v10090_v6  ;;  %v4874_v32 = vmul.f32 %v10180_v49, %v4699_v58  ;;  %v10468_v52 = vld [vmem:[#allocation2 + $0x82] sm:$0xff]  ;;  %v12547_v37 = vld [vmem:[#allocation17_spill] sm:$0xff] }
 0x473   :  { %12545 = vst [vmem:[#allocation63_spill] sm:$0xff] %v10449_v40  ;;  %v4838_v30 = vadd.f32 %v4822_v8, %v4786_v61  ;;  %v4513_v36 = vmul.f32 %v4803_v42, %v10090_v6  ;;  %v10464_v25 = vmul.f32 %v10140_v0, %v10441_v20  ;;  %v4875_v57 = vmul.f32 %v10180_v49, %v4855_v27 }
 0x474   :  { %v4839_v21 = vadd.f32 %v4823_v19, %v4787_v17  ;;  %v4528_v35 = vadd.f32 %v4512_v9, %v4460_v41  ;;  %v4564_v44 = vmul.f32 %v4699_v58, %v10115_v62  ;;  %v10471_v45 = vmul.f32 %v4855_v27, %v10115_v62  ;;  %v12548_v9 = vld [vmem:[#allocation18_spill] sm:$0xff] }
 0x475   :  { %12546 = vst [vmem:[#allocation64_spill] sm:$0xff] %v10464_v25  ;;  %v4890_v26 = vadd.f32 %v4874_v32, %v4838_v30  ;;  %v10474_v28 = vmul.f32 %v4751_v11, %v10150_v2  ;;  %v10478_v43 = vmul.f32 %v10150_v2, %v10456_v22  ;;  %v4109_v63 = vld [vmem:[#allocation2 + $0xd0] sm:$0xff]  ;;  %v10484_v58 = vadd.f32 %v4513_v36, %v4461_v48 }
 0x476   :  { %v10480_v29 = vld [vmem:[#allocation2 + $0xd1] sm:$0xff]  ;;  %v4891_v1 = vadd.f32 %v4875_v57, %v4839_v21  ;;  %v10487_v12 = vmul.f32 %v4803_v42, %v10153_v53  ;;  %v10491_v55 = vmul.f32 %v10153_v53, %v10460_v3  ;;  %v10494_v24 = vmul.f32 %v10134_v51, %v4109_v63 }
 0x477   :  { %v10482_v47 = vld [vmem:[#allocation2 + $0xd2] sm:$0xff]  ;;  %v10498_v61 = vadd.f32 %v4564_v44, %v4528_v35  ;;  %v10501_v8 = vmul.f32 %v4855_v27, %v10171_v54  ;;  %v10505_v42 = vmul.f32 %v10171_v54, %v10468_v52  ;;  %v10512_v48 = vmul.f32 %v10137_v39, %v10480_v29  ;;  %v10516_v30 = vld [vmem:[#allocation2 + $0xe0] sm:$0xff] }
 0x478   :  { %v3797_v11 = vld [vmem:[#allocation2 + $0xb0] sm:$0xff]  ;;  %4428 = vst.msk [vmem:[#allocation2 + $0xd1] sm:$0xff] %vm43_vm1, %v12547_v37  ;;  %v10518_v27 = vld [vmem:[#allocation2 + $0xe1] sm:$0xff]  ;;  %v4908_v44 = vpack.c.bf16 %v4891_v1, %v4890_v26  ;;  %v3871_v37 = vmul.f32 %v10480_v29, %v10056_v16  ;;  %v3923_v40 = vmul.f32 %v10482_v47, %v10069_v50 }
 0x479   :  { %v3849_v10 = vld [vmem:[#allocation2 + $0xb1] sm:$0xff]  ;;  %v3817_v19 = vmul.f32 %v10053_v23, %v3797_v11  ;;  %v3972_v41 = vmul.f32 %v10093_v13, %v3797_v11  ;;  %v10520_v32 = vld [vmem:[#allocation2 + $0xe2] sm:$0xff]  ;;  %v3819_v11 = vmul.f32 %v4109_v63, %v10053_v23 }
 0x47a   :  { %v3901_v46 = vld [vmem:[#allocation2 + $0xb2] sm:$0xff]  ;;  %v3869_v17 = vmul.f32 %v10056_v16, %v3849_v10  ;;  %v3953_v21 = vld [vmem:[#allocation2 + $0xc0] sm:$0xff]  ;;  %4429 = vst.msk [vmem:[#allocation2 + $0xe1] sm:$0xff] %vm43_vm1, %v12549_v38  ;;  %v4024_v5 = vmul.f32 %v10099_v31, %v3849_v10  ;;  %7711 = vmatprep.mubr.msk.bf16.mxu0 %vm43_vm1, %v4908_v44 }
 0x47b   :  { %4426 = vst.msk [vmem:[#allocation2 + $0xb1] sm:$0xff] %vm43_vm1, %v12548_v9  ;;  %v3921_v36 = vmul.f32 %v10069_v50, %v3901_v46  ;;  %v4005_v57 = vld [vmem:[#allocation2 + $0xc1] sm:$0xff]  ;;  %v3988_v14 = vadd.f32 %v3972_v41, %v12550_v60  ;;  %v4076_v20 = vmul.f32 %v10121_v4, %v3901_v46  ;;  %v3973_v26 = vmul.f32 %v10093_v13, %v3953_v21  ;;  %v7685_v46 = vpop.f32.mrb[60].mxu0 }
 0x47c   :  { %v4057_v35 = vld [vmem:[#allocation2 + $0xc2] sm:$0xff]  ;;  %v3885_v9 = vadd.f32 %v3869_v17, %v3817_v19  ;;  %v4025_v1 = vmul.f32 %v10099_v31, %v4005_v57  ;;  %v4128_v25 = vmul.f32 %v10134_v51, %v3953_v21  ;;  %v3818_v60 = vmul.f32 %v3953_v21, %v10053_v23  ;;  %v3737_v54 = vpop.f32.mrb[61].mxu0 }
 0x47d   :  { %4427 = vst.msk [vmem:[#allocation2 + $0xc1] sm:$0xff] %vm43_vm1, %v12551_v34  ;;  %v4077_v59 = vmul.f32 %v10121_v4, %v4057_v35  ;;  %v4040_v19 = vadd.f32 %v4024_v5, %v3988_v14  ;;  %v3870_v10 = vmul.f32 %v4005_v57, %v10056_v16  ;;  %v4180_v17 = vmul.f32 %v10137_v39, %v4005_v57  ;;  %v7686_v14 = vpop.f32.mrb[62].mxu0 }
 0x47e   :  { %v3937_v38 = vadd.f32 %v3921_v36, %v3885_v9  ;;  %v3887_v34 = vadd.f32 %v3871_v37, %v3819_v11  ;;  %v3922_v41 = vmul.f32 %v4057_v35, %v10069_v50  ;;  %v3746_v33 = vadd.f32 %v7685_v46, %v10050_v7  ;;  %v3740_v62 = vpop.f32.mrb[63].mxu0 }
 0x47f   :  { %v4092_v44 = vadd.f32 %v4076_v20, %v4040_v19  ;;  %v3886_v36 = vadd.f32 %v3870_v10, %v3818_v60  ;;  %v3738_v5 = vadd.f32 %v10050_v7, %v3737_v54  ;;  %v3974_v9 = vmul.f32 %v4109_v63, %v10093_v13 }
 0x480   :  { %v3989_v53 = vadd.f32 %v3973_v26, %v3937_v38  ;;  %v3939_v21 = vadd.f32 %v3923_v40, %v3887_v34  ;;  %v3975_v57 = vmul.f32 %v10093_v13, %v10516_v30  ;;  %v3770_v11 = vmax.f32 %v3746_v33, 0.0 }
 0x481   :  { %v3749_v37 = vadd.f32 %v7686_v14, %v10050_v7  ;;  %v4144_v6 = vadd.f32 %v4128_v25, %v4092_v44  ;;  %v3768_v46 = vmax.f32 %v3738_v5, 0.0  ;;  %v3741_v26 = vadd.f32 %v10050_v7, %v3740_v62 }
 0x482   :  { %v4041_v2 = vadd.f32 %v4025_v1, %v3989_v53  ;;  %v3938_v20 = vadd.f32 %v3922_v41, %v3886_v36  ;;  %v3991_v38 = vadd.f32 %v3975_v57, %v3939_v21  ;;  %3786 = vst.msk [vmem:[#allocation2 + $0x111] sm:$0xff] %vm43_vm1, %v3770_v11  ;;  %v4027_v63 = vmul.f32 %v10099_v31, %v10518_v27 }
 0x483   :  { %v3771_v54 = vmax.f32 %v3749_v37, 0.0  ;;  %v4196_v19 = vadd.f32 %v4180_v17, %v4144_v6  ;;  %3784 = vst.msk [vmem:[#allocation2 + $0xf1] sm:$0xff] %vm43_vm1, %v3768_v46  ;;  %v3769_v33 = vmax.f32 %v3741_v26, 0.0  ;;  %v4232_v60 = vmul.f32 %v10140_v0, %v4057_v35 }
 0x484   :  { %v4093_v40 = vadd.f32 %v4077_v59, %v4041_v2  ;;  %v3990_v53 = vadd.f32 %v3974_v9, %v3938_v20  ;;  %v4026_v25 = vmul.f32 %v10480_v29, %v10099_v31  ;;  %v4233_v62 = vmul.f32 %v10140_v0, %v10482_v47 }
 0x485   :  { %3787 = vst.msk [vmem:[#allocation2 + $0x121] sm:$0xff] %vm43_vm1, %v3771_v54  ;;  %v4043_v6 = vadd.f32 %v4027_v63, %v3991_v38  ;;  %v4078_v2 = vmul.f32 %v10482_v47, %v10121_v4  ;;  %3785 = vst.msk [vmem:[#allocation2 + $0x101] sm:$0xff] %vm43_vm1, %v3769_v33  ;;  %v4248_v59 = vadd.f32 %v4232_v60, %v4196_v19  ;;  %v12553_v54 = vld [vmem:[#allocation22_spill] sm:$0xff] }
 0x486   :  { %v4145_v7 = vadd.f32 %v10494_v24, %v4093_v40  ;;  %v4042_v1 = vadd.f32 %v4026_v25, %v3990_v53  ;;  %v4079_v35 = vmul.f32 %v10121_v4, %v10520_v32  ;;  %v4581_v29 = vadd.f32 %v10471_v45, %v10484_v58 }
 0x487   :  { %v4130_v24 = vmul.f32 %v10134_v51, %v10516_v30  ;;  %v4182_v17 = vmul.f32 %v10137_v39, %v10518_v27  ;;  %v4632_v47 = vadd.f32 %v10474_v28, %v10498_v61  ;;  %v4234_v44 = vmul.f32 %v10140_v0, %v10520_v32 }
 0x488   :  { %v4197_v10 = vadd.f32 %v10512_v48, %v4145_v7  ;;  %v4094_v34 = vadd.f32 %v4078_v2, %v4042_v1  ;;  %v4095_v41 = vadd.f32 %v4079_v35, %v4043_v6  ;;  %v4633_v36 = vadd.f32 %v10478_v43, %v4581_v29  ;;  %v12554_v7 = vld [vmem:[#allocation23_spill] sm:$0xff]  ;;  %v12556_v1 = vld [vmem:[#allocation9_spill] sm:$0xff] }
 0x489   :  { %v4684_v45 = vadd.f32 %v10487_v12, %v4632_v47  ;;  %v3820_v58 = vmul.f32 %v10516_v30, %v10053_v23  ;;  %v3872_v48 = vmul.f32 %v10518_v27, %v10056_v16  ;;  %v4772_v28 = vmul.f32 %v10174_v15, %v10456_v22  ;;  %v10589_v9 = vld [vmem:[#allocation2 + $0x110] sm:$0xff]  ;;  %v12552_v22 = vld [vmem:[#allocation21_spill] sm:$0xff] }
 0x48a   :  { %v4249_v5 = vadd.f32 %v4233_v62, %v4197_v10  ;;  %v4146_v14 = vadd.f32 %v4130_v24, %v4094_v34  ;;  %v4685_v21 = vadd.f32 %v10491_v55, %v4633_v36  ;;  %v4824_v61 = vmul.f32 %v10177_v56, %v10460_v3  ;;  %v10591_v43 = vld [vmem:[#allocation2 + $0x111] sm:$0xff] }
 0x48b   :  { %v10593_v12 = vld [vmem:[#allocation2 + $0x112] sm:$0xff]  ;;  %v4736_v27 = vadd.f32 %v10501_v8, %v4684_v45  ;;  %v4876_v55 = vmul.f32 %v10180_v49, %v10468_v52  ;;  %v3888_v46 = vadd.f32 %v3872_v48, %v3820_v58  ;;  %v3924_v38 = vmul.f32 %v10520_v32, %v10069_v50 }
 0x48c   :  { %v4264_v57 = vpack.c.bf16 %v4249_v5, %v4248_v59  ;;  %v4111_v30 = vld [vmem:[#allocation2 + $0xf0] sm:$0xff]  ;;  %4432 = vst.msk [vmem:[#allocation2 + $0x111] sm:$0xff] %vm43_vm1, %v12552_v22  ;;  %v4198_v20 = vadd.f32 %v4182_v17, %v4146_v14  ;;  %v10606_v40 = vld [vmem:[#allocation2 + $0x120] sm:$0xff]  ;;  %v4737_v19 = vadd.f32 %v10505_v42, %v4685_v21 }
 0x48d   :  { %v4163_v11 = vld [vmem:[#allocation2 + $0xf1] sm:$0xff]  ;;  %v4131_v3 = vmul.f32 %v10134_v51, %v4111_v30  ;;  %v10608_v8 = vld [vmem:[#allocation2 + $0x121] sm:$0xff]  ;;  %v4788_v63 = vadd.f32 %v4772_v28, %v4736_v27  ;;  %v3821_v33 = vmul.f32 %v4111_v30, %v10053_v23  ;;  %v3940_v42 = vadd.f32 %v3924_v38, %v3888_v46 }
 0x48e   :  { %v4215_v37 = vld [vmem:[#allocation2 + $0xf2] sm:$0xff]  ;;  %v4183_v26 = vmul.f32 %v10137_v39, %v4163_v11  ;;  %v10610_v52 = vld [vmem:[#allocation2 + $0x122] sm:$0xff]  ;;  %7697 = vmatprep.mubr.msk.bf16.mxu1 %vm43_vm1, %v4264_v57  ;;  %v3873_v60 = vmul.f32 %v4163_v11, %v10056_v16  ;;  %v4789_v35 = vadd.f32 %v12556_v1, %v4737_v19  ;;  %v3976_v24 = vmul.f32 %v4111_v30, %v10093_v13 }
 0x48f   :  { %4430 = vst.msk [vmem:[#allocation2 + $0xf1] sm:$0xff] %vm43_vm1, %v12553_v54  ;;  %v10616_v53 = vld [vmem:[#allocation2 + $0x100] sm:$0xff]  ;;  %4433 = vst.msk [vmem:[#allocation2 + $0x121] sm:$0xff] %vm43_vm1, %v12554_v7  ;;  %v4147_v62 = vadd.f32 %v4131_v3, %v4095_v41  ;;  %v4235_v6 = vmul.f32 %v10140_v0, %v4215_v37  ;;  %v3925_v2 = vmul.f32 %v4215_v37, %v10069_v50  ;;  %v12555_v59 = vld [vmem:[#allocation24_spill] sm:$0xff] }
 0x490   :  { %v10618_v32 = vld [vmem:[#allocation2 + $0x101] sm:$0xff]  ;;  %v4840_v29 = vadd.f32 %v4824_v61, %v4788_v63  ;;  %v3889_v10 = vadd.f32 %v3873_v60, %v3821_v33  ;;  %v4443_v17 = vld [vmem:[#allocation2 + $0xb0] sm:$0xff]  ;;  %v4250_v34 = vadd.f32 %v4234_v44, %v4198_v20  ;;  %v3977_v41 = vmul.f32 %v10093_v13, %v10616_v53 }
 0x491   :  { %v10620_v25 = vld [vmem:[#allocation2 + $0x102] sm:$0xff]  ;;  %v4199_v47 = vadd.f32 %v4183_v26, %v4147_v62  ;;  %v4028_v36 = vmul.f32 %v4163_v11, %v10099_v31  ;;  %v3992_v14 = vadd.f32 %v3976_v24, %v3940_v42  ;;  %v4029_v28 = vmul.f32 %v10099_v31, %v10618_v32  ;;  %v4495_v44 = vld [vmem:[#allocation2 + $0xb1] sm:$0xff] }
 0x492   :  { %4431 = vst.msk [vmem:[#allocation2 + $0x101] sm:$0xff] %vm43_vm1, %v12555_v59  ;;  %v12557_v5 = vld [vmem:[#allocation10_spill] sm:$0xff]  ;;  %v4892_v58 = vadd.f32 %v4876_v55, %v4840_v29  ;;  %v3941_v48 = vadd.f32 %v3925_v2, %v3889_v10  ;;  %v4133_v61 = vmul.f32 %v10134_v51, %v10589_v9  ;;  %v4463_v57 = vmul.f32 %v10087_v18, %v4443_v17  ;;  %v12558_v30 = vld [vmem:[#allocation11_spill] sm:$0xff]  ;;  %v4547_v38 = vld [vmem:[#allocation2 + $0xb2] sm:$0xff] }
 0x493   :  { %v4841_v45 = vadd.f32 %v12557_v5, %v4789_v35  ;;  %v4251_v21 = vadd.f32 %v4235_v6, %v4199_v47  ;;  %v4044_v22 = vadd.f32 %v4028_v36, %v3992_v14  ;;  %v4080_v11 = vmul.f32 %v4215_v37, %v10121_v4  ;;  %v12559_v33 = vld [vmem:[#allocation48_spill] sm:$0xff]  ;;  %v10648_v7 = vld [vmem:[#allocation2 + $0xc0] sm:$0xff]  ;;  %v12561_v10 = vld [vmem:[#allocation51_spill] sm:$0xff] }
 0x494   :  { %v3993_v46 = vadd.f32 %v3977_v41, %v3941_v48  ;;  %v4081_v55 = vmul.f32 %v10121_v4, %v10620_v25  ;;  %v4132_v26 = vmul.f32 %v10134_v51, %v10616_v53  ;;  %v4184_v20 = vmul.f32 %v10137_v39, %v10618_v32  ;;  %v10650_v62 = vld [vmem:[#allocation2 + $0xc1] sm:$0xff]  ;;  %v12562_v36 = vld [vmem:[#allocation12_spill] sm:$0xff] }
 0x495   :  { %v4893_v27 = vadd.f32 %v12558_v30, %v4841_v45  ;;  %v4265_v3 = vpack.c.bf16 %v4251_v21, %v4250_v34  ;;  %v4096_v63 = vadd.f32 %v4080_v11, %v4044_v22  ;;  %v4515_v60 = vmul.f32 %v12559_v33, %v4495_v44  ;;  %v12560_v42 = vld [vmem:[#allocation54_spill] sm:$0xff]  ;;  %v10662_v34 = vld [vmem:[#allocation2 + $0xd0] sm:$0xff]  ;;  %v12563_v45 = vld [vmem:[#allocation53_spill] sm:$0xff] }
 0x496   :  { %v4045_v19 = vadd.f32 %v4029_v28, %v3993_v46  ;;  %v4185_v37 = vmul.f32 %v10137_v39, %v10591_v43  ;;  %v4236_v6 = vmul.f32 %v10140_v0, %v10620_v25  ;;  %v4237_v2 = vmul.f32 %v10140_v0, %v10593_v12  ;;  %v4703_v47 = vld [vmem:[#allocation2 + $0xc2] sm:$0xff]  ;;  %v10670_v48 = vld [vmem:[#allocation2 + $0xd1] sm:$0xff] }
 0x497   :  { %v4909_v54 = vpack.c.bf16 %v4893_v27, %v4892_v58  ;;  %7698 = vmatmul.mubr.msk.bf16.gmra.mrb[40].mxu1 %vm43_vm1, %v4265_v3  ;;  %v4618_v59 = vmul.f32 %v12560_v42, %v4443_v17  ;;  %v4148_v35 = vadd.f32 %v4132_v26, %v4096_v63  ;;  %v4531_v29 = vadd.f32 %v4515_v60, %v4463_v57  ;;  %v12564_v57 = vld [vmem:[#allocation45_spill] sm:$0xff] }
 0x498   :  { %v4097_v1 = vadd.f32 %v4081_v55, %v4045_v19  ;;  %v4567_v24 = vmul.f32 %v12561_v10, %v4547_v38  ;;  %v4619_v41 = vmul.f32 %v12560_v42, %v10648_v7  ;;  %v4670_v58 = vmul.f32 %v12563_v45, %v4495_v44 }
 0x499   :  { %7712 = vmatmul.mubr.msk.bf16.gmra.mrb[68].mxu0 %vm43_vm1, %v4909_v54  ;;  %v4634_v5 = vadd.f32 %v4618_v59, %v12562_v36  ;;  %v4671_v17 = vmul.f32 %v12563_v45, %v10650_v62  ;;  %v4200_v21 = vadd.f32 %v4184_v20, %v4148_v35  ;;  %v4722_v30 = vmul.f32 %v12564_v57, %v4547_v38 }
 0x49a   :  { %v4149_v14 = vadd.f32 %v4133_v61, %v4097_v1  ;;  %v4583_v28 = vadd.f32 %v4567_v24, %v4531_v29  ;;  %v4723_v46 = vmul.f32 %v12564_v57, %v4703_v47  ;;  %v4774_v22 = vmul.f32 %v10174_v15, %v10648_v7 }
 0x49b   :  { %v4686_v27 = vadd.f32 %v4670_v58, %v4634_v5  ;;  %v4775_v11 = vmul.f32 %v10174_v15, %v10662_v34  ;;  %v4826_v55 = vmul.f32 %v10177_v56, %v10650_v62  ;;  %v4827_v61 = vmul.f32 %v10177_v56, %v10670_v48 }
 0x49c   :  { %v4201_v44 = vadd.f32 %v4185_v37, %v4149_v14  ;;  %v4635_v3 = vadd.f32 %v4619_v41, %v4583_v28  ;;  %v3822_v20 = vmul.f32 %v10616_v53, %v10053_v23  ;;  %v3823_v38 = vmul.f32 %v10589_v9, %v10053_v23  ;;  %v4859_v37 = vld [vmem:[#allocation2 + $0xd2] sm:$0xff] }
 0x49d   :  { %v4738_v26 = vadd.f32 %v4722_v30, %v4686_v27  ;;  %v3874_v54 = vmul.f32 %v10618_v32, %v10056_v16  ;;  %v4252_v19 = vadd.f32 %v4236_v6, %v4200_v21  ;;  %v3875_v59 = vmul.f32 %v10591_v43, %v10056_v16 }
 0x49e   :  { %v4253_v63 = vadd.f32 %v4237_v2, %v4201_v44  ;;  %v4687_v60 = vadd.f32 %v4671_v17, %v4635_v3  ;;  %v4878_v35 = vmul.f32 %v10180_v49, %v4703_v47  ;;  %v3926_v53 = vmul.f32 %v10620_v25, %v10069_v50  ;;  %v4601_v3 = vld [vmem:[#allocation2 + $0xe0] sm:$0xff] }
 0x49f   :  { %v4790_v1 = vadd.f32 %v4774_v22, %v4738_v26  ;;  %v3890_v29 = vadd.f32 %v3874_v54, %v3822_v20  ;;  %v3891_v23 = vadd.f32 %v3875_v59, %v3823_v38  ;;  %v3927_v32 = vmul.f32 %v10593_v12, %v10069_v50  ;;  %v4653_v20 = vld [vmem:[#allocation2 + $0xe1] sm:$0xff]  ;;  %v4757_v59 = vld [vmem:[#allocation2 + $0xf0] sm:$0xff] }
 0x4a0   :  { %v4266_v24 = vpack.c.bf16 %v4253_v63, %v4252_v19  ;;  %v4739_v41 = vadd.f32 %v4723_v46, %v4687_v60  ;;  %v4879_v2 = vmul.f32 %v10180_v49, %v4859_v37  ;;  %v3978_v16 = vmul.f32 %v10589_v9, %v10093_v13 }
 0x4a1   :  { %v4842_v6 = vadd.f32 %v4826_v55, %v4790_v1  ;;  %v3942_v36 = vadd.f32 %v3926_v53, %v3890_v29  ;;  %v3943_v58 = vadd.f32 %v3927_v32, %v3891_v23  ;;  %v3979_v25 = vmul.f32 %v10093_v13, %v10606_v40  ;;  %v12565_v1 = vld [vmem:[#allocation61_spill] sm:$0xff]  ;;  %v12566_v23 = vld [vmem:[#allocation63_spill] sm:$0xff] }
 0x4a2   :  { %7701 = vmatprep.mubr.msk.bf16.mxu1 %vm43_vm1, %v4266_v24  ;;  %v4791_v5 = vadd.f32 %v4775_v11, %v4739_v41  ;;  %v4030_v17 = vmul.f32 %v10591_v43, %v10099_v31  ;;  %v4031_v50 = vmul.f32 %v10099_v31, %v10608_v8  ;;  %v4082_v21 = vmul.f32 %v10593_v12, %v10121_v4 }
 0x4a3   :  { %v3994_v14 = vadd.f32 %v3978_v16, %v3942_v36  ;;  %v4083_v9 = vmul.f32 %v10121_v4, %v10610_v52  ;;  %v4894_v30 = vadd.f32 %v4878_v35, %v4842_v6  ;;  %v3995_v27 = vadd.f32 %v3979_v25, %v3943_v58  ;;  %v4809_v16 = vld [vmem:[#allocation2 + $0xf1] sm:$0xff] }
 0x4a4   :  { %v4843_v28 = vadd.f32 %v4827_v61, %v4791_v5  ;;  %v4464_v46 = vmul.f32 %v10648_v7, %v10087_v18  ;;  %v4465_v43 = vmul.f32 %v10662_v34, %v10087_v18  ;;  %v4516_v22 = vmul.f32 %v10650_v62, %v12559_v33  ;;  %v12567_v58 = vld [vmem:[#allocation64_spill] sm:$0xff] }
 0x4a5   :  { %v4046_v13 = vadd.f32 %v4030_v17, %v3994_v14  ;;  %v4517_v31 = vmul.f32 %v10670_v48, %v12559_v33  ;;  %v4047_v11 = vadd.f32 %v4031_v50, %v3995_v27  ;;  %v4134_v4 = vmul.f32 %v10134_v51, %v10606_v40  ;;  %v4861_v17 = vld [vmem:[#allocation2 + $0xf2] sm:$0xff] }
 0x4a6   :  { %v4895_v12 = vadd.f32 %v4879_v2, %v4843_v28  ;;  %v4568_v44 = vmul.f32 %v4703_v47, %v12561_v10  ;;  %v4532_v7 = vadd.f32 %v4516_v22, %v4464_v46  ;;  %v4569_v26 = vmul.f32 %v4859_v37, %v12561_v10  ;;  %v4705_v47 = vld [vmem:[#allocation2 + $0xe2] sm:$0xff] }
 0x4a7   :  { %v4098_v55 = vadd.f32 %v4082_v21, %v4046_v13  ;;  %v4533_v61 = vadd.f32 %v4517_v31, %v4465_v43  ;;  %v4099_v54 = vadd.f32 %v4083_v9, %v4047_v11  ;;  %v4186_v62 = vmul.f32 %v10137_v39, %v10608_v8  ;;  %v4603_v43 = vld [vmem:[#allocation2 + $0x100] sm:$0xff] }
 0x4a8   :  { %v4910_v38 = vpack.c.bf16 %v4895_v12, %v4894_v30  ;;  %v4620_v19 = vmul.f32 %v10662_v34, %v12560_v42  ;;  %v4584_v60 = vadd.f32 %v4568_v44, %v4532_v7  ;;  %v4621_v40 = vmul.f32 %v12560_v42, %v4601_v3  ;;  %v4655_v7 = vld [vmem:[#allocation2 + $0x101] sm:$0xff] }
 0x4a9   :  { %v4150_v63 = vadd.f32 %v4134_v4, %v4098_v55  ;;  %v4585_v51 = vadd.f32 %v4569_v26, %v4533_v61  ;;  %v4151_v35 = vadd.f32 %v12565_v1, %v4099_v54  ;;  %v4238_v29 = vmul.f32 %v10140_v0, %v10610_v52  ;;  %v4707_v54 = vld [vmem:[#allocation2 + $0x102] sm:$0xff] }
 0x4aa   :  { %7715 = vmatprep.mubr.msk.bf16.mxu0 %vm43_vm1, %v4910_v38  ;;  %v4672_v39 = vmul.f32 %v10670_v48, %v12563_v45  ;;  %v4673_v8 = vmul.f32 %v12563_v45, %v4653_v20  ;;  %v4636_v53 = vadd.f32 %v4620_v19, %v4584_v60  ;;  %v4724_v41 = vmul.f32 %v4859_v37, %v12564_v57 }
 0x4ab   :  { %v4202_v34 = vadd.f32 %v4186_v62, %v4150_v63  ;;  %v4637_v24 = vadd.f32 %v4621_v40, %v4585_v51  ;;  %v4203_v32 = vadd.f32 %v12566_v23, %v4151_v35  ;;  %v4725_v6 = vmul.f32 %v12564_v57, %v4705_v47  ;;  %v4759_v63 = vld [vmem:[#allocation2 + $0x110] sm:$0xff] }
 0x4ac   :  { %v4776_v2 = vmul.f32 %v10174_v15, %v4601_v3  ;;  %v4777_v36 = vmul.f32 %v10174_v15, %v4757_v59  ;;  %v4688_v52 = vadd.f32 %v4672_v39, %v4636_v53  ;;  %v4828_v48 = vmul.f32 %v10177_v56, %v4653_v20  ;;  %v4863_v53 = vld [vmem:[#allocation2 + $0x112] sm:$0xff] }
 0x4ad   :  { %v4254_v0 = vadd.f32 %v4238_v29, %v4202_v34  ;;  %v4689_v5 = vadd.f32 %v4673_v8, %v4637_v24  ;;  %v4255_v25 = vadd.f32 %v12567_v58, %v4203_v32  ;;  %v4466_v14 = vmul.f32 %v4601_v3, %v10087_v18 }
 0x4ae   :  { %v4467_v37 = vmul.f32 %v4757_v59, %v10087_v18  ;;  %v4518_v50 = vmul.f32 %v4653_v20, %v12559_v33  ;;  %v4740_v21 = vadd.f32 %v4724_v41, %v4688_v52  ;;  %v4829_v28 = vmul.f32 %v10177_v56, %v4809_v16  ;;  %v4605_v52 = vld [vmem:[#allocation2 + $0x120] sm:$0xff] }
 0x4af   :  { %v4741_v9 = vadd.f32 %v4725_v6, %v4689_v5  ;;  %v4519_v30 = vmul.f32 %v4809_v16, %v12559_v33  ;;  %v4267_v27 = vpack.c.bf16 %v4255_v25, %v4254_v0  ;;  %v4570_v13 = vmul.f32 %v4705_v47, %v12561_v10 }
 0x4b0   :  { %v4534_v46 = vadd.f32 %v4518_v50, %v4466_v14  ;;  %v4622_v22 = vmul.f32 %v4757_v59, %v12560_v42  ;;  %v4792_v31 = vadd.f32 %v4776_v2, %v4740_v21  ;;  %v4571_v4 = vmul.f32 %v4861_v17, %v12561_v10 }
 0x4b1   :  { %v4793_v12 = vadd.f32 %v4777_v36, %v4741_v9  ;;  %v4535_v11 = vadd.f32 %v4519_v30, %v4467_v37  ;;  %7702 = vmatmul.mubr.msk.bf16.gmra.mrb[44].mxu1 %vm43_vm1, %v4267_v27  ;;  %v4880_v44 = vmul.f32 %v10180_v49, %v4705_v47  ;;  %v4881_v3 = vmul.f32 %v10180_v49, %v4861_v17  ;;  %v4811_v47 = vld [vmem:[#allocation2 + $0x111] sm:$0xff]  ;;  %v4657_v37 = vld [vmem:[#allocation2 + $0x121] sm:$0xff] }
 0x4b2   :  { %v4586_v55 = vadd.f32 %v4570_v13, %v4534_v46  ;;  %v4844_v61 = vadd.f32 %v4828_v48, %v4792_v31  ;;  %v4623_v38 = vmul.f32 %v12560_v42, %v4603_v43  ;;  %v4674_v19 = vmul.f32 %v4809_v16, %v12563_v45 }
 0x4b3   :  { %v4845_v26 = vadd.f32 %v4829_v28, %v4793_v12  ;;  %v4587_v20 = vadd.f32 %v4571_v4, %v4535_v11  ;;  %v4675_v59 = vmul.f32 %v12563_v45, %v4655_v7  ;;  %v4726_v35 = vmul.f32 %v4861_v17, %v12564_v57 }
 0x4b4   :  { %v4638_v62 = vadd.f32 %v4622_v22, %v4586_v55  ;;  %v4896_v60 = vadd.f32 %v4880_v44, %v4844_v61  ;;  %v4727_v29 = vmul.f32 %v12564_v57, %v4707_v54  ;;  %v4468_v39 = vmul.f32 %v4603_v43, %v10087_v18  ;;  %v12568_v55 = vld [vmem:[#allocation59_spill] sm:$0xff] }
 0x4b5   :  { %v4897_v51 = vadd.f32 %v4881_v3, %v4845_v26  ;;  %v4639_v40 = vadd.f32 %v4623_v38, %v4587_v20  ;;  %v4469_v24 = vmul.f32 %v4759_v63, %v10087_v18  ;;  %v4520_v41 = vmul.f32 %v4655_v7, %v12559_v33  ;;  %v12569_v38 = vld [vmem:[#allocation60_spill] sm:$0xff] }
 0x4b6   :  { %v4690_v1 = vadd.f32 %v4674_v19, %v4638_v62  ;;  %v4778_v32 = vmul.f32 %v10174_v15, %v4603_v43  ;;  %v4521_v6 = vmul.f32 %v4811_v47, %v12559_v33  ;;  %v4779_v36 = vmul.f32 %v10174_v15, %v4759_v63 }
 0x4b7   :  { %v4911_v8 = vpack.c.bf16 %v4897_v51, %v4896_v60  ;;  %v4691_v34 = vadd.f32 %v4675_v59, %v4639_v40  ;;  %v4536_v16 = vadd.f32 %v4520_v41, %v4468_v39  ;;  %v4572_v0 = vmul.f32 %v4707_v54, %v12561_v10 }
 0x4b8   :  { %v4742_v23 = vadd.f32 %v4726_v35, %v4690_v1  ;;  %v4830_v48 = vmul.f32 %v10177_v56, %v4655_v7  ;;  %v4537_v18 = vadd.f32 %v4521_v6, %v4469_v24  ;;  %v4573_v58 = vmul.f32 %v4863_v53, %v12561_v10  ;;  %v4709_v10 = vld [vmem:[#allocation2 + $0x122] sm:$0xff]  ;;  %v7412_v1 = vld [vmem:[%s12172_s7 + $0x10] sm:$0xf]  ;;  %v7398_v35 = vld [vmem:[%s12175_s10 + $0xc] sm:$0xf]  ;;  %s7871_s7 = smov 8  }
 0x4b9   :  { %7716 = vmatmul.mubr.msk.bf16.gmra.mrb[72].mxu0 %vm43_vm1, %v4911_v8  ;;  %v4743_v2 = vadd.f32 %v4727_v29, %v4691_v34  ;;  %v4831_v17 = vmul.f32 %v10177_v56, %v4811_v47  ;;  %v4588_v14 = vadd.f32 %v4572_v0, %v4536_v16  ;;  %v4624_v33 = vmul.f32 %v4759_v63, %v12560_v42  ;;  %v12570_v63 = vld [vmem:[#allocation62_spill] sm:$0xff]  ;;  %v12573_v0 = vld [vmem:[#allocation27_spill] sm:$0xff] }
 0x4ba   :  { %v4794_v5 = vadd.f32 %v4778_v32, %v4742_v23  ;;  %v4882_v21 = vmul.f32 %v10180_v49, %v4707_v54  ;;  %v4589_v9 = vadd.f32 %v4573_v58, %v4537_v18  ;;  %v4625_v28 = vmul.f32 %v12560_v42, %v4605_v52  ;;  %7835 = vmatprep.subr.msk.bf16.mxu0 %vm205_vm0, %v7412_v1  ;;  %v10799_v29 = vld [vmem:[%s12176_s11 + $0x2] ss:$0 sm:$0xff]  ;;  %v12571_v32 = vld [vmem:[#allocation25_spill] sm:$0xff]  ;;  %v7395_v18 = vld [vmem:[%s12174_s9 + $0x24] sm:$0x7] }
 0x4bb   :  { %v4795_v25 = vadd.f32 %v4779_v36, %v4743_v2  ;;  %v4883_v27 = vmul.f32 %v10180_v49, %v4863_v53  ;;  %v4640_v46 = vadd.f32 %v4624_v33, %v4588_v14  ;;  %v4676_v13 = vmul.f32 %v4811_v47, %v12563_v45  ;;  %7834 = vmatprep.subr.msk.bf16.mxu1 %vm205_vm0, %v7398_v35  ;;  %v12572_v36 = vld [vmem:[#allocation26_spill] sm:$0xff]  ;;  %v7409_v14 = vld [vmem:[%s12171_s6 + $0x30] sm:$0x7] }
 0x4bc   :  { %v4846_v50 = vadd.f32 %v4830_v48, %v4794_v5  ;;  %v4641_v43 = vadd.f32 %v4625_v28, %v4589_v9  ;;  %v4677_v22 = vmul.f32 %v12563_v45, %v4657_v37  ;;  %v4728_v4 = vmul.f32 %v4863_v53, %v12564_v57  ;;  %v12574_v5 = vld [vmem:[#allocation28_spill] sm:$0xff]  ;;  %v10818_v58 = vld [vmem:[%s12173_s8 + $0x3] ss:$0 sm:$0xff] }
 0x4bd   :  { %v4847_v30 = vadd.f32 %v4831_v17, %v4795_v25  ;;  %v4692_v11 = vadd.f32 %v4676_v13, %v4640_v46  ;;  %v4729_v3 = vmul.f32 %v12564_v57, %v4709_v10  ;;  %v4781_v42 = vmul.f32 %v10174_v15, %v12568_v55  ;;  %v12575_v25 = vld [vmem:[#allocation6_spill] sm:$0xff]  ;;  %v12579_v55 = vld [vmem:[#allocation8_spill] sm:$0xff] }
 0x4be   :  { %v4898_v31 = vadd.f32 %v4882_v21, %v4846_v50  ;;  %v4693_v44 = vadd.f32 %v4677_v22, %v4641_v43  ;;  %v4780_v26 = vmul.f32 %v10174_v15, %v4605_v52  ;;  %v4833_v54 = vmul.f32 %v10177_v56, %v12569_v38  ;;  %v12576_v50 = vld [vmem:[#allocation7_spill] sm:$0xff] }
 0x4bf   :  { %v4899_v12 = vadd.f32 %v4883_v27, %v4847_v30  ;;  %v4744_v61 = vadd.f32 %v4728_v4, %v4692_v11  ;;  %v4832_v62 = vmul.f32 %v10177_v56, %v4657_v37  ;;  %v4885_v57 = vmul.f32 %v10180_v49, %v12570_v63  ;;  %v5080_v37 = vld [vmem:[#allocation2] sm:$0xff]  ;;  %v12581_v63 = vld [vmem:[#allocation29_spill] sm:$0xff] }
 0x4c0   :  { %v4745_v20 = vadd.f32 %v4729_v3, %v4693_v44  ;;  %v4884_v51 = vmul.f32 %v10180_v49, %v4709_v10  ;;  %v6237_v56 = vsel %vm205_vm0, %v7412_v1, 0  ;;  %v5591_v49 = vsel %vm205_vm0, %v7398_v35, 0  ;;  %v5132_v30 = vld [vmem:[#allocation2 + $0x1] sm:$0xff] }
 0x4c1   :  { %v4912_v7 = vpack.c.bf16 %v4899_v12, %v4898_v31  ;;  %v4796_v45 = vadd.f32 %v4780_v26, %v4744_v61  ;;  %7742 = vmatpush3.bf16.msra.mxu0 %v6237_v56  ;;  %7724 = vmatpush3.bf16.msra.mxu1 %v5591_v49  ;;  %v10822_v17 = vrot.slane %v7395_v18, %v12575_v25  ;;  %v12583_v56 = vld [vmem:[#allocation31_spill] sm:$0xff] }
 0x4c2   :  { %v4797_v19 = vadd.f32 %v4781_v42, %v4745_v20  ;;  %v10828_v21 = vrot.slane %v7395_v18, %v12576_v50  ;;  %v10833_v13 = vrot.slane %v7409_v14, %v12575_v25  ;;  %v10836_v10 = vrot.slane %v7409_v14, %v12576_v50  ;;  %v5184_v20 = vld [vmem:[#allocation2 + $0x2] sm:$0xff] }
 0x4c3   :  { %7719 = vmatprep.mubr.msk.bf16.mxu0 %vm43_vm1, %v4912_v7  ;;  %v4848_v60 = vadd.f32 %v4832_v62, %v4796_v45  ;;  %v5100_v12 = vmul.f32 %v10822_v17, %v5080_v37  ;;  %v10843_v42 = vrot.slane %v7395_v18, %v12579_v55  ;;  %v7396_v45 = vld [vmem:[%s12174_s9 + $0x28] sm:$0x7] }
 0x4c4   :  { %v4849_v40 = vadd.f32 %v4833_v54, %v4797_v19  ;;  %12577 = vst [vmem:[#allocation17_spill] sm:$0xff] %v10833_v13  ;;  %12578 = vst [vmem:[#allocation18_spill] sm:$0xff] %v10836_v10  ;;  %v5152_v3 = vmul.f32 %v10828_v21, %v5132_v30  ;;  %v5746_v62 = vmul.f32 %v10833_v13, %v5080_v37  ;;  %v10895_v37 = vld [vmem:[#allocation2 + $0x91] sm:$0xff] }
 0x4c5   :  { %v4900_v59 = vadd.f32 %v4884_v51, %v4848_v60  ;;  %12580 = vst [vmem:[#allocation19_spill] sm:$0xff] %v10843_v42  ;;  %v5798_v19 = vmul.f32 %v10836_v10, %v5132_v30  ;;  %v5204_v1 = vmul.f32 %v10843_v42, %v5184_v20 }
 0x4c6   :  { %v4901_v47 = vadd.f32 %v4885_v57, %v4849_v40 }
 0x4c7   :  { %v5814_v18 = vadd.f32 %v5798_v19, %v5746_v62  ;;  %v12589_v62 = vmax.f32 %v12572_v36, 0.0 }
 0x4c8   :  { %v4913_v15 = vpack.c.bf16 %v4901_v47, %v4900_v59  ;;  %v7397_v59 = vld [vmem:[%s12174_s9 + $0x2c] sm:$0x7]  ;;  %v10861_v47 = vrot.slane %v7409_v14, %v12579_v55 }
 0x4ca   :  { %7720 = vmatmul.mubr.msk.bf16.gmra.mrb[76].mxu0 %vm43_vm1, %v4913_v15  ;;  %12582 = vst [vmem:[#allocation44_spill] sm:$0xff] %v10861_v47  ;;  %v5168_v15 = vadd.f32 %v5152_v3, %v5100_v12  ;;  %v5850_v14 = vmul.f32 %v10861_v47, %v5184_v20  ;;  %v12587_v12 = vld [vmem:[#allocation32_spill] sm:$0xff] }
 0x534   :  { %v7691_v39 = vpop.f32.mrb[32].mxu1 }
 0x535   :  { %v4344_v8 = vadd.f32 %v7691_v39, %v10799_v29  ;;  %v4335_v34 = vpop.f32.mrb[33].mxu1  ;;  %v10869_v39 = vrot.slane %v7396_v45, %v12575_v25 }
 0x536   :  { %v4336_v53 = vadd.f32 %v10799_v29, %v4335_v34  ;;  %v7692_v24 = vpop.f32.mrb[34].mxu1  ;;  %v10875_v34 = vrot.slane %v7396_v45, %v12576_v50 }
 0x537   :  { %v4347_v41 = vadd.f32 %v7692_v24, %v10799_v29  ;;  %v4338_v23 = vpop.f32.mrb[35].mxu1  ;;  %v4400_v6 = vadd.f32 %v4344_v8, %v12571_v32  ;;  %v7410_v8 = vld [vmem:[%s12171_s6 + $0x34] sm:$0x7]  ;;  %v10881_v24 = vrot.slane %v7397_v59, %v12575_v25 }
 0x538   :  { %v4339_v2 = vadd.f32 %v10799_v29, %v4338_v23  ;;  %v4398_v16 = vadd.f32 %v4336_v53, %v12572_v36  ;;  %v10878_v53 = vrot.slane %v7396_v45, %v12579_v55  ;;  %v7411_v23 = vld [vmem:[%s12171_s6 + $0x38] sm:$0x7] }
 0x539   :  { %7018 = vrot.lane.b32.xlu1 %v4400_v6, %s7871_s7  ;;  %v4401_v52 = vadd.f32 %v4347_v41, %v12573_v0  ;;  %v10884_v41 = vrot.slane %v7397_v59, %v12576_v50  ;;  %v5088_v6 = vld [vmem:[#allocation2 + $0xa0] sm:$0xff] }
 0x53a   :  { %7014 = vrot.lane.b32.xlu0 %v4398_v16, %s7871_s7  ;;  %v4399_v48 = vadd.f32 %v4339_v2, %v12574_v5  ;;  %v5140_v2 = vld [vmem:[#allocation2 + $0xa1] sm:$0xff] }
 0x53b   :  { %v12584_v16 = vld [vmem:[#allocation30_spill] sm:$0xff]  ;;  %v5160_v20 = vmul.f32 %v10828_v21, %v5140_v2 }
 0x53d   :  { %7020 = vrot.lane.b32.xlu1 %v4401_v52, %s7871_s7 }
 0x53e   :  { %7016 = vrot.lane.b32.xlu0 %v4399_v48, %s7871_s7  ;;  %v10892_v48 = vrot.slane %v7397_v59, %v12579_v55 }
 0x540   :  { %v7709_v33 = vpop.f32.mrb[64].mxu0 }
 0x541   :  { %v4990_v9 = vadd.f32 %v7709_v33, %v10818_v58  ;;  %v4981_v28 = vpop.f32.mrb[65].mxu0  ;;  %v5399_v33 = vld [vmem:[#allocation2 + $0x90] sm:$0xff] }
 0x542   :  { %v4982_v27 = vadd.f32 %v10818_v58, %v4981_v28  ;;  %v7710_v46 = vpop.f32.mrb[66].mxu0 }
 0x543   :  { %v5050_v43 = vmax.f32 %v4990_v9, 0.0  ;;  %v4993_v22 = vadd.f32 %v7710_v46, %v10818_v58  ;;  %v4984_v31 = vpop.f32.mrb[67].mxu0  ;;  %v7695_v11 = vpop.f32.mrb[36].mxu1  ;;  %v5220_v9 = vadd.f32 %v5204_v1, %v5168_v15  ;;  %v10904_v46 = vrot.slane %v7410_v8, %v12575_v25 }
 0x544   :  { %v5048_v4 = vmax.f32 %v4982_v27, 0.0  ;;  %v4985_v44 = vadd.f32 %v10818_v58, %v4984_v31  ;;  %v4360_v7 = vadd.f32 %v7695_v11, %v10799_v29  ;;  %v4351_v61 = vpop.f32.mrb[37].mxu1  ;;  %v10912_v31 = vld [vmem:[#allocation2 + $0xa2] sm:$0xff]  ;;  %v12590_v1 = vmax.f32 %v12573_v0, 0.0 }
 0x545   :  { %5066 = vst.msk [vmem:[#allocation2 + $0x31] sm:$0xff] %vm43_vm1, %v5050_v43  ;;  %v5051_v26 = vmax.f32 %v4993_v22, 0.0  ;;  %v7696_v38 = vpop.f32.mrb[38].mxu1  ;;  %v4352_v60 = vadd.f32 %v10799_v29, %v4351_v61  ;;  %12585 = vst [vmem:[#allocation20_spill] sm:$0xff] %v10904_v46  ;;  %v10907_v43 = vrot.slane %v7410_v8, %v12576_v50  ;;  %v10910_v22 = vrot.slane %v7410_v8, %v12579_v55 }
 0x546   :  { %5064 = vst.msk [vmem:[#allocation2 + $0x11] sm:$0xff] %vm43_vm1, %v5048_v4  ;;  %v5049_v54 = vmax.f32 %v4985_v44, 0.0  ;;  %v4404_v57 = vadd.f32 %v4360_v7, %v12581_v63  ;;  %v4363_v51 = vadd.f32 %v7696_v38, %v10799_v29  ;;  %v4354_v40 = vpop.f32.mrb[39].mxu1  ;;  %v12588_v7 = vmax.f32 %v12571_v32, 0.0 }
 0x547   :  { %5067 = vst.msk [vmem:[#allocation2 + $0x41] sm:$0xff] %vm43_vm1, %v5051_v26  ;;  %v4355_v49 = vadd.f32 %v10799_v29, %v4354_v40  ;;  %v4402_v52 = vadd.f32 %v4352_v60, %v12584_v16  ;;  %12586 = vst [vmem:[#allocation21_spill] sm:$0xff] %v10907_v43  ;;  %v10920_v61 = vrot.slane %v7411_v23, %v12575_v25 }
 0x548   :  { %5065 = vst.msk [vmem:[#allocation2 + $0x21] sm:$0xff] %vm43_vm1, %v5049_v54  ;;  %v4405_v35 = vadd.f32 %v4363_v51, %v12583_v56  ;;  %7026 = vrot.lane.b32.xlu0 %v4404_v57, %s7871_s7  ;;  %v5108_v26 = vmul.f32 %v10822_v17, %v5088_v6  ;;  %v10937_v51 = vrot.slane %v7411_v23, %v12576_v50 }
 0x549   :  { %v4403_v11 = vadd.f32 %v4355_v49, %v12587_v12  ;;  %v10946_v49 = vrot.slane %v7411_v23, %v12579_v55  ;;  %v10949_v8 = vmul.f32 %v10881_v24, %v5399_v33  ;;  %v5212_v55 = vmul.f32 %v10843_v42, %v10912_v31 }
 0x54a   :  { %7028 = vrot.lane.b32.xlu1 %v4405_v35, %s7871_s7  ;;  %v10943_v35 = vadd.f32 %v5850_v14, %v5814_v18  ;;  %v5176_v14 = vadd.f32 %v5160_v20, %v5108_v26  ;;  %v10981_v36 = vmul.f32 %v10920_v61, %v5399_v33 }
 0x54c   :  { %v10897_v28 = vld [vmem:[#allocation2 + $0x30] sm:$0xff]  ;;  %7022 = vrot.lane.b32.xlu0 %v4402_v52, %s7871_s7  ;;  %v10953_v52 = vmul.f32 %v10884_v41, %v10895_v37  ;;  %12595 = vst [vmem:[#allocation9_spill] sm:$0xff] %v10981_v36 }
 0x54d   :  { %v10899_v30 = vld [vmem:[#allocation2 + $0x31] sm:$0xff] }
 0x54e   :  { %v10901_v27 = vld [vmem:[#allocation2 + $0x32] sm:$0xff]  ;;  %v10930_v19 = vld [vmem:[#allocation2 + $0x40] sm:$0xff]  ;;  %7024 = vrot.lane.b32.xlu1 %v4403_v11, %s7871_s7  ;;  %12591 = vst [vmem:[#allocation22_spill] sm:$0xff] %v10953_v52 }
 0x54f   :  { %v5081_v4 = vld [vmem:[#allocation2 + $0x10] sm:$0xff]  ;;  %5712 = vst.msk [vmem:[#allocation2 + $0x31] sm:$0xff] %vm43_vm1, %v12588_v7  ;;  %v10932_v57 = vld [vmem:[#allocation2 + $0x41] sm:$0xff] }
 0x550   :  { %v5133_v44 = vld [vmem:[#allocation2 + $0x11] sm:$0xff]  ;;  %v5101_v38 = vmul.f32 %v10822_v17, %v5081_v4  ;;  %v5256_v45 = vmul.f32 %v10869_v39, %v5081_v4  ;;  %v10934_v60 = vld [vmem:[#allocation2 + $0x42] sm:$0xff] }
 0x551   :  { %v5185_v3 = vld [vmem:[#allocation2 + $0x12] sm:$0xff]  ;;  %v5153_v54 = vmul.f32 %v10828_v21, %v5133_v44  ;;  %v5237_v40 = vld [vmem:[#allocation2 + $0x20] sm:$0xff]  ;;  %5713 = vst.msk [vmem:[#allocation2 + $0x41] sm:$0xff] %vm43_vm1, %v12590_v1  ;;  %v12592_v1 = vmax.f32 %v12574_v5, 0.0 }
 0x552   :  { %5710 = vst.msk [vmem:[#allocation2 + $0x11] sm:$0xff] %vm43_vm1, %v12589_v62  ;;  %v5289_v59 = vld [vmem:[#allocation2 + $0x21] sm:$0xff]  ;;  %v5205_v4 = vmul.f32 %v10843_v42, %v5185_v3  ;;  %v5272_v7 = vadd.f32 %v5256_v45, %v5220_v9  ;;  %v5308_v62 = vmul.f32 %v10875_v34, %v5133_v44  ;;  %v5257_v23 = vmul.f32 %v10869_v39, %v5237_v40 }
 0x553   :  { %v5341_v15 = vld [vmem:[#allocation2 + $0x22] sm:$0xff]  ;;  %v5169_v11 = vadd.f32 %v5153_v54, %v5101_v38  ;;  %v5360_v18 = vmul.f32 %v10878_v53, %v5185_v3  ;;  %v5102_v38 = vmul.f32 %v5237_v40, %v10822_v17  ;;  %v5154_v9 = vmul.f32 %v5289_v59, %v10828_v21  ;;  %v10966_v54 = vld [vmem:[#allocation2 + $0x92] sm:$0xff] }
 0x554   :  { %5711 = vst.msk [vmem:[#allocation2 + $0x21] sm:$0xff] %vm43_vm1, %v12592_v1  ;;  %v5324_v25 = vadd.f32 %v5308_v62, %v5272_v7  ;;  %v5309_v44 = vmul.f32 %v10875_v34, %v5289_v59  ;;  %v5412_v45 = vmul.f32 %v10881_v24, %v5237_v40  ;;  %v5754_v1 = vmul.f32 %v10833_v13, %v5088_v6 }
 0x555   :  { %v5221_v50 = vadd.f32 %v5205_v4, %v5169_v11  ;;  %v5806_v3 = vmul.f32 %v10836_v10, %v5140_v2  ;;  %v5170_v5 = vadd.f32 %v5154_v9, %v5102_v38  ;;  %v5206_v11 = vmul.f32 %v5341_v15, %v10843_v42 }
 0x556   :  { %v5376_v20 = vadd.f32 %v5360_v18, %v5324_v25  ;;  %v5361_v4 = vmul.f32 %v10878_v53, %v5341_v15  ;;  %v10976_v7 = vmul.f32 %v10892_v48, %v10966_v54  ;;  %v10978_v62 = vadd.f32 %v5212_v55, %v5176_v14 }
 0x557   :  { %v5273_v26 = vadd.f32 %v5257_v23, %v5221_v50  ;;  %v5222_v0 = vadd.f32 %v5206_v11, %v5170_v5  ;;  %v5258_v25 = vmul.f32 %v10897_v28, %v10869_v39  ;;  %v5413_v23 = vmul.f32 %v10881_v24, %v10897_v28 }
 0x558   :  { %12593 = vst [vmem:[#allocation23_spill] sm:$0xff] %v10976_v7  ;;  %12594 = vst [vmem:[#allocation24_spill] sm:$0xff] %v10978_v62  ;;  %v5428_v6 = vadd.f32 %v5412_v45, %v5376_v20  ;;  %v5103_v18 = vmul.f32 %v10897_v28, %v10822_v17  ;;  %v10991_v55 = vmul.f32 %v10937_v51, %v10895_v37 }
 0x559   :  { %v5325_v40 = vadd.f32 %v5309_v44, %v5273_v26  ;;  %v5727_v50 = vld [vmem:[#allocation2 + $0x10] sm:$0xff]  ;;  %v10993_v33 = vadd.f32 %v5806_v3, %v5754_v1  ;;  %v5464_v5 = vmul.f32 %v10884_v41, %v5289_v59  ;;  %v5155_v38 = vmul.f32 %v10899_v30, %v10828_v21 }
 0x55a   :  { %v5779_v2 = vld [vmem:[#allocation2 + $0x11] sm:$0xff]  ;;  %12596 = vst [vmem:[#allocation10_spill] sm:$0xff] %v10991_v55  ;;  %v5274_v9 = vadd.f32 %v5258_v25, %v5222_v0  ;;  %v5465_v45 = vmul.f32 %v10884_v41, %v10899_v30  ;;  %v5747_v26 = vmul.f32 %v10833_v13, %v5727_v50  ;;  %v11004_v37 = vmul.f32 %v10861_v47, %v10912_v31 }
 0x55b   :  { %v5377_v14 = vadd.f32 %v5361_v4, %v5325_v40  ;;  %v5831_v44 = vld [vmem:[#allocation2 + $0x12] sm:$0xff]  ;;  %v5799_v28 = vmul.f32 %v10836_v10, %v5779_v2  ;;  %v5480_v3 = vadd.f32 %v5464_v5, %v5428_v6  ;;  %v5517_v59 = vmul.f32 %v10892_v48, %v10901_v27  ;;  %v5883_v20 = vld [vmem:[#allocation2 + $0x20] sm:$0xff] }
 0x55c   :  { %v5310_v0 = vmul.f32 %v10899_v30, %v10875_v34  ;;  %v5207_v11 = vmul.f32 %v10901_v27, %v10843_v42  ;;  %v5851_v40 = vmul.f32 %v10861_v47, %v5831_v44  ;;  %v5902_v25 = vmul.f32 %v10904_v46, %v5727_v50 }
 0x55d   :  { %v5429_v1 = vadd.f32 %v5413_v23, %v5377_v14  ;;  %v5815_v4 = vadd.f32 %v5799_v28, %v5747_v26  ;;  %v5516_v31 = vmul.f32 %v10892_v48, %v5341_v15  ;;  %v5171_v23 = vadd.f32 %v5155_v38, %v5103_v18  ;;  %v5935_v14 = vld [vmem:[#allocation2 + $0x21] sm:$0xff]  ;;  %v6039_v28 = vld [vmem:[#allocation2 + $0x30] sm:$0xff] }
 0x55e   :  { %v5326_v6 = vadd.f32 %v5310_v0, %v5274_v9  ;;  %v5903_v55 = vmul.f32 %v10904_v46, %v5883_v20  ;;  %v5918_v30 = vadd.f32 %v5902_v25, %v10943_v35  ;;  %v5954_v36 = vmul.f32 %v10907_v43, %v5779_v2  ;;  %v6091_v2 = vld [vmem:[#allocation2 + $0x31] sm:$0xff] }
 0x55f   :  { %v5481_v32 = vadd.f32 %v5465_v45, %v5429_v1  ;;  %v5867_v5 = vadd.f32 %v5851_v40, %v5815_v4  ;;  %v5532_v62 = vadd.f32 %v5516_v31, %v5480_v3  ;;  %v5259_v26 = vmul.f32 %v10869_v39, %v10930_v19  ;;  %v5987_v45 = vld [vmem:[#allocation2 + $0x22] sm:$0xff]  ;;  %v6143_v25 = vld [vmem:[#allocation2 + $0x32] sm:$0xff] }
 0x560   :  { %v5362_v50 = vmul.f32 %v10901_v27, %v10878_v53  ;;  %v5955_v18 = vmul.f32 %v10907_v43, %v5935_v14  ;;  %v5970_v38 = vadd.f32 %v5954_v36, %v5918_v30  ;;  %v6006_v9 = vmul.f32 %v10910_v22, %v5831_v44 }
 0x561   :  { %v5533_v7 = vadd.f32 %v5517_v59, %v5481_v32  ;;  %v5919_v15 = vadd.f32 %v5903_v55, %v5867_v5  ;;  %v5223_v35 = vadd.f32 %v5207_v11, %v5171_v23  ;;  %v5414_v32 = vmul.f32 %v10881_v24, %v10930_v19 }
 0x562   :  { %v5378_v0 = vadd.f32 %v5362_v50, %v5326_v6  ;;  %v6007_v59 = vmul.f32 %v10910_v22, %v5987_v45  ;;  %v6022_v4 = vadd.f32 %v6006_v9, %v5970_v38  ;;  %v6058_v27 = vmul.f32 %v10920_v61, %v5883_v20  ;;  %v5885_v38 = vld [vmem:[#allocation2 + $0x40] sm:$0xff] }
 0x563   :  { %v5552_v1 = vpack.c.bf16 %v5533_v7, %v5532_v62  ;;  %v5971_v3 = vadd.f32 %v5955_v18, %v5919_v15  ;;  %v6059_v36 = vmul.f32 %v10920_v61, %v6039_v28  ;;  %v5748_v55 = vmul.f32 %v5883_v20, %v10833_v13 }
 0x564   :  { %v5749_v7 = vmul.f32 %v6039_v28, %v10833_v13  ;;  %v5800_v62 = vmul.f32 %v5935_v14, %v10836_v10  ;;  %v6074_v11 = vadd.f32 %v6058_v27, %v6022_v4  ;;  %v6110_v40 = vmul.f32 %v10937_v51, %v5935_v14 }
 0x565   :  { %7725 = vmatprep.mubr.msk.bf16.mxu1 %vm43_vm1, %v5552_v1  ;;  %v6023_v44 = vadd.f32 %v6007_v59, %v5971_v3  ;;  %v5801_v31 = vmul.f32 %v6091_v2, %v10836_v10  ;;  %v11035_v23 = vadd.f32 %v5259_v26, %v5223_v35  ;;  %v11039_v6 = vmul.f32 %v10930_v19, %v10822_v17 }
 0x566   :  { %v5816_v5 = vadd.f32 %v5800_v62, %v5748_v55  ;;  %v5852_v20 = vmul.f32 %v5987_v45, %v10861_v47  ;;  %v6111_v50 = vmul.f32 %v10937_v51, %v6091_v2  ;;  %v6126_v15 = vadd.f32 %v6110_v40, %v6074_v11 }
 0x567   :  { %v6075_v30 = vadd.f32 %v6059_v36, %v6023_v44  ;;  %v5817_v18 = vadd.f32 %v5801_v31, %v5749_v7  ;;  %v5156_v14 = vmul.f32 %v10932_v57, %v10828_v21  ;;  %v5853_v9 = vmul.f32 %v6143_v25, %v10861_v47 }
 0x568   :  { %v5868_v26 = vadd.f32 %v5852_v20, %v5816_v5  ;;  %v5904_v1 = vmul.f32 %v6039_v28, %v10904_v46  ;;  %v5430_v35 = vadd.f32 %v5414_v32, %v5378_v0  ;;  %v6162_v3 = vmul.f32 %v10946_v49, %v5987_v45  ;;  %v5937_v28 = vld [vmem:[#allocation2 + $0x41] sm:$0xff] }
 0x569   :  { %v6127_v19 = vadd.f32 %v6111_v50, %v6075_v30  ;;  %v6163_v59 = vmul.f32 %v10946_v49, %v6143_v25  ;;  %v5869_v27 = vadd.f32 %v5853_v9, %v5817_v18  ;;  %v5905_v36 = vmul.f32 %v10904_v46, %v5885_v38  ;;  %v12597_v18 = vld [vmem:[#allocation33_spill] sm:$0xff] }
 0x56a   :  { %v7699_v4 = vpop.f32.mrb[40].mxu1  ;;  %v5920_v55 = vadd.f32 %v5904_v1, %v5868_v26  ;;  %v5956_v7 = vmul.f32 %v6091_v2, %v10907_v43  ;;  %v6178_v40 = vadd.f32 %v6162_v3, %v6126_v15  ;;  %v6008_v0 = vmul.f32 %v6143_v25, %v10910_v22 }
 0x56b   :  { %v4376_v62 = vadd.f32 %v7699_v4, %v10799_v29  ;;  %v4367_v11 = vpop.f32.mrb[41].mxu1  ;;  %v6179_v31 = vadd.f32 %v6163_v59, %v6127_v19  ;;  %v5750_v50 = vmul.f32 %v5885_v38, %v10833_v13  ;;  %v5921_v4 = vadd.f32 %v5905_v36, %v5869_v27 }
 0x56c   :  { %v7713_v44 = vpop.f32.mrb[68].mxu0  ;;  %v4368_v32 = vadd.f32 %v10799_v29, %v4367_v11  ;;  %v7700_v20 = vpop.f32.mrb[42].mxu1  ;;  %v5972_v30 = vadd.f32 %v5956_v7, %v5920_v55  ;;  %v12598_v55 = vld [vmem:[#allocation35_spill] sm:$0xff]  ;;  %v6060_v36 = vmul.f32 %v10920_v61, %v5885_v38 }
 0x56d   :  { %v5006_v45 = vadd.f32 %v7713_v44, %v10818_v58  ;;  %v4997_v5 = vpop.f32.mrb[69].mxu0  ;;  %v4408_v2 = vadd.f32 %v4376_v62, %v12597_v18  ;;  %v4379_v26 = vadd.f32 %v7700_v20, %v10799_v29  ;;  %v4370_v1 = vpop.f32.mrb[43].mxu1  ;;  %v6198_v19 = vpack.c.bf16 %v6179_v31, %v6178_v40 }
 0x56e   :  { %v4998_v9 = vadd.f32 %v10818_v58, %v4997_v5  ;;  %v7714_v15 = vpop.f32.mrb[70].mxu0  ;;  %v5802_v44 = vmul.f32 %v5937_v28, %v10836_v10  ;;  %v4371_v52 = vadd.f32 %v10799_v29, %v4370_v1  ;;  %v5311_v31 = vmul.f32 %v10875_v34, %v10932_v57 }
 0x56f   :  { %v5054_v3 = vmax.f32 %v5006_v45, 0.0  ;;  %v5009_v25 = vadd.f32 %v7714_v15, %v10818_v58  ;;  %v5000_v59 = vpop.f32.mrb[71].mxu0  ;;  %v4409_v7 = vadd.f32 %v4379_v26, %v12598_v55  ;;  %7034 = vrot.lane.b32.xlu0 %v4408_v2, %s7871_s7  ;;  %7743 = vmatprep.mubr.msk.bf16.mxu0 %vm43_vm1, %v6198_v19  ;;  %v6024_v27 = vadd.f32 %v6008_v0, %v5972_v30  ;;  %v12599_v45 = vld [vmem:[#allocation34_spill] sm:$0xff]  ;;  %v12600_v15 = vld [vmem:[#allocation36_spill] sm:$0xff] }
 0x570   :  { %v5052_v11 = vmax.f32 %v4998_v9, 0.0  ;;  %v5001_v62 = vadd.f32 %v10818_v58, %v5000_v59  ;;  %v4406_v5 = vadd.f32 %v4368_v32, %v12599_v45  ;;  %v5466_v2 = vmul.f32 %v10884_v41, %v10932_v57  ;;  %v5989_v30 = vld [vmem:[#allocation2 + $0x42] sm:$0xff] }
 0x571   :  { %5070 = vst.msk [vmem:[#allocation2 + $0x71] sm:$0xff] %vm43_vm1, %v5054_v3  ;;  %v5055_v40 = vmax.f32 %v5009_v25, 0.0  ;;  %7036 = vrot.lane.b32.xlu1 %v4409_v7, %s7871_s7  ;;  %v5957_v9 = vmul.f32 %v10907_v43, %v5937_v28  ;;  %v5327_v26 = vadd.f32 %v5311_v31, %v11035_v23  ;;  %v5172_v0 = vadd.f32 %v5156_v14, %v11039_v6  ;;  %v5407_v25 = vld [vmem:[#allocation2 + $0x130] sm:$0xff] }
 0x572   :  { %5068 = vst.msk [vmem:[#allocation2 + $0x51] sm:$0xff] %vm43_vm1, %v5052_v11  ;;  %v5053_v20 = vmax.f32 %v5001_v62, 0.0  ;;  %v6076_v38 = vadd.f32 %v6060_v36, %v6024_v27  ;;  %v6112_v32 = vmul.f32 %v10937_v51, %v5937_v28  ;;  %v4407_v1 = vadd.f32 %v4371_v52, %v12600_v15 }
 0x573   :  { %5071 = vst.msk [vmem:[#allocation2 + $0x81] sm:$0xff] %vm43_vm1, %v5055_v40  ;;  %7030 = vrot.lane.b32.xlu0 %v4406_v5, %s7871_s7  ;;  %v5482_v19 = vadd.f32 %v5466_v2, %v5430_v35  ;;  %v5973_v57 = vadd.f32 %v5957_v9, %v5921_v4  ;;  %v5818_v3 = vadd.f32 %v5802_v44, %v5750_v50 }
 0x574   :  { %5069 = vst.msk [vmem:[#allocation2 + $0x61] sm:$0xff] %vm43_vm1, %v5053_v20  ;;  %v5363_v59 = vmul.f32 %v10878_v53, %v10934_v60  ;;  %v5208_v23 = vmul.f32 %v10934_v60, %v10843_v42  ;;  %v6128_v6 = vadd.f32 %v6112_v32, %v6076_v38  ;;  %v11089_v14 = vmul.f32 %v10946_v49, %v10966_v54 }
 0x575   :  { %7032 = vrot.lane.b32.xlu1 %v4407_v1, %s7871_s7  ;;  %v5518_v52 = vmul.f32 %v10892_v48, %v10934_v60  ;;  %v6009_v35 = vmul.f32 %v10910_v22, %v5989_v30  ;;  %v6164_v28 = vmul.f32 %v10946_v49, %v5989_v30  ;;  %v5854_v50 = vmul.f32 %v5989_v30, %v10861_v47 }
 0x576   :  { %12601 = vst [vmem:[#allocation11_spill] sm:$0xff] %v11089_v14  ;;  %v5379_v4 = vadd.f32 %v5363_v59, %v5327_v26  ;;  %v5224_v44 = vadd.f32 %v5208_v23, %v5172_v0  ;;  %v11099_v11 = vadd.f32 %v11004_v37, %v10993_v33  ;;  %v11102_v54 = vmul.f32 %v10881_v24, %v5407_v25 }
 0x577   :  { %v11104_v7 = vadd.f32 %v5518_v52, %v5482_v19  ;;  %v11108_v31 = vadd.f32 %v6009_v35, %v5973_v57  ;;  %v11110_v27 = vadd.f32 %v6164_v28, %v6128_v6  ;;  %v11112_v36 = vadd.f32 %v5854_v50, %v5818_v3 }
 0x578   :  { %12602 = vst [vmem:[#allocation48_spill] sm:$0xff] %v11099_v11  ;;  %12603 = vst [vmem:[#allocation54_spill] sm:$0xff] %v11102_v54  ;;  %v5397_v62 = vld [vmem:[#allocation2 + $0x70] sm:$0xff]  ;;  %v12604_v0 = vmax.f32 %v12581_v63, 0.0  ;;  %v12605_v19 = vmax.f32 %v12584_v16, 0.0  ;;  %v12607_v11 = vmax.f32 %v12587_v12, 0.0 }
 0x579   :  { %v5449_v40 = vld [vmem:[#allocation2 + $0x71] sm:$0xff]  ;;  %v11115_v33 = vmul.f32 %v10881_v24, %v5397_v62  ;;  %v5107_v26 = vmul.f32 %v5397_v62, %v10822_v17 }
 0x57a   :  { %v11106_v60 = vld [vmem:[#allocation2 + $0x72] sm:$0xff]  ;;  %v11118_v37 = vmul.f32 %v10884_v41, %v5449_v40  ;;  %v5243_v57 = vld [vmem:[#allocation2 + $0x80] sm:$0xff]  ;;  %v5159_v12 = vmul.f32 %v5449_v40, %v10828_v21 }
 0x57b   :  { %v5395_v5 = vld [vmem:[#allocation2 + $0x50] sm:$0xff]  ;;  %v11122_v9 = vmul.f32 %v10892_v48, %v11106_v60  ;;  %5716 = vst.msk [vmem:[#allocation2 + $0x71] sm:$0xff] %vm43_vm1, %v12604_v0  ;;  %v5295_v3 = vld [vmem:[#allocation2 + $0x81] sm:$0xff]  ;;  %v12606_v0 = vmax.f32 %v12583_v56, 0.0 }
 0x57c   :  { %v5447_v20 = vld [vmem:[#allocation2 + $0x51] sm:$0xff]  ;;  %v5415_v30 = vmul.f32 %v10881_v24, %v5395_v5  ;;  %v5105_v1 = vmul.f32 %v5395_v5, %v10822_v17  ;;  %v5347_v25 = vld [vmem:[#allocation2 + $0x82] sm:$0xff]  ;;  %v5260_v52 = vmul.f32 %v5395_v5, %v10869_v39  ;;  %v5175_v18 = vadd.f32 %v5159_v12, %v5107_v26 }
 0x57d   :  { %v5499_v2 = vld [vmem:[#allocation2 + $0x52] sm:$0xff]  ;;  %v5467_v38 = vmul.f32 %v10884_v41, %v5447_v20  ;;  %v5157_v59 = vmul.f32 %v5447_v20, %v10828_v21  ;;  %v5241_v6 = vld [vmem:[#allocation2 + $0x60] sm:$0xff]  ;;  %v5312_v28 = vmul.f32 %v5447_v20, %v10875_v34  ;;  %5717 = vst.msk [vmem:[#allocation2 + $0x81] sm:$0xff] %vm43_vm1, %v12606_v0  ;;  %v5366_v12 = vmul.f32 %v11106_v60, %v10878_v53 }
 0x57e   :  { %v5519_v32 = vmul.f32 %v10892_v48, %v5499_v2  ;;  %5714 = vst.msk [vmem:[#allocation2 + $0x51] sm:$0xff] %vm43_vm1, %v12605_v19  ;;  %v5209_v23 = vmul.f32 %v5499_v2, %v10843_v42  ;;  %v5293_v35 = vld [vmem:[#allocation2 + $0x61] sm:$0xff]  ;;  %v5431_v16 = vadd.f32 %v5415_v30, %v5379_v4  ;;  %v5261_v19 = vmul.f32 %v10869_v39, %v5241_v6 }
 0x57f   :  { %v5345_v50 = vld [vmem:[#allocation2 + $0x62] sm:$0xff]  ;;  %v5313_v63 = vmul.f32 %v10875_v34, %v5293_v35  ;;  %v5364_v54 = vmul.f32 %v5499_v2, %v10878_v53  ;;  %v5173_v5 = vadd.f32 %v5157_v59, %v5105_v1  ;;  %v5276_v14 = vadd.f32 %v5260_v52, %v5224_v44 }
 0x580   :  { %5715 = vst.msk [vmem:[#allocation2 + $0x61] sm:$0xff] %vm43_vm1, %v12607_v11  ;;  %v5365_v20 = vmul.f32 %v10878_v53, %v5345_v50  ;;  %v5416_v15 = vmul.f32 %v10881_v24, %v5241_v6  ;;  %v5483_v56 = vadd.f32 %v5467_v38, %v5431_v16  ;;  %v5468_v0 = vmul.f32 %v10884_v41, %v5293_v35 }
 0x581   :  { %v5520_v4 = vmul.f32 %v10892_v48, %v5345_v50  ;;  %v5106_v30 = vmul.f32 %v5241_v6, %v10822_v17  ;;  %v5225_v55 = vadd.f32 %v5209_v23, %v5173_v5  ;;  %v5328_v45 = vadd.f32 %v5312_v28, %v5276_v14 }
 0x582   :  { %v5158_v2 = vmul.f32 %v5293_v35, %v10828_v21  ;;  %v5535_v11 = vadd.f32 %v5519_v32, %v5483_v56  ;;  %v5210_v44 = vmul.f32 %v5345_v50, %v10843_v42  ;;  %v5211_v1 = vmul.f32 %v11106_v60, %v10843_v42 }
 0x583   :  { %v5262_v16 = vmul.f32 %v5397_v62, %v10869_v39  ;;  %v5277_v38 = vadd.f32 %v5261_v19, %v5225_v55  ;;  %v5380_v59 = vadd.f32 %v5364_v54, %v5328_v45  ;;  %v5263_v14 = vmul.f32 %v10869_v39, %v5243_v57 }
 0x584   :  { %v5174_v52 = vadd.f32 %v5158_v2, %v5106_v30  ;;  %v5553_v6 = vpack.c.bf16 %v5535_v11, %v11104_v7  ;;  %v5314_v23 = vmul.f32 %v5449_v40, %v10875_v34  ;;  %v5315_v35 = vmul.f32 %v10875_v34, %v5295_v3  ;;  %v7703_v40 = vpop.f32.mrb[44].mxu1 }
 0x585   :  { %v5329_v56 = vadd.f32 %v5313_v63, %v5277_v38  ;;  %v5432_v32 = vadd.f32 %v5416_v15, %v5380_v59  ;;  %v5227_v50 = vadd.f32 %v5211_v1, %v5175_v18  ;;  %v6041_v5 = vld [vmem:[#allocation2 + $0x50] sm:$0xff]  ;;  %v5367_v55 = vmul.f32 %v10878_v53, %v5347_v25  ;;  %v12608_v38 = vld [vmem:[#allocation37_spill] sm:$0xff] }
 0x586   :  { %v5226_v28 = vadd.f32 %v5210_v44, %v5174_v52  ;;  %v11163_v42 = vld [vmem:[#allocation2 + $0x51] sm:$0xff]  ;;  %7726 = vmatmul.mubr.msk.bf16.vlgmr.msra.gmra.mrb[48].mxu1 %vm43_vm1, %v5553_v6  ;;  %v5418_v45 = vmul.f32 %v10881_v24, %v5243_v57  ;;  %v5470_v54 = vmul.f32 %v10884_v41, %v5295_v3  ;;  %v5522_v26 = vmul.f32 %v10892_v48, %v5347_v25  ;;  %v4383_v57 = vpop.f32.mrb[45].mxu1 }
 0x587   :  { %v11165_v62 = vld [vmem:[#allocation2 + $0x52] sm:$0xff]  ;;  %v5381_v63 = vadd.f32 %v5365_v20, %v5329_v56  ;;  %v5484_v15 = vadd.f32 %v5468_v0, %v5432_v32  ;;  %v5279_v18 = vadd.f32 %v5263_v14, %v5227_v50  ;;  %v6061_v19 = vmul.f32 %v10920_v61, %v6041_v5  ;;  %v7704_v44 = vpop.f32.mrb[46].mxu1  ;;  %v12609_v32 = vld [vmem:[#allocation38_spill] sm:$0xff]  ;;  %v12610_v50 = vld [vmem:[#allocation39_spill] sm:$0xff] }
 0x588   :  { %v5278_v7 = vadd.f32 %v5262_v16, %v5226_v28  ;;  %v6113_v30 = vmul.f32 %v10937_v51, %v11163_v42  ;;  %v6165_v60 = vmul.f32 %v10946_v49, %v11165_v62  ;;  %v4392_v2 = vadd.f32 %v7703_v40, %v10799_v29  ;;  %v4386_v6 = vpop.f32.mrb[47].mxu1 }
 0x589   :  { %v5433_v3 = vadd.f32 %v11115_v33, %v5381_v63  ;;  %v5536_v20 = vadd.f32 %v5520_v4, %v5484_v15  ;;  %v4384_v11 = vadd.f32 %v10799_v29, %v4383_v57  ;;  %v5331_v1 = vadd.f32 %v5315_v35, %v5279_v18  ;;  %v12611_v18 = vld [vmem:[#allocation40_spill] sm:$0xff] }
 0x58a   :  { %v5330_v0 = vadd.f32 %v5314_v23, %v5278_v7  ;;  %v6077_v25 = vadd.f32 %v6061_v19, %v11108_v31  ;;  %v5751_v16 = vmul.f32 %v6041_v5, %v10833_v13  ;;  %v4412_v59 = vadd.f32 %v4392_v2, %v12608_v38  ;;  %v5887_v7 = vld [vmem:[#allocation2 + $0x60] sm:$0xff] }
 0x58b   :  { %v4395_v52 = vadd.f32 %v7704_v44, %v10799_v29  ;;  %v5485_v14 = vadd.f32 %v11118_v37, %v5433_v3  ;;  %v4410_v33 = vadd.f32 %v4384_v11, %v12609_v32  ;;  %v4387_v4 = vadd.f32 %v10799_v29, %v4386_v6  ;;  %v12612_v3 = vld [vmem:[#allocation22_spill] sm:$0xff] }
 0x58c   :  { %v5382_v56 = vadd.f32 %v5366_v12, %v5330_v0  ;;  %v5383_v23 = vadd.f32 %v5367_v55, %v5331_v1  ;;  %v6129_v28 = vadd.f32 %v6113_v30, %v6077_v25  ;;  %7042 = vrot.lane.b32.xlu0 %v4412_v59, %s7871_s7  ;;  %v5803_v15 = vmul.f32 %v11163_v42, %v10836_v10  ;;  %v7717_v55 = vpop.f32.mrb[72].mxu0  ;;  %v5939_v1 = vld [vmem:[#allocation2 + $0x61] sm:$0xff] }
 0x58d   :  { %v4413_v35 = vadd.f32 %v4395_v52, %v12610_v50  ;;  %v5537_v31 = vadd.f32 %v11122_v9, %v5485_v14  ;;  %v4411_v37 = vadd.f32 %v4387_v4, %v12611_v18  ;;  %v5855_v29 = vmul.f32 %v11165_v62, %v10861_v47  ;;  %v5013_v57 = vpop.f32.mrb[73].mxu0  ;;  %v12614_v52 = vld [vmem:[#allocation23_spill] sm:$0xff]  ;;  %v11213_v14 = vld [vmem:[#allocation2 + $0x132] sm:$0xff] }
 0x58e   :  { %v5434_v63 = vadd.f32 %v5418_v45, %v5382_v56  ;;  %v5435_v12 = vadd.f32 %v10949_v8, %v5383_v23  ;;  %v6181_v40 = vadd.f32 %v6165_v60, %v6129_v28  ;;  %v5819_v2 = vadd.f32 %v5803_v15, %v5751_v16  ;;  %v7718_v44 = vpop.f32.mrb[74].mxu0  ;;  %12615 = vst [vmem:[#allocation12_spill] sm:$0xff] %v11213_v14  ;;  %v5991_v23 = vld [vmem:[#allocation2 + $0x62] sm:$0xff]  ;;  %v6043_v28 = vld [vmem:[#allocation2 + $0x70] sm:$0xff] }
 0x58f   :  { %7044 = vrot.lane.b32.xlu1 %v4413_v35, %s7871_s7  ;;  %v5554_v19 = vpack.c.bf16 %v5537_v31, %v5536_v20  ;;  %v5906_v9 = vmul.f32 %v6041_v5, %v10904_v46  ;;  %v5022_v45 = vadd.f32 %v7717_v55, %v10818_v58  ;;  %v5907_v8 = vmul.f32 %v10904_v46, %v5887_v7  ;;  %v11207_v5 = vld [vmem:[#allocation2 + $0x131] sm:$0xff]  ;;  %v5016_v59 = vpop.f32.mrb[75].mxu0 }
 0x590   :  { %v5486_v30 = vadd.f32 %v5470_v54, %v5434_v63  ;;  %v5487_v0 = vadd.f32 %v12612_v3, %v5435_v12  ;;  %v6199_v11 = vpack.c.bf16 %v6181_v40, %v11110_v27  ;;  %v5014_v60 = vadd.f32 %v10818_v58, %v5013_v57  ;;  %7038 = vrot.lane.b32.xlu0 %v4410_v33, %s7871_s7 }
 0x591   :  { %7729 = vmatprep.mubr.msk.bf16.mxu1 %vm43_vm1, %v5554_v19  ;;  %v5871_v20 = vadd.f32 %v5855_v29, %v5819_v2  ;;  %12613 = vst [vmem:[#allocation51_spill] sm:$0xff] %v11207_v5  ;;  %v5058_v25 = vmax.f32 %v5022_v45, 0.0  ;;  %v5025_v16 = vadd.f32 %v7718_v44, %v10818_v58  ;;  %v5922_v6 = vadd.f32 %v5906_v9, %v11112_v36  ;;  %v6095_v36 = vld [vmem:[#allocation2 + $0x71] sm:$0xff] }
 0x592   :  { %v5538_v54 = vadd.f32 %v5522_v26, %v5486_v30  ;;  %v5539_v27 = vadd.f32 %v12614_v52, %v5487_v0  ;;  %7744 = vmatmul.mubr.msk.bf16.vlgmr.msra.gmra.mrb[80].mxu0 %vm43_vm1, %v6199_v11  ;;  %v5056_v56 = vmax.f32 %v5014_v60, 0.0  ;;  %v5017_v33 = vadd.f32 %v10818_v58, %v5016_v59  ;;  %v6147_v2 = vld [vmem:[#allocation2 + $0x72] sm:$0xff]  ;;  %v11244_v60 = vld [vmem:[#allocation2 + $0x80] sm:$0xff] }
 0x593   :  { %7040 = vrot.lane.b32.xlu1 %v4411_v37, %s7871_s7  ;;  %v5923_v26 = vadd.f32 %v5907_v8, %v5871_v20  ;;  %v5958_v4 = vmul.f32 %v11163_v42, %v10907_v43  ;;  %5074 = vst.msk [vmem:[#allocation2 + $0xd1] sm:$0xff] %vm43_vm1, %v5058_v25  ;;  %v5059_v35 = vmax.f32 %v5025_v16, 0.0  ;;  %v5959_v63 = vmul.f32 %v10907_v43, %v5939_v1  ;;  %v11251_v16 = vld [vmem:[#allocation2 + $0x81] sm:$0xff] }
 0x594   :  { %v5555_v31 = vpack.c.bf16 %v5539_v27, %v5538_v54  ;;  %v11223_v15 = vmul.f32 %v10884_v41, %v11207_v5  ;;  %5072 = vst.msk [vmem:[#allocation2 + $0xb1] sm:$0xff] %vm43_vm1, %v5056_v56  ;;  %v5057_v37 = vmax.f32 %v5017_v33, 0.0  ;;  %v6010_v42 = vmul.f32 %v11165_v62, %v10910_v22 }
 0x595   :  { %v5974_v12 = vadd.f32 %v5958_v4, %v5922_v6  ;;  %v11230_v40 = vmul.f32 %v10892_v48, %v11213_v14  ;;  %5075 = vst.msk [vmem:[#allocation2 + $0xe1] sm:$0xff] %vm43_vm1, %v5059_v35  ;;  %v5975_v29 = vadd.f32 %v5959_v63, %v5923_v26  ;;  %v6011_v55 = vmul.f32 %v10910_v22, %v5991_v23  ;;  %v12625_v14 = vld [vmem:[#allocation35_spill] sm:$0xff] }
 0x596   :  { %12616 = vst [vmem:[#allocation53_spill] sm:$0xff] %v11223_v15  ;;  %7730 = vmatmul.mubr.msk.bf16.gmra.mrb[52].mxu1 %vm43_vm1, %v5555_v31  ;;  %v6062_v19 = vmul.f32 %v10920_v61, %v5887_v7  ;;  %v6063_v30 = vmul.f32 %v10920_v61, %v6043_v28  ;;  %5073 = vst.msk [vmem:[#allocation2 + $0xc1] sm:$0xff] %vm43_vm1, %v5057_v37  ;;  %v6114_v62 = vmul.f32 %v10937_v51, %v5939_v1 }
 0x597   :  { %12617 = vst [vmem:[#allocation45_spill] sm:$0xff] %v11230_v40  ;;  %v6026_v9 = vadd.f32 %v6010_v42, %v5974_v12  ;;  %v6115_v45 = vmul.f32 %v10937_v51, %v6095_v36  ;;  %v5752_v57 = vmul.f32 %v5887_v7, %v10833_v13  ;;  %v6027_v3 = vadd.f32 %v6011_v55, %v5975_v29  ;;  %v12618_v12 = vld [vmem:[#allocation33_spill] sm:$0xff]  ;;  %v12627_v40 = vld [vmem:[#allocation24_spill] sm:$0xff] }
 0x598   :  { %v5753_v0 = vmul.f32 %v6043_v28, %v10833_v13  ;;  %v5804_v11 = vmul.f32 %v5939_v1, %v10836_v10  ;;  %v5805_v8 = vmul.f32 %v6095_v36, %v10836_v10  ;;  %v6166_v54 = vmul.f32 %v10946_v49, %v5991_v23 }
 0x599   :  { %v6078_v44 = vadd.f32 %v6062_v19, %v6026_v9  ;;  %v6167_v20 = vmul.f32 %v10946_v49, %v6147_v2  ;;  %v11249_v25 = vmul.f32 %v5991_v23, %v10861_v47  ;;  %v6079_v7 = vadd.f32 %v6063_v30, %v6027_v3 }
 0x59a   :  { %v11253_v59 = vadd.f32 %v5804_v11, %v5752_v57  ;;  %v11256_v52 = vmul.f32 %v6147_v2, %v10861_v47  ;;  %v11259_v1 = vmul.f32 %v6043_v28, %v10904_v46  ;;  %v5401_v27 = vld [vmem:[#allocation2 + $0xd0] sm:$0xff]  ;;  %v11265_v26 = vadd.f32 %v5805_v8, %v5753_v0  ;;  %v12624_v0 = vld [vmem:[#allocation19_spill] sm:$0xff] }
 0x59b   :  { %v11261_v6 = vld [vmem:[#allocation2 + $0xd1] sm:$0xff]  ;;  %v6130_v33 = vadd.f32 %v6114_v62, %v6078_v44  ;;  %v11269_v4 = vmul.f32 %v10904_v46, %v11244_v60  ;;  %v11272_v23 = vmul.f32 %v6095_v36, %v10907_v43  ;;  %v11275_v28 = vmul.f32 %v10881_v24, %v5401_v27  ;;  %v12622_v62 = vld [vmem:[#allocation34_spill] sm:$0xff] }
 0x59c   :  { %v11263_v56 = vld [vmem:[#allocation2 + $0xd2] sm:$0xff]  ;;  %v6131_v37 = vadd.f32 %v6115_v45, %v6079_v7  ;;  %v12619_v42 = vmax.f32 %v12618_v12, 0.0  ;;  %v11282_v29 = vmul.f32 %v10907_v43, %v11251_v16  ;;  %v11285_v55 = vmul.f32 %v6147_v2, %v10910_v22  ;;  %v11297_v57 = vld [vmem:[#allocation2 + $0xe0] sm:$0xff] }
 0x59d   :  { %v5089_v35 = vld [vmem:[#allocation2 + $0xb0] sm:$0xff]  ;;  %v11292_v9 = vmul.f32 %v10884_v41, %v11261_v6  ;;  %v12623_v45 = vmax.f32 %v12622_v62, 0.0  ;;  %v11299_v3 = vld [vmem:[#allocation2 + $0xe1] sm:$0xff]  ;;  %v12626_v62 = vmax.f32 %v12625_v14, 0.0  ;;  %v6182_v43 = vadd.f32 %v6166_v54, %v6130_v33  ;;  %v7721_v14 = vpop.f32.mrb[76].mxu0 }
 0x59e   :  { %v5141_v31 = vld [vmem:[#allocation2 + $0xb1] sm:$0xff]  ;;  %5720 = vst.msk [vmem:[#allocation2 + $0xd1] sm:$0xff] %vm43_vm1, %v12619_v42  ;;  %12620 = vst [vmem:[#allocation61_spill] sm:$0xff] %v11282_v29  ;;  %v5109_v36 = vmul.f32 %v10822_v17, %v5089_v35  ;;  %v5264_v30 = vmul.f32 %v10869_v39, %v5089_v35  ;;  %v11301_v2 = vld [vmem:[#allocation2 + $0xe2] sm:$0xff]  ;;  %v6183_v12 = vadd.f32 %v6167_v20, %v6131_v37 }
 0x59f   :  { %v5193_v63 = vld [vmem:[#allocation2 + $0xb2] sm:$0xff]  ;;  %12621 = vst [vmem:[#allocation63_spill] sm:$0xff] %v11285_v55  ;;  %v5161_v19 = vmul.f32 %v10828_v21, %v5141_v31  ;;  %v5245_v8 = vld [vmem:[#allocation2 + $0xc0] sm:$0xff]  ;;  %v5316_v7 = vmul.f32 %v10875_v34, %v5141_v31  ;;  %5721 = vst.msk [vmem:[#allocation2 + $0xe1] sm:$0xff] %vm43_vm1, %v12626_v62 }
 0x5a0   :  { %5718 = vst.msk [vmem:[#allocation2 + $0xb1] sm:$0xff] %vm43_vm1, %v12623_v45  ;;  %v5213_v11 = vmul.f32 %v12624_v0, %v5193_v63  ;;  %v5297_v44 = vld [vmem:[#allocation2 + $0xc1] sm:$0xff]  ;;  %v5368_v42 = vmul.f32 %v10878_v53, %v5193_v63  ;;  %v5265_v5 = vmul.f32 %v10869_v39, %v5245_v8  ;;  %v5280_v15 = vadd.f32 %v5264_v30, %v12627_v40  ;;  %v12628_v47 = vld [vmem:[#allocation36_spill] sm:$0xff] }
 0x5a1   :  { %v5349_v35 = vld [vmem:[#allocation2 + $0xc2] sm:$0xff]  ;;  %v5177_v45 = vadd.f32 %v5161_v19, %v5109_v36  ;;  %v12629_v46 = vmax.f32 %v12628_v47, 0.0  ;;  %v5317_v31 = vmul.f32 %v10875_v34, %v5297_v44  ;;  %v5420_v20 = vmul.f32 %v10881_v24, %v5245_v8  ;;  %v5029_v47 = vpop.f32.mrb[77].mxu0 }
 0x5a2   :  { %v5369_v10 = vmul.f32 %v10878_v53, %v5349_v35  ;;  %v5472_v63 = vmul.f32 %v10884_v41, %v5297_v44  ;;  %v5332_v62 = vadd.f32 %v5316_v7, %v5280_v15  ;;  %v6200_v36 = vpack.c.bf16 %v6183_v12, %v6182_v43  ;;  %v7844_v15 = vld [vmem:[%s12173_s8 + $0x3] ss:$0 sm:$0xff] }
 0x5a3   :  { %5719 = vst.msk [vmem:[#allocation2 + $0xc1] sm:$0xff] %vm43_vm1, %v12629_v46  ;;  %v5229_v37 = vadd.f32 %v5213_v11, %v5177_v45  ;;  %v5110_v19 = vmul.f32 %v5245_v8, %v10822_v17  ;;  %v5111_v40 = vmul.f32 %v5401_v27, %v10822_v17  ;;  %v5162_v54 = vmul.f32 %v5297_v44, %v10828_v21  ;;  %v7722_v11 = vpop.f32.mrb[78].mxu0 }
 0x5a4   :  { %v5163_v46 = vmul.f32 %v11261_v6, %v10828_v21  ;;  %v5214_v33 = vmul.f32 %v5349_v35, %v12624_v0  ;;  %v5038_v30 = vadd.f32 %v7721_v14, %v10818_v58  ;;  %v5384_v18 = vadd.f32 %v5368_v42, %v5332_v62  ;;  %7747 = vmatprep.mubr.msk.bf16.mxu0 %vm43_vm1, %v6200_v36  ;;  %v5032_v14 = vpop.f32.mrb[79].mxu0 }
 0x5a5   :  { %v5281_v13 = vadd.f32 %v5265_v5, %v5229_v37  ;;  %v5215_v43 = vmul.f32 %v11263_v56, %v12624_v0  ;;  %v5030_v12 = vadd.f32 %v7844_v15, %v5029_v47  ;;  %v5178_v8 = vadd.f32 %v5162_v54, %v5110_v19 }
 0x5a6   :  { %v5179_v44 = vadd.f32 %v5163_v46, %v5111_v40  ;;  %v5266_v7 = vmul.f32 %v5401_v27, %v10869_v39  ;;  %v5062_v45 = vmax.f32 %v5038_v30, 0.0  ;;  %v5041_v58 = vadd.f32 %v7844_v15, %v7722_v11 }
 0x5a7   :  { %v5333_v5 = vadd.f32 %v5317_v31, %v5281_v13  ;;  %v5436_v42 = vadd.f32 %v5420_v20, %v5384_v18  ;;  %v5060_v37 = vmax.f32 %v5030_v12, 0.0  ;;  %v5033_v62 = vadd.f32 %v7844_v15, %v5032_v14 }
 0x5a8   :  { %v5230_v36 = vadd.f32 %v5214_v33, %v5178_v8  ;;  %v5231_v50 = vadd.f32 %v5215_v43, %v5179_v44  ;;  %5078 = vst.msk [vmem:[#allocation2 + $0x111] sm:$0xff] %vm43_vm1, %v5062_v45  ;;  %v5063_v55 = vmax.f32 %v5041_v58, 0.0  ;;  %v5267_v47 = vmul.f32 %v10869_v39, %v11297_v57 }
 0x5a9   :  { %v5385_v29 = vadd.f32 %v5369_v10, %v5333_v5  ;;  %v5488_v32 = vadd.f32 %v5472_v63, %v5436_v42  ;;  %5076 = vst.msk [vmem:[#allocation2 + $0xf1] sm:$0xff] %vm43_vm1, %v5060_v37  ;;  %v5061_v27 = vmax.f32 %v5033_v62, 0.0  ;;  %v5524_v19 = vmul.f32 %v10892_v48, %v5349_v35 }
 0x5aa   :  { %v5282_v40 = vadd.f32 %v5266_v7, %v5230_v36  ;;  %v5318_v13 = vmul.f32 %v11261_v6, %v10875_v34  ;;  %5079 = vst.msk [vmem:[#allocation2 + $0x121] sm:$0xff] %vm43_vm1, %v5063_v55  ;;  %v5525_v10 = vmul.f32 %v10892_v48, %v11263_v56  ;;  %v5283_v31 = vadd.f32 %v5267_v47, %v5231_v50  ;;  %v5993_v55 = vld [vmem:[#allocation2 + $0x82] sm:$0xff] }
 0x5ab   :  { %v5437_v18 = vadd.f32 %v11275_v28, %v5385_v29  ;;  %v5319_v20 = vmul.f32 %v10875_v34, %v11299_v3  ;;  %5077 = vst.msk [vmem:[#allocation2 + $0x101] sm:$0xff] %vm43_vm1, %v5061_v27  ;;  %v5540_v63 = vadd.f32 %v5524_v19, %v5488_v32  ;;  %v5370_v35 = vmul.f32 %v11263_v56, %v10878_v53  ;;  %v12631_v36 = vld [vmem:[#allocation38_spill] sm:$0xff]  ;;  %v12633_v27 = vld [vmem:[#allocation61_spill] sm:$0xff] }
 0x5ac   :  { %v5334_v54 = vadd.f32 %v5318_v13, %v5282_v40  ;;  %v5371_v6 = vmul.f32 %v10878_v53, %v11301_v2  ;;  %v5422_v50 = vmul.f32 %v10881_v24, %v11297_v57  ;;  %v5872_v46 = vadd.f32 %v11249_v25, %v11253_v59  ;;  %v12634_v40 = vld [vmem:[#allocation63_spill] sm:$0xff] }
 0x5ad   :  { %v5489_v28 = vadd.f32 %v11292_v9, %v5437_v18  ;;  %v5335_v29 = vadd.f32 %v5319_v20, %v5283_v31  ;;  %v5474_v32 = vmul.f32 %v10884_v41, %v11299_v3  ;;  %v5526_v56 = vmul.f32 %v10892_v48, %v11301_v2 }
 0x5ae   :  { %v5386_v33 = vadd.f32 %v5370_v35, %v5334_v54  ;;  %v5873_v30 = vadd.f32 %v11256_v52, %v11265_v26  ;;  %v5924_v9 = vadd.f32 %v11259_v1, %v5872_v46  ;;  %v6013_v15 = vmul.f32 %v10910_v22, %v5993_v55 }
 0x5af   :  { %v5541_v43 = vadd.f32 %v5525_v10, %v5489_v28  ;;  %v6064_v12 = vmul.f32 %v10920_v61, %v11244_v60  ;;  %v5387_v11 = vadd.f32 %v5371_v6, %v5335_v29  ;;  %v5112_v8 = vmul.f32 %v11297_v57, %v10822_v17  ;;  %v11368_v44 = vld [vmem:[#allocation2 + $0x110] sm:$0xff] }
 0x5b0   :  { %v5438_v25 = vadd.f32 %v5422_v50, %v5386_v33  ;;  %v5925_v59 = vadd.f32 %v11269_v4, %v5873_v30  ;;  %v11370_v7 = vld [vmem:[#allocation2 + $0x111] sm:$0xff]  ;;  %v5976_v14 = vadd.f32 %v11272_v23, %v5924_v9  ;;  %v6116_v60 = vmul.f32 %v10937_v51, %v11251_v16 }
 0x5b1   :  { %v11372_v52 = vld [vmem:[#allocation2 + $0x112] sm:$0xff]  ;;  %v5556_v26 = vpack.c.bf16 %v5541_v43, %v5540_v63  ;;  %v5164_v4 = vmul.f32 %v11299_v3, %v10828_v21  ;;  %v12630_v57 = vmax.f32 %v12608_v38, 0.0  ;;  %v6168_v37 = vmul.f32 %v10946_v49, %v5993_v55  ;;  %v11389_v16 = vld [vmem:[#allocation2 + $0x120] sm:$0xff]  ;;  %v12635_v63 = vld [vmem:[#allocation39_spill] sm:$0xff] }
 0x5b2   :  { %v5403_v1 = vld [vmem:[#allocation2 + $0xf0] sm:$0xff]  ;;  %v5490_v42 = vadd.f32 %v5474_v32, %v5438_v25  ;;  %v5216_v62 = vmul.f32 %v11301_v2, %v12624_v0  ;;  %v12632_v23 = vmax.f32 %v12631_v36, 0.0  ;;  %v11391_v47 = vld [vmem:[#allocation2 + $0x121] sm:$0xff]  ;;  %v5977_v19 = vadd.f32 %v12633_v27, %v5925_v59 }
 0x5b3   :  { %v5455_v45 = vld [vmem:[#allocation2 + $0xf1] sm:$0xff]  ;;  %5724 = vst.msk [vmem:[#allocation2 + $0x111] sm:$0xff] %vm43_vm1, %v12630_v57  ;;  %v5423_v5 = vmul.f32 %v10881_v24, %v5403_v1  ;;  %v11393_v3 = vld [vmem:[#allocation2 + $0x122] sm:$0xff]  ;;  %7733 = vmatprep.mubr.msk.bf16.mxu1 %vm43_vm1, %v5556_v26  ;;  %v6028_v13 = vadd.f32 %v12634_v40, %v5976_v14  ;;  %v5113_v18 = vmul.f32 %v5403_v1, %v10822_v17  ;;  %v12636_v54 = vmax.f32 %v12635_v63, 0.0 }
 0x5b4   :  { %v5507_v58 = vld [vmem:[#allocation2 + $0xf2] sm:$0xff]  ;;  %v5165_v2 = vmul.f32 %v5455_v45, %v10828_v21  ;;  %v11400_v10 = vld [vmem:[#allocation2 + $0x100] sm:$0xff]  ;;  %v5475_v6 = vmul.f32 %v10884_v41, %v5455_v45  ;;  %v5180_v55 = vadd.f32 %v5164_v4, %v5112_v8  ;;  %v6029_v46 = vadd.f32 %v6013_v15, %v5977_v19 }
 0x5b5   :  { %5722 = vst.msk [vmem:[#allocation2 + $0xf1] sm:$0xff] %vm43_vm1, %v12632_v23  ;;  %v11402_v31 = vld [vmem:[#allocation2 + $0x101] sm:$0xff]  ;;  %5725 = vst.msk [vmem:[#allocation2 + $0x121] sm:$0xff] %vm43_vm1, %v12636_v54  ;;  %v5439_v35 = vadd.f32 %v5423_v5, %v5387_v11  ;;  %v5217_v28 = vmul.f32 %v5507_v58, %v12624_v0  ;;  %v12637_v29 = vld [vmem:[#allocation40_spill] sm:$0xff]  ;;  %v6080_v33 = vadd.f32 %v6064_v12, %v6028_v13 }
 0x5b6   :  { %v11404_v20 = vld [vmem:[#allocation2 + $0x102] sm:$0xff]  ;;  %v12638_v50 = vmax.f32 %v12637_v29, 0.0  ;;  %v5181_v32 = vadd.f32 %v5165_v2, %v5113_v18  ;;  %v5268_v30 = vmul.f32 %v5403_v1, %v10869_v39  ;;  %v5527_v9 = vmul.f32 %v10892_v48, %v5507_v58  ;;  %v12639_v11 = vld [vmem:[#allocation9_spill] sm:$0xff] }
 0x5b7   :  { %v5491_v43 = vadd.f32 %v5475_v6, %v5439_v35  ;;  %v5542_v25 = vadd.f32 %v5526_v56, %v5490_v42  ;;  %v5232_v59 = vadd.f32 %v5216_v62, %v5180_v55  ;;  %v6081_v26 = vadd.f32 %v12639_v11, %v6029_v46  ;;  %v12640_v1 = vld [vmem:[#allocation10_spill] sm:$0xff]  ;;  %v5735_v42 = vld [vmem:[#allocation2 + $0xb0] sm:$0xff] }
 0x5b8   :  { %5723 = vst.msk [vmem:[#allocation2 + $0x101] sm:$0xff] %vm43_vm1, %v12638_v50  ;;  %v6132_v14 = vadd.f32 %v6116_v60, %v6080_v33  ;;  %v5233_v8 = vadd.f32 %v5217_v28, %v5181_v32  ;;  %v5269_v4 = vmul.f32 %v10869_v39, %v11400_v10  ;;  %v5320_v15 = vmul.f32 %v5455_v45, %v10875_v34  ;;  %v5787_v62 = vld [vmem:[#allocation2 + $0xb1] sm:$0xff]  ;;  %v12641_v45 = vld [vmem:[#allocation11_spill] sm:$0xff]  ;;  %v12643_v46 = vld [vmem:[#allocation18_spill] sm:$0xff] }
 0x5b9   :  { %v5543_v57 = vadd.f32 %v5527_v9, %v5491_v43  ;;  %v5284_v5 = vadd.f32 %v5268_v30, %v5232_v59  ;;  %v5321_v12 = vmul.f32 %v10875_v34, %v11402_v31  ;;  %v6133_v23 = vadd.f32 %v12640_v1, %v6081_v26  ;;  %v12642_v28 = vld [vmem:[#allocation17_spill] sm:$0xff]  ;;  %v11438_v32 = vld [vmem:[#allocation2 + $0xc0] sm:$0xff]  ;;  %v12646_v1 = vld [vmem:[#allocation48_spill] sm:$0xff] }
 0x5ba   :  { %v6184_v27 = vadd.f32 %v6168_v37, %v6132_v14  ;;  %v5285_v19 = vadd.f32 %v5269_v4, %v5233_v8  ;;  %v5372_v56 = vmul.f32 %v5507_v58, %v10878_v53  ;;  %v5373_v13 = vmul.f32 %v10878_v53, %v11404_v20  ;;  %v5839_v58 = vld [vmem:[#allocation2 + $0xb2] sm:$0xff]  ;;  %v5943_v11 = vld [vmem:[#allocation2 + $0xc1] sm:$0xff] }
 0x5bb   :  { %v5557_v60 = vpack.c.bf16 %v5543_v57, %v5542_v25  ;;  %v5336_v40 = vadd.f32 %v5320_v15, %v5284_v5  ;;  %v5424_v18 = vmul.f32 %v10881_v24, %v11400_v10  ;;  %v6185_v2 = vadd.f32 %v12641_v45, %v6133_v23  ;;  %v12644_v25 = vld [vmem:[#allocation20_spill] sm:$0xff]  ;;  %v11446_v5 = vld [vmem:[#allocation2 + $0xc2] sm:$0xff] }
 0x5bc   :  { %v5337_v54 = vadd.f32 %v5321_v12, %v5285_v19  ;;  %v5425_v35 = vmul.f32 %v10881_v24, %v11368_v44  ;;  %v5476_v37 = vmul.f32 %v10884_v41, %v11402_v31  ;;  %v5477_v55 = vmul.f32 %v10884_v41, %v11370_v7  ;;  %v12645_v4 = vld [vmem:[#allocation44_spill] sm:$0xff] }
 0x5bd   :  { %7734 = vmatmul.mubr.msk.bf16.gmra.mrb[56].mxu1 %vm43_vm1, %v5557_v60  ;;  %v5388_v6 = vadd.f32 %v5372_v56, %v5336_v40  ;;  %v5755_v50 = vmul.f32 %v12642_v28, %v5735_v42  ;;  %v5807_v33 = vmul.f32 %v12643_v46, %v5787_v62  ;;  %v6201_v30 = vpack.c.bf16 %v6185_v2, %v6184_v27  ;;  %v12647_v27 = vld [vmem:[#allocation21_spill] sm:$0xff]  ;;  %v11453_v56 = vld [vmem:[#allocation2 + $0xd0] sm:$0xff] }
 0x5be   :  { %v5389_v43 = vadd.f32 %v5373_v13, %v5337_v54  ;;  %v5528_v9 = vmul.f32 %v10892_v48, %v11404_v20  ;;  %v5910_v59 = vmul.f32 %v12644_v25, %v5735_v42  ;;  %v5529_v14 = vmul.f32 %v10892_v48, %v11372_v52 }
 0x5bf   :  { %v5440_v26 = vadd.f32 %v5424_v18, %v5388_v6  ;;  %v5823_v8 = vadd.f32 %v5807_v33, %v5755_v50  ;;  %v5859_v57 = vmul.f32 %v12645_v4, %v5839_v58  ;;  %7748 = vmatmul.mubr.msk.bf16.gmra.mrb[84].mxu0 %vm43_vm1, %v6201_v30  ;;  %v5911_v12 = vmul.f32 %v12644_v25, %v11438_v32  ;;  %v11457_v18 = vld [vmem:[#allocation2 + $0xd1] sm:$0xff] }
 0x5c0   :  { %v5441_v15 = vadd.f32 %v5425_v35, %v5389_v43  ;;  %v5926_v23 = vadd.f32 %v5910_v59, %v12646_v1  ;;  %v5962_v19 = vmul.f32 %v12647_v27, %v5787_v62  ;;  %v5963_v40 = vmul.f32 %v12647_v27, %v5943_v11  ;;  %v6151_v59 = vld [vmem:[#allocation2 + $0xd2] sm:$0xff] }
 0x5c1   :  { %v5492_v42 = vadd.f32 %v5476_v37, %v5440_v26  ;;  %v5875_v60 = vadd.f32 %v5859_v57, %v5823_v8  ;;  %v6014_v13 = vmul.f32 %v10910_v22, %v5839_v58  ;;  %v6015_v54 = vmul.f32 %v10910_v22, %v11446_v5 }
 0x5c2   :  { %v5493_v45 = vadd.f32 %v5477_v55, %v5441_v15  ;;  %v5978_v2 = vadd.f32 %v5962_v19, %v5926_v23  ;;  %v6066_v35 = vmul.f32 %v10920_v61, %v11438_v32  ;;  %v6067_v37 = vmul.f32 %v10920_v61, %v11453_v56 }
 0x5c3   :  { %v5544_v6 = vadd.f32 %v5528_v9, %v5492_v42  ;;  %v5927_v62 = vadd.f32 %v5911_v12, %v5875_v60  ;;  %v6118_v50 = vmul.f32 %v10937_v51, %v5943_v11  ;;  %v6119_v58 = vmul.f32 %v10937_v51, %v11457_v18 }
 0x5c4   :  { %v5545_v33 = vadd.f32 %v5529_v14, %v5493_v45  ;;  %v6030_v30 = vadd.f32 %v6014_v13, %v5978_v2  ;;  %v5114_v55 = vmul.f32 %v11400_v10, %v10822_v17  ;;  %v5115_v26 = vmul.f32 %v11368_v44, %v10822_v17 }
 0x5c5   :  { %v5979_v43 = vadd.f32 %v5963_v40, %v5927_v62  ;;  %v5166_v9 = vmul.f32 %v11402_v31, %v10828_v21  ;;  %v5167_v8 = vmul.f32 %v11370_v7, %v10828_v21  ;;  %v6170_v15 = vmul.f32 %v10946_v49, %v11446_v5 }
 0x5c6   :  { %v5558_v57 = vpack.c.bf16 %v5545_v33, %v5544_v6  ;;  %v6082_v14 = vadd.f32 %v6066_v35, %v6030_v30  ;;  %v5218_v12 = vmul.f32 %v11404_v20, %v12624_v0  ;;  %v5219_v17 = vmul.f32 %v11372_v52, %v12624_v0  ;;  %v5893_v30 = vld [vmem:[#allocation2 + $0xe0] sm:$0xff] }
 0x5c7   :  { %v6031_v10 = vadd.f32 %v6015_v54, %v5979_v43  ;;  %v5182_v1 = vadd.f32 %v5166_v9, %v5114_v55  ;;  %v5183_v23 = vadd.f32 %v5167_v8, %v5115_v26  ;;  %v6171_v19 = vmul.f32 %v10946_v49, %v6151_v59  ;;  %v5945_v55 = vld [vmem:[#allocation2 + $0xe1] sm:$0xff] }
 0x5c8   :  { %7737 = vmatprep.mubr.msk.bf16.mxu1 %vm43_vm1, %v5558_v57  ;;  %v6134_v31 = vadd.f32 %v6118_v50, %v6082_v14  ;;  %v5270_v21 = vmul.f32 %v11368_v44, %v10869_v39  ;;  %v5271_v42 = vmul.f32 %v10869_v39, %v11389_v16  ;;  %v5322_v13 = vmul.f32 %v11370_v7, %v10875_v34  ;;  %v5997_v8 = vld [vmem:[#allocation2 + $0xe2] sm:$0xff] }
 0x5c9   :  { %v6083_v60 = vadd.f32 %v6067_v37, %v6031_v10  ;;  %v5234_v40 = vadd.f32 %v5218_v12, %v5182_v1  ;;  %v5235_v20 = vadd.f32 %v5219_v17, %v5183_v23  ;;  %v5323_v0 = vmul.f32 %v10875_v34, %v11391_v47  ;;  %v12648_v12 = vld [vmem:[#allocation54_spill] sm:$0xff] }
 0x5ca   :  { %v6186_v45 = vadd.f32 %v6170_v15, %v6134_v31  ;;  %v5374_v2 = vmul.f32 %v11372_v52, %v10878_v53  ;;  %v5375_v54 = vmul.f32 %v10878_v53, %v11393_v3  ;;  %v5426_v39 = vmul.f32 %v10881_v24, %v11389_v16  ;;  %v6049_v15 = vld [vmem:[#allocation2 + $0xf0] sm:$0xff] }
 0x5cb   :  { %v6135_v44 = vadd.f32 %v6119_v58, %v6083_v60  ;;  %v5286_v35 = vadd.f32 %v5270_v21, %v5234_v40  ;;  %v5287_v6 = vadd.f32 %v5271_v42, %v5235_v20  ;;  %v5756_v62 = vmul.f32 %v11438_v32, %v12642_v28  ;;  %v12649_v21 = vld [vmem:[#allocation53_spill] sm:$0xff] }
 0x5cc   :  { %v5757_v7 = vmul.f32 %v11453_v56, %v12642_v28  ;;  %v5808_v34 = vmul.f32 %v5943_v11, %v12643_v46  ;;  %v5809_v52 = vmul.f32 %v11457_v18, %v12643_v46  ;;  %v5478_v33 = vmul.f32 %v10884_v41, %v11391_v47 }
 0x5cd   :  { %v6187_v37 = vadd.f32 %v6171_v19, %v6135_v44  ;;  %v5338_v50 = vadd.f32 %v5322_v13, %v5286_v35  ;;  %v5339_v53 = vadd.f32 %v5323_v0, %v5287_v6  ;;  %v5860_v16 = vmul.f32 %v11446_v5, %v12645_v4  ;;  %v6153_v0 = vld [vmem:[#allocation2 + $0xf2] sm:$0xff] }
 0x5ce   :  { %v5824_v58 = vadd.f32 %v5808_v34, %v5756_v62  ;;  %v5825_v24 = vadd.f32 %v5809_v52, %v5757_v7  ;;  %v5861_v32 = vmul.f32 %v6151_v59, %v12645_v4  ;;  %v5530_v9 = vmul.f32 %v10892_v48, %v11393_v3  ;;  %v6101_v48 = vld [vmem:[#allocation2 + $0xf1] sm:$0xff]  ;;  %v5895_v34 = vld [vmem:[#allocation2 + $0x100] sm:$0xff] }
 0x5cf   :  { %v6202_v43 = vpack.c.bf16 %v6187_v37, %v6186_v45  ;;  %v5390_v11 = vadd.f32 %v5374_v2, %v5338_v50  ;;  %v5391_v26 = vadd.f32 %v5375_v54, %v5339_v53  ;;  %v5912_v41 = vmul.f32 %v11453_v56, %v12644_v25  ;;  %v12650_v54 = vld [vmem:[#allocation45_spill] sm:$0xff] }
 0x5d0   :  { %v5876_v57 = vadd.f32 %v5860_v16, %v5824_v58  ;;  %v5877_v14 = vadd.f32 %v5861_v32, %v5825_v24  ;;  %v5913_v47 = vmul.f32 %v12644_v25, %v5893_v30  ;;  %v5964_v1 = vmul.f32 %v11457_v18, %v12647_v27  ;;  %v5947_v16 = vld [vmem:[#allocation2 + $0x101] sm:$0xff] }
 0x5d1   :  { %7751 = vmatprep.mubr.msk.bf16.mxu0 %vm43_vm1, %v6202_v43  ;;  %v5442_v5 = vadd.f32 %v5426_v39, %v5390_v11  ;;  %v5443_v10 = vadd.f32 %v12648_v12, %v5391_v26  ;;  %v5965_v23 = vmul.f32 %v12647_v27, %v5945_v55  ;;  %v6016_v31 = vmul.f32 %v6151_v59, %v10910_v22 }
 0x5d2   :  { %v5928_v3 = vadd.f32 %v5912_v41, %v5876_v57  ;;  %v5929_v17 = vadd.f32 %v5913_v47, %v5877_v14  ;;  %v6017_v56 = vmul.f32 %v10910_v22, %v5997_v8  ;;  %v6068_v60 = vmul.f32 %v10920_v61, %v5893_v30  ;;  %v5999_v14 = vld [vmem:[#allocation2 + $0x102] sm:$0xff] }
 0x5d3   :  { %v5494_v19 = vadd.f32 %v5478_v33, %v5442_v5  ;;  %v5495_v42 = vadd.f32 %v12649_v21, %v5443_v10  ;;  %v6069_v40 = vmul.f32 %v10920_v61, %v6049_v15  ;;  %v6120_v18 = vmul.f32 %v10937_v51, %v5945_v55  ;;  %v6155_v21 = vld [vmem:[#allocation2 + $0x112] sm:$0xff] }
 0x5d4   :  { %v5980_v20 = vadd.f32 %v5964_v1, %v5928_v3  ;;  %v5981_v13 = vadd.f32 %v5965_v23, %v5929_v17  ;;  %v6121_v45 = vmul.f32 %v10937_v51, %v6101_v48  ;;  %v5758_v59 = vmul.f32 %v5893_v30, %v12642_v28  ;;  %v6103_v23 = vld [vmem:[#allocation2 + $0x111] sm:$0xff] }
 0x5d5   :  { %v5546_v2 = vadd.f32 %v5530_v9, %v5494_v19  ;;  %v5547_v44 = vadd.f32 %v12650_v54, %v5495_v42  ;;  %v5759_v35 = vmul.f32 %v6049_v15, %v12642_v28  ;;  %v5810_v62 = vmul.f32 %v5945_v55, %v12643_v46 }
 0x5d6   :  { %v6032_v6 = vadd.f32 %v6016_v31, %v5980_v20  ;;  %v6033_v39 = vadd.f32 %v6017_v56, %v5981_v13  ;;  %v5811_v7 = vmul.f32 %v6101_v48, %v12643_v46  ;;  %v5862_v37 = vmul.f32 %v5997_v8, %v12645_v4 }
 0x5d7   :  { %v5559_v52 = vpack.c.bf16 %v5547_v44, %v5546_v2  ;;  %v5863_v50 = vmul.f32 %v6153_v0, %v12645_v4  ;;  %v5914_v53 = vmul.f32 %v6049_v15, %v12644_v25  ;;  %v5826_v24 = vadd.f32 %v5810_v62, %v5758_v59  ;;  %v6051_v15 = vld [vmem:[#allocation2 + $0x110] sm:$0xff] }
 0x5d8   :  { %v6084_v33 = vadd.f32 %v6068_v60, %v6032_v6  ;;  %v6085_v58 = vadd.f32 %v6069_v40, %v6033_v39  ;;  %v5827_v30 = vadd.f32 %v5811_v7, %v5759_v35  ;;  %v6172_v32 = vmul.f32 %v10946_v49, %v5997_v8  ;;  %v5949_v6 = vld [vmem:[#allocation2 + $0x121] sm:$0xff] }
 0x5d9   :  { %7738 = vmatmul.mubr.msk.bf16.gmra.mrb[60].mxu1 %vm43_vm1, %v5559_v52  ;;  %v6173_v55 = vmul.f32 %v10946_v49, %v6153_v0  ;;  %v5915_v43 = vmul.f32 %v12644_v25, %v5895_v34  ;;  %v5878_v9 = vadd.f32 %v5862_v37, %v5826_v24  ;;  %v5966_v41 = vmul.f32 %v6101_v48, %v12647_v27 }
 0x5da   :  { %v6136_v11 = vadd.f32 %v6120_v18, %v6084_v33  ;;  %v6137_v26 = vadd.f32 %v6121_v45, %v6085_v58  ;;  %v5879_v57 = vadd.f32 %v5863_v50, %v5827_v30  ;;  %v5967_v47 = vmul.f32 %v12647_v27, %v5947_v16  ;;  %v5897_v45 = vld [vmem:[#allocation2 + $0x120] sm:$0xff] }
 0x5db   :  { %v5930_v10 = vadd.f32 %v5914_v53, %v5878_v9  ;;  %v6018_v8 = vmul.f32 %v6153_v0, %v10910_v22  ;;  %v6019_v3 = vmul.f32 %v10910_v22, %v5999_v14  ;;  %v5760_v17 = vmul.f32 %v5895_v34, %v12642_v28 }
 0x5dc   :  { %v6188_v5 = vadd.f32 %v6172_v32, %v6136_v11  ;;  %v6189_v12 = vadd.f32 %v6173_v55, %v6137_v26  ;;  %v5931_v1 = vadd.f32 %v5915_v43, %v5879_v57  ;;  %v5761_v48 = vmul.f32 %v6051_v15, %v12642_v28  ;;  %v7845_v55 = vld [vmem:[#allocation2 + $0x130] sm:$0xff] }
 0x5dd   :  { %v5982_v56 = vadd.f32 %v5966_v41, %v5930_v10  ;;  %v5812_v42 = vmul.f32 %v5947_v16, %v12643_v46  ;;  %v5813_v60 = vmul.f32 %v6103_v23, %v12643_v46  ;;  %v6070_v13 = vmul.f32 %v10920_v61, %v5895_v34 }
 0x5de   :  { %v6203_v31 = vpack.c.bf16 %v6189_v12, %v6188_v5  ;;  %v5983_v19 = vadd.f32 %v5967_v47, %v5931_v1  ;;  %v6071_v18 = vmul.f32 %v10920_v61, %v6051_v15  ;;  %v5864_v54 = vmul.f32 %v5999_v14, %v12645_v4  ;;  %v12652_v1 = vld [vmem:[#allocation12_spill] sm:$0xff] }
 0x5df   :  { %v6034_v40 = vadd.f32 %v6018_v8, %v5982_v56  ;;  %v5828_v0 = vadd.f32 %v5812_v42, %v5760_v17  ;;  %v5829_v2 = vadd.f32 %v5813_v60, %v5761_v48  ;;  %v5865_v44 = vmul.f32 %v6155_v21, %v12645_v4  ;;  %v6001_v4 = vld [vmem:[#allocation2 + $0x122] sm:$0xff]  ;;  %v12653_v60 = vld [vmem:[#allocation25_spill] sm:$0xff] }
 0x5e0   :  { %7752 = vmatmul.mubr.msk.bf16.gmra.mrb[88].mxu0 %vm43_vm1, %v6203_v31  ;;  %v6035_v20 = vadd.f32 %v6019_v3, %v5983_v19  ;;  %v6122_v35 = vmul.f32 %v10937_v51, %v5947_v16  ;;  %v6123_v46 = vmul.f32 %v10937_v51, %v6103_v23  ;;  %v5916_v7 = vmul.f32 %v6051_v15, %v12644_v25  ;;  %v12651_v15 = vld [vmem:[#allocation51_spill] sm:$0xff]  ;;  %v11580_v19 = vld [vmem:[%s12176_s11 + $0x3] ss:$0 sm:$0xff] }
 0x5e1   :  { %v6086_v28 = vadd.f32 %v6070_v13, %v6034_v40  ;;  %v5880_v39 = vadd.f32 %v5864_v54, %v5828_v0  ;;  %v5881_v62 = vadd.f32 %v5865_v44, %v5829_v2  ;;  %v5917_v34 = vmul.f32 %v12644_v25, %v5897_v45  ;;  %v12655_v54 = vld [vmem:[#allocation26_spill] sm:$0xff] }
 0x5e2   :  { %v6087_v59 = vadd.f32 %v6071_v18, %v6035_v20  ;;  %v6174_v50 = vmul.f32 %v10946_v49, %v5999_v14  ;;  %v6175_v53 = vmul.f32 %v10946_v49, %v6155_v21  ;;  %v5968_v24 = vmul.f32 %v6103_v23, %v12647_v27 }
 0x5e3   :  { %v6138_v52 = vadd.f32 %v6122_v35, %v6086_v28  ;;  %v5932_v33 = vadd.f32 %v5916_v7, %v5880_v39  ;;  %v5933_v58 = vadd.f32 %v5917_v34, %v5881_v62  ;;  %v5969_v30 = vmul.f32 %v12647_v27, %v5949_v6  ;;  %v7423_v28 = vld [vmem:[%s12174_s9 + $0x30] sm:$0x7]  ;;  %v6372_v7 = vld [vmem:[#allocation2] sm:$0xff]  ;;  %v12658_v34 = vld [vmem:[#allocation7_spill] sm:$0xff] }
 0x5e4   :  { %v6139_v37 = vadd.f32 %v6123_v46, %v6087_v59  ;;  %v6073_v43 = vmul.f32 %v7845_v55, %v10920_v61  ;;  %v6020_v26 = vmul.f32 %v6155_v21, %v10910_v22  ;;  %v6021_v9 = vmul.f32 %v10910_v22, %v6001_v4  ;;  %v12656_v59 = vld [vmem:[#allocation28_spill] sm:$0xff]  ;;  %v11599_v46 = vld [vmem:[%s12173_s8 + $0x4] ss:$0 sm:$0xff] }
 0x5e5   :  { %v6190_v16 = vadd.f32 %v6174_v50, %v6138_v52  ;;  %v5984_v11 = vadd.f32 %v5968_v24, %v5932_v33  ;;  %v5985_v25 = vadd.f32 %v5969_v30, %v5933_v58  ;;  %v6072_v47 = vmul.f32 %v10920_v61, %v5897_v45  ;;  %v7426_v61 = vld [vmem:[%s12175_s10 + $0x10] sm:$0xf]  ;;  %v12654_v45 = vld [vmem:[#allocation27_spill] sm:$0xff]  ;;  %s7872_s10 = smov 16  }
 0x5e6   :  { %v6191_v32 = vadd.f32 %v6175_v53, %v6139_v37  ;;  %v6125_v5 = vmul.f32 %v10937_v51, %v12651_v15  ;;  %v6124_v10 = vmul.f32 %v10937_v51, %v5949_v6  ;;  %v6177_v23 = vmul.f32 %v10946_v49, %v12652_v1  ;;  %7836 = vmatprep.subr.msk.bf16.mxu1 %vm205_vm0, %v7426_v61  ;;  %v12657_v6 = vld [vmem:[#allocation6_spill] sm:$0xff] }
 0x5e7   :  { %v6036_v14 = vadd.f32 %v6020_v26, %v5984_v11  ;;  %v6037_v41 = vadd.f32 %v6021_v9, %v5985_v25  ;;  %v6176_v22 = vmul.f32 %v10946_v49, %v6001_v4  ;;  %v6883_v51 = vsel %vm205_vm0, %v7426_v61, 0  ;;  %v6424_v53 = vld [vmem:[#allocation2 + $0x1] sm:$0xff]  ;;  %v12659_v25 = vld [vmem:[#allocation8_spill] sm:$0xff] }
 0x5e8   :  { %v6204_v57 = vpack.c.bf16 %v6191_v32, %v6190_v16  ;;  %7760 = vmatpush3.bf16.msra.mxu1 %v6883_v51  ;;  %v11603_v39 = vrot.slane %v7423_v28, %v12657_v6  ;;  %v11606_v52 = vrot.slane %v7423_v28, %v12658_v34  ;;  %v11615_v26 = vrot.slane %v7423_v28, %v12659_v25  ;;  %v12662_v61 = vld [vmem:[#allocation30_spill] sm:$0xff] }
 0x5e9   :  { %v6088_v27 = vadd.f32 %v6072_v47, %v6036_v14  ;;  %v6089_v12 = vadd.f32 %v6073_v43, %v6037_v41  ;;  %v6476_v41 = vld [vmem:[#allocation2 + $0x2] sm:$0xff] }
 0x5ea   :  { %7755 = vmatprep.mubr.msk.bf16.mxu0 %vm43_vm1, %v6204_v57  ;;  %v6392_v16 = vmul.f32 %v11603_v39, %v6372_v7  ;;  %v6444_v11 = vmul.f32 %v11606_v52, %v6424_v53 }
 0x5eb   :  { %v6140_v8 = vadd.f32 %v6124_v10, %v6088_v27  ;;  %v6141_v3 = vadd.f32 %v6125_v5, %v6089_v12  ;;  %v12660_v5 = vld [vmem:[#allocation29_spill] sm:$0xff] }
 0x5ed   :  { %v6192_v17 = vadd.f32 %v6176_v22, %v6140_v8  ;;  %v6193_v31 = vadd.f32 %v6177_v23, %v6141_v3  ;;  %v7424_v23 = vld [vmem:[%s12174_s9 + $0x34] sm:$0x7]  ;;  %v6460_v8 = vadd.f32 %v6444_v11, %v6392_v16  ;;  %v6496_v3 = vmul.f32 %v11615_v26, %v6476_v41  ;;  %v12661_v22 = vld [vmem:[#allocation31_spill] sm:$0xff] }
 0x5ef   :  { %v6205_v56 = vpack.c.bf16 %v6193_v31, %v6192_v17 }
 0x5f1   :  { %7756 = vmatmul.mubr.msk.bf16.gmra.mrb[92].mxu0 %vm43_vm1, %v6205_v56  ;;  %v11633_v56 = vrot.slane %v7424_v23, %v12657_v6 }
 0x659   :  { %v7727_v49 = vpop.f32.mrb[48].mxu1 }
 0x65a   :  { %v5636_v21 = vadd.f32 %v7727_v49, %v11580_v19  ;;  %v5627_v48 = vpop.f32.mrb[49].mxu1  ;;  %v6512_v49 = vadd.f32 %v6496_v3, %v6460_v8 }
 0x65b   :  { %v7728_v42 = vpop.f32.mrb[50].mxu1  ;;  %v5628_v20 = vadd.f32 %v11580_v19, %v5627_v48  ;;  %v12663_v48 = vld [vmem:[#allocation32_spill] sm:$0xff] }
 0x65c   :  { %v5692_v40 = vadd.f32 %v5636_v21, %v12653_v60  ;;  %v5639_v13 = vadd.f32 %v7728_v42, %v11580_v19  ;;  %v5630_v18 = vpop.f32.mrb[51].mxu1  ;;  %v11638_v21 = vrot.slane %v7424_v23, %v12658_v34 }
 0x65d   :  { %v5631_v2 = vadd.f32 %v11580_v19, %v5630_v18  ;;  %v5690_v44 = vadd.f32 %v5628_v20, %v12655_v54 }
 0x65e   :  { %v5693_v0 = vadd.f32 %v5639_v13, %v12654_v45  ;;  %7082 = vrot.lane.b32.xlu0 %v5692_v40, %s7872_s10  ;;  %v7425_v13 = vld [vmem:[%s12174_s9 + $0x38] sm:$0x7] }
 0x65f   :  { %v5691_v35 = vadd.f32 %v5631_v2, %v12656_v59  ;;  %v11649_v2 = vrot.slane %v7424_v23, %v12659_v25  ;;  %v11655_v7 = vrot.slane %v7425_v13, %v12657_v6 }
 0x660   :  { %7084 = vrot.lane.b32.xlu1 %v5693_v0, %s7872_s10 }
 0x662   :  { %7078 = vrot.lane.b32.xlu0 %v5690_v44, %s7872_s10 }
 0x664   :  { %7080 = vrot.lane.b32.xlu1 %v5691_v35, %s7872_s10 }
 0x665   :  { %v7745_v62 = vpop.f32.mrb[80].mxu0 }
 0x666   :  { %v6282_v37 = vadd.f32 %v7745_v62, %v11599_v46  ;;  %v6273_v50 = vpop.f32.mrb[81].mxu0 }
 0x667   :  { %v6274_v4 = vadd.f32 %v11599_v46, %v6273_v50  ;;  %v7746_v33 = vpop.f32.mrb[82].mxu0 }
 0x668   :  { %v6342_v58 = vmax.f32 %v6282_v37, 0.0  ;;  %v6285_v24 = vadd.f32 %v7746_v33, %v11599_v46  ;;  %v6276_v30 = vpop.f32.mrb[83].mxu0 }
 0x669   :  { %v7731_v32 = vpop.f32.mrb[52].mxu1  ;;  %v6340_v55 = vmax.f32 %v6274_v4, 0.0  ;;  %v6277_v43 = vadd.f32 %v11599_v46, %v6276_v30 }
 0x66a   :  { %v5652_v9 = vadd.f32 %v7731_v32, %v11580_v19  ;;  %6358 = vst.msk [vmem:[#allocation2 + $0x31] sm:$0xff] %vm43_vm1, %v6342_v58  ;;  %v5643_v57 = vpop.f32.mrb[53].mxu1  ;;  %v6343_v14 = vmax.f32 %v6285_v24, 0.0 }
 0x66b   :  { %6356 = vst.msk [vmem:[#allocation2 + $0x11] sm:$0xff] %vm43_vm1, %v6340_v55  ;;  %v7732_v47 = vpop.f32.mrb[54].mxu1  ;;  %v6341_v15 = vmax.f32 %v6277_v43, 0.0  ;;  %v5644_v12 = vadd.f32 %v11580_v19, %v5643_v57  ;;  %v11662_v55 = vrot.slane %v7425_v13, %v12658_v34 }
 0x66c   :  { %v5696_v27 = vadd.f32 %v5652_v9, %v12660_v5  ;;  %v5655_v10 = vadd.f32 %v7732_v47, %v11580_v19  ;;  %6359 = vst.msk [vmem:[#allocation2 + $0x41] sm:$0xff] %vm43_vm1, %v6343_v14  ;;  %v5646_v1 = vpop.f32.mrb[55].mxu1  ;;  %v11668_v47 = vrot.slane %v7425_v13, %v12659_v25 }
 0x66d   :  { %6357 = vst.msk [vmem:[#allocation2 + $0x21] sm:$0xff] %vm43_vm1, %v6341_v15  ;;  %v5647_v31 = vadd.f32 %v11580_v19, %v5646_v1  ;;  %v5694_v51 = vadd.f32 %v5644_v12, %v12662_v61 }
 0x66e   :  { %v5697_v17 = vadd.f32 %v5655_v10, %v12661_v22  ;;  %7090 = vrot.lane.b32.xlu0 %v5696_v27, %s7872_s10 }
 0x66f   :  { %v5695_v42 = vadd.f32 %v5647_v31, %v12663_v48 }
 0x670   :  { %7092 = vrot.lane.b32.xlu1 %v5697_v17, %s7872_s10 }
 0x671   :  { %v6685_v32 = vld [vmem:[#allocation2 + $0x30] sm:$0xff] }
 0x672   :  { %7086 = vrot.lane.b32.xlu0 %v5694_v51, %s7872_s10  ;;  %v6373_v60 = vld [vmem:[#allocation2 + $0x10] sm:$0xff]  ;;  %v6705_v14 = vmul.f32 %v11655_v7, %v6685_v32  ;;  %v6395_v51 = vmul.f32 %v6685_v32, %v11603_v39  ;;  %v6550_v48 = vmul.f32 %v6685_v32, %v11633_v56 }
 0x673   :  { %v6425_v40 = vld [vmem:[#allocation2 + $0x11] sm:$0xff]  ;;  %v6393_v18 = vmul.f32 %v11603_v39, %v6373_v60  ;;  %v6548_v0 = vmul.f32 %v11633_v56, %v6373_v60 }
 0x674   :  { %v6477_v20 = vld [vmem:[#allocation2 + $0x12] sm:$0xff]  ;;  %v6445_v45 = vmul.f32 %v11606_v52, %v6425_v40  ;;  %7088 = vrot.lane.b32.xlu1 %v5695_v42, %s7872_s10  ;;  %v6529_v54 = vld [vmem:[#allocation2 + $0x20] sm:$0xff]  ;;  %v6600_v35 = vmul.f32 %v11638_v21, %v6425_v40 }
 0x675   :  { %v6497_v28 = vmul.f32 %v11615_v26, %v6477_v20  ;;  %v6564_v59 = vadd.f32 %v6548_v0, %v6512_v49  ;;  %v6581_v62 = vld [vmem:[#allocation2 + $0x21] sm:$0xff]  ;;  %v6549_v50 = vmul.f32 %v11633_v56, %v6529_v54  ;;  %v6652_v4 = vmul.f32 %v11649_v2, %v6477_v20  ;;  %v6737_v9 = vld [vmem:[#allocation2 + $0x31] sm:$0xff] }
 0x676   :  { %v6461_v44 = vadd.f32 %v6445_v45, %v6393_v18  ;;  %v6633_v33 = vld [vmem:[#allocation2 + $0x22] sm:$0xff]  ;;  %v6601_v24 = vmul.f32 %v11638_v21, %v6581_v62  ;;  %v6704_v16 = vmul.f32 %v11655_v7, %v6529_v54  ;;  %v6756_v41 = vmul.f32 %v11662_v55, %v6581_v62  ;;  %v6789_v5 = vld [vmem:[#allocation2 + $0x32] sm:$0xff] }
 0x677   :  { %v6616_v53 = vadd.f32 %v6600_v35, %v6564_v59  ;;  %v6653_v6 = vmul.f32 %v11649_v2, %v6633_v33  ;;  %v6757_v15 = vmul.f32 %v11662_v55, %v6737_v9  ;;  %v6394_v34 = vmul.f32 %v6529_v54, %v11603_v39  ;;  %v6531_v54 = vld [vmem:[#allocation2 + $0x40] sm:$0xff] }
 0x678   :  { %v6513_v37 = vadd.f32 %v6497_v28, %v6461_v44  ;;  %v6446_v10 = vmul.f32 %v6581_v62, %v11606_v52  ;;  %v6808_v23 = vmul.f32 %v11668_v47, %v6633_v33  ;;  %v6809_v8 = vmul.f32 %v11668_v47, %v6789_v5  ;;  %v12664_v28 = vld [vmem:[#allocation33_spill] sm:$0xff] }
 0x679   :  { %v6668_v30 = vadd.f32 %v6652_v4, %v6616_v53  ;;  %v6498_v25 = vmul.f32 %v6633_v33, %v11615_v26  ;;  %v6447_v49 = vmul.f32 %v6737_v9, %v11606_v52  ;;  %v6602_v20 = vmul.f32 %v6737_v9, %v11638_v21 }
 0x67a   :  { %v6565_v58 = vadd.f32 %v6549_v50, %v6513_v37  ;;  %v6462_v17 = vadd.f32 %v6446_v10, %v6394_v34  ;;  %v6499_v45 = vmul.f32 %v6789_v5, %v11615_v26 }
 0x67b   :  { %v6720_v11 = vadd.f32 %v6704_v16, %v6668_v30  ;;  %v6463_v60 = vadd.f32 %v6447_v49, %v6395_v51  ;;  %v12665_v30 = vld [vmem:[#allocation35_spill] sm:$0xff] }
 0x67c   :  { %v6617_v43 = vadd.f32 %v6601_v24, %v6565_v58  ;;  %v6514_v61 = vadd.f32 %v6498_v25, %v6462_v17  ;;  %v6654_v58 = vmul.f32 %v6789_v5, %v11649_v2  ;;  %v6396_v17 = vmul.f32 %v6531_v54, %v11603_v39  ;;  %v6635_v25 = vld [vmem:[#allocation2 + $0x42] sm:$0xff] }
 0x67d   :  { %v6772_v12 = vadd.f32 %v6756_v41, %v6720_v11  ;;  %v6515_v53 = vadd.f32 %v6499_v45, %v6463_v60  ;;  %v6583_v11 = vld [vmem:[#allocation2 + $0x41] sm:$0xff] }
 0x67e   :  { %v6669_v57 = vadd.f32 %v6653_v6, %v6617_v43  ;;  %v6566_v42 = vadd.f32 %v6550_v48, %v6514_v61  ;;  %v6551_v6 = vmul.f32 %v11633_v56, %v6531_v54  ;;  %v6758_v49 = vmul.f32 %v11662_v55, %v6583_v11 }
 0x67f   :  { %v6824_v3 = vadd.f32 %v6808_v23, %v6772_v12  ;;  %v6706_v23 = vmul.f32 %v11655_v7, %v6531_v54  ;;  %v6655_v48 = vmul.f32 %v11649_v2, %v6635_v25  ;;  %v6810_v54 = vmul.f32 %v11668_v47, %v6635_v25 }
 0x680   :  { %v6721_v27 = vadd.f32 %v6705_v14, %v6669_v57  ;;  %v6618_v44 = vadd.f32 %v6602_v20, %v6566_v42  ;;  %v6567_v34 = vadd.f32 %v6551_v6, %v6515_v53  ;;  %v6500_v20 = vmul.f32 %v6635_v25, %v11615_v26 }
 0x682   :  { %v6773_v1 = vadd.f32 %v6757_v15, %v6721_v27  ;;  %v6670_v41 = vadd.f32 %v6654_v58, %v6618_v44  ;;  %v12666_v15 = vld [vmem:[#allocation34_spill] sm:$0xff] }
 0x684   :  { %v6825_v22 = vadd.f32 %v6809_v8, %v6773_v1  ;;  %v6603_v1 = vmul.f32 %v11638_v21, %v6583_v11  ;;  %v12667_v8 = vld [vmem:[#allocation36_spill] sm:$0xff]  ;;  %v6722_v61 = vadd.f32 %v6706_v23, %v6670_v41 }
 0x686   :  { %v6844_v31 = vpack.c.bf16 %v6825_v22, %v6824_v3  ;;  %v6619_v51 = vadd.f32 %v6603_v1, %v6567_v34  ;;  %v6774_v60 = vadd.f32 %v6758_v49, %v6722_v61 }
 0x688   :  { %7761 = vmatprep.mubr.msk.bf16.mxu1 %vm43_vm1, %v6844_v31  ;;  %v6448_v31 = vmul.f32 %v6583_v11, %v11606_v52 }
 0x68a   :  { %v6464_v42 = vadd.f32 %v6448_v31, %v6396_v17 }
 0x690   :  { %v7735_v40 = vpop.f32.mrb[56].mxu1 }
 0x691   :  { %v5668_v13 = vadd.f32 %v7735_v40, %v11580_v19  ;;  %v5659_v18 = vpop.f32.mrb[57].mxu1  ;;  %v6671_v40 = vadd.f32 %v6655_v48, %v6619_v51  ;;  %v6691_v51 = vld [vmem:[#allocation2 + $0x90] sm:$0xff] }
 0x692   :  { %v7736_v0 = vpop.f32.mrb[58].mxu1  ;;  %v7749_v35 = vpop.f32.mrb[84].mxu0  ;;  %v5660_v62 = vadd.f32 %v11580_v19, %v5659_v18 }
 0x693   :  { %v5700_v59 = vadd.f32 %v5668_v13, %v12664_v28  ;;  %v5671_v37 = vadd.f32 %v7736_v0, %v11580_v19  ;;  %v5662_v50 = vpop.f32.mrb[59].mxu1  ;;  %v6298_v4 = vadd.f32 %v7749_v35, %v11599_v46  ;;  %v6289_v33 = vpop.f32.mrb[85].mxu0  ;;  %v6826_v35 = vadd.f32 %v6810_v54, %v6774_v60 }
 0x694   :  { %v6290_v24 = vadd.f32 %v11599_v46, %v6289_v33  ;;  %v7750_v32 = vpop.f32.mrb[86].mxu0  ;;  %v5663_v43 = vadd.f32 %v11580_v19, %v5662_v50  ;;  %v5698_v27 = vadd.f32 %v5660_v62, %v12666_v15 }
 0x695   :  { %v5701_v16 = vadd.f32 %v5671_v37, %v12665_v30  ;;  %7098 = vrot.lane.b32.xlu0 %v5700_v59, %s7872_s10  ;;  %v6346_v9 = vmax.f32 %v6298_v4, 0.0  ;;  %v6301_v57 = vadd.f32 %v7750_v32, %v11599_v46  ;;  %v6292_v14 = vpop.f32.mrb[87].mxu0  ;;  %v6516_v59 = vadd.f32 %v6500_v20, %v6464_v42 }
 0x696   :  { %v6344_v5 = vmax.f32 %v6290_v24, 0.0  ;;  %v6293_v12 = vadd.f32 %v11599_v46, %v6292_v14  ;;  %v5699_v3 = vadd.f32 %v5663_v43, %v12667_v8 }
 0x697   :  { %7100 = vrot.lane.b32.xlu1 %v5701_v16, %s7872_s10  ;;  %6362 = vst.msk [vmem:[#allocation2 + $0x71] sm:$0xff] %vm43_vm1, %v6346_v9  ;;  %v6347_v10 = vmax.f32 %v6301_v57, 0.0 }
 0x698   :  { %6360 = vst.msk [vmem:[#allocation2 + $0x51] sm:$0xff] %vm43_vm1, %v6344_v5  ;;  %v6345_v22 = vmax.f32 %v6293_v12, 0.0 }
 0x699   :  { %7094 = vrot.lane.b32.xlu0 %v5698_v27, %s7872_s10  ;;  %6363 = vst.msk [vmem:[#allocation2 + $0x81] sm:$0xff] %vm43_vm1, %v6347_v10 }
 0x69a   :  { %6361 = vst.msk [vmem:[#allocation2 + $0x61] sm:$0xff] %vm43_vm1, %v6345_v22 }
 0x69b   :  { %7096 = vrot.lane.b32.xlu1 %v5699_v3, %s7872_s10 }
 0x69e   :  { %v6689_v13 = vld [vmem:[#allocation2 + $0x70] sm:$0xff] }
 0x69f   :  { %v6687_v18 = vld [vmem:[#allocation2 + $0x50] sm:$0xff]  ;;  %v6399_v4 = vmul.f32 %v6689_v13, %v11603_v39  ;;  %v6554_v42 = vmul.f32 %v6689_v13, %v11633_v56  ;;  %v6709_v54 = vmul.f32 %v11655_v7, %v6689_v13 }
 0x6a0   :  { %v6739_v45 = vld [vmem:[#allocation2 + $0x51] sm:$0xff]  ;;  %v6707_v44 = vmul.f32 %v11655_v7, %v6687_v18  ;;  %v6397_v28 = vmul.f32 %v6687_v18, %v11603_v39  ;;  %v6552_v50 = vmul.f32 %v6687_v18, %v11633_v56  ;;  %v6535_v1 = vld [vmem:[#allocation2 + $0x80] sm:$0xff] }
 0x6a1   :  { %v6791_v0 = vld [vmem:[#allocation2 + $0x52] sm:$0xff]  ;;  %v6449_v62 = vmul.f32 %v6739_v45, %v11606_v52  ;;  %v6533_v37 = vld [vmem:[#allocation2 + $0x60] sm:$0xff]  ;;  %v6759_v58 = vmul.f32 %v11662_v55, %v6739_v45  ;;  %v6604_v11 = vmul.f32 %v6739_v45, %v11638_v21  ;;  %v6555_v60 = vmul.f32 %v11633_v56, %v6535_v1 }
 0x6a2   :  { %v6585_v53 = vld [vmem:[#allocation2 + $0x61] sm:$0xff]  ;;  %v6723_v33 = vadd.f32 %v6707_v44, %v6671_v40  ;;  %v6811_v24 = vmul.f32 %v11668_v47, %v6791_v0  ;;  %v6501_v30 = vmul.f32 %v6791_v0, %v11615_v26  ;;  %v6741_v16 = vld [vmem:[#allocation2 + $0x71] sm:$0xff]  ;;  %v6553_v43 = vmul.f32 %v11633_v56, %v6533_v37 }
 0x6a3   :  { %v6465_v32 = vadd.f32 %v6449_v62, %v6397_v28  ;;  %v6568_v6 = vadd.f32 %v6552_v50, %v6516_v59  ;;  %v6637_v9 = vld [vmem:[#allocation2 + $0x62] sm:$0xff]  ;;  %v6793_v57 = vld [vmem:[#allocation2 + $0x72] sm:$0xff]  ;;  %v6605_v41 = vmul.f32 %v11638_v21, %v6585_v53  ;;  %v6656_v15 = vmul.f32 %v6791_v0, %v11649_v2 }
 0x6a4   :  { %v6775_v14 = vadd.f32 %v6759_v58, %v6723_v33  ;;  %v6398_v27 = vmul.f32 %v6533_v37, %v11603_v39  ;;  %v6450_v34 = vmul.f32 %v6585_v53, %v11606_v52  ;;  %v6451_v10 = vmul.f32 %v6741_v16, %v11606_v52  ;;  %v6587_v0 = vld [vmem:[#allocation2 + $0x81] sm:$0xff] }
 0x6a5   :  { %v6517_v5 = vadd.f32 %v6501_v30, %v6465_v32  ;;  %v6620_v12 = vadd.f32 %v6604_v11, %v6568_v6  ;;  %v6708_v8 = vmul.f32 %v11655_v7, %v6533_v37  ;;  %v6502_v3 = vmul.f32 %v6637_v9, %v11615_v26  ;;  %v6639_v59 = vld [vmem:[#allocation2 + $0x82] sm:$0xff] }
 0x6a6   :  { %v6827_v23 = vadd.f32 %v6811_v24, %v6775_v14  ;;  %v6503_v22 = vmul.f32 %v6793_v57, %v11615_v26  ;;  %v6466_v25 = vadd.f32 %v6450_v34, %v6398_v27  ;;  %v6467_v61 = vadd.f32 %v6451_v10, %v6399_v4 }
 0x6a7   :  { %v6569_v17 = vadd.f32 %v6553_v43, %v6517_v5  ;;  %v6672_v31 = vadd.f32 %v6656_v15, %v6620_v12  ;;  %v6657_v48 = vmul.f32 %v11649_v2, %v6637_v9  ;;  %v6760_v44 = vmul.f32 %v11662_v55, %v6585_v53 }
 0x6a8   :  { %v6845_v49 = vpack.c.bf16 %v6827_v23, %v6826_v35  ;;  %v6518_v18 = vadd.f32 %v6502_v3, %v6466_v25  ;;  %v6519_v45 = vadd.f32 %v6503_v22, %v6467_v61  ;;  %v6761_v28 = vmul.f32 %v11662_v55, %v6741_v16 }
 0x6a9   :  { %v6621_v40 = vadd.f32 %v6605_v41, %v6569_v17  ;;  %v6724_v20 = vadd.f32 %v6708_v8, %v6672_v31  ;;  %v6711_v35 = vmul.f32 %v11655_v7, %v6691_v51  ;;  %v6606_v33 = vmul.f32 %v6741_v16, %v11638_v21  ;;  %v6743_v41 = vld [vmem:[#allocation2 + $0x91] sm:$0xff] }
 0x6aa   :  { %7762 = vmatmul.mubr.msk.bf16.vlgmr.msra.gmra.mrb[64].mxu1 %vm43_vm1, %v6845_v49  ;;  %v6570_v50 = vadd.f32 %v6554_v42, %v6518_v18  ;;  %v6571_v4 = vadd.f32 %v6555_v60, %v6519_v45  ;;  %v6813_v30 = vmul.f32 %v11668_v47, %v6793_v57  ;;  %v6607_v13 = vmul.f32 %v11638_v21, %v6587_v0  ;;  %v6795_v8 = vld [vmem:[#allocation2 + $0x92] sm:$0xff]  ;;  %v6432_v18 = vld [vmem:[#allocation2 + $0xa1] sm:$0xff] }
 0x6ab   :  { %v6673_v37 = vadd.f32 %v6657_v48, %v6621_v40  ;;  %v6658_v53 = vmul.f32 %v6793_v57, %v11649_v2  ;;  %v6776_v6 = vadd.f32 %v6760_v44, %v6724_v20  ;;  %v6659_v14 = vmul.f32 %v11649_v2, %v6639_v59  ;;  %v6380_v48 = vld [vmem:[#allocation2 + $0xa0] sm:$0xff] }
 0x6ac   :  { %v7739_v62 = vpop.f32.mrb[60].mxu1  ;;  %v6622_v11 = vadd.f32 %v6606_v33, %v6570_v50  ;;  %v6623_v12 = vadd.f32 %v6607_v13, %v6571_v4  ;;  %v6812_v10 = vmul.f32 %v11668_v47, %v6637_v9  ;;  %v6710_v57 = vmul.f32 %v11655_v7, %v6535_v1 }
 0x6ad   :  { %v5684_v58 = vadd.f32 %v7739_v62, %v11580_v19  ;;  %v5675_v24 = vpop.f32.mrb[61].mxu1  ;;  %v6725_v43 = vadd.f32 %v6709_v54, %v6673_v37  ;;  %v6763_v17 = vmul.f32 %v11662_v55, %v6743_v41  ;;  %v6762_v51 = vmul.f32 %v11662_v55, %v6587_v0 }
 0x6ae   :  { %v7740_v32 = vpop.f32.mrb[62].mxu1  ;;  %v5676_v16 = vadd.f32 %v11580_v19, %v5675_v24  ;;  %v6674_v23 = vadd.f32 %v6658_v53, %v6622_v11  ;;  %v6828_v31 = vadd.f32 %v6812_v10, %v6776_v6  ;;  %v6814_v20 = vmul.f32 %v11668_v47, %v6639_v59 }
 0x6af   :  { %v5704_v15 = vadd.f32 %v5684_v58, %v12608_v38  ;;  %v5687_v27 = vadd.f32 %v7740_v32, %v11580_v19  ;;  %v5678_v5 = vpop.f32.mrb[63].mxu1  ;;  %v6777_v34 = vadd.f32 %v6761_v28, %v6725_v43  ;;  %v6675_v38 = vadd.f32 %v6659_v14, %v6623_v12  ;;  %v6484_v58 = vld [vmem:[#allocation2 + $0xa2] sm:$0xff] }
 0x6b0   :  { %v5679_v22 = vadd.f32 %v11580_v19, %v5678_v5  ;;  %v6726_v61 = vadd.f32 %v6710_v57, %v6674_v23  ;;  %v5702_v9 = vadd.f32 %v5676_v16, %v12631_v36  ;;  %v6400_v37 = vmul.f32 %v11603_v39, %v6380_v48 }
 0x6b1   :  { %v5705_v3 = vadd.f32 %v5687_v27, %v12635_v63  ;;  %7106 = vrot.lane.b32.xlu0 %v5704_v15, %s7872_s10  ;;  %v6829_v25 = vadd.f32 %v6813_v30, %v6777_v34  ;;  %v6727_v1 = vadd.f32 %v6711_v35, %v6675_v38  ;;  %v6815_v63 = vmul.f32 %v11668_v47, %v6795_v8  ;;  %v11776_v15 = vpop.permute.xlu0 %7014 }
 0x6b2   :  { %v6778_v40 = vadd.f32 %v6762_v51, %v6726_v61  ;;  %v5703_v54 = vadd.f32 %v5679_v22, %v12637_v29  ;;  %v6452_v29 = vmul.f32 %v11606_v52, %v6432_v18  ;;  %v6504_v53 = vmul.f32 %v11615_v26, %v6484_v58 }
 0x6b3   :  { %v7753_v49 = vpop.f32.mrb[88].mxu0  ;;  %7108 = vrot.lane.b32.xlu1 %v5705_v3, %s7872_s10  ;;  %v6846_v60 = vpack.c.bf16 %v6829_v25, %v6828_v31  ;;  %v6779_v36 = vadd.f32 %v6763_v17, %v6727_v1 }
 0x6b4   :  { %v6314_v19 = vadd.f32 %v7753_v49, %v11599_v46  ;;  %v6305_v42 = vpop.f32.mrb[89].mxu0  ;;  %v6830_v62 = vadd.f32 %v6814_v20, %v6778_v40  ;;  %v6468_v13 = vadd.f32 %v6452_v29, %v6400_v37  ;;  %v11793_v49 = vpop.permute.xlu1 %7018 }
 0x6b5   :  { %v6306_v45 = vadd.f32 %v11599_v46, %v6305_v42  ;;  %v7754_v0 = vpop.f32.mrb[90].mxu0  ;;  %7102 = vrot.lane.b32.xlu0 %v5702_v9, %s7872_s10  ;;  %7765 = vmatprep.mubr.msk.bf16.mxu1 %vm43_vm1, %v6846_v60  ;;  %v6831_v4 = vadd.f32 %v6815_v63, %v6779_v36 }
 0x6b6   :  { %v6350_v44 = vmax.f32 %v6314_v19, 0.0  ;;  %v6317_v28 = vadd.f32 %v7754_v0, %v11599_v46  ;;  %v6308_v35 = vpop.f32.mrb[91].mxu0  ;;  %v6520_v32 = vadd.f32 %v6504_v53, %v6468_v13 }
 0x6b7   :  { %v6348_v50 = vmax.f32 %v6306_v45, 0.0  ;;  %v6309_v59 = vadd.f32 %v11599_v46, %v6308_v35  ;;  %7104 = vrot.lane.b32.xlu1 %v5703_v54, %s7872_s10  ;;  %v6847_v30 = vpack.c.bf16 %v6831_v4, %v6830_v62  ;;  %v11800_v45 = vpop.permute.xlu0 %7016 }
 0x6b8   :  { %6366 = vst.msk [vmem:[#allocation2 + $0xd1] sm:$0xff] %vm43_vm1, %v6350_v44  ;;  %v6351_v33 = vmax.f32 %v6317_v28, 0.0 }
 0x6b9   :  { %6364 = vst.msk [vmem:[#allocation2 + $0xb1] sm:$0xff] %vm43_vm1, %v6348_v50  ;;  %v6349_v24 = vmax.f32 %v6309_v59, 0.0  ;;  %7766 = vmatmul.mubr.msk.bf16.gmra.mrb[68].mxu1 %vm43_vm1, %v6847_v30 }
 0x6ba   :  { %6367 = vst.msk [vmem:[#allocation2 + $0xe1] sm:$0xff] %vm43_vm1, %v6351_v33 }
 0x6bb   :  { %6365 = vst.msk [vmem:[#allocation2 + $0xc1] sm:$0xff] %vm43_vm1, %v6349_v24 }
 0x6bf   :  { %v6693_v43 = vld [vmem:[#allocation2 + $0xd0] sm:$0xff] }
 0x6c0   :  { %v11774_v6 = vld [vmem:[#allocation2 + $0xd1] sm:$0xff]  ;;  %v6403_v23 = vmul.f32 %v6693_v43, %v11603_v39  ;;  %v6558_v50 = vmul.f32 %v6693_v43, %v11633_v56 }
 0x6c1   :  { %v6381_v11 = vld [vmem:[#allocation2 + $0xb0] sm:$0xff]  ;;  %v6455_v57 = vmul.f32 %v11774_v6, %v11606_v52  ;;  %v6539_v19 = vld [vmem:[#allocation2 + $0xe0] sm:$0xff] }
 0x6c2   :  { %v6433_v14 = vld [vmem:[#allocation2 + $0xb1] sm:$0xff]  ;;  %v6401_v16 = vmul.f32 %v11603_v39, %v6381_v11  ;;  %v6556_v5 = vmul.f32 %v11633_v56, %v6381_v11  ;;  %v6537_v34 = vld [vmem:[#allocation2 + $0xc0] sm:$0xff]  ;;  %v6559_v59 = vmul.f32 %v11633_v56, %v6539_v19 }
 0x6c3   :  { %v6485_v41 = vld [vmem:[#allocation2 + $0xb2] sm:$0xff]  ;;  %v6453_v27 = vmul.f32 %v11606_v52, %v6433_v14  ;;  %v6589_v10 = vld [vmem:[#allocation2 + $0xc1] sm:$0xff]  ;;  %v6608_v38 = vmul.f32 %v11638_v21, %v6433_v14  ;;  %v6557_v31 = vmul.f32 %v11633_v56, %v6537_v34  ;;  %v6402_v63 = vmul.f32 %v6537_v34, %v11603_v39  ;;  %v11808_v14 = vpop.permute.xlu1 %7020 }
 0x6c4   :  { %v11781_v12 = vld [vmem:[#allocation2 + $0xd2] sm:$0xff]  ;;  %v6505_v3 = vmul.f32 %v11615_v26, %v6485_v41  ;;  %v6572_v22 = vadd.f32 %v6556_v5, %v6520_v32  ;;  %v6641_v17 = vld [vmem:[#allocation2 + $0xc2] sm:$0xff]  ;;  %v6609_v25 = vmul.f32 %v11638_v21, %v6589_v10  ;;  %v6660_v61 = vmul.f32 %v11649_v2, %v6485_v41  ;;  %v7757_v42 = vpop.f32.mrb[92].mxu0 }
 0x6c5   :  { %v6469_v8 = vadd.f32 %v6453_v27, %v6401_v16  ;;  %v6507_v51 = vmul.f32 %v11781_v12, %v11615_v26  ;;  %v6454_v48 = vmul.f32 %v6589_v10, %v11606_v52  ;;  %v6661_v60 = vmul.f32 %v11649_v2, %v6641_v17  ;;  %v6321_v54 = vpop.f32.mrb[93].mxu0  ;;  %v6591_v30 = vld [vmem:[#allocation2 + $0xe1] sm:$0xff] }
 0x6c6   :  { %v6624_v1 = vadd.f32 %v6608_v38, %v6572_v22  ;;  %v6712_v40 = vmul.f32 %v11655_v7, %v6537_v34  ;;  %v6471_v20 = vadd.f32 %v6455_v57, %v6403_v23  ;;  %v6506_v18 = vmul.f32 %v6641_v17, %v11615_v26  ;;  %v7758_v62 = vpop.f32.mrb[94].mxu0  ;;  %v6643_v38 = vld [vmem:[#allocation2 + $0xe2] sm:$0xff] }
 0x6c7   :  { %v6521_v9 = vadd.f32 %v6505_v3, %v6469_v8  ;;  %v6330_v0 = vadd.f32 %v7757_v42, %v11599_v46  ;;  %v6470_v28 = vadd.f32 %v6454_v48, %v6402_v63  ;;  %v6322_v35 = vadd.f32 %v11599_v46, %v6321_v54  ;;  %v6324_v33 = vpop.f32.mrb[95].mxu0  ;;  %v11817_v8 = vpop.permute.xlu0 %7026 }
 0x6c8   :  { %v6676_v44 = vadd.f32 %v6660_v61, %v6624_v1  ;;  %v6523_v37 = vadd.f32 %v6507_v51, %v6471_v20  ;;  %v6333_v29 = vadd.f32 %v7758_v62, %v11599_v46  ;;  %v6325_v53 = vadd.f32 %v11599_v46, %v6324_v33  ;;  %v11826_v51 = vpop.permute.xlu1 %7028 }
 0x6c9   :  { %v6573_v36 = vadd.f32 %v6557_v31, %v6521_v9  ;;  %v6354_v4 = vmax.f32 %v6330_v0, 0.0  ;;  %v6352_v13 = vmax.f32 %v6322_v35, 0.0  ;;  %v6522_v32 = vadd.f32 %v6506_v18, %v6470_v28 }
 0x6ca   :  { %v6728_v24 = vadd.f32 %v6712_v40, %v6676_v44  ;;  %v6575_v11 = vadd.f32 %v6559_v59, %v6523_v37  ;;  %v6355_v41 = vmax.f32 %v6333_v29, 0.0  ;;  %v6713_v27 = vmul.f32 %v11655_v7, %v6693_v43 }
 0x6cb   :  { %v6625_v58 = vadd.f32 %v6609_v25, %v6573_v36  ;;  %6370 = vst.msk [vmem:[#allocation2 + $0x111] sm:$0xff] %vm43_vm1, %v6354_v4  ;;  %v6764_v5 = vmul.f32 %v11662_v55, %v6589_v10  ;;  %6368 = vst.msk [vmem:[#allocation2 + $0xf1] sm:$0xff] %vm43_vm1, %v6352_v13  ;;  %v6353_v34 = vmax.f32 %v6325_v53, 0.0  ;;  %v6574_v23 = vadd.f32 %v6558_v50, %v6522_v32  ;;  %v11835_v44 = vpop.permute.xlu0 %7022 }
 0x6cc   :  { %v6610_v57 = vmul.f32 %v11774_v6, %v11638_v21  ;;  %v6611_v46 = vmul.f32 %v11638_v21, %v6591_v30  ;;  %6371 = vst.msk [vmem:[#allocation2 + $0x121] sm:$0xff] %vm43_vm1, %v6355_v41  ;;  %v6765_v22 = vmul.f32 %v11662_v55, %v11774_v6  ;;  %v6662_v25 = vmul.f32 %v11781_v12, %v11649_v2  ;;  %v11839_v59 = vpop.permute.xlu1 %7024 }
 0x6cd   :  { %v6677_v16 = vadd.f32 %v6661_v60, %v6625_v58  ;;  %v6780_v43 = vadd.f32 %v6764_v5, %v6728_v24  ;;  %6369 = vst.msk [vmem:[#allocation2 + $0x101] sm:$0xff] %vm43_vm1, %v6353_v34  ;;  %v6404_v61 = vmul.f32 %v6539_v19, %v11603_v39  ;;  %v6816_v1 = vmul.f32 %v11668_v47, %v6641_v17 }
 0x6ce   :  { %v6626_v10 = vadd.f32 %v6610_v57, %v6574_v23  ;;  %v6627_v31 = vadd.f32 %v6611_v46, %v6575_v11  ;;  %v6817_v63 = vmul.f32 %v11668_v47, %v11781_v12  ;;  %v6456_v6 = vmul.f32 %v6591_v30, %v11606_v52 }
 0x6cf   :  { %v6729_v3 = vadd.f32 %v6713_v27, %v6677_v16  ;;  %v6663_v48 = vmul.f32 %v11649_v2, %v6643_v38  ;;  %v6714_v60 = vmul.f32 %v11655_v7, %v6539_v19  ;;  %v6832_v40 = vadd.f32 %v6816_v1, %v6780_v43 }
 0x6d0   :  { %v6678_v42 = vadd.f32 %v6662_v25, %v6626_v10  ;;  %v6472_v18 = vadd.f32 %v6456_v6, %v6404_v61  ;;  %v6766_v36 = vmul.f32 %v11662_v55, %v6591_v30  ;;  %v6508_v12 = vmul.f32 %v6643_v38, %v11615_v26  ;;  %v11858_v6 = vpop.permute.xlu1 %7036 }
 0x6d1   :  { %v6781_v9 = vadd.f32 %v6765_v22, %v6729_v3  ;;  %v6679_v0 = vadd.f32 %v6663_v48, %v6627_v31  ;;  %v6818_v13 = vmul.f32 %v11668_v47, %v6643_v38  ;;  %v11851_v3 = vpop.permute.xlu0 %7034 }
 0x6d2   :  { %v6730_v54 = vadd.f32 %v6714_v60, %v6678_v42  ;;  %v6695_v28 = vld [vmem:[#allocation2 + $0xf0] sm:$0xff]  ;;  %v6524_v29 = vadd.f32 %v6508_v12, %v6472_v18 }
 0x6d3   :  { %v6833_v20 = vadd.f32 %v6817_v63, %v6781_v9  ;;  %v6747_v35 = vld [vmem:[#allocation2 + $0xf1] sm:$0xff]  ;;  %v6715_v62 = vmul.f32 %v11655_v7, %v6695_v28  ;;  %v6405_v19 = vmul.f32 %v6695_v28, %v11603_v39  ;;  %v6560_v58 = vmul.f32 %v6695_v28, %v11633_v56 }
 0x6d4   :  { %v6782_v37 = vadd.f32 %v6766_v36, %v6730_v54  ;;  %v6799_v50 = vld [vmem:[#allocation2 + $0xf2] sm:$0xff]  ;;  %v6457_v4 = vmul.f32 %v6747_v35, %v11606_v52  ;;  %v6541_v33 = vld [vmem:[#allocation2 + $0x100] sm:$0xff]  ;;  %v6767_v30 = vmul.f32 %v11662_v55, %v6747_v35  ;;  %v6612_v16 = vmul.f32 %v6747_v35, %v11638_v21 }
 0x6d5   :  { %v6848_v17 = vpack.c.bf16 %v6833_v20, %v6832_v40  ;;  %v6731_v24 = vadd.f32 %v6715_v62, %v6679_v0  ;;  %v6593_v53 = vld [vmem:[#allocation2 + $0x101] sm:$0xff]  ;;  %v6509_v11 = vmul.f32 %v6799_v50, %v11615_v26  ;;  %v6576_v41 = vadd.f32 %v6560_v58, %v6524_v29  ;;  %v6697_v27 = vld [vmem:[#allocation2 + $0x110] sm:$0xff] }
 0x6d6   :  { %v6473_v32 = vadd.f32 %v6457_v4, %v6405_v19  ;;  %v6819_v34 = vmul.f32 %v11668_v47, %v6799_v50  ;;  %v6834_v23 = vadd.f32 %v6818_v13, %v6782_v37  ;;  %v6561_v57 = vmul.f32 %v11633_v56, %v6541_v33  ;;  %v6749_v46 = vld [vmem:[#allocation2 + $0x111] sm:$0xff]  ;;  %v6645_v10 = vld [vmem:[#allocation2 + $0x102] sm:$0xff] }
 0x6d7   :  { %7769 = vmatprep.mubr.msk.bf16.mxu1 %vm43_vm1, %v6848_v17  ;;  %v6783_v5 = vadd.f32 %v6767_v30, %v6731_v24  ;;  %v6613_v43 = vmul.f32 %v11638_v21, %v6593_v53  ;;  %v6628_v38 = vadd.f32 %v6612_v16, %v6576_v41  ;;  %v6664_v31 = vmul.f32 %v6799_v50, %v11649_v2  ;;  %v6801_v61 = vld [vmem:[#allocation2 + $0x112] sm:$0xff]  ;;  %v6543_v36 = vld [vmem:[#allocation2 + $0x120] sm:$0xff]  ;;  %v11868_v50 = vpop.permute.xlu0 %7030 }
 0x6d8   :  { %v6525_v22 = vadd.f32 %v6509_v11, %v6473_v32  ;;  %v6406_v9 = vmul.f32 %v6541_v33, %v11603_v39  ;;  %v6407_v1 = vmul.f32 %v6697_v27, %v11603_v39  ;;  %v6458_v63 = vmul.f32 %v6593_v53, %v11606_v52  ;;  %v6699_v58 = vld [vmem:[#allocation2 + $0x130] sm:$0xff]  ;;  %v6647_v13 = vld [vmem:[#allocation2 + $0x122] sm:$0xff]  ;;  %v11874_v32 = vpop.permute.xlu1 %7032 }
 0x6d9   :  { %v6835_v25 = vadd.f32 %v6819_v34, %v6783_v5  ;;  %v6680_v42 = vadd.f32 %v6664_v31, %v6628_v38  ;;  %v6716_v60 = vmul.f32 %v11655_v7, %v6541_v33  ;;  %v6459_v40 = vmul.f32 %v6749_v46, %v11606_v52  ;;  %v6595_v52 = vld [vmem:[#allocation2 + $0x121] sm:$0xff] }
 0x6da   :  { %v6577_v48 = vadd.f32 %v6561_v57, %v6525_v22  ;;  %v6665_v18 = vmul.f32 %v11649_v2, %v6645_v10  ;;  %v6474_v0 = vadd.f32 %v6458_v63, %v6406_v9  ;;  %v6510_v54 = vmul.f32 %v6645_v10, %v11615_v26 }
 0x6db   :  { %v6849_v20 = vpack.c.bf16 %v6835_v25, %v6834_v23  ;;  %v6732_v28 = vadd.f32 %v6716_v60, %v6680_v42  ;;  %v6475_v39 = vadd.f32 %v6459_v40, %v6407_v1  ;;  %v6511_v35 = vmul.f32 %v6801_v61, %v11615_v26  ;;  %v6751_v23 = vld [vmem:[#allocation2 + $0x131] sm:$0xff]  ;;  %v7043_v9 = vpop.permute.xlu0 %7042 }
 0x6dc   :  { %v6629_v17 = vadd.f32 %v6613_v43, %v6577_v48  ;;  %v6717_v12 = vmul.f32 %v11655_v7, %v6697_v27  ;;  %v6526_v62 = vadd.f32 %v6510_v54, %v6474_v0  ;;  %v6562_v37 = vmul.f32 %v6697_v27, %v11633_v56  ;;  %v6803_v25 = vld [vmem:[#allocation2 + $0x132] sm:$0xff]  ;;  %v7045_v60 = vpop.permute.xlu1 %7044 }
 0x6dd   :  { %7770 = vmatmul.mubr.msk.bf16.gmra.mrb[72].mxu1 %vm43_vm1, %v6849_v20  ;;  %v6768_v4 = vmul.f32 %v11662_v55, %v6593_v53  ;;  %v6527_v29 = vadd.f32 %v6511_v35, %v6475_v39  ;;  %v6563_v33 = vmul.f32 %v11633_v56, %v6543_v36  ;;  %v6769_v24 = vmul.f32 %v11662_v55, %v6749_v46 }
 0x6de   :  { %v6681_v19 = vadd.f32 %v6665_v18, %v6629_v17  ;;  %v6578_v26 = vadd.f32 %v6562_v37, %v6526_v62  ;;  %v6614_v30 = vmul.f32 %v6749_v46, %v11638_v21  ;;  %v6615_v27 = vmul.f32 %v11638_v21, %v6595_v52  ;;  %v7316_v37 = vld [vmem:[%s12176_s11] ss:$0 sm:$0xff] }
 0x6df   :  { %v6784_v41 = vadd.f32 %v6768_v4, %v6732_v28  ;;  %v6579_v16 = vadd.f32 %v6563_v33, %v6527_v29  ;;  %v6820_v5 = vmul.f32 %v11668_v47, %v6645_v10  ;;  %v6666_v34 = vmul.f32 %v6801_v61, %v11649_v2  ;;  %v11888_v54 = vpop.permute.xlu0 %7038  ;;  %v12668_v33 = vld [vmem:[#allocation55_spill] sm:$0xff] }
 0x6e0   :  { %v6733_v11 = vadd.f32 %v6717_v12, %v6681_v19  ;;  %v6630_v53 = vadd.f32 %v6614_v30, %v6578_v26  ;;  %v6719_v56 = vmul.f32 %v11655_v7, %v6699_v58  ;;  %v6821_v22 = vmul.f32 %v11668_v47, %v6801_v61  ;;  %v11890_v17 = vpop.permute.xlu1 %7040 }
 0x6e1   :  { %v6631_v46 = vadd.f32 %v6615_v27, %v6579_v16  ;;  %v6667_v43 = vmul.f32 %v11649_v2, %v6647_v13  ;;  %v6718_v31 = vmul.f32 %v11655_v7, %v6543_v36  ;;  %v6836_v21 = vadd.f32 %v6820_v5, %v6784_v41  ;;  %v12670_v41 = vld [vmem:[#allocation58_spill] sm:$0xff] }
 0x6e2   :  { %v6785_v57 = vadd.f32 %v6769_v24, %v6733_v11  ;;  %v6682_v38 = vadd.f32 %v6666_v34, %v6630_v53  ;;  %v6771_v63 = vmul.f32 %v11662_v55, %v6751_v23  ;;  %v6770_v42 = vmul.f32 %v11662_v55, %v6595_v52  ;;  %v7344_v52 = vld [vmem:[%s12176_s11 + $0x1] ss:$0 sm:$0xff]  ;;  %v12669_v24 = vld [vmem:[#allocation47_spill] sm:$0xff]  ;;  %v12671_v34 = vld [vmem:[#allocation41_spill] sm:$0xff] }
 0x6e3   :  { %v6683_v10 = vadd.f32 %v6667_v43, %v6631_v46  ;;  %v6823_v61 = vmul.f32 %v11668_v47, %v6803_v25  ;;  %v6822_v2 = vmul.f32 %v11668_v47, %v6647_v13  ;;  %v11893_v55 = vpop.permute.xlu0 %7082  ;;  %v11913_v4 = vadd.f32 %v7344_v52, %v7316_v37  ;;  %v12672_v43 = vld [vmem:[#allocation13_spill] sm:$0xff] }
 0x6e4   :  { %v6837_v1 = vadd.f32 %v6821_v22, %v6785_v57  ;;  %v6734_v48 = vadd.f32 %v6718_v31, %v6682_v38  ;;  %v11895_v39 = vpop.permute.xlu1 %7084  ;;  %v12673_v31 = vld [vmem:[#allocation15_spill] sm:$0xff] }
 0x6e5   :  { %v6735_v20 = vadd.f32 %v6719_v56, %v6683_v10  ;;  %v11919_v58 = vadd.f32 %v11913_v4, %v12668_v33  ;;  %v11923_v26 = vadd.f32 %v11913_v4, %v12669_v24  ;;  %v11933_v16 = vadd.f32 %v11913_v4, %v12670_v41 }
 0x6e6   :  { %v6850_v40 = vpack.c.bf16 %v6837_v1, %v6836_v21  ;;  %v6786_v18 = vadd.f32 %v6770_v42, %v6734_v48  ;;  %v11959_v38 = vadd.f32 %v11913_v4, %v12672_v43  ;;  %v11963_v25 = vadd.f32 %v11913_v4, %v12673_v31  ;;  %v12674_v48 = vld [vmem:[#allocation43_spill] sm:$0xff] }
 0x6e7   :  { %v6787_v7 = vadd.f32 %v6771_v63, %v6735_v20  ;;  %v11897_v35 = vpop.permute.xlu0 %7078  ;;  %v7200_v30 = vsel %vm43_vm1, %v11919_v58, %v11851_v3  ;;  %v7201_v27 = vsel %vm43_vm1, %v11923_v26, %v11858_v6  ;;  %v11943_v3 = vadd.f32 %v11913_v4, %v12671_v34 }
 0x6e8   :  { %7773 = vmatprep.mubr.msk.bf16.mxu1 %vm43_vm1, %v6850_v40  ;;  %v6838_v0 = vadd.f32 %v6822_v2, %v6786_v18  ;;  %v11899_v12 = vpop.permute.xlu1 %7080  ;;  %v7198_v56 = vsel %vm43_vm1, %v11933_v16, %v11868_v50  ;;  %v7204_v50 = vsel %vm43_vm1, %v11959_v38, %v7043_v9  ;;  %v7777_v42 = vadd.f32 %v12674_v48, %v7316_v37  ;;  %v11979_v40 = vld [vmem:[%s12176_s11 + $0x4] ss:$0 sm:$0xff]  ;;  %s7873_s11 = smov 24  }
 0x6e9   :  { %v6839_v36 = vadd.f32 %v6823_v61, %v6787_v7  ;;  %v7199_v6 = vsel %vm43_vm1, %v11943_v3, %v11874_v32  ;;  %v7205_v32 = vsel %vm43_vm1, %v11963_v25, %v7045_v60  ;;  %v12675_v61 = vld [vmem:[#allocation56_spill] sm:$0xff] }
 0x6ea   :  { %v11981_v9 = vadd.f32 %v7777_v42, %v7344_v52  ;;  %v7779_v18 = vadd.f32 %v7316_v37, %v12675_v61 }
 0x6eb   :  { %v6851_v28 = vpack.c.bf16 %v6839_v36, %v6838_v0  ;;  %v11901_v47 = vpop.permute.xlu0 %7090  ;;  %v12676_v0 = vld [vmem:[#allocation42_spill] sm:$0xff] }
 0x6ec   :  { %v11903_v62 = vpop.permute.xlu1 %7092  ;;  %v11987_v36 = vadd.f32 %v11913_v4, %v12676_v0 }
 0x6ed   :  { %7774 = vmatmul.mubr.msk.bf16.gmra.mrb[76].mxu1 %vm43_vm1, %v6851_v28 }
 0x6ef   :  { %v11911_v19 = vpop.permute.xlu0 %7086 }
 0x6f0   :  { %v11915_v29 = vpop.permute.xlu1 %7088 }
 0x707   :  { %v7099_v13 = vpop.permute.xlu0 %7098 }
 0x708   :  { %v11929_v11 = vsel %vm7206_vm3, %v7200_v30, %v7099_v13  ;;  %v11992_v13 = vadd.f32 %v7779_v18, %v7344_v52 }
 0x709   :  { %v7101_v5 = vpop.permute.xlu1 %7100 }
 0x70a   :  { %v11939_v53 = vsel %vm7206_vm3, %v7201_v27, %v7101_v5  ;;  %v12677_v27 = vld [vmem:[#allocation52_spill] sm:$0xff] }
 0x70b   :  { %v7095_v23 = vpop.permute.xlu0 %7094  ;;  %v11999_v5 = vadd.f32 %v11913_v4, %v12677_v27 }
 0x70c   :  { %v11949_v57 = vsel %vm7206_vm3, %v7198_v56, %v7095_v23  ;;  %v12678_v23 = vld [vmem:[#allocation49_spill] sm:$0xff] }
 0x70d   :  { %v7097_v22 = vpop.permute.xlu1 %7096 }
 0x70e   :  { %v11955_v46 = vsel %vm7206_vm3, %v7199_v6, %v7097_v22  ;;  %v12008_v6 = vadd.f32 %v11913_v4, %v12678_v23 }
 0x723   :  { %v7107_v21 = vpop.permute.xlu0 %7106 }
 0x724   :  { %v11968_v1 = vsel %vm7206_vm3, %v7204_v50, %v7107_v21  ;;  %v12679_v50 = vld [vmem:[#allocation50_spill] sm:$0xff] }
 0x725   :  { %v7109_v10 = vpop.permute.xlu1 %7108  ;;  %v12013_v21 = vadd.f32 %v11913_v4, %v12679_v50  ;;  %v12682_v50 = vld [vmem:[#allocation14_spill] sm:$0xff] }
 0x726   :  { %v11973_v63 = vsel %vm7206_vm3, %v7205_v32, %v7109_v10 }
 0x77d   :  { %v7763_v20 = vpop.f32.mrb[64].mxu1 }
 0x77e   :  { %v6928_v2 = vadd.f32 %v7763_v20, %v11979_v40  ;;  %v6919_v7 = vpop.f32.mrb[65].mxu1  ;;  %v12680_v20 = vld [vmem:[#allocation46_spill] sm:$0xff] }
 0x77f   :  { %v7764_v60 = vpop.f32.mrb[66].mxu1  ;;  %v6920_v33 = vadd.f32 %v11979_v40, %v6919_v7  ;;  %v12020_v61 = vadd.f32 %v11913_v4, %v12680_v20  ;;  %v12681_v7 = vld [vmem:[#allocation57_spill] sm:$0xff] }
 0x780   :  { %v6984_v28 = vadd.f32 %v11981_v9, %v6928_v2  ;;  %v6931_v24 = vadd.f32 %v7764_v60, %v11979_v40  ;;  %v6922_v30 = vpop.f32.mrb[67].mxu1  ;;  %v12027_v60 = vadd.f32 %v11913_v4, %v12681_v7 }
 0x781   :  { %v6923_v37 = vadd.f32 %v11979_v40, %v6922_v30  ;;  %v6982_v34 = vadd.f32 %v11992_v13, %v6920_v33 }
 0x782   :  { %v6985_v41 = vadd.f32 %v11987_v36, %v6931_v24  ;;  %7146 = vrot.lane.b32.xlu0 %v6984_v28, %s7873_s11 }
 0x783   :  { %v6983_v56 = vadd.f32 %v11999_v5, %v6923_v37 }
 0x784   :  { %7148 = vrot.lane.b32.xlu1 %v6985_v41, %s7873_s11 }
 0x786   :  { %7142 = vrot.lane.b32.xlu0 %v6982_v34, %s7873_s11 }
 0x788   :  { %7144 = vrot.lane.b32.xlu1 %v6983_v56, %s7873_s11 }
 0x78c   :  { %v7767_v52 = vpop.f32.mrb[68].mxu1 }
 0x78d   :  { %v6944_v22 = vadd.f32 %v7767_v52, %v11979_v40  ;;  %v6935_v43 = vpop.f32.mrb[69].mxu1 }
 0x78e   :  { %v7768_v31 = vpop.f32.mrb[70].mxu1  ;;  %v6936_v10 = vadd.f32 %v11979_v40, %v6935_v43 }
 0x78f   :  { %v6988_v32 = vadd.f32 %v12008_v6, %v6944_v22  ;;  %v6947_v48 = vadd.f32 %v7768_v31, %v11979_v40  ;;  %v6938_v42 = vpop.f32.mrb[71].mxu1 }
 0x790   :  { %v6939_v2 = vadd.f32 %v11979_v40, %v6938_v42  ;;  %v6986_v0 = vadd.f32 %v12020_v61, %v6936_v10  ;;  %v12683_v42 = vld [vmem:[#allocation16_spill] sm:$0xff] }
 0x791   :  { %v6989_v18 = vadd.f32 %v12013_v21, %v6947_v48  ;;  %7154 = vrot.lane.b32.xlu0 %v6988_v32, %s7873_s11  ;;  %v12048_v32 = vadd.f32 %v11913_v4, %v12682_v50 }
 0x792   :  { %v6987_v28 = vadd.f32 %v12027_v60, %v6939_v2 }
 0x793   :  { %7156 = vrot.lane.b32.xlu1 %v6989_v18, %s7873_s11 }
 0x795   :  { %7150 = vrot.lane.b32.xlu0 %v6986_v0, %s7873_s11 }
 0x797   :  { %7152 = vrot.lane.b32.xlu1 %v6987_v28, %s7873_s11 }
 0x7b0   :  { %v7771_v33 = vpop.f32.mrb[72].mxu1 }
 0x7b1   :  { %v6960_v24 = vadd.f32 %v7771_v33, %v11979_v40  ;;  %v6951_v30 = vpop.f32.mrb[73].mxu1  ;;  %v7105_v33 = vpop.permute.xlu1 %7104 }
 0x7b2   :  { %v7772_v41 = vpop.f32.mrb[74].mxu1  ;;  %v6952_v27 = vadd.f32 %v11979_v40, %v6951_v30 }
 0x7b3   :  { %v6992_v37 = vadd.f32 %v11919_v58, %v6960_v24  ;;  %v6963_v34 = vadd.f32 %v7772_v41, %v11979_v40  ;;  %v6954_v56 = vpop.f32.mrb[75].mxu1 }
 0x7b4   :  { %v6955_v23 = vadd.f32 %v11979_v40, %v6954_v56  ;;  %v6990_v22 = vadd.f32 %v11933_v16, %v6952_v27  ;;  %v12053_v16 = vadd.f32 %v11913_v4, %v12683_v42  ;;  %v7103_v4 = vpop.permute.xlu0 %7102 }
 0x7b5   :  { %v6993_v52 = vadd.f32 %v11923_v26, %v6963_v34  ;;  %7162 = vrot.lane.b32.xlu0 %v6992_v37, %s7873_s11 }
 0x7b6   :  { %v6991_v43 = vadd.f32 %v11943_v3, %v6955_v23 }
 0x7b7   :  { %7164 = vrot.lane.b32.xlu1 %v6993_v52, %s7873_s11 }
 0x7b9   :  { %7158 = vrot.lane.b32.xlu0 %v6990_v22, %s7873_s11 }
 0x7bb   :  { %7160 = vrot.lane.b32.xlu1 %v6991_v43, %s7873_s11 }
 0x7c0   :  { %v7775_v58 = vpop.f32.mrb[76].mxu1 }
 0x7c1   :  { %v6967_v31 = vpop.f32.mrb[77].mxu1  ;;  %v6976_v3 = vadd.f32 %v7775_v58, %v11979_v40 }
 0x7c2   :  { %v6968_v26 = vadd.f32 %v11979_v40, %v6967_v31  ;;  %v7776_v10 = vpop.f32.mrb[78].mxu1 }
 0x7c3   :  { %v6970_v48 = vpop.f32.mrb[79].mxu1  ;;  %v6979_v2 = vadd.f32 %v7776_v10, %v11979_v40  ;;  %v6996_v0 = vadd.f32 %v11959_v38, %v6976_v3 }
 0x7c4   :  { %v6994_v20 = vadd.f32 %v12048_v32, %v6968_v26  ;;  %v6971_v18 = vadd.f32 %v11979_v40, %v6970_v48  ;;  %v7192_v40 = vsel %vm43_vm1, %v11981_v9, %v11793_v49  ;;  %v7190_v49 = vsel %vm43_vm1, %v11992_v13, %v11776_v15 }
 0x7c5   :  { %v6997_v28 = vadd.f32 %v11963_v25, %v6979_v2  ;;  %v7209_v24 = vsel %vm7206_vm3, %v7192_v40, %v11893_v55  ;;  %v7193_v25 = vsel %vm43_vm1, %v11987_v36, %v11808_v14  ;;  %v7207_v55 = vsel %vm7206_vm3, %v7190_v49, %v11897_v35 }
 0x7c6   :  { %v6995_v7 = vadd.f32 %v12053_v16, %v6971_v18  ;;  %7166 = vrot.lane.b32.xlu0 %v6994_v20, %s7873_s11  ;;  %v7210_v41 = vsel %vm7206_vm3, %v7193_v25, %v11895_v39  ;;  %v7191_v36 = vsel %vm43_vm1, %v11999_v5, %v11800_v45  ;;  %v7196_v35 = vsel %vm43_vm1, %v12008_v6, %v11817_v8 }
 0x7c7   :  { %v7208_v27 = vsel %vm7206_vm3, %v7191_v36, %v11899_v12  ;;  %v7213_v34 = vsel %vm7206_vm3, %v7196_v35, %v11901_v47  ;;  %v7197_v5 = vsel %vm43_vm1, %v12013_v21, %v11826_v51  ;;  %v7194_v8 = vsel %vm43_vm1, %v12020_v61, %v11835_v44 }
 0x7c8   :  { %7168 = vrot.lane.b32.xlu1 %v6995_v7, %s7873_s11  ;;  %v7214_v56 = vsel %vm7206_vm3, %v7197_v5, %v11903_v62  ;;  %v7211_v47 = vsel %vm7206_vm3, %v7194_v8, %v11911_v19  ;;  %v7195_v21 = vsel %vm43_vm1, %v12027_v60, %v11839_v59  ;;  %v7203_v26 = vsel %vm43_vm1, %v12053_v16, %v11890_v17 }
 0x7c9   :  { %v7212_v23 = vsel %vm7206_vm3, %v7195_v21, %v11915_v29  ;;  %v7220_v10 = vsel %vm7206_vm3, %v7203_v26, %v7105_v33 }
 0x7ca   :  { %7170 = vrot.lane.b32.xlu0 %v6996_v0, %s7873_s11 }
 0x7cc   :  { %7172 = vrot.lane.b32.xlu1 %v6997_v28, %s7873_s11 }
 0x7f4   :  { %v7147_v38 = vpop.permute.xlu0 %7146 }
 0x7f5   :  { %v7226_v30 = vsel %vm7223_vm4, %v7209_v24, %v7147_v38 }
 0x7f6   :  { %7243 = vst.msk [vmem:[#allocation3 + $0x10] sm:$0xff] %vm7240_vm5, %v7226_v30  ;;  %v7149_v37 = vpop.permute.xlu1 %7148 }
 0x7f7   :  { %v7227_v9 = vsel %vm7223_vm4, %v7210_v41, %v7149_v37 }
 0x7f8   :  { %7244 = vst.msk [vmem:[#allocation3 + $0x18] sm:$0xff] %vm7240_vm5, %v7227_v9  ;;  %v7143_v14 = vpop.permute.xlu0 %7142 }
 0x7f9   :  { %v7224_v39 = vsel %vm7223_vm4, %v7207_v55, %v7143_v14 }
 0x7fa   :  { %7241 = vst.msk [vmem:[#allocation3] sm:$0xff] %vm7240_vm5, %v7224_v39  ;;  %v7145_v15 = vpop.permute.xlu1 %7144 }
 0x7fb   :  { %v7225_v13 = vsel %vm7223_vm4, %v7208_v27, %v7145_v15 }
 0x7fc   :  { %7242 = vst.msk [vmem:[#allocation3 + $0x8] sm:$0xff] %vm7240_vm5, %v7225_v13 }
 0x803   :  { %v7155_v45 = vpop.permute.xlu0 %7154 }
 0x804   :  { %v7230_v12 = vsel %vm7223_vm4, %v7213_v34, %v7155_v45 }
 0x805   :  { %7247 = vst.msk [vmem:[#allocation3 + $0x30] sm:$0xff] %vm7240_vm5, %v7230_v12  ;;  %v7157_v52 = vpop.permute.xlu1 %7156 }
 0x806   :  { %v7231_v6 = vsel %vm7223_vm4, %v7214_v56, %v7157_v52 }
 0x807   :  { %7248 = vst.msk [vmem:[#allocation3 + $0x38] sm:$0xff] %vm7240_vm5, %v7231_v6  ;;  %v7151_v51 = vpop.permute.xlu0 %7150 }
 0x808   :  { %v7228_v62 = vsel %vm7223_vm4, %v7211_v47, %v7151_v51 }
 0x809   :  { %7245 = vst.msk [vmem:[#allocation3 + $0x20] sm:$0xff] %vm7240_vm5, %v7228_v62  ;;  %v7153_v44 = vpop.permute.xlu1 %7152 }
 0x80a   :  { %v7229_v61 = vsel %vm7223_vm4, %v7212_v23, %v7153_v44 }
 0x80b   :  { %7246 = vst.msk [vmem:[#allocation3 + $0x28] sm:$0xff] %vm7240_vm5, %v7229_v61 }
 0x827   :  { %v7163_v19 = vpop.permute.xlu0 %7162 }
 0x828   :  { %v7234_v22 = vsel %vm7223_vm4, %v11929_v11, %v7163_v19  ;;  %v7202_v11 = vsel %vm43_vm1, %v12048_v32, %v11888_v54 }
 0x829   :  { %7251 = vst.msk [vmem:[#allocation3 + $0x50] sm:$0xff] %vm7240_vm5, %v7234_v22  ;;  %v7165_v43 = vpop.permute.xlu1 %7164 }
 0x82a   :  { %v7235_v59 = vsel %vm7223_vm4, %v11939_v53, %v7165_v43  ;;  %v7219_v53 = vsel %vm7206_vm3, %v7202_v11, %v7103_v4 }
 0x82b   :  { %7252 = vst.msk [vmem:[#allocation3 + $0x58] sm:$0xff] %vm7240_vm5, %v7235_v59  ;;  %v7159_v29 = vpop.permute.xlu0 %7158 }
 0x82c   :  { %v7232_v60 = vsel %vm7223_vm4, %v11949_v57, %v7159_v29 }
 0x82d   :  { %7249 = vst.msk [vmem:[#allocation3 + $0x40] sm:$0xff] %vm7240_vm5, %v7232_v60  ;;  %v7161_v58 = vpop.permute.xlu1 %7160 }
 0x82e   :  { %v7233_v31 = vsel %vm7223_vm4, %v11955_v46, %v7161_v58 }
 0x82f   :  { %7250 = vst.msk [vmem:[#allocation3 + $0x48] sm:$0xff] %vm7240_vm5, %v7233_v31 }
 0x838   :  { %v7167_v50 = vpop.permute.xlu0 %7166 }
 0x839   :  { %v7236_v57 = vsel %vm7223_vm4, %v7219_v53, %v7167_v50 }
 0x83a   :  { %7253 = vst.msk [vmem:[#allocation3 + $0x60] sm:$0xff] %vm7240_vm5, %v7236_v57  ;;  %v7169_v46 = vpop.permute.xlu1 %7168 }
 0x83b   :  { %v7237_v48 = vsel %vm7223_vm4, %v7220_v10, %v7169_v46 }
 0x83c   :  { %7254 = vst.msk [vmem:[#allocation3 + $0x68] sm:$0xff] %vm7240_vm5, %v7237_v48  ;;  %v7171_v54 = vpop.permute.xlu0 %7170 }
 0x83d   :  { %v7238_v32 = vsel %vm7223_vm4, %v11968_v1, %v7171_v54 }
 0x83e   :  { %7255 = vst.msk [vmem:[#allocation3 + $0x70] sm:$0xff] %vm7240_vm5, %v7238_v32  ;;  %v7173_v17 = vpop.permute.xlu1 %7172 }
 0x83f   :  { %v7239_v42 = vsel %vm7223_vm4, %v11973_v63, %v7173_v17 }
 0x840   :  { %7256 = vst.msk [vmem:[#allocation3 + $0x78] sm:$0xff] %vm7240_vm5, %v7239_v42 }
 0x841   :  { %7857 = shalt.err (!%p7854_p4)
}
 0x842   :  { %s7858_s18 = scalar_lea.hbm %s12177_s12, 2048 }
 0x843   :  { %p7859_p5 = scmp.ne.s32.totalorder %s12177_s12, %s7858_s18  ;;  %p7862_p6 = scmp.lt.u32.totalorder %s7858_s18, %s12177_s12 }
 0x845   :  { %p7864_p7 = pnand %p7862_p6, %p7859_p5 }
 0x847   :  { %7867 = shalt.err (!%p7864_p7)
}
 0x848   :  { %s7875_s3 = smov 128  }
 0x849   :  { %7268 = dma.vmem_to_hbm [thread:$0]  %s7263_s14, 2048, %s12177_s12, [#allocation4], %s7875_s3, %s7875_s3, %s7871_s7  }
 0x84a   :  { %7868 = dma.done.wait [#allocation4], 2048  }
 0x84b   :  { %7869 = vsyncadd [#allocation4], 4294965248 }
 0x84c   :  { %7272 = vsyncpa [#allocation4], 1 }

</bundles_post_ra>
